<compile_context>
chip_gen: v6e
topology: v6e:2x2x1
jax: 0.10.0
libtpu: 0.0.40
codegen_flags: <defaults>
</compile_context>

<pallas_src>
import functools
import numpy as np
import jax
import jax.numpy as jnp
from jax.experimental import pallas as pl
from jax.experimental.pallas import tpu as pltpu


def rcblock_kernel(x_ref, h0_ref, wi_ref, bi_ref, wh_ref, bhn_ref,
                   wc_ref, bc_ref, gamma_ref, beta_ref, p_ref, sel_ref,
                   out_ref, gif_scr, gib_scr, rp_scr, rb_scr,
                   *, nf, bsp, cp, ks, di, pad, eps, neg_slope):
    f32 = jnp.float32
    m = cp                      # padded (lane-dense) channel width, multiple of 128
    rows = nf * bsp

    # ---- Phase 1: hoist ALL GRU input projections out of the recurrence (two matmuls) ----
    # Separate fwd/bwd buffers so each direction's gate slab starts at lane 0 and every gate
    # boundary (m, 2m) is a multiple of 128 lanes.  bi already contains the time-invariant
    # r/z recurrent biases, so the loop only adds the n-gate recurrent bias per step.
    x_in = x_ref[...]
    gif_scr[...] = jnp.dot(x_in, wi_ref[0], preferred_element_type=f32) + bi_ref[0]
    gib_scr[...] = jnp.dot(x_in, wi_ref[1], preferred_element_type=f32) + bi_ref[1]

    bhn_f = jnp.broadcast_to(bhn_ref[0], (bsp, m))     # hoisted broadcasts (not re-emitted per step)
    bhn_b = jnp.broadcast_to(bhn_ref[1], (bsp, m))

    def gru_step(gi, h, wh, bhn):
        # PyTorch gate order (r, z, n); gi = Wi*x + bi (+ bh_r / bh_z folded in).
        gh = jnp.dot(h, wh, preferred_element_type=f32)            # (bsp, 3m)
        rz = jax.nn.sigmoid(gi[:, :2 * m] + gh[:, :2 * m])         # lane-aligned slabs
        r_g, z_g = rz[:, :m], rz[:, m:]
        n_g = jnp.tanh(gi[:, 2 * m:] + r_g * (gh[:, 2 * m:] + bhn))
        return n_g + z_g * (h - n_g)                               # (1-z)*n + z*h

    # ---- Phase 2: bidirectional recurrence, fwd & bwd chains interleaved, unrolled ----
    # Every slice below starts at a multiple of 8 sublanes and spans full 128-lane tiles
    # (bsp == 8k, m == 128k): plain full-tile vld/vst on the serial critical path.
    h_f = h0_ref[0]                                    # (bsp, m)
    h_b = h0_ref[1]
    for i in range(nf):
        tb = nf - 1 - i
        h_f = gru_step(gif_scr[i * bsp:(i + 1) * bsp, :], h_f, wh_ref[0], bhn_f)
        h_b = gru_step(gib_scr[tb * bsp:(tb + 1) * bsp, :], h_b, wh_ref[1], bhn_b)
        rp_scr[(pad + i) * bsp:(pad + i + 1) * bsp, :] = h_f       # fwd outputs (haloed buffer)
        rb_scr[tb * bsp:(tb + 1) * bsp, :] = h_b                   # bwd outputs

    # r = fwd + bwd: keep in registers for the residual, in rp_scr (with halo) for the conv.
    r2 = rp_scr[pad * bsp:(pad + nf) * bsp, :] + rb_scr[...]
    rp_scr[pad * bsp:(pad + nf) * bsp, :] = r2
    if pad > 0:                                        # only the 2*pad halo blocks are zeroed
        zhalo = jnp.zeros((pad * bsp, m), f32)
        rp_scr[0:pad * bsp, :] = zhalo
        rp_scr[(pad + nf) * bsp:(pad + nf + pad) * bsp, :] = zhalo

    # ---- Phase 3: grouped dilated Conv1d as ks accumulating matmuls over shifted taps ----
    # (no lane concat: saves (ks-1)*rows*m*4 B of VMEM and a full activation copy)
    y = jnp.dot(rp_scr[0:rows, :], wc_ref[0], preferred_element_type=f32)
    for k in range(1, ks):
        y = y + jnp.dot(rp_scr[k * di * bsp:k * di * bsp + rows, :], wc_ref[k],
                        preferred_element_type=f32)
    y = y + bc_ref[...]

    # ---- Phase 4: GroupNorm (centered two-pass, numerically safe) + LeakyReLU ----
    def bcast_rows(v):   # (bsp, m) per-batch stats -> (rows, m);  row = t*bsp + b
        return jnp.broadcast_to(v[None], (nf, bsp, m)).reshape(rows, m)

    sel = sel_ref[...]                                             # (bsp, rows) row selector
    mean_c = jnp.dot(jnp.dot(sel, y, preferred_element_type=f32),
                     p_ref[...], preferred_element_type=f32)       # per-(batch, group) mean
    yc = y - bcast_rows(mean_c)                                    # center first -> stable var
    var_c = jnp.dot(jnp.dot(sel, yc * yc, preferred_element_type=f32),
                    p_ref[...], preferred_element_type=f32)
    scale_c = jax.lax.rsqrt(var_c + eps) * gamma_ref[...]          # (bsp, m)
    c_aff = yc * bcast_rows(scale_c) + beta_ref[...]
    c_act = jnp.where(c_aff >= 0, c_aff, neg_slope * c_aff)        # LeakyReLU

    # ---- residual; single contiguous lane-dense store (out aliases the x buffer) ----
    out_ref[...] = x_ref[...] + r2 + c_act


def _round_up(v, k):
    return ((v + k - 1) // k) * k


@functools.partial(jax.jit, static_argnames=('ks', 'dilation', 'num_groups'))
def rcblock_forward(x, params, *, ks, dilation, num_groups):
    """x: (bs, mfd, nf) float32 (PyTorch NCW layout). Returns (bs, mfd, nf)."""
    bs, mfd, nf = x.shape
    assert (ks - 1) * dilation % 2 == 0, "Conv1d 'same' padding must be symmetric"
    pad = (ks - 1) * dilation // 2
    cpg = mfd // num_groups
    f32 = jnp.float32

    bsp = _round_up(bs, 8)      # sublane-aligned per-timestep batch slab
    cp = _round_up(mfd, 128)    # lane-dense channel width (zero-padded lanes are free on MXU)
    rows = nf * bsp

    Wi, Wh, bi, bh = params['Wi'], params['Wh'], params['bi'], params['bh']

    def pad_w(w):               # (mfd, mfd) -> (cp, cp)
        return jnp.zeros((cp, cp), f32).at[:mfd, :mfd].set(w)

    def pad_row(b):             # (1, mfd) -> (1, cp)
        return jnp.zeros((1, cp), f32).at[:, :mfd].set(b)

    # Per-direction GRU weights with gates concatenated (r|z|n); the time-invariant r/z
    # recurrent biases are folded into the hoisted input bias.
    wi2 = jnp.stack([jnp.concatenate([pad_w(Wi[3 * d + g]) for g in range(3)], axis=1)
                     for d in range(2)])                                    # (2, cp, 3*cp)
    wh2 = jnp.stack([jnp.concatenate([pad_w(Wh[3 * d + g]) for g in range(3)], axis=1)
                     for d in range(2)])                                    # (2, cp, 3*cp)
    bi2 = jnp.stack([jnp.concatenate([pad_row(bi[3 * d + 0] + bh[3 * d + 0]),
                                      pad_row(bi[3 * d + 1] + bh[3 * d + 1]),
                                      pad_row(bi[3 * d + 2])], axis=1)
                     for d in range(2)])                                    # (2, 1, 3*cp)
    bhn2 = jnp.stack([pad_row(bh[3 * d + 2]) for d in range(2)])            # (2, 1, cp)

    # Grouped conv weight -> per-tap block-diagonal (cp, cp) matrices; the dilated conv then
    # becomes ks accumulating (rows, cp) x (cp, cp) matmuls in the kernel.
    cw = params['conv_w']                                                   # (mfd, cpg, ks)
    wc = jnp.zeros((ks, cp, cp), f32)
    for g in range(num_groups):
        blk = jnp.transpose(cw[g * cpg:(g + 1) * cpg], (2, 1, 0))           # (ks, in_pg, out_pg)
        wc = wc.at[:, g * cpg:(g + 1) * cpg, g * cpg:(g + 1) * cpg].set(blk)

    bc = pad_row(params['conv_b'][None, :])
    gamma = pad_row(params['gamma'][None, :])
    beta = pad_row(params['beta'][None, :])

    # GroupNorm helpers: channel-group mean projector (includes 1/(nf*cpg)) and per-batch row
    # selector for the row = t*bsp + b layout.  Padded channels / padded batch rows select
    # and project to zero, so they never contaminate the statistics.
    grp = np.arange(mfd) // cpg
    p_np = np.zeros((cp, cp), np.float32)
    p_np[:mfd, :mfd] = (grp[:, None] == grp[None, :]).astype(np.float32) / float(nf * cpg)
    sel_np = np.zeros((bsp, rows), np.float32)
    for b in range(bs):
        sel_np[b, np.arange(nf) * bsp + b] = 1.0
    p_mat = jnp.asarray(p_np)
    sel_m = jnp.asarray(sel_np)

    h0 = jnp.zeros((2, bsp, cp), f32).at[:, :bs, :mfd].set(params['h0'].astype(f32))

    x3 = jnp.transpose(x, (2, 0, 1)).astype(f32)                            # (nf, bs, mfd)
    x2d = jnp.pad(x3, ((0, 0), (0, bsp - bs), (0, cp - mfd))).reshape(rows, cp)

    kernel = functools.partial(rcblock_kernel, nf=nf, bsp=bsp, cp=cp,
                               ks=ks, di=dilation, pad=pad, eps=1e-5, neg_slope=0.01)
    vmem = pl.BlockSpec(memory_space=pltpu.MemorySpace.VMEM)
    out2d = pl.pallas_call(
        kernel,
        out_shape=jax.ShapeDtypeStruct((rows, cp), f32),
        in_specs=[vmem] * 12,
        out_specs=vmem,
        scratch_shapes=[
            pltpu.VMEM((rows, 3 * cp), f32),              # hoisted fwd gate inputs
            pltpu.VMEM((rows, 3 * cp), f32),              # hoisted bwd gate inputs
            pltpu.VMEM(((nf + 2 * pad) * bsp, cp), f32),  # GRU fwd / fwd+bwd output + conv halo
            pltpu.VMEM((rows, cp), f32),                  # backward-direction outputs
        ],
        input_output_aliases={0: 0},                      # residual output reuses the x buffer
        compiler_params=pltpu.CompilerParams(vmem_limit_bytes=64 * 1024 * 1024),
        # TODO(synk): on v7x (2 TensorCores, 64 MiB VMEM) add a 2-way "parallel" batch grid and
        # time-tile phases 1/3/4 once nf*bsp*cp outgrows VMEM; on 1-TC v5e/v6e the gridless,
        # fully VMEM-resident single call is the right structure (no per-step grid overhead).
    )(x2d, h0, wi2, bi2, wh2, bhn2, wc, bc, gamma, beta, p_mat, sel_m)

    out = out2d.reshape(nf, bsp, cp)[:, :bs, :mfd]
    return jnp.transpose(out, (1, 2, 0))


# -------------------------- pure-JAX reference (for verification) --------------------------
def rcblock_reference(x, params, *, ks, dilation, num_groups):
    bs, mfd, nf = x.shape
    hp = jax.lax.Precision.HIGHEST
    Wi, Wh, bi, bh = params['Wi'], params['Wh'], params['bi'], params['bh']

    def step(x_t, h, d):
        b = 3 * d
        r = jax.nn.sigmoid(jnp.dot(x_t, Wi[b + 0], precision=hp) + bi[b + 0, 0]
                           + jnp.dot(h, Wh[b + 0], precision=hp) + bh[b + 0, 0])
        z = jax.nn.sigmoid(jnp.dot(x_t, Wi[b + 1], precision=hp) + bi[b + 1, 0]
                           + jnp.dot(h, Wh[b + 1], precision=hp) + bh[b + 1, 0])
        n = jnp.tanh(jnp.dot(x_t, Wi[b + 2], precision=hp) + bi[b + 2, 0]
                     + r * (jnp.dot(h, Wh[b + 2], precision=hp) + bh[b + 2, 0]))
        return (1.0 - z) * n + z * h

    h = params['h0'][0]
    fwd = []
    for t in range(nf):
        h = step(x[:, :, t], h, 0)
        fwd.append(h)
    h = params['h0'][1]
    bwd = [None] * nf
    for t in range(nf - 1, -1, -1):
        h = step(x[:, :, t], h, 1)
        bwd[t] = h
    r = jnp.stack([f + b_ for f, b_ in zip(fwd, bwd)], axis=2)   # (bs, mfd, nf)

    pad = (ks - 1) * dilation // 2
    c = jax.lax.conv_general_dilated(
        r, params['conv_w'], window_strides=(1,), padding=[(pad, pad)],
        rhs_dilation=(dilation,), feature_group_count=num_groups,
        dimension_numbers=('NCH', 'OIH', 'NCH'), precision=hp)
    c = c + params['conv_b'][None, :, None]

    cpg = mfd // num_groups
    cg = c.reshape(bs, num_groups, cpg, nf)
    mean = cg.mean(axis=(2, 3), keepdims=True)
    var = cg.var(axis=(2, 3), keepdims=True)
    cn = ((cg - mean) / jnp.sqrt(var + 1e-5)).reshape(bs, mfd, nf)
    cn = cn * params['gamma'][None, :, None] + params['beta'][None, :, None]
    c_act = jnp.where(cn >= 0, cn, 0.01 * cn)
    return x + r + c_act


if __name__ == "__main__":
    bs, mfd, nf = 2, 32, 16
    ks, dilation, num_groups = 3, 1, 4
    cpg = mfd // num_groups

    key = jax.random.PRNGKey(0)
    k = jax.random.split(key, 10)
    s = 1.0 / np.sqrt(mfd)
    params = {
        # GRU weights per direction+gate, pre-transposed for "x @ W":
        # index order [fwd_r, fwd_z, fwd_n, bwd_r, bwd_z, bwd_n]
        'Wi': jax.random.uniform(k[0], (6, mfd, mfd), jnp.float32, -s, s),
        'Wh': jax.random.uniform(k[1], (6, mfd, mfd), jnp.float32, -s, s),
        'bi': jax.random.uniform(k[2], (6, 1, mfd), jnp.float32, -s, s),
        'bh': jax.random.uniform(k[3], (6, 1, mfd), jnp.float32, -s, s),
        'conv_w': jax.random.uniform(k[4], (mfd, cpg, ks), jnp.float32, -0.3, 0.3),
        'conv_b': jax.random.uniform(k[5], (mfd,), jnp.float32, -0.1, 0.1),
        'gamma': 1.0 + 0.1 * jax.random.normal(k[6], (mfd,), jnp.float32),
        'beta': 0.1 * jax.random.normal(k[7], (mfd,), jnp.float32),
        # PyTorch samples init_hidden ~ N(0,1) per forward; generated deterministically here.
        'h0': jax.random.normal(k[8], (2, bs, mfd), jnp.float32),
    }
    x = jax.random.normal(k[9], (bs, mfd, nf), jnp.float32)

    out = rcblock_forward(x, params, ks=ks, dilation=dilation, num_groups=num_groups)
    out = jax.block_until_ready(out)

    ref = rcblock_reference(x, params, ks=ks, dilation=dilation, num_groups=num_groups)
    err = float(jnp.max(jnp.abs(out - ref)))
    assert out.shape == (bs, mfd, nf)
    assert np.isfinite(np.asarray(out)).all()
    # Tolerance covers TPU MXU default-precision (bf16-pass) f32 matmuls inside the kernel vs
    # the Precision.HIGHEST pure-JAX reference; layout/logic bugs show up orders of magnitude
    # larger than this bound.
    assert err < 5e-3, f"max abs err {err}"
    print("KERNEL_OK")
</pallas_src>

<mosaic_0001>
module attributes {stable_mosaic.version = 11 : i64} {
  func.func @rcblock_kernel(%arg0: memref<128x128xf32, #tpu.memory_space<vmem>>, %arg1: memref<2x8x128xf32, #tpu.memory_space<vmem>>, %arg2: memref<2x128x384xf32, #tpu.memory_space<vmem>>, %arg3: memref<2x1x384xf32, #tpu.memory_space<vmem>>, %arg4: memref<2x128x384xf32, #tpu.memory_space<vmem>>, %arg5: memref<2x1x128xf32, #tpu.memory_space<vmem>>, %arg6: memref<3x128x128xf32, #tpu.memory_space<vmem>>, %arg7: memref<1x128xf32, #tpu.memory_space<vmem>>, %arg8: memref<1x128xf32, #tpu.memory_space<vmem>>, %arg9: memref<1x128xf32, #tpu.memory_space<vmem>>, %arg10: memref<128x128xf32, #tpu.memory_space<vmem>>, %arg11: memref<8x128xf32, #tpu.memory_space<vmem>>, %arg12: memref<128x128xf32, #tpu.memory_space<vmem>>, %arg13: memref<128x384xf32, #tpu.memory_space<vmem>>, %arg14: memref<128x384xf32, #tpu.memory_space<vmem>>, %arg15: memref<144x128xf32, #tpu.memory_space<vmem>>, %arg16: memref<128x128xf32, #tpu.memory_space<vmem>>) attributes {dimension_semantics = [], scalar_prefetch = 0 : i64, scratch_operands = 4 : i64, tpu.core_type = #tpu.core_type<tc>} {
    %c0 = arith.constant 0 : index
    %c0_0 = arith.constant 0 : index
    %0 = vector.load %arg0[%c0, %c0_0] : memref<128x128xf32, #tpu.memory_space<vmem>>, vector<128x128xf32>
    %c0_1 = arith.constant 0 : index
    %c0_2 = arith.constant 0 : index
    %c0_3 = arith.constant 0 : index
    %1 = vector.load %arg2[%c0_1, %c0_2, %c0_3] : memref<2x128x384xf32, #tpu.memory_space<vmem>>, vector<1x128x384xf32>
    %2 = vector.shape_cast %1 : vector<1x128x384xf32> to vector<128x384xf32>
    %cst = arith.constant dense<0.000000e+00> : vector<128x384xf32>
    %3 = tpu.matmul %0, %2, %cst {dimension_numbers = #tpu.dot_dimension_numbers<[1], [0], [0], [1], [0, 0, 1, 1], [], []>} : vector<128x128xf32>, vector<128x384xf32>, vector<128x384xf32> -> vector<128x384xf32>
    %c0_4 = arith.constant 0 : index
    %c0_5 = arith.constant 0 : index
    %c0_6 = arith.constant 0 : index
    %4 = vector.load %arg3[%c0_4, %c0_5, %c0_6] : memref<2x1x384xf32, #tpu.memory_space<vmem>>, vector<1x1x384xf32>
    %5 = vector.shape_cast %4 : vector<1x1x384xf32> to vector<1x384xf32>
    %6 = vector.broadcast %5 : vector<1x384xf32> to vector<128x384xf32>
    %7 = arith.addf %3, %6 : vector<128x384xf32>
    %c0_7 = arith.constant 0 : index
    %c0_8 = arith.constant 0 : index
    %8 = vector.load %arg13[%c0_7, %c0_8] : memref<128x384xf32, #tpu.memory_space<vmem>>, vector<128x384xf32>
    tpu.vector_store %arg13[%c0_7, %c0_8], %7 {strides = array<i32>} : memref<128x384xf32, #tpu.memory_space<vmem>>, vector<128x384xf32>,
    %c1 = arith.constant 1 : index
    %c0_9 = arith.constant 0 : index
    %c0_10 = arith.constant 0 : index
    %9 = vector.load %arg2[%c1, %c0_9, %c0_10] : memref<2x128x384xf32, #tpu.memory_space<vmem>>, vector<1x128x384xf32>
    %10 = vector.shape_cast %9 : vector<1x128x384xf32> to vector<128x384xf32>
    %cst_11 = arith.constant dense<0.000000e+00> : vector<128x384xf32>
    %11 = tpu.matmul %0, %10, %cst_11 {dimension_numbers = #tpu.dot_dimension_numbers<[1], [0], [0], [1], [0, 0, 1, 1], [], []>} : vector<128x128xf32>, vector<128x384xf32>, vector<128x384xf32> -> vector<128x384xf32>
    %c1_12 = arith.constant 1 : index
    %c0_13 = arith.constant 0 : index
    %c0_14 = arith.constant 0 : index
    %12 = vector.load %arg3[%c1_12, %c0_13, %c0_14] : memref<2x1x384xf32, #tpu.memory_space<vmem>>, vector<1x1x384xf32>
    %13 = vector.shape_cast %12 : vector<1x1x384xf32> to vector<1x384xf32>
    %14 = vector.broadcast %13 : vector<1x384xf32> to vector<128x384xf32>
    %15 = arith.addf %11, %14 : vector<128x384xf32>
    %c0_15 = arith.constant 0 : index
    %c0_16 = arith.constant 0 : index
    %16 = vector.load %arg14[%c0_15, %c0_16] : memref<128x384xf32, #tpu.memory_space<vmem>>, vector<128x384xf32>
    tpu.vector_store %arg14[%c0_15, %c0_16], %15 {strides = array<i32>} : memref<128x384xf32, #tpu.memory_space<vmem>>, vector<128x384xf32>,
    %c0_17 = arith.constant 0 : index
    %c0_18 = arith.constant 0 : index
    %c0_19 = arith.constant 0 : index
    %17 = vector.load %arg5[%c0_17, %c0_18, %c0_19] : memref<2x1x128xf32, #tpu.memory_space<vmem>>, vector<1x1x128xf32>
    %18 = vector.shape_cast %17 : vector<1x1x128xf32> to vector<1x128xf32>
    %19 = vector.shape_cast %18 : vector<1x128xf32> to vector<1x128xf32>
    %20 = vector.broadcast %19 : vector<1x128xf32> to vector<8x128xf32>
    %c1_20 = arith.constant 1 : index
    %c0_21 = arith.constant 0 : index
    %c0_22 = arith.constant 0 : index
    %21 = vector.load %arg5[%c1_20, %c0_21, %c0_22] : memref<2x1x128xf32, #tpu.memory_space<vmem>>, vector<1x1x128xf32>
    %22 = vector.shape_cast %21 : vector<1x1x128xf32> to vector<1x128xf32>
    %23 = vector.shape_cast %22 : vector<1x128xf32> to vector<1x128xf32>
    %24 = vector.broadcast %23 : vector<1x128xf32> to vector<8x128xf32>
    %c0_23 = arith.constant 0 : index
    %c0_24 = arith.constant 0 : index
    %c0_25 = arith.constant 0 : index
    %25 = vector.load %arg1[%c0_23, %c0_24, %c0_25] : memref<2x8x128xf32, #tpu.memory_space<vmem>>, vector<1x8x128xf32>
    %26 = vector.shape_cast %25 : vector<1x8x128xf32> to vector<8x128xf32>
    %c1_26 = arith.constant 1 : index
    %c0_27 = arith.constant 0 : index
    %c0_28 = arith.constant 0 : index
    %27 = vector.load %arg1[%c1_26, %c0_27, %c0_28] : memref<2x8x128xf32, #tpu.memory_space<vmem>>, vector<1x8x128xf32>
    %28 = vector.shape_cast %27 : vector<1x8x128xf32> to vector<8x128xf32>
    %c0_29 = arith.constant 0 : index
    %c0_30 = arith.constant 0 : index
    %29 = vector.load %arg13[%c0_29, %c0_30] : memref<128x384xf32, #tpu.memory_space<vmem>>, vector<8x384xf32>
    %c0_31 = arith.constant 0 : index
    %c0_32 = arith.constant 0 : index
    %c0_33 = arith.constant 0 : index
    %30 = vector.load %arg4[%c0_31, %c0_32, %c0_33] : memref<2x128x384xf32, #tpu.memory_space<vmem>>, vector<1x128x384xf32>
    %31 = vector.shape_cast %30 : vector<1x128x384xf32> to vector<128x384xf32>
    %cst_34 = arith.constant dense<0.000000e+00> : vector<8x384xf32>
    %32 = tpu.matmul %26, %31, %cst_34 {dimension_numbers = #tpu.dot_dimension_numbers<[1], [0], [0], [1], [0, 0, 1, 1], [], []>} : vector<8x128xf32>, vector<128x384xf32>, vector<8x384xf32> -> vector<8x384xf32>
    %33 = vector.extract_strided_slice %29 {offsets = [0, 0], sizes = [8, 256], strides = [1, 1]} : vector<8x384xf32> to vector<8x256xf32>
    %34 = vector.extract_strided_slice %32 {offsets = [0, 0], sizes = [8, 256], strides = [1, 1]} : vector<8x384xf32> to vector<8x256xf32>
    %35 = arith.addf %33, %34 : vector<8x256xf32>
    %36 = arith.negf %35 : vector<8x256xf32>
    %37 = math.exp %36 : vector<8x256xf32>
    %cst_35 = arith.constant 1.000000e+00 : f32
    %38 = vector.broadcast %cst_35 : f32 to vector<8x256xf32>
    %39 = arith.addf %38, %37 : vector<8x256xf32>
    %40 = arith.divf %38, %39 : vector<8x256xf32>
    %41 = vector.extract_strided_slice %40 {offsets = [0, 0], sizes = [8, 128], strides = [1, 1]} : vector<8x256xf32> to vector<8x128xf32>
    %42 = vector.extract_strided_slice %40 {offsets = [0, 128], sizes = [8, 128], strides = [1, 1]} : vector<8x256xf32> to vector<8x128xf32>
    %43 = vector.extract_strided_slice %29 {offsets = [0, 256], sizes = [8, 128], strides = [1, 1]} : vector<8x384xf32> to vector<8x128xf32>
    %44 = vector.extract_strided_slice %32 {offsets = [0, 256], sizes = [8, 128], strides = [1, 1]} : vector<8x384xf32> to vector<8x128xf32>
    %45 = arith.addf %44, %20 : vector<8x128xf32>
    %46 = arith.mulf %41, %45 : vector<8x128xf32>
    %47 = arith.addf %43, %46 : vector<8x128xf32>
    %48 = math.tanh %47 : vector<8x128xf32>
    %49 = arith.subf %26, %48 : vector<8x128xf32>
    %50 = arith.mulf %42, %49 : vector<8x128xf32>
    %51 = arith.addf %48, %50 : vector<8x128xf32>
    %c120 = arith.constant 120 : index
    %c0_36 = arith.constant 0 : index
    %52 = vector.load %arg14[%c120, %c0_36] : memref<128x384xf32, #tpu.memory_space<vmem>>, vector<8x384xf32>
    %c1_37 = arith.constant 1 : index
    %c0_38 = arith.constant 0 : index
    %c0_39 = arith.constant 0 : index
    %53 = vector.load %arg4[%c1_37, %c0_38, %c0_39] : memref<2x128x384xf32, #tpu.memory_space<vmem>>, vector<1x128x384xf32>
    %54 = vector.shape_cast %53 : vector<1x128x384xf32> to vector<128x384xf32>
    %cst_40 = arith.constant dense<0.000000e+00> : vector<8x384xf32>
    %55 = tpu.matmul %28, %54, %cst_40 {dimension_numbers = #tpu.dot_dimension_numbers<[1], [0], [0], [1], [0, 0, 1, 1], [], []>} : vector<8x128xf32>, vector<128x384xf32>, vector<8x384xf32> -> vector<8x384xf32>
    %56 = vector.extract_strided_slice %52 {offsets = [0, 0], sizes = [8, 256], strides = [1, 1]} : vector<8x384xf32> to vector<8x256xf32>
    %57 = vector.extract_strided_slice %55 {offsets = [0, 0], sizes = [8, 256], strides = [1, 1]} : vector<8x384xf32> to vector<8x256xf32>
    %58 = arith.addf %56, %57 : vector<8x256xf32>
    %59 = arith.negf %58 : vector<8x256xf32>
    %60 = math.exp %59 : vector<8x256xf32>
    %cst_41 = arith.constant 1.000000e+00 : f32
    %61 = vector.broadcast %cst_41 : f32 to vector<8x256xf32>
    %62 = arith.addf %61, %60 : vector<8x256xf32>
    %63 = arith.divf %61, %62 : vector<8x256xf32>
    %64 = vector.extract_strided_slice %63 {offsets = [0, 0], sizes = [8, 128], strides = [1, 1]} : vector<8x256xf32> to vector<8x128xf32>
    %65 = vector.extract_strided_slice %63 {offsets = [0, 128], sizes = [8, 128], strides = [1, 1]} : vector<8x256xf32> to vector<8x128xf32>
    %66 = vector.extract_strided_slice %52 {offsets = [0, 256], sizes = [8, 128], strides = [1, 1]} : vector<8x384xf32> to vector<8x128xf32>
    %67 = vector.extract_strided_slice %55 {offsets = [0, 256], sizes = [8, 128], strides = [1, 1]} : vector<8x384xf32> to vector<8x128xf32>
    %68 = arith.addf %67, %24 : vector<8x128xf32>
    %69 = arith.mulf %64, %68 : vector<8x128xf32>
    %70 = arith.addf %66, %69 : vector<8x128xf32>
    %71 = math.tanh %70 : vector<8x128xf32>
    %72 = arith.subf %28, %71 : vector<8x128xf32>
    %73 = arith.mulf %65, %72 : vector<8x128xf32>
    %74 = arith.addf %71, %73 : vector<8x128xf32>
    %c8 = arith.constant 8 : index
    %c0_42 = arith.constant 0 : index
    %75 = vector.load %arg15[%c8, %c0_42] : memref<144x128xf32, #tpu.memory_space<vmem>>, vector<8x128xf32>
    tpu.vector_store %arg15[%c8, %c0_42], %51 {strides = array<i32>} : memref<144x128xf32, #tpu.memory_space<vmem>>, vector<8x128xf32>,
    %c120_43 = arith.constant 120 : index
    %c0_44 = arith.constant 0 : index
    %76 = vector.load %arg16[%c120_43, %c0_44] : memref<128x128xf32, #tpu.memory_space<vmem>>, vector<8x128xf32>
    tpu.vector_store %arg16[%c120_43, %c0_44], %74 {strides = array<i32>} : memref<128x128xf32, #tpu.memory_space<vmem>>, vector<8x128xf32>,
    %c8_45 = arith.constant 8 : index
    %c0_46 = arith.constant 0 : index
    %77 = vector.load %arg13[%c8_45, %c0_46] : memref<128x384xf32, #tpu.memory_space<vmem>>, vector<8x384xf32>
    %c0_47 = arith.constant 0 : index
    %c0_48 = arith.constant 0 : index
    %c0_49 = arith.constant 0 : index
    %78 = vector.load %arg4[%c0_47, %c0_48, %c0_49] : memref<2x128x384xf32, #tpu.memory_space<vmem>>, vector<1x128x384xf32>
    %79 = vector.shape_cast %78 : vector<1x128x384xf32> to vector<128x384xf32>
    %cst_50 = arith.constant dense<0.000000e+00> : vector<8x384xf32>
    %80 = tpu.matmul %51, %79, %cst_50 {dimension_numbers = #tpu.dot_dimension_numbers<[1], [0], [0], [1], [0, 0, 1, 1], [], []>} : vector<8x128xf32>, vector<128x384xf32>, vector<8x384xf32> -> vector<8x384xf32>
    %81 = vector.extract_strided_slice %77 {offsets = [0, 0], sizes = [8, 256], strides = [1, 1]} : vector<8x384xf32> to vector<8x256xf32>
    %82 = vector.extract_strided_slice %80 {offsets = [0, 0], sizes = [8, 256], strides = [1, 1]} : vector<8x384xf32> to vector<8x256xf32>
    %83 = arith.addf %81, %82 : vector<8x256xf32>
    %84 = arith.negf %83 : vector<8x256xf32>
    %85 = math.exp %84 : vector<8x256xf32>
    %cst_51 = arith.constant 1.000000e+00 : f32
    %86 = vector.broadcast %cst_51 : f32 to vector<8x256xf32>
    %87 = arith.addf %86, %85 : vector<8x256xf32>
    %88 = arith.divf %86, %87 : vector<8x256xf32>
    %89 = vector.extract_strided_slice %88 {offsets = [0, 0], sizes = [8, 128], strides = [1, 1]} : vector<8x256xf32> to vector<8x128xf32>
    %90 = vector.extract_strided_slice %88 {offsets = [0, 128], sizes = [8, 128], strides = [1, 1]} : vector<8x256xf32> to vector<8x128xf32>
    %91 = vector.extract_strided_slice %77 {offsets = [0, 256], sizes = [8, 128], strides = [1, 1]} : vector<8x384xf32> to vector<8x128xf32>
    %92 = vector.extract_strided_slice %80 {offsets = [0, 256], sizes = [8, 128], strides = [1, 1]} : vector<8x384xf32> to vector<8x128xf32>
    %93 = arith.addf %92, %20 : vector<8x128xf32>
    %94 = arith.mulf %89, %93 : vector<8x128xf32>
    %95 = arith.addf %91, %94 : vector<8x128xf32>
    %96 = math.tanh %95 : vector<8x128xf32>
    %97 = arith.subf %51, %96 : vector<8x128xf32>
    %98 = arith.mulf %90, %97 : vector<8x128xf32>
    %99 = arith.addf %96, %98 : vector<8x128xf32>
    %c112 = arith.constant 112 : index
    %c0_52 = arith.constant 0 : index
    %100 = vector.load %arg14[%c112, %c0_52] : memref<128x384xf32, #tpu.memory_space<vmem>>, vector<8x384xf32>
    %c1_53 = arith.constant 1 : index
    %c0_54 = arith.constant 0 : index
    %c0_55 = arith.constant 0 : index
    %101 = vector.load %arg4[%c1_53, %c0_54, %c0_55] : memref<2x128x384xf32, #tpu.memory_space<vmem>>, vector<1x128x384xf32>
    %102 = vector.shape_cast %101 : vector<1x128x384xf32> to vector<128x384xf32>
    %cst_56 = arith.constant dense<0.000000e+00> : vector<8x384xf32>
    %103 = tpu.matmul %74, %102, %cst_56 {dimension_numbers = #tpu.dot_dimension_numbers<[1], [0], [0], [1], [0, 0, 1, 1], [], []>} : vector<8x128xf32>, vector<128x384xf32>, vector<8x384xf32> -> vector<8x384xf32>
    %104 = vector.extract_strided_slice %100 {offsets = [0, 0], sizes = [8, 256], strides = [1, 1]} : vector<8x384xf32> to vector<8x256xf32>
    %105 = vector.extract_strided_slice %103 {offsets = [0, 0], sizes = [8, 256], strides = [1, 1]} : vector<8x384xf32> to vector<8x256xf32>
    %106 = arith.addf %104, %105 : vector<8x256xf32>
    %107 = arith.negf %106 : vector<8x256xf32>
    %108 = math.exp %107 : vector<8x256xf32>
    %cst_57 = arith.constant 1.000000e+00 : f32
    %109 = vector.broadcast %cst_57 : f32 to vector<8x256xf32>
    %110 = arith.addf %109, %108 : vector<8x256xf32>
    %111 = arith.divf %109, %110 : vector<8x256xf32>
    %112 = vector.extract_strided_slice %111 {offsets = [0, 0], sizes = [8, 128], strides = [1, 1]} : vector<8x256xf32> to vector<8x128xf32>
    %113 = vector.extract_strided_slice %111 {offsets = [0, 128], sizes = [8, 128], strides = [1, 1]} : vector<8x256xf32> to vector<8x128xf32>
    %114 = vector.extract_strided_slice %100 {offsets = [0, 256], sizes = [8, 128], strides = [1, 1]} : vector<8x384xf32> to vector<8x128xf32>
    %115 = vector.extract_strided_slice %103 {offsets = [0, 256], sizes = [8, 128], strides = [1, 1]} : vector<8x384xf32> to vector<8x128xf32>
    %116 = arith.addf %115, %24 : vector<8x128xf32>
    %117 = arith.mulf %112, %116 : vector<8x128xf32>
    %118 = arith.addf %114, %117 : vector<8x128xf32>
    %119 = math.tanh %118 : vector<8x128xf32>
    %120 = arith.subf %74, %119 : vector<8x128xf32>
    %121 = arith.mulf %113, %120 : vector<8x128xf32>
    %122 = arith.addf %119, %121 : vector<8x128xf32>
    %c16 = arith.constant 16 : index
    %c0_58 = arith.constant 0 : index
    %123 = vector.load %arg15[%c16, %c0_58] : memref<144x128xf32, #tpu.memory_space<vmem>>, vector<8x128xf32>
    tpu.vector_store %arg15[%c16, %c0_58], %99 {strides = array<i32>} : memref<144x128xf32, #tpu.memory_space<vmem>>, vector<8x128xf32>,
    %c112_59 = arith.constant 112 : index
    %c0_60 = arith.constant 0 : index
    %124 = vector.load %arg16[%c112_59, %c0_60] : memref<128x128xf32, #tpu.memory_space<vmem>>, vector<8x128xf32>
    tpu.vector_store %arg16[%c112_59, %c0_60], %122 {strides = array<i32>} : memref<128x128xf32, #tpu.memory_space<vmem>>, vector<8x128xf32>,
    %c16_61 = arith.constant 16 : index
    %c0_62 = arith.constant 0 : index
    %125 = vector.load %arg13[%c16_61, %c0_62] : memref<128x384xf32, #tpu.memory_space<vmem>>, vector<8x384xf32>
    %c0_63 = arith.constant 0 : index
    %c0_64 = arith.constant 0 : index
    %c0_65 = arith.constant 0 : index
    %126 = vector.load %arg4[%c0_63, %c0_64, %c0_65] : memref<2x128x384xf32, #tpu.memory_space<vmem>>, vector<1x128x384xf32>
    %127 = vector.shape_cast %126 : vector<1x128x384xf32> to vector<128x384xf32>
    %cst_66 = arith.constant dense<0.000000e+00> : vector<8x384xf32>
    %128 = tpu.matmul %99, %127, %cst_66 {dimension_numbers = #tpu.dot_dimension_numbers<[1], [0], [0], [1], [0, 0, 1, 1], [], []>} : vector<8x128xf32>, vector<128x384xf32>, vector<8x384xf32> -> vector<8x384xf32>
    %129 = vector.extract_strided_slice %125 {offsets = [0, 0], sizes = [8, 256], strides = [1, 1]} : vector<8x384xf32> to vector<8x256xf32>
    %130 = vector.extract_strided_slice %128 {offsets = [0, 0], sizes = [8, 256], strides = [1, 1]} : vector<8x384xf32> to vector<8x256xf32>
    %131 = arith.addf %129, %130 : vector<8x256xf32>
    %132 = arith.negf %131 : vector<8x256xf32>
    %133 = math.exp %132 : vector<8x256xf32>
    %cst_67 = arith.constant 1.000000e+00 : f32
    %134 = vector.broadcast %cst_67 : f32 to vector<8x256xf32>
    %135 = arith.addf %134, %133 : vector<8x256xf32>
    %136 = arith.divf %134, %135 : vector<8x256xf32>
    %137 = vector.extract_strided_slice %136 {offsets = [0, 0], sizes = [8, 128], strides = [1, 1]} : vector<8x256xf32> to vector<8x128xf32>
    %138 = vector.extract_strided_slice %136 {offsets = [0, 128], sizes = [8, 128], strides = [1, 1]} : vector<8x256xf32> to vector<8x128xf32>
    %139 = vector.extract_strided_slice %125 {offsets = [0, 256], sizes = [8, 128], strides = [1, 1]} : vector<8x384xf32> to vector<8x128xf32>
    %140 = vector.extract_strided_slice %128 {offsets = [0, 256], sizes = [8, 128], strides = [1, 1]} : vector<8x384xf32> to vector<8x128xf32>
    %141 = arith.addf %140, %20 : vector<8x128xf32>
    %142 = arith.mulf %137, %141 : vector<8x128xf32>
    %143 = arith.addf %139, %142 : vector<8x128xf32>
    %144 = math.tanh %143 : vector<8x128xf32>
    %145 = arith.subf %99, %144 : vector<8x128xf32>
    %146 = arith.mulf %138, %145 : vector<8x128xf32>
    %147 = arith.addf %144, %146 : vector<8x128xf32>
    %c104 = arith.constant 104 : index
    %c0_68 = arith.constant 0 : index
    %148 = vector.load %arg14[%c104, %c0_68] : memref<128x384xf32, #tpu.memory_space<vmem>>, vector<8x384xf32>
    %c1_69 = arith.constant 1 : index
    %c0_70 = arith.constant 0 : index
    %c0_71 = arith.constant 0 : index
    %149 = vector.load %arg4[%c1_69, %c0_70, %c0_71] : memref<2x128x384xf32, #tpu.memory_space<vmem>>, vector<1x128x384xf32>
    %150 = vector.shape_cast %149 : vector<1x128x384xf32> to vector<128x384xf32>
    %cst_72 = arith.constant dense<0.000000e+00> : vector<8x384xf32>
    %151 = tpu.matmul %122, %150, %cst_72 {dimension_numbers = #tpu.dot_dimension_numbers<[1], [0], [0], [1], [0, 0, 1, 1], [], []>} : vector<8x128xf32>, vector<128x384xf32>, vector<8x384xf32> -> vector<8x384xf32>
    %152 = vector.extract_strided_slice %148 {offsets = [0, 0], sizes = [8, 256], strides = [1, 1]} : vector<8x384xf32> to vector<8x256xf32>
    %153 = vector.extract_strided_slice %151 {offsets = [0, 0], sizes = [8, 256], strides = [1, 1]} : vector<8x384xf32> to vector<8x256xf32>
    %154 = arith.addf %152, %153 : vector<8x256xf32>
    %155 = arith.negf %154 : vector<8x256xf32>
    %156 = math.exp %155 : vector<8x256xf32>
    %cst_73 = arith.constant 1.000000e+00 : f32
    %157 = vector.broadcast %cst_73 : f32 to vector<8x256xf32>
    %158 = arith.addf %157, %156 : vector<8x256xf32>
    %159 = arith.divf %157, %158 : vector<8x256xf32>
    %160 = vector.extract_strided_slice %159 {offsets = [0, 0], sizes = [8, 128], strides = [1, 1]} : vector<8x256xf32> to vector<8x128xf32>
    %161 = vector.extract_strided_slice %159 {offsets = [0, 128], sizes = [8, 128], strides = [1, 1]} : vector<8x256xf32> to vector<8x128xf32>
    %162 = vector.extract_strided_slice %148 {offsets = [0, 256], sizes = [8, 128], strides = [1, 1]} : vector<8x384xf32> to vector<8x128xf32>
    %163 = vector.extract_strided_slice %151 {offsets = [0, 256], sizes = [8, 128], strides = [1, 1]} : vector<8x384xf32> to vector<8x128xf32>
    %164 = arith.addf %163, %24 : vector<8x128xf32>
    %165 = arith.mulf %160, %164 : vector<8x128xf32>
    %166 = arith.addf %162, %165 : vector<8x128xf32>
    %167 = math.tanh %166 : vector<8x128xf32>
    %168 = arith.subf %122, %167 : vector<8x128xf32>
    %169 = arith.mulf %161, %168 : vector<8x128xf32>
    %170 = arith.addf %167, %169 : vector<8x128xf32>
    %c24 = arith.constant 24 : index
    %c0_74 = arith.constant 0 : index
    %171 = vector.load %arg15[%c24, %c0_74] : memref<144x128xf32, #tpu.memory_space<vmem>>, vector<8x128xf32>
    tpu.vector_store %arg15[%c24, %c0_74], %147 {strides = array<i32>} : memref<144x128xf32, #tpu.memory_space<vmem>>, vector<8x128xf32>,
    %c104_75 = arith.constant 104 : index
    %c0_76 = arith.constant 0 : index
    %172 = vector.load %arg16[%c104_75, %c0_76] : memref<128x128xf32, #tpu.memory_space<vmem>>, vector<8x128xf32>
    tpu.vector_store %arg16[%c104_75, %c0_76], %170 {strides = array<i32>} : memref<128x128xf32, #tpu.memory_space<vmem>>, vector<8x128xf32>,
    %c24_77 = arith.constant 24 : index
    %c0_78 = arith.constant 0 : index
    %173 = vector.load %arg13[%c24_77, %c0_78] : memref<128x384xf32, #tpu.memory_space<vmem>>, vector<8x384xf32>
    %c0_79 = arith.constant 0 : index
    %c0_80 = arith.constant 0 : index
    %c0_81 = arith.constant 0 : index
    %174 = vector.load %arg4[%c0_79, %c0_80, %c0_81] : memref<2x128x384xf32, #tpu.memory_space<vmem>>, vector<1x128x384xf32>
    %175 = vector.shape_cast %174 : vector<1x128x384xf32> to vector<128x384xf32>
    %cst_82 = arith.constant dense<0.000000e+00> : vector<8x384xf32>
    %176 = tpu.matmul %147, %175, %cst_82 {dimension_numbers = #tpu.dot_dimension_numbers<[1], [0], [0], [1], [0, 0, 1, 1], [], []>} : vector<8x128xf32>, vector<128x384xf32>, vector<8x384xf32> -> vector<8x384xf32>
    %177 = vector.extract_strided_slice %173 {offsets = [0, 0], sizes = [8, 256], strides = [1, 1]} : vector<8x384xf32> to vector<8x256xf32>
    %178 = vector.extract_strided_slice %176 {offsets = [0, 0], sizes = [8, 256], strides = [1, 1]} : vector<8x384xf32> to vector<8x256xf32>
    %179 = arith.addf %177, %178 : vector<8x256xf32>
    %180 = arith.negf %179 : vector<8x256xf32>
    %181 = math.exp %180 : vector<8x256xf32>
    %cst_83 = arith.constant 1.000000e+00 : f32
    %182 = vector.broadcast %cst_83 : f32 to vector<8x256xf32>
    %183 = arith.addf %182, %181 : vector<8x256xf32>
    %184 = arith.divf %182, %183 : vector<8x256xf32>
    %185 = vector.extract_strided_slice %184 {offsets = [0, 0], sizes = [8, 128], strides = [1, 1]} : vector<8x256xf32> to vector<8x128xf32>
    %186 = vector.extract_strided_slice %184 {offsets = [0, 128], sizes = [8, 128], strides = [1, 1]} : vector<8x256xf32> to vector<8x128xf32>
    %187 = vector.extract_strided_slice %173 {offsets = [0, 256], sizes = [8, 128], strides = [1, 1]} : vector<8x384xf32> to vector<8x128xf32>
    %188 = vector.extract_strided_slice %176 {offsets = [0, 256], sizes = [8, 128], strides = [1, 1]} : vector<8x384xf32> to vector<8x128xf32>
    %189 = arith.addf %188, %20 : vector<8x128xf32>
    %190 = arith.mulf %185, %189 : vector<8x128xf32>
    %191 = arith.addf %187, %190 : vector<8x128xf32>
    %192 = math.tanh %191 : vector<8x128xf32>
    %193 = arith.subf %147, %192 : vector<8x128xf32>
    %194 = arith.mulf %186, %193 : vector<8x128xf32>
    %195 = arith.addf %192, %194 : vector<8x128xf32>
    %c96 = arith.constant 96 : index
    %c0_84 = arith.constant 0 : index
    %196 = vector.load %arg14[%c96, %c0_84] : memref<128x384xf32, #tpu.memory_space<vmem>>, vector<8x384xf32>
    %c1_85 = arith.constant 1 : index
    %c0_86 = arith.constant 0 : index
    %c0_87 = arith.constant 0 : index
    %197 = vector.load %arg4[%c1_85, %c0_86, %c0_87] : memref<2x128x384xf32, #tpu.memory_space<vmem>>, vector<1x128x384xf32>
    %198 = vector.shape_cast %197 : vector<1x128x384xf32> to vector<128x384xf32>
    %cst_88 = arith.constant dense<0.000000e+00> : vector<8x384xf32>
    %199 = tpu.matmul %170, %198, %cst_88 {dimension_numbers = #tpu.dot_dimension_numbers<[1], [0], [0], [1], [0, 0, 1, 1], [], []>} : vector<8x128xf32>, vector<128x384xf32>, vector<8x384xf32> -> vector<8x384xf32>
    %200 = vector.extract_strided_slice %196 {offsets = [0, 0], sizes = [8, 256], strides = [1, 1]} : vector<8x384xf32> to vector<8x256xf32>
    %201 = vector.extract_strided_slice %199 {offsets = [0, 0], sizes = [8, 256], strides = [1, 1]} : vector<8x384xf32> to vector<8x256xf32>
    %202 = arith.addf %200, %201 : vector<8x256xf32>
    %203 = arith.negf %202 : vector<8x256xf32>
    %204 = math.exp %203 : vector<8x256xf32>
    %cst_89 = arith.constant 1.000000e+00 : f32
    %205 = vector.broadcast %cst_89 : f32 to vector<8x256xf32>
    %206 = arith.addf %205, %204 : vector<8x256xf32>
    %207 = arith.divf %205, %206 : vector<8x256xf32>
    %208 = vector.extract_strided_slice %207 {offsets = [0, 0], sizes = [8, 128], strides = [1, 1]} : vector<8x256xf32> to vector<8x128xf32>
    %209 = vector.extract_strided_slice %207 {offsets = [0, 128], sizes = [8, 128], strides = [1, 1]} : vector<8x256xf32> to vector<8x128xf32>
    %210 = vector.extract_strided_slice %196 {offsets = [0, 256], sizes = [8, 128], strides = [1, 1]} : vector<8x384xf32> to vector<8x128xf32>
    %211 = vector.extract_strided_slice %199 {offsets = [0, 256], sizes = [8, 128], strides = [1, 1]} : vector<8x384xf32> to vector<8x128xf32>
    %212 = arith.addf %211, %24 : vector<8x128xf32>
    %213 = arith.mulf %208, %212 : vector<8x128xf32>
    %214 = arith.addf %210, %213 : vector<8x128xf32>
    %215 = math.tanh %214 : vector<8x128xf32>
    %216 = arith.subf %170, %215 : vector<8x128xf32>
    %217 = arith.mulf %209, %216 : vector<8x128xf32>
    %218 = arith.addf %215, %217 : vector<8x128xf32>
    %c32 = arith.constant 32 : index
    %c0_90 = arith.constant 0 : index
    %219 = vector.load %arg15[%c32, %c0_90] : memref<144x128xf32, #tpu.memory_space<vmem>>, vector<8x128xf32>
    tpu.vector_store %arg15[%c32, %c0_90], %195 {strides = array<i32>} : memref<144x128xf32, #tpu.memory_space<vmem>>, vector<8x128xf32>,
    %c96_91 = arith.constant 96 : index
    %c0_92 = arith.constant 0 : index
    %220 = vector.load %arg16[%c96_91, %c0_92] : memref<128x128xf32, #tpu.memory_space<vmem>>, vector<8x128xf32>
    tpu.vector_store %arg16[%c96_91, %c0_92], %218 {strides = array<i32>} : memref<128x128xf32, #tpu.memory_space<vmem>>, vector<8x128xf32>,
    %c32_93 = arith.constant 32 : index
    %c0_94 = arith.constant 0 : index
    %221 = vector.load %arg13[%c32_93, %c0_94] : memref<128x384xf32, #tpu.memory_space<vmem>>, vector<8x384xf32>
    %c0_95 = arith.constant 0 : index
    %c0_96 = arith.constant 0 : index
    %c0_97 = arith.constant 0 : index
    %222 = vector.load %arg4[%c0_95, %c0_96, %c0_97] : memref<2x128x384xf32, #tpu.memory_space<vmem>>, vector<1x128x384xf32>
    %223 = vector.shape_cast %222 : vector<1x128x384xf32> to vector<128x384xf32>
    %cst_98 = arith.constant dense<0.000000e+00> : vector<8x384xf32>
    %224 = tpu.matmul %195, %223, %cst_98 {dimension_numbers = #tpu.dot_dimension_numbers<[1], [0], [0], [1], [0, 0, 1, 1], [], []>} : vector<8x128xf32>, vector<128x384xf32>, vector<8x384xf32> -> vector<8x384xf32>
    %225 = vector.extract_strided_slice %221 {offsets = [0, 0], sizes = [8, 256], strides = [1, 1]} : vector<8x384xf32> to vector<8x256xf32>
    %226 = vector.extract_strided_slice %224 {offsets = [0, 0], sizes = [8, 256], strides = [1, 1]} : vector<8x384xf32> to vector<8x256xf32>
    %227 = arith.addf %225, %226 : vector<8x256xf32>
    %228 = arith.negf %227 : vector<8x256xf32>
    %229 = math.exp %228 : vector<8x256xf32>
    %cst_99 = arith.constant 1.000000e+00 : f32
    %230 = vector.broadcast %cst_99 : f32 to vector<8x256xf32>
    %231 = arith.addf %230, %229 : vector<8x256xf32>
    %232 = arith.divf %230, %231 : vector<8x256xf32>
    %233 = vector.extract_strided_slice %232 {offsets = [0, 0], sizes = [8, 128], strides = [1, 1]} : vector<8x256xf32> to vector<8x128xf32>
    %234 = vector.extract_strided_slice %232 {offsets = [0, 128], sizes = [8, 128], strides = [1, 1]} : vector<8x256xf32> to vector<8x128xf32>
    %235 = vector.extract_strided_slice %221 {offsets = [0, 256], sizes = [8, 128], strides = [1, 1]} : vector<8x384xf32> to vector<8x128xf32>
    %236 = vector.extract_strided_slice %224 {offsets = [0, 256], sizes = [8, 128], strides = [1, 1]} : vector<8x384xf32> to vector<8x128xf32>
    %237 = arith.addf %236, %20 : vector<8x128xf32>
    %238 = arith.mulf %233, %237 : vector<8x128xf32>
    %239 = arith.addf %235, %238 : vector<8x128xf32>
    %240 = math.tanh %239 : vector<8x128xf32>
    %241 = arith.subf %195, %240 : vector<8x128xf32>
    %242 = arith.mulf %234, %241 : vector<8x128xf32>
    %243 = arith.addf %240, %242 : vector<8x128xf32>
    %c88 = arith.constant 88 : index
    %c0_100 = arith.constant 0 : index
    %244 = vector.load %arg14[%c88, %c0_100] : memref<128x384xf32, #tpu.memory_space<vmem>>, vector<8x384xf32>
    %c1_101 = arith.constant 1 : index
    %c0_102 = arith.constant 0 : index
    %c0_103 = arith.constant 0 : index
    %245 = vector.load %arg4[%c1_101, %c0_102, %c0_103] : memref<2x128x384xf32, #tpu.memory_space<vmem>>, vector<1x128x384xf32>
    %246 = vector.shape_cast %245 : vector<1x128x384xf32> to vector<128x384xf32>
    %cst_104 = arith.constant dense<0.000000e+00> : vector<8x384xf32>
    %247 = tpu.matmul %218, %246, %cst_104 {dimension_numbers = #tpu.dot_dimension_numbers<[1], [0], [0], [1], [0, 0, 1, 1], [], []>} : vector<8x128xf32>, vector<128x384xf32>, vector<8x384xf32> -> vector<8x384xf32>
    %248 = vector.extract_strided_slice %244 {offsets = [0, 0], sizes = [8, 256], strides = [1, 1]} : vector<8x384xf32> to vector<8x256xf32>
    %249 = vector.extract_strided_slice %247 {offsets = [0, 0], sizes = [8, 256], strides = [1, 1]} : vector<8x384xf32> to vector<8x256xf32>
    %250 = arith.addf %248, %249 : vector<8x256xf32>
    %251 = arith.negf %250 : vector<8x256xf32>
    %252 = math.exp %251 : vector<8x256xf32>
    %cst_105 = arith.constant 1.000000e+00 : f32
    %253 = vector.broadcast %cst_105 : f32 to vector<8x256xf32>
    %254 = arith.addf %253, %252 : vector<8x256xf32>
    %255 = arith.divf %253, %254 : vector<8x256xf32>
    %256 = vector.extract_strided_slice %255 {offsets = [0, 0], sizes = [8, 128], strides = [1, 1]} : vector<8x256xf32> to vector<8x128xf32>
    %257 = vector.extract_strided_slice %255 {offsets = [0, 128], sizes = [8, 128], strides = [1, 1]} : vector<8x256xf32> to vector<8x128xf32>
    %258 = vector.extract_strided_slice %244 {offsets = [0, 256], sizes = [8, 128], strides = [1, 1]} : vector<8x384xf32> to vector<8x128xf32>
    %259 = vector.extract_strided_slice %247 {offsets = [0, 256], sizes = [8, 128], strides = [1, 1]} : vector<8x384xf32> to vector<8x128xf32>
    %260 = arith.addf %259, %24 : vector<8x128xf32>
    %261 = arith.mulf %256, %260 : vector<8x128xf32>
    %262 = arith.addf %258, %261 : vector<8x128xf32>
    %263 = math.tanh %262 : vector<8x128xf32>
    %264 = arith.subf %218, %263 : vector<8x128xf32>
    %265 = arith.mulf %257, %264 : vector<8x128xf32>
    %266 = arith.addf %263, %265 : vector<8x128xf32>
    %c40 = arith.constant 40 : index
    %c0_106 = arith.constant 0 : index
    %267 = vector.load %arg15[%c40, %c0_106] : memref<144x128xf32, #tpu.memory_space<vmem>>, vector<8x128xf32>
    tpu.vector_store %arg15[%c40, %c0_106], %243 {strides = array<i32>} : memref<144x128xf32, #tpu.memory_space<vmem>>, vector<8x128xf32>,
    %c88_107 = arith.constant 88 : index
    %c0_108 = arith.constant 0 : index
    %268 = vector.load %arg16[%c88_107, %c0_108] : memref<128x128xf32, #tpu.memory_space<vmem>>, vector<8x128xf32>
    tpu.vector_store %arg16[%c88_107, %c0_108], %266 {strides = array<i32>} : memref<128x128xf32, #tpu.memory_space<vmem>>, vector<8x128xf32>,
    %c40_109 = arith.constant 40 : index
    %c0_110 = arith.constant 0 : index
    %269 = vector.load %arg13[%c40_109, %c0_110] : memref<128x384xf32, #tpu.memory_space<vmem>>, vector<8x384xf32>
    %c0_111 = arith.constant 0 : index
    %c0_112 = arith.constant 0 : index
    %c0_113 = arith.constant 0 : index
    %270 = vector.load %arg4[%c0_111, %c0_112, %c0_113] : memref<2x128x384xf32, #tpu.memory_space<vmem>>, vector<1x128x384xf32>
    %271 = vector.shape_cast %270 : vector<1x128x384xf32> to vector<128x384xf32>
    %cst_114 = arith.constant dense<0.000000e+00> : vector<8x384xf32>
    %272 = tpu.matmul %243, %271, %cst_114 {dimension_numbers = #tpu.dot_dimension_numbers<[1], [0], [0], [1], [0, 0, 1, 1], [], []>} : vector<8x128xf32>, vector<128x384xf32>, vector<8x384xf32> -> vector<8x384xf32>
    %273 = vector.extract_strided_slice %269 {offsets = [0, 0], sizes = [8, 256], strides = [1, 1]} : vector<8x384xf32> to vector<8x256xf32>
    %274 = vector.extract_strided_slice %272 {offsets = [0, 0], sizes = [8, 256], strides = [1, 1]} : vector<8x384xf32> to vector<8x256xf32>
    %275 = arith.addf %273, %274 : vector<8x256xf32>
    %276 = arith.negf %275 : vector<8x256xf32>
    %277 = math.exp %276 : vector<8x256xf32>
    %cst_115 = arith.constant 1.000000e+00 : f32
    %278 = vector.broadcast %cst_115 : f32 to vector<8x256xf32>
    %279 = arith.addf %278, %277 : vector<8x256xf32>
    %280 = arith.divf %278, %279 : vector<8x256xf32>
    %281 = vector.extract_strided_slice %280 {offsets = [0, 0], sizes = [8, 128], strides = [1, 1]} : vector<8x256xf32> to vector<8x128xf32>
    %282 = vector.extract_strided_slice %280 {offsets = [0, 128], sizes = [8, 128], strides = [1, 1]} : vector<8x256xf32> to vector<8x128xf32>
    %283 = vector.extract_strided_slice %269 {offsets = [0, 256], sizes = [8, 128], strides = [1, 1]} : vector<8x384xf32> to vector<8x128xf32>
    %284 = vector.extract_strided_slice %272 {offsets = [0, 256], sizes = [8, 128], strides = [1, 1]} : vector<8x384xf32> to vector<8x128xf32>
    %285 = arith.addf %284, %20 : vector<8x128xf32>
    %286 = arith.mulf %281, %285 : vector<8x128xf32>
    %287 = arith.addf %283, %286 : vector<8x128xf32>
    %288 = math.tanh %287 : vector<8x128xf32>
    %289 = arith.subf %243, %288 : vector<8x128xf32>
    %290 = arith.mulf %282, %289 : vector<8x128xf32>
    %291 = arith.addf %288, %290 : vector<8x128xf32>
    %c80 = arith.constant 80 : index
    %c0_116 = arith.constant 0 : index
    %292 = vector.load %arg14[%c80, %c0_116] : memref<128x384xf32, #tpu.memory_space<vmem>>, vector<8x384xf32>
    %c1_117 = arith.constant 1 : index
    %c0_118 = arith.constant 0 : index
    %c0_119 = arith.constant 0 : index
    %293 = vector.load %arg4[%c1_117, %c0_118, %c0_119] : memref<2x128x384xf32, #tpu.memory_space<vmem>>, vector<1x128x384xf32>
    %294 = vector.shape_cast %293 : vector<1x128x384xf32> to vector<128x384xf32>
    %cst_120 = arith.constant dense<0.000000e+00> : vector<8x384xf32>
    %295 = tpu.matmul %266, %294, %cst_120 {dimension_numbers = #tpu.dot_dimension_numbers<[1], [0], [0], [1], [0, 0, 1, 1], [], []>} : vector<8x128xf32>, vector<128x384xf32>, vector<8x384xf32> -> vector<8x384xf32>
    %296 = vector.extract_strided_slice %292 {offsets = [0, 0], sizes = [8, 256], strides = [1, 1]} : vector<8x384xf32> to vector<8x256xf32>
    %297 = vector.extract_strided_slice %295 {offsets = [0, 0], sizes = [8, 256], strides = [1, 1]} : vector<8x384xf32> to vector<8x256xf32>
    %298 = arith.addf %296, %297 : vector<8x256xf32>
    %299 = arith.negf %298 : vector<8x256xf32>
    %300 = math.exp %299 : vector<8x256xf32>
    %cst_121 = arith.constant 1.000000e+00 : f32
    %301 = vector.broadcast %cst_121 : f32 to vector<8x256xf32>
    %302 = arith.addf %301, %300 : vector<8x256xf32>
    %303 = arith.divf %301, %302 : vector<8x256xf32>
    %304 = vector.extract_strided_slice %303 {offsets = [0, 0], sizes = [8, 128], strides = [1, 1]} : vector<8x256xf32> to vector<8x128xf32>
    %305 = vector.extract_strided_slice %303 {offsets = [0, 128], sizes = [8, 128], strides = [1, 1]} : vector<8x256xf32> to vector<8x128xf32>
    %306 = vector.extract_strided_slice %292 {offsets = [0, 256], sizes = [8, 128], strides = [1, 1]} : vector<8x384xf32> to vector<8x128xf32>
    %307 = vector.extract_strided_slice %295 {offsets = [0, 256], sizes = [8, 128], strides = [1, 1]} : vector<8x384xf32> to vector<8x128xf32>
    %308 = arith.addf %307, %24 : vector<8x128xf32>
    %309 = arith.mulf %304, %308 : vector<8x128xf32>
    %310 = arith.addf %306, %309 : vector<8x128xf32>
    %311 = math.tanh %310 : vector<8x128xf32>
    %312 = arith.subf %266, %311 : vector<8x128xf32>
    %313 = arith.mulf %305, %312 : vector<8x128xf32>
    %314 = arith.addf %311, %313 : vector<8x128xf32>
    %c48 = arith.constant 48 : index
    %c0_122 = arith.constant 0 : index
    %315 = vector.load %arg15[%c48, %c0_122] : memref<144x128xf32, #tpu.memory_space<vmem>>, vector<8x128xf32>
    tpu.vector_store %arg15[%c48, %c0_122], %291 {strides = array<i32>} : memref<144x128xf32, #tpu.memory_space<vmem>>, vector<8x128xf32>,
    %c80_123 = arith.constant 80 : index
    %c0_124 = arith.constant 0 : index
    %316 = vector.load %arg16[%c80_123, %c0_124] : memref<128x128xf32, #tpu.memory_space<vmem>>, vector<8x128xf32>
    tpu.vector_store %arg16[%c80_123, %c0_124], %314 {strides = array<i32>} : memref<128x128xf32, #tpu.memory_space<vmem>>, vector<8x128xf32>,
    %c48_125 = arith.constant 48 : index
    %c0_126 = arith.constant 0 : index
    %317 = vector.load %arg13[%c48_125, %c0_126] : memref<128x384xf32, #tpu.memory_space<vmem>>, vector<8x384xf32>
    %c0_127 = arith.constant 0 : index
    %c0_128 = arith.constant 0 : index
    %c0_129 = arith.constant 0 : index
    %318 = vector.load %arg4[%c0_127, %c0_128, %c0_129] : memref<2x128x384xf32, #tpu.memory_space<vmem>>, vector<1x128x384xf32>
    %319 = vector.shape_cast %318 : vector<1x128x384xf32> to vector<128x384xf32>
    %cst_130 = arith.constant dense<0.000000e+00> : vector<8x384xf32>
    %320 = tpu.matmul %291, %319, %cst_130 {dimension_numbers = #tpu.dot_dimension_numbers<[1], [0], [0], [1], [0, 0, 1, 1], [], []>} : vector<8x128xf32>, vector<128x384xf32>, vector<8x384xf32> -> vector<8x384xf32>
    %321 = vector.extract_strided_slice %317 {offsets = [0, 0], sizes = [8, 256], strides = [1, 1]} : vector<8x384xf32> to vector<8x256xf32>
    %322 = vector.extract_strided_slice %320 {offsets = [0, 0], sizes = [8, 256], strides = [1, 1]} : vector<8x384xf32> to vector<8x256xf32>
    %323 = arith.addf %321, %322 : vector<8x256xf32>
    %324 = arith.negf %323 : vector<8x256xf32>
    %325 = math.exp %324 : vector<8x256xf32>
    %cst_131 = arith.constant 1.000000e+00 : f32
    %326 = vector.broadcast %cst_131 : f32 to vector<8x256xf32>
    %327 = arith.addf %326, %325 : vector<8x256xf32>
    %328 = arith.divf %326, %327 : vector<8x256xf32>
    %329 = vector.extract_strided_slice %328 {offsets = [0, 0], sizes = [8, 128], strides = [1, 1]} : vector<8x256xf32> to vector<8x128xf32>
    %330 = vector.extract_strided_slice %328 {offsets = [0, 128], sizes = [8, 128], strides = [1, 1]} : vector<8x256xf32> to vector<8x128xf32>
    %331 = vector.extract_strided_slice %317 {offsets = [0, 256], sizes = [8, 128], strides = [1, 1]} : vector<8x384xf32> to vector<8x128xf32>
    %332 = vector.extract_strided_slice %320 {offsets = [0, 256], sizes = [8, 128], strides = [1, 1]} : vector<8x384xf32> to vector<8x128xf32>
    %333 = arith.addf %332, %20 : vector<8x128xf32>
    %334 = arith.mulf %329, %333 : vector<8x128xf32>
    %335 = arith.addf %331, %334 : vector<8x128xf32>
    %336 = math.tanh %335 : vector<8x128xf32>
    %337 = arith.subf %291, %336 : vector<8x128xf32>
    %338 = arith.mulf %330, %337 : vector<8x128xf32>
    %339 = arith.addf %336, %338 : vector<8x128xf32>
    %c72 = arith.constant 72 : index
    %c0_132 = arith.constant 0 : index
    %340 = vector.load %arg14[%c72, %c0_132] : memref<128x384xf32, #tpu.memory_space<vmem>>, vector<8x384xf32>
    %c1_133 = arith.constant 1 : index
    %c0_134 = arith.constant 0 : index
    %c0_135 = arith.constant 0 : index
    %341 = vector.load %arg4[%c1_133, %c0_134, %c0_135] : memref<2x128x384xf32, #tpu.memory_space<vmem>>, vector<1x128x384xf32>
    %342 = vector.shape_cast %341 : vector<1x128x384xf32> to vector<128x384xf32>
    %cst_136 = arith.constant dense<0.000000e+00> : vector<8x384xf32>
    %343 = tpu.matmul %314, %342, %cst_136 {dimension_numbers = #tpu.dot_dimension_numbers<[1], [0], [0], [1], [0, 0, 1, 1], [], []>} : vector<8x128xf32>, vector<128x384xf32>, vector<8x384xf32> -> vector<8x384xf32>
    %344 = vector.extract_strided_slice %340 {offsets = [0, 0], sizes = [8, 256], strides = [1, 1]} : vector<8x384xf32> to vector<8x256xf32>
    %345 = vector.extract_strided_slice %343 {offsets = [0, 0], sizes = [8, 256], strides = [1, 1]} : vector<8x384xf32> to vector<8x256xf32>
    %346 = arith.addf %344, %345 : vector<8x256xf32>
    %347 = arith.negf %346 : vector<8x256xf32>
    %348 = math.exp %347 : vector<8x256xf32>
    %cst_137 = arith.constant 1.000000e+00 : f32
    %349 = vector.broadcast %cst_137 : f32 to vector<8x256xf32>
    %350 = arith.addf %349, %348 : vector<8x256xf32>
    %351 = arith.divf %349, %350 : vector<8x256xf32>
    %352 = vector.extract_strided_slice %351 {offsets = [0, 0], sizes = [8, 128], strides = [1, 1]} : vector<8x256xf32> to vector<8x128xf32>
    %353 = vector.extract_strided_slice %351 {offsets = [0, 128], sizes = [8, 128], strides = [1, 1]} : vector<8x256xf32> to vector<8x128xf32>
    %354 = vector.extract_strided_slice %340 {offsets = [0, 256], sizes = [8, 128], strides = [1, 1]} : vector<8x384xf32> to vector<8x128xf32>
    %355 = vector.extract_strided_slice %343 {offsets = [0, 256], sizes = [8, 128], strides = [1, 1]} : vector<8x384xf32> to vector<8x128xf32>
    %356 = arith.addf %355, %24 : vector<8x128xf32>
    %357 = arith.mulf %352, %356 : vector<8x128xf32>
    %358 = arith.addf %354, %357 : vector<8x128xf32>
    %359 = math.tanh %358 : vector<8x128xf32>
    %360 = arith.subf %314, %359 : vector<8x128xf32>
    %361 = arith.mulf %353, %360 : vector<8x128xf32>
    %362 = arith.addf %359, %361 : vector<8x128xf32>
    %c56 = arith.constant 56 : index
    %c0_138 = arith.constant 0 : index
    %363 = vector.load %arg15[%c56, %c0_138] : memref<144x128xf32, #tpu.memory_space<vmem>>, vector<8x128xf32>
    tpu.vector_store %arg15[%c56, %c0_138], %339 {strides = array<i32>} : memref<144x128xf32, #tpu.memory_space<vmem>>, vector<8x128xf32>,
    %c72_139 = arith.constant 72 : index
    %c0_140 = arith.constant 0 : index
    %364 = vector.load %arg16[%c72_139, %c0_140] : memref<128x128xf32, #tpu.memory_space<vmem>>, vector<8x128xf32>
    tpu.vector_store %arg16[%c72_139, %c0_140], %362 {strides = array<i32>} : memref<128x128xf32, #tpu.memory_space<vmem>>, vector<8x128xf32>,
    %c56_141 = arith.constant 56 : index
    %c0_142 = arith.constant 0 : index
    %365 = vector.load %arg13[%c56_141, %c0_142] : memref<128x384xf32, #tpu.memory_space<vmem>>, vector<8x384xf32>
    %c0_143 = arith.constant 0 : index
    %c0_144 = arith.constant 0 : index
    %c0_145 = arith.constant 0 : index
    %366 = vector.load %arg4[%c0_143, %c0_144, %c0_145] : memref<2x128x384xf32, #tpu.memory_space<vmem>>, vector<1x128x384xf32>
    %367 = vector.shape_cast %366 : vector<1x128x384xf32> to vector<128x384xf32>
    %cst_146 = arith.constant dense<0.000000e+00> : vector<8x384xf32>
    %368 = tpu.matmul %339, %367, %cst_146 {dimension_numbers = #tpu.dot_dimension_numbers<[1], [0], [0], [1], [0, 0, 1, 1], [], []>} : vector<8x128xf32>, vector<128x384xf32>, vector<8x384xf32> -> vector<8x384xf32>
    %369 = vector.extract_strided_slice %365 {offsets = [0, 0], sizes = [8, 256], strides = [1, 1]} : vector<8x384xf32> to vector<8x256xf32>
    %370 = vector.extract_strided_slice %368 {offsets = [0, 0], sizes = [8, 256], strides = [1, 1]} : vector<8x384xf32> to vector<8x256xf32>
    %371 = arith.addf %369, %370 : vector<8x256xf32>
    %372 = arith.negf %371 : vector<8x256xf32>
    %373 = math.exp %372 : vector<8x256xf32>
    %cst_147 = arith.constant 1.000000e+00 : f32
    %374 = vector.broadcast %cst_147 : f32 to vector<8x256xf32>
    %375 = arith.addf %374, %373 : vector<8x256xf32>
    %376 = arith.divf %374, %375 : vector<8x256xf32>
    %377 = vector.extract_strided_slice %376 {offsets = [0, 0], sizes = [8, 128], strides = [1, 1]} : vector<8x256xf32> to vector<8x128xf32>
    %378 = vector.extract_strided_slice %376 {offsets = [0, 128], sizes = [8, 128], strides = [1, 1]} : vector<8x256xf32> to vector<8x128xf32>
    %379 = vector.extract_strided_slice %365 {offsets = [0, 256], sizes = [8, 128], strides = [1, 1]} : vector<8x384xf32> to vector<8x128xf32>
    %380 = vector.extract_strided_slice %368 {offsets = [0, 256], sizes = [8, 128], strides = [1, 1]} : vector<8x384xf32> to vector<8x128xf32>
    %381 = arith.addf %380, %20 : vector<8x128xf32>
    %382 = arith.mulf %377, %381 : vector<8x128xf32>
    %383 = arith.addf %379, %382 : vector<8x128xf32>
    %384 = math.tanh %383 : vector<8x128xf32>
    %385 = arith.subf %339, %384 : vector<8x128xf32>
    %386 = arith.mulf %378, %385 : vector<8x128xf32>
    %387 = arith.addf %384, %386 : vector<8x128xf32>
    %c64 = arith.constant 64 : index
    %c0_148 = arith.constant 0 : index
    %388 = vector.load %arg14[%c64, %c0_148] : memref<128x384xf32, #tpu.memory_space<vmem>>, vector<8x384xf32>
    %c1_149 = arith.constant 1 : index
    %c0_150 = arith.constant 0 : index
    %c0_151 = arith.constant 0 : index
    %389 = vector.load %arg4[%c1_149, %c0_150, %c0_151] : memref<2x128x384xf32, #tpu.memory_space<vmem>>, vector<1x128x384xf32>
    %390 = vector.shape_cast %389 : vector<1x128x384xf32> to vector<128x384xf32>
    %cst_152 = arith.constant dense<0.000000e+00> : vector<8x384xf32>
    %391 = tpu.matmul %362, %390, %cst_152 {dimension_numbers = #tpu.dot_dimension_numbers<[1], [0], [0], [1], [0, 0, 1, 1], [], []>} : vector<8x128xf32>, vector<128x384xf32>, vector<8x384xf32> -> vector<8x384xf32>
    %392 = vector.extract_strided_slice %388 {offsets = [0, 0], sizes = [8, 256], strides = [1, 1]} : vector<8x384xf32> to vector<8x256xf32>
    %393 = vector.extract_strided_slice %391 {offsets = [0, 0], sizes = [8, 256], strides = [1, 1]} : vector<8x384xf32> to vector<8x256xf32>
    %394 = arith.addf %392, %393 : vector<8x256xf32>
    %395 = arith.negf %394 : vector<8x256xf32>
    %396 = math.exp %395 : vector<8x256xf32>
    %cst_153 = arith.constant 1.000000e+00 : f32
    %397 = vector.broadcast %cst_153 : f32 to vector<8x256xf32>
    %398 = arith.addf %397, %396 : vector<8x256xf32>
    %399 = arith.divf %397, %398 : vector<8x256xf32>
    %400 = vector.extract_strided_slice %399 {offsets = [0, 0], sizes = [8, 128], strides = [1, 1]} : vector<8x256xf32> to vector<8x128xf32>
    %401 = vector.extract_strided_slice %399 {offsets = [0, 128], sizes = [8, 128], strides = [1, 1]} : vector<8x256xf32> to vector<8x128xf32>
    %402 = vector.extract_strided_slice %388 {offsets = [0, 256], sizes = [8, 128], strides = [1, 1]} : vector<8x384xf32> to vector<8x128xf32>
    %403 = vector.extract_strided_slice %391 {offsets = [0, 256], sizes = [8, 128], strides = [1, 1]} : vector<8x384xf32> to vector<8x128xf32>
    %404 = arith.addf %403, %24 : vector<8x128xf32>
    %405 = arith.mulf %400, %404 : vector<8x128xf32>
    %406 = arith.addf %402, %405 : vector<8x128xf32>
    %407 = math.tanh %406 : vector<8x128xf32>
    %408 = arith.subf %362, %407 : vector<8x128xf32>
    %409 = arith.mulf %401, %408 : vector<8x128xf32>
    %410 = arith.addf %407, %409 : vector<8x128xf32>
    %c64_154 = arith.constant 64 : index
    %c0_155 = arith.constant 0 : index
    %411 = vector.load %arg15[%c64_154, %c0_155] : memref<144x128xf32, #tpu.memory_space<vmem>>, vector<8x128xf32>
    tpu.vector_store %arg15[%c64_154, %c0_155], %387 {strides = array<i32>} : memref<144x128xf32, #tpu.memory_space<vmem>>, vector<8x128xf32>,
    %c64_156 = arith.constant 64 : index
    %c0_157 = arith.constant 0 : index
    %412 = vector.load %arg16[%c64_156, %c0_157] : memref<128x128xf32, #tpu.memory_space<vmem>>, vector<8x128xf32>
    tpu.vector_store %arg16[%c64_156, %c0_157], %410 {strides = array<i32>} : memref<128x128xf32, #tpu.memory_space<vmem>>, vector<8x128xf32>,
    %c64_158 = arith.constant 64 : index
    %c0_159 = arith.constant 0 : index
    %413 = vector.load %arg13[%c64_158, %c0_159] : memref<128x384xf32, #tpu.memory_space<vmem>>, vector<8x384xf32>
    %c0_160 = arith.constant 0 : index
    %c0_161 = arith.constant 0 : index
    %c0_162 = arith.constant 0 : index
    %414 = vector.load %arg4[%c0_160, %c0_161, %c0_162] : memref<2x128x384xf32, #tpu.memory_space<vmem>>, vector<1x128x384xf32>
    %415 = vector.shape_cast %414 : vector<1x128x384xf32> to vector<128x384xf32>
    %cst_163 = arith.constant dense<0.000000e+00> : vector<8x384xf32>
    %416 = tpu.matmul %387, %415, %cst_163 {dimension_numbers = #tpu.dot_dimension_numbers<[1], [0], [0], [1], [0, 0, 1, 1], [], []>} : vector<8x128xf32>, vector<128x384xf32>, vector<8x384xf32> -> vector<8x384xf32>
    %417 = vector.extract_strided_slice %413 {offsets = [0, 0], sizes = [8, 256], strides = [1, 1]} : vector<8x384xf32> to vector<8x256xf32>
    %418 = vector.extract_strided_slice %416 {offsets = [0, 0], sizes = [8, 256], strides = [1, 1]} : vector<8x384xf32> to vector<8x256xf32>
    %419 = arith.addf %417, %418 : vector<8x256xf32>
    %420 = arith.negf %419 : vector<8x256xf32>
    %421 = math.exp %420 : vector<8x256xf32>
    %cst_164 = arith.constant 1.000000e+00 : f32
    %422 = vector.broadcast %cst_164 : f32 to vector<8x256xf32>
    %423 = arith.addf %422, %421 : vector<8x256xf32>
    %424 = arith.divf %422, %423 : vector<8x256xf32>
    %425 = vector.extract_strided_slice %424 {offsets = [0, 0], sizes = [8, 128], strides = [1, 1]} : vector<8x256xf32> to vector<8x128xf32>
    %426 = vector.extract_strided_slice %424 {offsets = [0, 128], sizes = [8, 128], strides = [1, 1]} : vector<8x256xf32> to vector<8x128xf32>
    %427 = vector.extract_strided_slice %413 {offsets = [0, 256], sizes = [8, 128], strides = [1, 1]} : vector<8x384xf32> to vector<8x128xf32>
    %428 = vector.extract_strided_slice %416 {offsets = [0, 256], sizes = [8, 128], strides = [1, 1]} : vector<8x384xf32> to vector<8x128xf32>
    %429 = arith.addf %428, %20 : vector<8x128xf32>
    %430 = arith.mulf %425, %429 : vector<8x128xf32>
    %431 = arith.addf %427, %430 : vector<8x128xf32>
    %432 = math.tanh %431 : vector<8x128xf32>
    %433 = arith.subf %387, %432 : vector<8x128xf32>
    %434 = arith.mulf %426, %433 : vector<8x128xf32>
    %435 = arith.addf %432, %434 : vector<8x128xf32>
    %c56_165 = arith.constant 56 : index
    %c0_166 = arith.constant 0 : index
    %436 = vector.load %arg14[%c56_165, %c0_166] : memref<128x384xf32, #tpu.memory_space<vmem>>, vector<8x384xf32>
    %c1_167 = arith.constant 1 : index
    %c0_168 = arith.constant 0 : index
    %c0_169 = arith.constant 0 : index
    %437 = vector.load %arg4[%c1_167, %c0_168, %c0_169] : memref<2x128x384xf32, #tpu.memory_space<vmem>>, vector<1x128x384xf32>
    %438 = vector.shape_cast %437 : vector<1x128x384xf32> to vector<128x384xf32>
    %cst_170 = arith.constant dense<0.000000e+00> : vector<8x384xf32>
    %439 = tpu.matmul %410, %438, %cst_170 {dimension_numbers = #tpu.dot_dimension_numbers<[1], [0], [0], [1], [0, 0, 1, 1], [], []>} : vector<8x128xf32>, vector<128x384xf32>, vector<8x384xf32> -> vector<8x384xf32>
    %440 = vector.extract_strided_slice %436 {offsets = [0, 0], sizes = [8, 256], strides = [1, 1]} : vector<8x384xf32> to vector<8x256xf32>
    %441 = vector.extract_strided_slice %439 {offsets = [0, 0], sizes = [8, 256], strides = [1, 1]} : vector<8x384xf32> to vector<8x256xf32>
    %442 = arith.addf %440, %441 : vector<8x256xf32>
    %443 = arith.negf %442 : vector<8x256xf32>
    %444 = math.exp %443 : vector<8x256xf32>
    %cst_171 = arith.constant 1.000000e+00 : f32
    %445 = vector.broadcast %cst_171 : f32 to vector<8x256xf32>
    %446 = arith.addf %445, %444 : vector<8x256xf32>
    %447 = arith.divf %445, %446 : vector<8x256xf32>
    %448 = vector.extract_strided_slice %447 {offsets = [0, 0], sizes = [8, 128], strides = [1, 1]} : vector<8x256xf32> to vector<8x128xf32>
    %449 = vector.extract_strided_slice %447 {offsets = [0, 128], sizes = [8, 128], strides = [1, 1]} : vector<8x256xf32> to vector<8x128xf32>
    %450 = vector.extract_strided_slice %436 {offsets = [0, 256], sizes = [8, 128], strides = [1, 1]} : vector<8x384xf32> to vector<8x128xf32>
    %451 = vector.extract_strided_slice %439 {offsets = [0, 256], sizes = [8, 128], strides = [1, 1]} : vector<8x384xf32> to vector<8x128xf32>
    %452 = arith.addf %451, %24 : vector<8x128xf32>
    %453 = arith.mulf %448, %452 : vector<8x128xf32>
    %454 = arith.addf %450, %453 : vector<8x128xf32>
    %455 = math.tanh %454 : vector<8x128xf32>
    %456 = arith.subf %410, %455 : vector<8x128xf32>
    %457 = arith.mulf %449, %456 : vector<8x128xf32>
    %458 = arith.addf %455, %457 : vector<8x128xf32>
    %c72_172 = arith.constant 72 : index
    %c0_173 = arith.constant 0 : index
    %459 = vector.load %arg15[%c72_172, %c0_173] : memref<144x128xf32, #tpu.memory_space<vmem>>, vector<8x128xf32>
    tpu.vector_store %arg15[%c72_172, %c0_173], %435 {strides = array<i32>} : memref<144x128xf32, #tpu.memory_space<vmem>>, vector<8x128xf32>,
    %c56_174 = arith.constant 56 : index
    %c0_175 = arith.constant 0 : index
    %460 = vector.load %arg16[%c56_174, %c0_175] : memref<128x128xf32, #tpu.memory_space<vmem>>, vector<8x128xf32>
    tpu.vector_store %arg16[%c56_174, %c0_175], %458 {strides = array<i32>} : memref<128x128xf32, #tpu.memory_space<vmem>>, vector<8x128xf32>,
    %c72_176 = arith.constant 72 : index
    %c0_177 = arith.constant 0 : index
    %461 = vector.load %arg13[%c72_176, %c0_177] : memref<128x384xf32, #tpu.memory_space<vmem>>, vector<8x384xf32>
    %c0_178 = arith.constant 0 : index
    %c0_179 = arith.constant 0 : index
    %c0_180 = arith.constant 0 : index
    %462 = vector.load %arg4[%c0_178, %c0_179, %c0_180] : memref<2x128x384xf32, #tpu.memory_space<vmem>>, vector<1x128x384xf32>
    %463 = vector.shape_cast %462 : vector<1x128x384xf32> to vector<128x384xf32>
    %cst_181 = arith.constant dense<0.000000e+00> : vector<8x384xf32>
    %464 = tpu.matmul %435, %463, %cst_181 {dimension_numbers = #tpu.dot_dimension_numbers<[1], [0], [0], [1], [0, 0, 1, 1], [], []>} : vector<8x128xf32>, vector<128x384xf32>, vector<8x384xf32> -> vector<8x384xf32>
    %465 = vector.extract_strided_slice %461 {offsets = [0, 0], sizes = [8, 256], strides = [1, 1]} : vector<8x384xf32> to vector<8x256xf32>
    %466 = vector.extract_strided_slice %464 {offsets = [0, 0], sizes = [8, 256], strides = [1, 1]} : vector<8x384xf32> to vector<8x256xf32>
    %467 = arith.addf %465, %466 : vector<8x256xf32>
    %468 = arith.negf %467 : vector<8x256xf32>
    %469 = math.exp %468 : vector<8x256xf32>
    %cst_182 = arith.constant 1.000000e+00 : f32
    %470 = vector.broadcast %cst_182 : f32 to vector<8x256xf32>
    %471 = arith.addf %470, %469 : vector<8x256xf32>
    %472 = arith.divf %470, %471 : vector<8x256xf32>
    %473 = vector.extract_strided_slice %472 {offsets = [0, 0], sizes = [8, 128], strides = [1, 1]} : vector<8x256xf32> to vector<8x128xf32>
    %474 = vector.extract_strided_slice %472 {offsets = [0, 128], sizes = [8, 128], strides = [1, 1]} : vector<8x256xf32> to vector<8x128xf32>
    %475 = vector.extract_strided_slice %461 {offsets = [0, 256], sizes = [8, 128], strides = [1, 1]} : vector<8x384xf32> to vector<8x128xf32>
    %476 = vector.extract_strided_slice %464 {offsets = [0, 256], sizes = [8, 128], strides = [1, 1]} : vector<8x384xf32> to vector<8x128xf32>
    %477 = arith.addf %476, %20 : vector<8x128xf32>
    %478 = arith.mulf %473, %477 : vector<8x128xf32>
    %479 = arith.addf %475, %478 : vector<8x128xf32>
    %480 = math.tanh %479 : vector<8x128xf32>
    %481 = arith.subf %435, %480 : vector<8x128xf32>
    %482 = arith.mulf %474, %481 : vector<8x128xf32>
    %483 = arith.addf %480, %482 : vector<8x128xf32>
    %c48_183 = arith.constant 48 : index
    %c0_184 = arith.constant 0 : index
    %484 = vector.load %arg14[%c48_183, %c0_184] : memref<128x384xf32, #tpu.memory_space<vmem>>, vector<8x384xf32>
    %c1_185 = arith.constant 1 : index
    %c0_186 = arith.constant 0 : index
    %c0_187 = arith.constant 0 : index
    %485 = vector.load %arg4[%c1_185, %c0_186, %c0_187] : memref<2x128x384xf32, #tpu.memory_space<vmem>>, vector<1x128x384xf32>
    %486 = vector.shape_cast %485 : vector<1x128x384xf32> to vector<128x384xf32>
    %cst_188 = arith.constant dense<0.000000e+00> : vector<8x384xf32>
    %487 = tpu.matmul %458, %486, %cst_188 {dimension_numbers = #tpu.dot_dimension_numbers<[1], [0], [0], [1], [0, 0, 1, 1], [], []>} : vector<8x128xf32>, vector<128x384xf32>, vector<8x384xf32> -> vector<8x384xf32>
    %488 = vector.extract_strided_slice %484 {offsets = [0, 0], sizes = [8, 256], strides = [1, 1]} : vector<8x384xf32> to vector<8x256xf32>
    %489 = vector.extract_strided_slice %487 {offsets = [0, 0], sizes = [8, 256], strides = [1, 1]} : vector<8x384xf32> to vector<8x256xf32>
    %490 = arith.addf %488, %489 : vector<8x256xf32>
    %491 = arith.negf %490 : vector<8x256xf32>
    %492 = math.exp %491 : vector<8x256xf32>
    %cst_189 = arith.constant 1.000000e+00 : f32
    %493 = vector.broadcast %cst_189 : f32 to vector<8x256xf32>
    %494 = arith.addf %493, %492 : vector<8x256xf32>
    %495 = arith.divf %493, %494 : vector<8x256xf32>
    %496 = vector.extract_strided_slice %495 {offsets = [0, 0], sizes = [8, 128], strides = [1, 1]} : vector<8x256xf32> to vector<8x128xf32>
    %497 = vector.extract_strided_slice %495 {offsets = [0, 128], sizes = [8, 128], strides = [1, 1]} : vector<8x256xf32> to vector<8x128xf32>
    %498 = vector.extract_strided_slice %484 {offsets = [0, 256], sizes = [8, 128], strides = [1, 1]} : vector<8x384xf32> to vector<8x128xf32>
    %499 = vector.extract_strided_slice %487 {offsets = [0, 256], sizes = [8, 128], strides = [1, 1]} : vector<8x384xf32> to vector<8x128xf32>
    %500 = arith.addf %499, %24 : vector<8x128xf32>
    %501 = arith.mulf %496, %500 : vector<8x128xf32>
    %502 = arith.addf %498, %501 : vector<8x128xf32>
    %503 = math.tanh %502 : vector<8x128xf32>
    %504 = arith.subf %458, %503 : vector<8x128xf32>
    %505 = arith.mulf %497, %504 : vector<8x128xf32>
    %506 = arith.addf %503, %505 : vector<8x128xf32>
    %c80_190 = arith.constant 80 : index
    %c0_191 = arith.constant 0 : index
    %507 = vector.load %arg15[%c80_190, %c0_191] : memref<144x128xf32, #tpu.memory_space<vmem>>, vector<8x128xf32>
    tpu.vector_store %arg15[%c80_190, %c0_191], %483 {strides = array<i32>} : memref<144x128xf32, #tpu.memory_space<vmem>>, vector<8x128xf32>,
    %c48_192 = arith.constant 48 : index
    %c0_193 = arith.constant 0 : index
    %508 = vector.load %arg16[%c48_192, %c0_193] : memref<128x128xf32, #tpu.memory_space<vmem>>, vector<8x128xf32>
    tpu.vector_store %arg16[%c48_192, %c0_193], %506 {strides = array<i32>} : memref<128x128xf32, #tpu.memory_space<vmem>>, vector<8x128xf32>,
    %c80_194 = arith.constant 80 : index
    %c0_195 = arith.constant 0 : index
    %509 = vector.load %arg13[%c80_194, %c0_195] : memref<128x384xf32, #tpu.memory_space<vmem>>, vector<8x384xf32>
    %c0_196 = arith.constant 0 : index
    %c0_197 = arith.constant 0 : index
    %c0_198 = arith.constant 0 : index
    %510 = vector.load %arg4[%c0_196, %c0_197, %c0_198] : memref<2x128x384xf32, #tpu.memory_space<vmem>>, vector<1x128x384xf32>
    %511 = vector.shape_cast %510 : vector<1x128x384xf32> to vector<128x384xf32>
    %cst_199 = arith.constant dense<0.000000e+00> : vector<8x384xf32>
    %512 = tpu.matmul %483, %511, %cst_199 {dimension_numbers = #tpu.dot_dimension_numbers<[1], [0], [0], [1], [0, 0, 1, 1], [], []>} : vector<8x128xf32>, vector<128x384xf32>, vector<8x384xf32> -> vector<8x384xf32>
    %513 = vector.extract_strided_slice %509 {offsets = [0, 0], sizes = [8, 256], strides = [1, 1]} : vector<8x384xf32> to vector<8x256xf32>
    %514 = vector.extract_strided_slice %512 {offsets = [0, 0], sizes = [8, 256], strides = [1, 1]} : vector<8x384xf32> to vector<8x256xf32>
    %515 = arith.addf %513, %514 : vector<8x256xf32>
    %516 = arith.negf %515 : vector<8x256xf32>
    %517 = math.exp %516 : vector<8x256xf32>
    %cst_200 = arith.constant 1.000000e+00 : f32
    %518 = vector.broadcast %cst_200 : f32 to vector<8x256xf32>
    %519 = arith.addf %518, %517 : vector<8x256xf32>
    %520 = arith.divf %518, %519 : vector<8x256xf32>
    %521 = vector.extract_strided_slice %520 {offsets = [0, 0], sizes = [8, 128], strides = [1, 1]} : vector<8x256xf32> to vector<8x128xf32>
    %522 = vector.extract_strided_slice %520 {offsets = [0, 128], sizes = [8, 128], strides = [1, 1]} : vector<8x256xf32> to vector<8x128xf32>
    %523 = vector.extract_strided_slice %509 {offsets = [0, 256], sizes = [8, 128], strides = [1, 1]} : vector<8x384xf32> to vector<8x128xf32>
    %524 = vector.extract_strided_slice %512 {offsets = [0, 256], sizes = [8, 128], strides = [1, 1]} : vector<8x384xf32> to vector<8x128xf32>
    %525 = arith.addf %524, %20 : vector<8x128xf32>
    %526 = arith.mulf %521, %525 : vector<8x128xf32>
    %527 = arith.addf %523, %526 : vector<8x128xf32>
    %528 = math.tanh %527 : vector<8x128xf32>
    %529 = arith.subf %483, %528 : vector<8x128xf32>
    %530 = arith.mulf %522, %529 : vector<8x128xf32>
    %531 = arith.addf %528, %530 : vector<8x128xf32>
    %c40_201 = arith.constant 40 : index
    %c0_202 = arith.constant 0 : index
    %532 = vector.load %arg14[%c40_201, %c0_202] : memref<128x384xf32, #tpu.memory_space<vmem>>, vector<8x384xf32>
    %c1_203 = arith.constant 1 : index
    %c0_204 = arith.constant 0 : index
    %c0_205 = arith.constant 0 : index
    %533 = vector.load %arg4[%c1_203, %c0_204, %c0_205] : memref<2x128x384xf32, #tpu.memory_space<vmem>>, vector<1x128x384xf32>
    %534 = vector.shape_cast %533 : vector<1x128x384xf32> to vector<128x384xf32>
    %cst_206 = arith.constant dense<0.000000e+00> : vector<8x384xf32>
    %535 = tpu.matmul %506, %534, %cst_206 {dimension_numbers = #tpu.dot_dimension_numbers<[1], [0], [0], [1], [0, 0, 1, 1], [], []>} : vector<8x128xf32>, vector<128x384xf32>, vector<8x384xf32> -> vector<8x384xf32>
    %536 = vector.extract_strided_slice %532 {offsets = [0, 0], sizes = [8, 256], strides = [1, 1]} : vector<8x384xf32> to vector<8x256xf32>
    %537 = vector.extract_strided_slice %535 {offsets = [0, 0], sizes = [8, 256], strides = [1, 1]} : vector<8x384xf32> to vector<8x256xf32>
    %538 = arith.addf %536, %537 : vector<8x256xf32>
    %539 = arith.negf %538 : vector<8x256xf32>
    %540 = math.exp %539 : vector<8x256xf32>
    %cst_207 = arith.constant 1.000000e+00 : f32
    %541 = vector.broadcast %cst_207 : f32 to vector<8x256xf32>
    %542 = arith.addf %541, %540 : vector<8x256xf32>
    %543 = arith.divf %541, %542 : vector<8x256xf32>
    %544 = vector.extract_strided_slice %543 {offsets = [0, 0], sizes = [8, 128], strides = [1, 1]} : vector<8x256xf32> to vector<8x128xf32>
    %545 = vector.extract_strided_slice %543 {offsets = [0, 128], sizes = [8, 128], strides = [1, 1]} : vector<8x256xf32> to vector<8x128xf32>
    %546 = vector.extract_strided_slice %532 {offsets = [0, 256], sizes = [8, 128], strides = [1, 1]} : vector<8x384xf32> to vector<8x128xf32>
    %547 = vector.extract_strided_slice %535 {offsets = [0, 256], sizes = [8, 128], strides = [1, 1]} : vector<8x384xf32> to vector<8x128xf32>
    %548 = arith.addf %547, %24 : vector<8x128xf32>
    %549 = arith.mulf %544, %548 : vector<8x128xf32>
    %550 = arith.addf %546, %549 : vector<8x128xf32>
    %551 = math.tanh %550 : vector<8x128xf32>
    %552 = arith.subf %506, %551 : vector<8x128xf32>
    %553 = arith.mulf %545, %552 : vector<8x128xf32>
    %554 = arith.addf %551, %553 : vector<8x128xf32>
    %c88_208 = arith.constant 88 : index
    %c0_209 = arith.constant 0 : index
    %555 = vector.load %arg15[%c88_208, %c0_209] : memref<144x128xf32, #tpu.memory_space<vmem>>, vector<8x128xf32>
    tpu.vector_store %arg15[%c88_208, %c0_209], %531 {strides = array<i32>} : memref<144x128xf32, #tpu.memory_space<vmem>>, vector<8x128xf32>,
    %c40_210 = arith.constant 40 : index
    %c0_211 = arith.constant 0 : index
    %556 = vector.load %arg16[%c40_210, %c0_211] : memref<128x128xf32, #tpu.memory_space<vmem>>, vector<8x128xf32>
    tpu.vector_store %arg16[%c40_210, %c0_211], %554 {strides = array<i32>} : memref<128x128xf32, #tpu.memory_space<vmem>>, vector<8x128xf32>,
    %c88_212 = arith.constant 88 : index
    %c0_213 = arith.constant 0 : index
    %557 = vector.load %arg13[%c88_212, %c0_213] : memref<128x384xf32, #tpu.memory_space<vmem>>, vector<8x384xf32>
    %c0_214 = arith.constant 0 : index
    %c0_215 = arith.constant 0 : index
    %c0_216 = arith.constant 0 : index
    %558 = vector.load %arg4[%c0_214, %c0_215, %c0_216] : memref<2x128x384xf32, #tpu.memory_space<vmem>>, vector<1x128x384xf32>
    %559 = vector.shape_cast %558 : vector<1x128x384xf32> to vector<128x384xf32>
    %cst_217 = arith.constant dense<0.000000e+00> : vector<8x384xf32>
    %560 = tpu.matmul %531, %559, %cst_217 {dimension_numbers = #tpu.dot_dimension_numbers<[1], [0], [0], [1], [0, 0, 1, 1], [], []>} : vector<8x128xf32>, vector<128x384xf32>, vector<8x384xf32> -> vector<8x384xf32>
    %561 = vector.extract_strided_slice %557 {offsets = [0, 0], sizes = [8, 256], strides = [1, 1]} : vector<8x384xf32> to vector<8x256xf32>
    %562 = vector.extract_strided_slice %560 {offsets = [0, 0], sizes = [8, 256], strides = [1, 1]} : vector<8x384xf32> to vector<8x256xf32>
    %563 = arith.addf %561, %562 : vector<8x256xf32>
    %564 = arith.negf %563 : vector<8x256xf32>
    %565 = math.exp %564 : vector<8x256xf32>
    %cst_218 = arith.constant 1.000000e+00 : f32
    %566 = vector.broadcast %cst_218 : f32 to vector<8x256xf32>
    %567 = arith.addf %566, %565 : vector<8x256xf32>
    %568 = arith.divf %566, %567 : vector<8x256xf32>
    %569 = vector.extract_strided_slice %568 {offsets = [0, 0], sizes = [8, 128], strides = [1, 1]} : vector<8x256xf32> to vector<8x128xf32>
    %570 = vector.extract_strided_slice %568 {offsets = [0, 128], sizes = [8, 128], strides = [1, 1]} : vector<8x256xf32> to vector<8x128xf32>
    %571 = vector.extract_strided_slice %557 {offsets = [0, 256], sizes = [8, 128], strides = [1, 1]} : vector<8x384xf32> to vector<8x128xf32>
    %572 = vector.extract_strided_slice %560 {offsets = [0, 256], sizes = [8, 128], strides = [1, 1]} : vector<8x384xf32> to vector<8x128xf32>
    %573 = arith.addf %572, %20 : vector<8x128xf32>
    %574 = arith.mulf %569, %573 : vector<8x128xf32>
    %575 = arith.addf %571, %574 : vector<8x128xf32>
    %576 = math.tanh %575 : vector<8x128xf32>
    %577 = arith.subf %531, %576 : vector<8x128xf32>
    %578 = arith.mulf %570, %577 : vector<8x128xf32>
    %579 = arith.addf %576, %578 : vector<8x128xf32>
    %c32_219 = arith.constant 32 : index
    %c0_220 = arith.constant 0 : index
    %580 = vector.load %arg14[%c32_219, %c0_220] : memref<128x384xf32, #tpu.memory_space<vmem>>, vector<8x384xf32>
    %c1_221 = arith.constant 1 : index
    %c0_222 = arith.constant 0 : index
    %c0_223 = arith.constant 0 : index
    %581 = vector.load %arg4[%c1_221, %c0_222, %c0_223] : memref<2x128x384xf32, #tpu.memory_space<vmem>>, vector<1x128x384xf32>
    %582 = vector.shape_cast %581 : vector<1x128x384xf32> to vector<128x384xf32>
    %cst_224 = arith.constant dense<0.000000e+00> : vector<8x384xf32>
    %583 = tpu.matmul %554, %582, %cst_224 {dimension_numbers = #tpu.dot_dimension_numbers<[1], [0], [0], [1], [0, 0, 1, 1], [], []>} : vector<8x128xf32>, vector<128x384xf32>, vector<8x384xf32> -> vector<8x384xf32>
    %584 = vector.extract_strided_slice %580 {offsets = [0, 0], sizes = [8, 256], strides = [1, 1]} : vector<8x384xf32> to vector<8x256xf32>
    %585 = vector.extract_strided_slice %583 {offsets = [0, 0], sizes = [8, 256], strides = [1, 1]} : vector<8x384xf32> to vector<8x256xf32>
    %586 = arith.addf %584, %585 : vector<8x256xf32>
    %587 = arith.negf %586 : vector<8x256xf32>
    %588 = math.exp %587 : vector<8x256xf32>
    %cst_225 = arith.constant 1.000000e+00 : f32
    %589 = vector.broadcast %cst_225 : f32 to vector<8x256xf32>
    %590 = arith.addf %589, %588 : vector<8x256xf32>
    %591 = arith.divf %589, %590 : vector<8x256xf32>
    %592 = vector.extract_strided_slice %591 {offsets = [0, 0], sizes = [8, 128], strides = [1, 1]} : vector<8x256xf32> to vector<8x128xf32>
    %593 = vector.extract_strided_slice %591 {offsets = [0, 128], sizes = [8, 128], strides = [1, 1]} : vector<8x256xf32> to vector<8x128xf32>
    %594 = vector.extract_strided_slice %580 {offsets = [0, 256], sizes = [8, 128], strides = [1, 1]} : vector<8x384xf32> to vector<8x128xf32>
    %595 = vector.extract_strided_slice %583 {offsets = [0, 256], sizes = [8, 128], strides = [1, 1]} : vector<8x384xf32> to vector<8x128xf32>
    %596 = arith.addf %595, %24 : vector<8x128xf32>
    %597 = arith.mulf %592, %596 : vector<8x128xf32>
    %598 = arith.addf %594, %597 : vector<8x128xf32>
    %599 = math.tanh %598 : vector<8x128xf32>
    %600 = arith.subf %554, %599 : vector<8x128xf32>
    %601 = arith.mulf %593, %600 : vector<8x128xf32>
    %602 = arith.addf %599, %601 : vector<8x128xf32>
    %c96_226 = arith.constant 96 : index
    %c0_227 = arith.constant 0 : index
    %603 = vector.load %arg15[%c96_226, %c0_227] : memref<144x128xf32, #tpu.memory_space<vmem>>, vector<8x128xf32>
    tpu.vector_store %arg15[%c96_226, %c0_227], %579 {strides = array<i32>} : memref<144x128xf32, #tpu.memory_space<vmem>>, vector<8x128xf32>,
    %c32_228 = arith.constant 32 : index
    %c0_229 = arith.constant 0 : index
    %604 = vector.load %arg16[%c32_228, %c0_229] : memref<128x128xf32, #tpu.memory_space<vmem>>, vector<8x128xf32>
    tpu.vector_store %arg16[%c32_228, %c0_229], %602 {strides = array<i32>} : memref<128x128xf32, #tpu.memory_space<vmem>>, vector<8x128xf32>,
    %c96_230 = arith.constant 96 : index
    %c0_231 = arith.constant 0 : index
    %605 = vector.load %arg13[%c96_230, %c0_231] : memref<128x384xf32, #tpu.memory_space<vmem>>, vector<8x384xf32>
    %c0_232 = arith.constant 0 : index
    %c0_233 = arith.constant 0 : index
    %c0_234 = arith.constant 0 : index
    %606 = vector.load %arg4[%c0_232, %c0_233, %c0_234] : memref<2x128x384xf32, #tpu.memory_space<vmem>>, vector<1x128x384xf32>
    %607 = vector.shape_cast %606 : vector<1x128x384xf32> to vector<128x384xf32>
    %cst_235 = arith.constant dense<0.000000e+00> : vector<8x384xf32>
    %608 = tpu.matmul %579, %607, %cst_235 {dimension_numbers = #tpu.dot_dimension_numbers<[1], [0], [0], [1], [0, 0, 1, 1], [], []>} : vector<8x128xf32>, vector<128x384xf32>, vector<8x384xf32> -> vector<8x384xf32>
    %609 = vector.extract_strided_slice %605 {offsets = [0, 0], sizes = [8, 256], strides = [1, 1]} : vector<8x384xf32> to vector<8x256xf32>
    %610 = vector.extract_strided_slice %608 {offsets = [0, 0], sizes = [8, 256], strides = [1, 1]} : vector<8x384xf32> to vector<8x256xf32>
    %611 = arith.addf %609, %610 : vector<8x256xf32>
    %612 = arith.negf %611 : vector<8x256xf32>
    %613 = math.exp %612 : vector<8x256xf32>
    %cst_236 = arith.constant 1.000000e+00 : f32
    %614 = vector.broadcast %cst_236 : f32 to vector<8x256xf32>
    %615 = arith.addf %614, %613 : vector<8x256xf32>
    %616 = arith.divf %614, %615 : vector<8x256xf32>
    %617 = vector.extract_strided_slice %616 {offsets = [0, 0], sizes = [8, 128], strides = [1, 1]} : vector<8x256xf32> to vector<8x128xf32>
    %618 = vector.extract_strided_slice %616 {offsets = [0, 128], sizes = [8, 128], strides = [1, 1]} : vector<8x256xf32> to vector<8x128xf32>
    %619 = vector.extract_strided_slice %605 {offsets = [0, 256], sizes = [8, 128], strides = [1, 1]} : vector<8x384xf32> to vector<8x128xf32>
    %620 = vector.extract_strided_slice %608 {offsets = [0, 256], sizes = [8, 128], strides = [1, 1]} : vector<8x384xf32> to vector<8x128xf32>
    %621 = arith.addf %620, %20 : vector<8x128xf32>
    %622 = arith.mulf %617, %621 : vector<8x128xf32>
    %623 = arith.addf %619, %622 : vector<8x128xf32>
    %624 = math.tanh %623 : vector<8x128xf32>
    %625 = arith.subf %579, %624 : vector<8x128xf32>
    %626 = arith.mulf %618, %625 : vector<8x128xf32>
    %627 = arith.addf %624, %626 : vector<8x128xf32>
    %c24_237 = arith.constant 24 : index
    %c0_238 = arith.constant 0 : index
    %628 = vector.load %arg14[%c24_237, %c0_238] : memref<128x384xf32, #tpu.memory_space<vmem>>, vector<8x384xf32>
    %c1_239 = arith.constant 1 : index
    %c0_240 = arith.constant 0 : index
    %c0_241 = arith.constant 0 : index
    %629 = vector.load %arg4[%c1_239, %c0_240, %c0_241] : memref<2x128x384xf32, #tpu.memory_space<vmem>>, vector<1x128x384xf32>
    %630 = vector.shape_cast %629 : vector<1x128x384xf32> to vector<128x384xf32>
    %cst_242 = arith.constant dense<0.000000e+00> : vector<8x384xf32>
    %631 = tpu.matmul %602, %630, %cst_242 {dimension_numbers = #tpu.dot_dimension_numbers<[1], [0], [0], [1], [0, 0, 1, 1], [], []>} : vector<8x128xf32>, vector<128x384xf32>, vector<8x384xf32> -> vector<8x384xf32>
    %632 = vector.extract_strided_slice %628 {offsets = [0, 0], sizes = [8, 256], strides = [1, 1]} : vector<8x384xf32> to vector<8x256xf32>
    %633 = vector.extract_strided_slice %631 {offsets = [0, 0], sizes = [8, 256], strides = [1, 1]} : vector<8x384xf32> to vector<8x256xf32>
    %634 = arith.addf %632, %633 : vector<8x256xf32>
    %635 = arith.negf %634 : vector<8x256xf32>
    %636 = math.exp %635 : vector<8x256xf32>
    %cst_243 = arith.constant 1.000000e+00 : f32
    %637 = vector.broadcast %cst_243 : f32 to vector<8x256xf32>
    %638 = arith.addf %637, %636 : vector<8x256xf32>
    %639 = arith.divf %637, %638 : vector<8x256xf32>
    %640 = vector.extract_strided_slice %639 {offsets = [0, 0], sizes = [8, 128], strides = [1, 1]} : vector<8x256xf32> to vector<8x128xf32>
    %641 = vector.extract_strided_slice %639 {offsets = [0, 128], sizes = [8, 128], strides = [1, 1]} : vector<8x256xf32> to vector<8x128xf32>
    %642 = vector.extract_strided_slice %628 {offsets = [0, 256], sizes = [8, 128], strides = [1, 1]} : vector<8x384xf32> to vector<8x128xf32>
    %643 = vector.extract_strided_slice %631 {offsets = [0, 256], sizes = [8, 128], strides = [1, 1]} : vector<8x384xf32> to vector<8x128xf32>
    %644 = arith.addf %643, %24 : vector<8x128xf32>
    %645 = arith.mulf %640, %644 : vector<8x128xf32>
    %646 = arith.addf %642, %645 : vector<8x128xf32>
    %647 = math.tanh %646 : vector<8x128xf32>
    %648 = arith.subf %602, %647 : vector<8x128xf32>
    %649 = arith.mulf %641, %648 : vector<8x128xf32>
    %650 = arith.addf %647, %649 : vector<8x128xf32>
    %c104_244 = arith.constant 104 : index
    %c0_245 = arith.constant 0 : index
    %651 = vector.load %arg15[%c104_244, %c0_245] : memref<144x128xf32, #tpu.memory_space<vmem>>, vector<8x128xf32>
    tpu.vector_store %arg15[%c104_244, %c0_245], %627 {strides = array<i32>} : memref<144x128xf32, #tpu.memory_space<vmem>>, vector<8x128xf32>,
    %c24_246 = arith.constant 24 : index
    %c0_247 = arith.constant 0 : index
    %652 = vector.load %arg16[%c24_246, %c0_247] : memref<128x128xf32, #tpu.memory_space<vmem>>, vector<8x128xf32>
    tpu.vector_store %arg16[%c24_246, %c0_247], %650 {strides = array<i32>} : memref<128x128xf32, #tpu.memory_space<vmem>>, vector<8x128xf32>,
    %c104_248 = arith.constant 104 : index
    %c0_249 = arith.constant 0 : index
    %653 = vector.load %arg13[%c104_248, %c0_249] : memref<128x384xf32, #tpu.memory_space<vmem>>, vector<8x384xf32>
    %c0_250 = arith.constant 0 : index
    %c0_251 = arith.constant 0 : index
    %c0_252 = arith.constant 0 : index
    %654 = vector.load %arg4[%c0_250, %c0_251, %c0_252] : memref<2x128x384xf32, #tpu.memory_space<vmem>>, vector<1x128x384xf32>
    %655 = vector.shape_cast %654 : vector<1x128x384xf32> to vector<128x384xf32>
    %cst_253 = arith.constant dense<0.000000e+00> : vector<8x384xf32>
    %656 = tpu.matmul %627, %655, %cst_253 {dimension_numbers = #tpu.dot_dimension_numbers<[1], [0], [0], [1], [0, 0, 1, 1], [], []>} : vector<8x128xf32>, vector<128x384xf32>, vector<8x384xf32> -> vector<8x384xf32>
    %657 = vector.extract_strided_slice %653 {offsets = [0, 0], sizes = [8, 256], strides = [1, 1]} : vector<8x384xf32> to vector<8x256xf32>
    %658 = vector.extract_strided_slice %656 {offsets = [0, 0], sizes = [8, 256], strides = [1, 1]} : vector<8x384xf32> to vector<8x256xf32>
    %659 = arith.addf %657, %658 : vector<8x256xf32>
    %660 = arith.negf %659 : vector<8x256xf32>
    %661 = math.exp %660 : vector<8x256xf32>
    %cst_254 = arith.constant 1.000000e+00 : f32
    %662 = vector.broadcast %cst_254 : f32 to vector<8x256xf32>
    %663 = arith.addf %662, %661 : vector<8x256xf32>
    %664 = arith.divf %662, %663 : vector<8x256xf32>
    %665 = vector.extract_strided_slice %664 {offsets = [0, 0], sizes = [8, 128], strides = [1, 1]} : vector<8x256xf32> to vector<8x128xf32>
    %666 = vector.extract_strided_slice %664 {offsets = [0, 128], sizes = [8, 128], strides = [1, 1]} : vector<8x256xf32> to vector<8x128xf32>
    %667 = vector.extract_strided_slice %653 {offsets = [0, 256], sizes = [8, 128], strides = [1, 1]} : vector<8x384xf32> to vector<8x128xf32>
    %668 = vector.extract_strided_slice %656 {offsets = [0, 256], sizes = [8, 128], strides = [1, 1]} : vector<8x384xf32> to vector<8x128xf32>
    %669 = arith.addf %668, %20 : vector<8x128xf32>
    %670 = arith.mulf %665, %669 : vector<8x128xf32>
    %671 = arith.addf %667, %670 : vector<8x128xf32>
    %672 = math.tanh %671 : vector<8x128xf32>
    %673 = arith.subf %627, %672 : vector<8x128xf32>
    %674 = arith.mulf %666, %673 : vector<8x128xf32>
    %675 = arith.addf %672, %674 : vector<8x128xf32>
    %c16_255 = arith.constant 16 : index
    %c0_256 = arith.constant 0 : index
    %676 = vector.load %arg14[%c16_255, %c0_256] : memref<128x384xf32, #tpu.memory_space<vmem>>, vector<8x384xf32>
    %c1_257 = arith.constant 1 : index
    %c0_258 = arith.constant 0 : index
    %c0_259 = arith.constant 0 : index
    %677 = vector.load %arg4[%c1_257, %c0_258, %c0_259] : memref<2x128x384xf32, #tpu.memory_space<vmem>>, vector<1x128x384xf32>
    %678 = vector.shape_cast %677 : vector<1x128x384xf32> to vector<128x384xf32>
    %cst_260 = arith.constant dense<0.000000e+00> : vector<8x384xf32>
    %679 = tpu.matmul %650, %678, %cst_260 {dimension_numbers = #tpu.dot_dimension_numbers<[1], [0], [0], [1], [0, 0, 1, 1], [], []>} : vector<8x128xf32>, vector<128x384xf32>, vector<8x384xf32> -> vector<8x384xf32>
    %680 = vector.extract_strided_slice %676 {offsets = [0, 0], sizes = [8, 256], strides = [1, 1]} : vector<8x384xf32> to vector<8x256xf32>
    %681 = vector.extract_strided_slice %679 {offsets = [0, 0], sizes = [8, 256], strides = [1, 1]} : vector<8x384xf32> to vector<8x256xf32>
    %682 = arith.addf %680, %681 : vector<8x256xf32>
    %683 = arith.negf %682 : vector<8x256xf32>
    %684 = math.exp %683 : vector<8x256xf32>
    %cst_261 = arith.constant 1.000000e+00 : f32
    %685 = vector.broadcast %cst_261 : f32 to vector<8x256xf32>
    %686 = arith.addf %685, %684 : vector<8x256xf32>
    %687 = arith.divf %685, %686 : vector<8x256xf32>
    %688 = vector.extract_strided_slice %687 {offsets = [0, 0], sizes = [8, 128], strides = [1, 1]} : vector<8x256xf32> to vector<8x128xf32>
    %689 = vector.extract_strided_slice %687 {offsets = [0, 128], sizes = [8, 128], strides = [1, 1]} : vector<8x256xf32> to vector<8x128xf32>
    %690 = vector.extract_strided_slice %676 {offsets = [0, 256], sizes = [8, 128], strides = [1, 1]} : vector<8x384xf32> to vector<8x128xf32>
    %691 = vector.extract_strided_slice %679 {offsets = [0, 256], sizes = [8, 128], strides = [1, 1]} : vector<8x384xf32> to vector<8x128xf32>
    %692 = arith.addf %691, %24 : vector<8x128xf32>
    %693 = arith.mulf %688, %692 : vector<8x128xf32>
    %694 = arith.addf %690, %693 : vector<8x128xf32>
    %695 = math.tanh %694 : vector<8x128xf32>
    %696 = arith.subf %650, %695 : vector<8x128xf32>
    %697 = arith.mulf %689, %696 : vector<8x128xf32>
    %698 = arith.addf %695, %697 : vector<8x128xf32>
    %c112_262 = arith.constant 112 : index
    %c0_263 = arith.constant 0 : index
    %699 = vector.load %arg15[%c112_262, %c0_263] : memref<144x128xf32, #tpu.memory_space<vmem>>, vector<8x128xf32>
    tpu.vector_store %arg15[%c112_262, %c0_263], %675 {strides = array<i32>} : memref<144x128xf32, #tpu.memory_space<vmem>>, vector<8x128xf32>,
    %c16_264 = arith.constant 16 : index
    %c0_265 = arith.constant 0 : index
    %700 = vector.load %arg16[%c16_264, %c0_265] : memref<128x128xf32, #tpu.memory_space<vmem>>, vector<8x128xf32>
    tpu.vector_store %arg16[%c16_264, %c0_265], %698 {strides = array<i32>} : memref<128x128xf32, #tpu.memory_space<vmem>>, vector<8x128xf32>,
    %c112_266 = arith.constant 112 : index
    %c0_267 = arith.constant 0 : index
    %701 = vector.load %arg13[%c112_266, %c0_267] : memref<128x384xf32, #tpu.memory_space<vmem>>, vector<8x384xf32>
    %c0_268 = arith.constant 0 : index
    %c0_269 = arith.constant 0 : index
    %c0_270 = arith.constant 0 : index
    %702 = vector.load %arg4[%c0_268, %c0_269, %c0_270] : memref<2x128x384xf32, #tpu.memory_space<vmem>>, vector<1x128x384xf32>
    %703 = vector.shape_cast %702 : vector<1x128x384xf32> to vector<128x384xf32>
    %cst_271 = arith.constant dense<0.000000e+00> : vector<8x384xf32>
    %704 = tpu.matmul %675, %703, %cst_271 {dimension_numbers = #tpu.dot_dimension_numbers<[1], [0], [0], [1], [0, 0, 1, 1], [], []>} : vector<8x128xf32>, vector<128x384xf32>, vector<8x384xf32> -> vector<8x384xf32>
    %705 = vector.extract_strided_slice %701 {offsets = [0, 0], sizes = [8, 256], strides = [1, 1]} : vector<8x384xf32> to vector<8x256xf32>
    %706 = vector.extract_strided_slice %704 {offsets = [0, 0], sizes = [8, 256], strides = [1, 1]} : vector<8x384xf32> to vector<8x256xf32>
    %707 = arith.addf %705, %706 : vector<8x256xf32>
    %708 = arith.negf %707 : vector<8x256xf32>
    %709 = math.exp %708 : vector<8x256xf32>
    %cst_272 = arith.constant 1.000000e+00 : f32
    %710 = vector.broadcast %cst_272 : f32 to vector<8x256xf32>
    %711 = arith.addf %710, %709 : vector<8x256xf32>
    %712 = arith.divf %710, %711 : vector<8x256xf32>
    %713 = vector.extract_strided_slice %712 {offsets = [0, 0], sizes = [8, 128], strides = [1, 1]} : vector<8x256xf32> to vector<8x128xf32>
    %714 = vector.extract_strided_slice %712 {offsets = [0, 128], sizes = [8, 128], strides = [1, 1]} : vector<8x256xf32> to vector<8x128xf32>
    %715 = vector.extract_strided_slice %701 {offsets = [0, 256], sizes = [8, 128], strides = [1, 1]} : vector<8x384xf32> to vector<8x128xf32>
    %716 = vector.extract_strided_slice %704 {offsets = [0, 256], sizes = [8, 128], strides = [1, 1]} : vector<8x384xf32> to vector<8x128xf32>
    %717 = arith.addf %716, %20 : vector<8x128xf32>
    %718 = arith.mulf %713, %717 : vector<8x128xf32>
    %719 = arith.addf %715, %718 : vector<8x128xf32>
    %720 = math.tanh %719 : vector<8x128xf32>
    %721 = arith.subf %675, %720 : vector<8x128xf32>
    %722 = arith.mulf %714, %721 : vector<8x128xf32>
    %723 = arith.addf %720, %722 : vector<8x128xf32>
    %c8_273 = arith.constant 8 : index
    %c0_274 = arith.constant 0 : index
    %724 = vector.load %arg14[%c8_273, %c0_274] : memref<128x384xf32, #tpu.memory_space<vmem>>, vector<8x384xf32>
    %c1_275 = arith.constant 1 : index
    %c0_276 = arith.constant 0 : index
    %c0_277 = arith.constant 0 : index
    %725 = vector.load %arg4[%c1_275, %c0_276, %c0_277] : memref<2x128x384xf32, #tpu.memory_space<vmem>>, vector<1x128x384xf32>
    %726 = vector.shape_cast %725 : vector<1x128x384xf32> to vector<128x384xf32>
    %cst_278 = arith.constant dense<0.000000e+00> : vector<8x384xf32>
    %727 = tpu.matmul %698, %726, %cst_278 {dimension_numbers = #tpu.dot_dimension_numbers<[1], [0], [0], [1], [0, 0, 1, 1], [], []>} : vector<8x128xf32>, vector<128x384xf32>, vector<8x384xf32> -> vector<8x384xf32>
    %728 = vector.extract_strided_slice %724 {offsets = [0, 0], sizes = [8, 256], strides = [1, 1]} : vector<8x384xf32> to vector<8x256xf32>
    %729 = vector.extract_strided_slice %727 {offsets = [0, 0], sizes = [8, 256], strides = [1, 1]} : vector<8x384xf32> to vector<8x256xf32>
    %730 = arith.addf %728, %729 : vector<8x256xf32>
    %731 = arith.negf %730 : vector<8x256xf32>
    %732 = math.exp %731 : vector<8x256xf32>
    %cst_279 = arith.constant 1.000000e+00 : f32
    %733 = vector.broadcast %cst_279 : f32 to vector<8x256xf32>
    %734 = arith.addf %733, %732 : vector<8x256xf32>
    %735 = arith.divf %733, %734 : vector<8x256xf32>
    %736 = vector.extract_strided_slice %735 {offsets = [0, 0], sizes = [8, 128], strides = [1, 1]} : vector<8x256xf32> to vector<8x128xf32>
    %737 = vector.extract_strided_slice %735 {offsets = [0, 128], sizes = [8, 128], strides = [1, 1]} : vector<8x256xf32> to vector<8x128xf32>
    %738 = vector.extract_strided_slice %724 {offsets = [0, 256], sizes = [8, 128], strides = [1, 1]} : vector<8x384xf32> to vector<8x128xf32>
    %739 = vector.extract_strided_slice %727 {offsets = [0, 256], sizes = [8, 128], strides = [1, 1]} : vector<8x384xf32> to vector<8x128xf32>
    %740 = arith.addf %739, %24 : vector<8x128xf32>
    %741 = arith.mulf %736, %740 : vector<8x128xf32>
    %742 = arith.addf %738, %741 : vector<8x128xf32>
    %743 = math.tanh %742 : vector<8x128xf32>
    %744 = arith.subf %698, %743 : vector<8x128xf32>
    %745 = arith.mulf %737, %744 : vector<8x128xf32>
    %746 = arith.addf %743, %745 : vector<8x128xf32>
    %c120_280 = arith.constant 120 : index
    %c0_281 = arith.constant 0 : index
    %747 = vector.load %arg15[%c120_280, %c0_281] : memref<144x128xf32, #tpu.memory_space<vmem>>, vector<8x128xf32>
    tpu.vector_store %arg15[%c120_280, %c0_281], %723 {strides = array<i32>} : memref<144x128xf32, #tpu.memory_space<vmem>>, vector<8x128xf32>,
    %c8_282 = arith.constant 8 : index
    %c0_283 = arith.constant 0 : index
    %748 = vector.load %arg16[%c8_282, %c0_283] : memref<128x128xf32, #tpu.memory_space<vmem>>, vector<8x128xf32>
    tpu.vector_store %arg16[%c8_282, %c0_283], %746 {strides = array<i32>} : memref<128x128xf32, #tpu.memory_space<vmem>>, vector<8x128xf32>,
    %c120_284 = arith.constant 120 : index
    %c0_285 = arith.constant 0 : index
    %749 = vector.load %arg13[%c120_284, %c0_285] : memref<128x384xf32, #tpu.memory_space<vmem>>, vector<8x384xf32>
    %c0_286 = arith.constant 0 : index
    %c0_287 = arith.constant 0 : index
    %c0_288 = arith.constant 0 : index
    %750 = vector.load %arg4[%c0_286, %c0_287, %c0_288] : memref<2x128x384xf32, #tpu.memory_space<vmem>>, vector<1x128x384xf32>
    %751 = vector.shape_cast %750 : vector<1x128x384xf32> to vector<128x384xf32>
    %cst_289 = arith.constant dense<0.000000e+00> : vector<8x384xf32>
    %752 = tpu.matmul %723, %751, %cst_289 {dimension_numbers = #tpu.dot_dimension_numbers<[1], [0], [0], [1], [0, 0, 1, 1], [], []>} : vector<8x128xf32>, vector<128x384xf32>, vector<8x384xf32> -> vector<8x384xf32>
    %753 = vector.extract_strided_slice %749 {offsets = [0, 0], sizes = [8, 256], strides = [1, 1]} : vector<8x384xf32> to vector<8x256xf32>
    %754 = vector.extract_strided_slice %752 {offsets = [0, 0], sizes = [8, 256], strides = [1, 1]} : vector<8x384xf32> to vector<8x256xf32>
    %755 = arith.addf %753, %754 : vector<8x256xf32>
    %756 = arith.negf %755 : vector<8x256xf32>
    %757 = math.exp %756 : vector<8x256xf32>
    %cst_290 = arith.constant 1.000000e+00 : f32
    %758 = vector.broadcast %cst_290 : f32 to vector<8x256xf32>
    %759 = arith.addf %758, %757 : vector<8x256xf32>
    %760 = arith.divf %758, %759 : vector<8x256xf32>
    %761 = vector.extract_strided_slice %760 {offsets = [0, 0], sizes = [8, 128], strides = [1, 1]} : vector<8x256xf32> to vector<8x128xf32>
    %762 = vector.extract_strided_slice %760 {offsets = [0, 128], sizes = [8, 128], strides = [1, 1]} : vector<8x256xf32> to vector<8x128xf32>
    %763 = vector.extract_strided_slice %749 {offsets = [0, 256], sizes = [8, 128], strides = [1, 1]} : vector<8x384xf32> to vector<8x128xf32>
    %764 = vector.extract_strided_slice %752 {offsets = [0, 256], sizes = [8, 128], strides = [1, 1]} : vector<8x384xf32> to vector<8x128xf32>
    %765 = arith.addf %764, %20 : vector<8x128xf32>
    %766 = arith.mulf %761, %765 : vector<8x128xf32>
    %767 = arith.addf %763, %766 : vector<8x128xf32>
    %768 = math.tanh %767 : vector<8x128xf32>
    %769 = arith.subf %723, %768 : vector<8x128xf32>
    %770 = arith.mulf %762, %769 : vector<8x128xf32>
    %771 = arith.addf %768, %770 : vector<8x128xf32>
    %c0_291 = arith.constant 0 : index
    %c0_292 = arith.constant 0 : index
    %772 = vector.load %arg14[%c0_291, %c0_292] : memref<128x384xf32, #tpu.memory_space<vmem>>, vector<8x384xf32>
    %c1_293 = arith.constant 1 : index
    %c0_294 = arith.constant 0 : index
    %c0_295 = arith.constant 0 : index
    %773 = vector.load %arg4[%c1_293, %c0_294, %c0_295] : memref<2x128x384xf32, #tpu.memory_space<vmem>>, vector<1x128x384xf32>
    %774 = vector.shape_cast %773 : vector<1x128x384xf32> to vector<128x384xf32>
    %cst_296 = arith.constant dense<0.000000e+00> : vector<8x384xf32>
    %775 = tpu.matmul %746, %774, %cst_296 {dimension_numbers = #tpu.dot_dimension_numbers<[1], [0], [0], [1], [0, 0, 1, 1], [], []>} : vector<8x128xf32>, vector<128x384xf32>, vector<8x384xf32> -> vector<8x384xf32>
    %776 = vector.extract_strided_slice %772 {offsets = [0, 0], sizes = [8, 256], strides = [1, 1]} : vector<8x384xf32> to vector<8x256xf32>
    %777 = vector.extract_strided_slice %775 {offsets = [0, 0], sizes = [8, 256], strides = [1, 1]} : vector<8x384xf32> to vector<8x256xf32>
    %778 = arith.addf %776, %777 : vector<8x256xf32>
    %779 = arith.negf %778 : vector<8x256xf32>
    %780 = math.exp %779 : vector<8x256xf32>
    %cst_297 = arith.constant 1.000000e+00 : f32
    %781 = vector.broadcast %cst_297 : f32 to vector<8x256xf32>
    %782 = arith.addf %781, %780 : vector<8x256xf32>
    %783 = arith.divf %781, %782 : vector<8x256xf32>
    %784 = vector.extract_strided_slice %783 {offsets = [0, 0], sizes = [8, 128], strides = [1, 1]} : vector<8x256xf32> to vector<8x128xf32>
    %785 = vector.extract_strided_slice %783 {offsets = [0, 128], sizes = [8, 128], strides = [1, 1]} : vector<8x256xf32> to vector<8x128xf32>
    %786 = vector.extract_strided_slice %772 {offsets = [0, 256], sizes = [8, 128], strides = [1, 1]} : vector<8x384xf32> to vector<8x128xf32>
    %787 = vector.extract_strided_slice %775 {offsets = [0, 256], sizes = [8, 128], strides = [1, 1]} : vector<8x384xf32> to vector<8x128xf32>
    %788 = arith.addf %787, %24 : vector<8x128xf32>
    %789 = arith.mulf %784, %788 : vector<8x128xf32>
    %790 = arith.addf %786, %789 : vector<8x128xf32>
    %791 = math.tanh %790 : vector<8x128xf32>
    %792 = arith.subf %746, %791 : vector<8x128xf32>
    %793 = arith.mulf %785, %792 : vector<8x128xf32>
    %794 = arith.addf %791, %793 : vector<8x128xf32>
    %c128 = arith.constant 128 : index
    %c0_298 = arith.constant 0 : index
    %795 = vector.load %arg15[%c128, %c0_298] : memref<144x128xf32, #tpu.memory_space<vmem>>, vector<8x128xf32>
    tpu.vector_store %arg15[%c128, %c0_298], %771 {strides = array<i32>} : memref<144x128xf32, #tpu.memory_space<vmem>>, vector<8x128xf32>,
    %c0_299 = arith.constant 0 : index
    %c0_300 = arith.constant 0 : index
    %796 = vector.load %arg16[%c0_299, %c0_300] : memref<128x128xf32, #tpu.memory_space<vmem>>, vector<8x128xf32>
    tpu.vector_store %arg16[%c0_299, %c0_300], %794 {strides = array<i32>} : memref<128x128xf32, #tpu.memory_space<vmem>>, vector<8x128xf32>,
    %c8_301 = arith.constant 8 : index
    %c0_302 = arith.constant 0 : index
    %797 = vector.load %arg15[%c8_301, %c0_302] : memref<144x128xf32, #tpu.memory_space<vmem>>, vector<128x128xf32>
    %c0_303 = arith.constant 0 : index
    %c0_304 = arith.constant 0 : index
    %798 = vector.load %arg16[%c0_303, %c0_304] : memref<128x128xf32, #tpu.memory_space<vmem>>, vector<128x128xf32>
    %799 = arith.addf %797, %798 : vector<128x128xf32>
    %c8_305 = arith.constant 8 : index
    %c0_306 = arith.constant 0 : index
    %800 = vector.load %arg15[%c8_305, %c0_306] : memref<144x128xf32, #tpu.memory_space<vmem>>, vector<128x128xf32>
    tpu.vector_store %arg15[%c8_305, %c0_306], %799 {strides = array<i32>} : memref<144x128xf32, #tpu.memory_space<vmem>>, vector<128x128xf32>,
    %cst_307 = arith.constant 0.000000e+00 : f32
    %801 = vector.broadcast %cst_307 : f32 to vector<8x128xf32>
    %c0_308 = arith.constant 0 : index
    %c0_309 = arith.constant 0 : index
    %802 = vector.load %arg15[%c0_308, %c0_309] : memref<144x128xf32, #tpu.memory_space<vmem>>, vector<8x128xf32>
    tpu.vector_store %arg15[%c0_308, %c0_309], %801 {strides = array<i32>} : memref<144x128xf32, #tpu.memory_space<vmem>>, vector<8x128xf32>,
    %c136 = arith.constant 136 : index
    %c0_310 = arith.constant 0 : index
    %803 = vector.load %arg15[%c136, %c0_310] : memref<144x128xf32, #tpu.memory_space<vmem>>, vector<8x128xf32>
    tpu.vector_store %arg15[%c136, %c0_310], %801 {strides = array<i32>} : memref<144x128xf32, #tpu.memory_space<vmem>>, vector<8x128xf32>,
    %c0_311 = arith.constant 0 : index
    %c0_312 = arith.constant 0 : index
    %804 = vector.load %arg15[%c0_311, %c0_312] : memref<144x128xf32, #tpu.memory_space<vmem>>, vector<128x128xf32>
    %c0_313 = arith.constant 0 : index
    %c0_314 = arith.constant 0 : index
    %c0_315 = arith.constant 0 : index
    %805 = vector.load %arg6[%c0_313, %c0_314, %c0_315] : memref<3x128x128xf32, #tpu.memory_space<vmem>>, vector<1x128x128xf32>
    %806 = vector.shape_cast %805 : vector<1x128x128xf32> to vector<128x128xf32>
    %cst_316 = arith.constant dense<0.000000e+00> : vector<128x128xf32>
    %807 = tpu.matmul %804, %806, %cst_316 {dimension_numbers = #tpu.dot_dimension_numbers<[1], [0], [0], [1], [0, 0, 1, 1], [], []>} : vector<128x128xf32>, vector<128x128xf32>, vector<128x128xf32> -> vector<128x128xf32>
    %c8_317 = arith.constant 8 : index
    %c0_318 = arith.constant 0 : index
    %808 = vector.load %arg15[%c8_317, %c0_318] : memref<144x128xf32, #tpu.memory_space<vmem>>, vector<128x128xf32>
    %c1_319 = arith.constant 1 : index
    %c0_320 = arith.constant 0 : index
    %c0_321 = arith.constant 0 : index
    %809 = vector.load %arg6[%c1_319, %c0_320, %c0_321] : memref<3x128x128xf32, #tpu.memory_space<vmem>>, vector<1x128x128xf32>
    %810 = vector.shape_cast %809 : vector<1x128x128xf32> to vector<128x128xf32>
    %cst_322 = arith.constant dense<0.000000e+00> : vector<128x128xf32>
    %811 = tpu.matmul %808, %810, %cst_322 {dimension_numbers = #tpu.dot_dimension_numbers<[1], [0], [0], [1], [0, 0, 1, 1], [], []>} : vector<128x128xf32>, vector<128x128xf32>, vector<128x128xf32> -> vector<128x128xf32>
    %812 = arith.addf %807, %811 : vector<128x128xf32>
    %c16_323 = arith.constant 16 : index
    %c0_324 = arith.constant 0 : index
    %813 = vector.load %arg15[%c16_323, %c0_324] : memref<144x128xf32, #tpu.memory_space<vmem>>, vector<128x128xf32>
    %c2 = arith.constant 2 : index
    %c0_325 = arith.constant 0 : index
    %c0_326 = arith.constant 0 : index
    %814 = vector.load %arg6[%c2, %c0_325, %c0_326] : memref<3x128x128xf32, #tpu.memory_space<vmem>>, vector<1x128x128xf32>
    %815 = vector.shape_cast %814 : vector<1x128x128xf32> to vector<128x128xf32>
    %cst_327 = arith.constant dense<0.000000e+00> : vector<128x128xf32>
    %816 = tpu.matmul %813, %815, %cst_327 {dimension_numbers = #tpu.dot_dimension_numbers<[1], [0], [0], [1], [0, 0, 1, 1], [], []>} : vector<128x128xf32>, vector<128x128xf32>, vector<128x128xf32> -> vector<128x128xf32>
    %817 = arith.addf %812, %816 : vector<128x128xf32>
    %c0_328 = arith.constant 0 : index
    %c0_329 = arith.constant 0 : index
    %818 = vector.load %arg7[%c0_328, %c0_329] : memref<1x128xf32, #tpu.memory_space<vmem>>, vector<1x128xf32>
    %819 = vector.broadcast %818 : vector<1x128xf32> to vector<128x128xf32>
    %820 = arith.addf %817, %819 : vector<128x128xf32>
    %c0_330 = arith.constant 0 : index
    %c0_331 = arith.constant 0 : index
    %821 = vector.load %arg11[%c0_330, %c0_331] : memref<8x128xf32, #tpu.memory_space<vmem>>, vector<8x128xf32>
    %cst_332 = arith.constant dense<0.000000e+00> : vector<8x128xf32>
    %822 = tpu.matmul %821, %820, %cst_332 {dimension_numbers = #tpu.dot_dimension_numbers<[1], [0], [0], [1], [0, 0, 1, 1], [], []>} : vector<8x128xf32>, vector<128x128xf32>, vector<8x128xf32> -> vector<8x128xf32>
    %c0_333 = arith.constant 0 : index
    %c0_334 = arith.constant 0 : index
    %823 = vector.load %arg10[%c0_333, %c0_334] : memref<128x128xf32, #tpu.memory_space<vmem>>, vector<128x128xf32>
    %cst_335 = arith.constant dense<0.000000e+00> : vector<8x128xf32>
    %824 = tpu.matmul %822, %823, %cst_335 {dimension_numbers = #tpu.dot_dimension_numbers<[1], [0], [0], [1], [0, 0, 1, 1], [], []>} : vector<8x128xf32>, vector<128x128xf32>, vector<8x128xf32> -> vector<8x128xf32>
    %825 = vector.shape_cast %824 : vector<8x128xf32> to vector<1x8x128xf32>
    %826 = vector.shape_cast %825 : vector<1x8x128xf32> to vector<1x8x128xf32>
    %827 = vector.broadcast %826 : vector<1x8x128xf32> to vector<16x8x128xf32>
    %828 = vector.shape_cast %827 : vector<16x8x128xf32> to vector<128x128xf32>
    %829 = arith.subf %820, %828 : vector<128x128xf32>
    %830 = arith.mulf %829, %829 : vector<128x128xf32>
    %cst_336 = arith.constant dense<0.000000e+00> : vector<8x128xf32>
    %831 = tpu.matmul %821, %830, %cst_336 {dimension_numbers = #tpu.dot_dimension_numbers<[1], [0], [0], [1], [0, 0, 1, 1], [], []>} : vector<8x128xf32>, vector<128x128xf32>, vector<8x128xf32> -> vector<8x128xf32>
    %c0_337 = arith.constant 0 : index
    %c0_338 = arith.constant 0 : index
    %832 = vector.load %arg10[%c0_337, %c0_338] : memref<128x128xf32, #tpu.memory_space<vmem>>, vector<128x128xf32>
    %cst_339 = arith.constant dense<0.000000e+00> : vector<8x128xf32>
    %833 = tpu.matmul %831, %832, %cst_339 {dimension_numbers = #tpu.dot_dimension_numbers<[1], [0], [0], [1], [0, 0, 1, 1], [], []>} : vector<8x128xf32>, vector<128x128xf32>, vector<8x128xf32> -> vector<8x128xf32>
    %cst_340 = arith.constant 9.99999974E-6 : f32
    %834 = vector.broadcast %cst_340 : f32 to vector<8x128xf32>
    %835 = arith.addf %833, %834 : vector<8x128xf32>
    %836 = math.rsqrt %835 : vector<8x128xf32>
    %c0_341 = arith.constant 0 : index
    %c0_342 = arith.constant 0 : index
    %837 = vector.load %arg8[%c0_341, %c0_342] : memref<1x128xf32, #tpu.memory_space<vmem>>, vector<1x128xf32>
    %838 = vector.broadcast %837 : vector<1x128xf32> to vector<8x128xf32>
    %839 = arith.mulf %836, %838 : vector<8x128xf32>
    %840 = vector.shape_cast %839 : vector<8x128xf32> to vector<1x8x128xf32>
    %841 = vector.shape_cast %840 : vector<1x8x128xf32> to vector<1x8x128xf32>
    %842 = vector.broadcast %841 : vector<1x8x128xf32> to vector<16x8x128xf32>
    %843 = vector.shape_cast %842 : vector<16x8x128xf32> to vector<128x128xf32>
    %844 = arith.mulf %829, %843 : vector<128x128xf32>
    %c0_343 = arith.constant 0 : index
    %c0_344 = arith.constant 0 : index
    %845 = vector.load %arg9[%c0_343, %c0_344] : memref<1x128xf32, #tpu.memory_space<vmem>>, vector<1x128xf32>
    %846 = vector.broadcast %845 : vector<1x128xf32> to vector<128x128xf32>
    %847 = arith.addf %844, %846 : vector<128x128xf32>
    %cst_345 = arith.constant 0.000000e+00 : f32
    %848 = vector.broadcast %cst_345 : f32 to vector<128x128xf32>
    %849 = arith.cmpf oge, %847, %848 : vector<128x128xf32>
    %cst_346 = arith.constant 0.00999999977 : f32
    %850 = vector.broadcast %cst_346 : f32 to vector<128x128xf32>
    %851 = arith.mulf %850, %847 : vector<128x128xf32>
    %852 = arith.select %849, %847, %851 : vector<128x128xi1>, vector<128x128xf32>
    %c0_347 = arith.constant 0 : index
    %c0_348 = arith.constant 0 : index
    %853 = vector.load %arg0[%c0_347, %c0_348] : memref<128x128xf32, #tpu.memory_space<vmem>>, vector<128x128xf32>
    %854 = arith.addf %853, %799 : vector<128x128xf32>
    %855 = arith.addf %854, %852 : vector<128x128xf32>
    %c0_349 = arith.constant 0 : index
    %c0_350 = arith.constant 0 : index
    %856 = vector.load %arg12[%c0_349, %c0_350] : memref<128x128xf32, #tpu.memory_space<vmem>>, vector<128x128xf32>
    tpu.vector_store %arg12[%c0_349, %c0_350], %855 {strides = array<i32>} : memref<128x128xf32, #tpu.memory_space<vmem>>, vector<128x128xf32>,
    return
  }
}

</mosaic_0001>

<bundles_post_ra>
// kernel: rcblock_forward.1
= control target key start
LH: loop header
LB: loop body
LE: loop exit
PB: predicated region body
PF: predicated region fallthrough
CT: control target
= control target key end

     0   :  { %v20431_v3 = vmov 0.0   ;;  %vm12447_vm0 = vmmov 0   ;;  %s20418_s2 = inlined_call_operand.vmem [shape: f32[2,128,384], index: 2, kind: input, shape index: {}]   ;;  %s20419_s0 = inlined_call_operand.vmem [shape: f32[128,128], index: 0, kind: input, shape index: {}, may-alias: {0,12}]   ;;  %s20420_s4 = inlined_call_operand.vmem [shape: f32[2,128,384], index: 4, kind: input, shape index: {}]   ;;  %s20421_s1 = inlined_call_operand.vmem [shape: f32[2,8,128], index: 1, kind: input, shape index: {}]   ;;  %s20422_s3 = inlined_call_operand.vmem [shape: f32[2,1,384], index: 3, kind: input, shape index: {}]   ;;  %s20423_s5 = inlined_call_operand.vmem [shape: f32[2,1,128], index: 5, kind: input, shape index: {}]   ;;  %s20424_s6 = inlined_call_operand.vmem [shape: f32[3,128,128], index: 6, kind: input, shape index: {}]   ;;  %s20425_s10 = inlined_call_operand.vmem [shape: f32[128,128], index: 10, kind: input, shape index: {}]   ;;  %s20426_s7 = inlined_call_operand.vmem [shape: f32[1,128], index: 7, kind: input, shape index: {}]   ;;  %s20427_s11 = inlined_call_operand.vmem [shape: f32[8,128], index: 11, kind: input, shape index: {}]   ;;  %s20428_s8 = inlined_call_operand.vmem [shape: f32[1,128], index: 8, kind: input, shape index: {}]   ;;  %s20429_s9 = inlined_call_operand.vmem [shape: f32[1,128], index: 9, kind: input, shape index: {}]   ;;  %s20430_s12 = inlined_call_operand.vmem [shape: f32[128,128], index: 12, kind: output, shape index: {}, may-alias: {0,12}]  }
   0x1   :  { %v103_v0 = vld [vmem:[%s20418_s2 + $0x170] sm:$0xff]  ;;  %v102_v1 = vld [vmem:[%s20418_s2 + $0x168] sm:$0xff]  ;;  %v100_v2 = vld [vmem:[%s20418_s2 + $0x158] sm:$0xff]  ;;  %186 = vmatprep.mubr.f32.mxu0 %v20431_v3 }
   0x2   :  { %122 = vmatprep.subr.mxu0 %v103_v0  ;;  %v99_v4 = vld [vmem:[%s20418_s2 + $0x150] sm:$0xff]  ;;  %v97_v5 = vld [vmem:[%s20418_s2 + $0x140] sm:$0xff]  ;;  %v96_v6 = vld [vmem:[%s20418_s2 + $0x138] sm:$0xff] }
   0x3   :  { %123 = vmatpush1.msra.mxu0 %v102_v1  ;;  %v94_v7 = vld [vmem:[%s20418_s2 + $0x128] sm:$0xff]  ;;  %v93_v8 = vld [vmem:[%s20418_s2 + $0x120] sm:$0xff]  ;;  %v91_v9 = vld [vmem:[%s20418_s2 + $0x110] sm:$0xff] }
   0x4   :  { %124 = vmatprep.subr.mxu0 %v100_v2  ;;  %v90_v10 = vld [vmem:[%s20418_s2 + $0x108] sm:$0xff]  ;;  %v88_v11 = vld [vmem:[%s20418_s2 + $0xf8] sm:$0xff]  ;;  %v87_v12 = vld [vmem:[%s20418_s2 + $0xf0] sm:$0xff] }
   0x5   :  { %125 = vmatpush1.msra.mxu0 %v99_v4  ;;  %v85_v13 = vld [vmem:[%s20418_s2 + $0xe0] sm:$0xff]  ;;  %v104_v14 = vld [vmem:[%s20418_s2 + $0x178] sm:$0xff]  ;;  %v82_v17 = vld [vmem:[%s20418_s2 + $0xc8] sm:$0xff] }
   0x6   :  { %126 = vmatprep.subr.mxu0 %v97_v5  ;;  %v84_v15 = vld [vmem:[%s20418_s2 + $0xd8] sm:$0xff]  ;;  %10572 = vmatprep.subr.mxu1 %v104_v14  ;;  %v101_v16 = vld [vmem:[%s20418_s2 + $0x160] sm:$0xff]  ;;  %v98_v18 = vld [vmem:[%s20418_s2 + $0x148] sm:$0xff] }
   0x7   :  { %127 = vmatpush1.msra.mxu0 %v96_v6  ;;  %10573 = vmatpush3.msra.mxu1 %v104_v14  ;;  %v81_v19 = vld [vmem:[%s20418_s2 + $0xc0] sm:$0xff]  ;;  %v79_v20 = vld [vmem:[%s20418_s2 + $0xb0] sm:$0xff]  ;;  %v78_v22 = vld [vmem:[%s20418_s2 + $0xa8] sm:$0xff] }
   0x8   :  { %128 = vmatprep.subr.mxu0 %v94_v7  ;;  %10574 = vmatprep.subr.mxu1 %v101_v16  ;;  %v95_v21 = vld [vmem:[%s20418_s2 + $0x130] sm:$0xff]  ;;  %v76_v23 = vld [vmem:[%s20418_s2 + $0x98] sm:$0xff]  ;;  %v73_v26 = vld [vmem:[%s20418_s2 + $0x80] sm:$0xff] }
   0x9   :  { %129 = vmatpush1.msra.mxu0 %v93_v8  ;;  %10575 = vmatpush3.msra.mxu1 %v101_v16  ;;  %v92_v24 = vld [vmem:[%s20418_s2 + $0x118] sm:$0xff]  ;;  %v75_v25 = vld [vmem:[%s20418_s2 + $0x90] sm:$0xff]  ;;  %v89_v27 = vld [vmem:[%s20418_s2 + $0x100] sm:$0xff] }
   0xa   :  { %130 = vmatprep.subr.mxu0 %v91_v9  ;;  %10576 = vmatprep.subr.mxu1 %v98_v18  ;;  %v72_v28 = vld [vmem:[%s20418_s2 + $0x78] sm:$0xff]  ;;  %v70_v29 = vld [vmem:[%s20418_s2 + $0x68] sm:$0xff]  ;;  %v69_v31 = vld [vmem:[%s20418_s2 + $0x60] sm:$0xff] }
   0xb   :  { %131 = vmatpush1.msra.mxu0 %v90_v10  ;;  %10577 = vmatpush3.msra.mxu1 %v98_v18  ;;  %v86_v30 = vld [vmem:[%s20418_s2 + $0xe8] sm:$0xff]  ;;  %v67_v32 = vld [vmem:[%s20418_s2 + $0x50] sm:$0xff]  ;;  %v64_v35 = vld [vmem:[%s20418_s2 + $0x38] sm:$0xff] }
   0xc   :  { %132 = vmatprep.subr.mxu0 %v88_v11  ;;  %10578 = vmatprep.subr.mxu1 %v95_v21  ;;  %v83_v33 = vld [vmem:[%s20418_s2 + $0xd0] sm:$0xff]  ;;  %v66_v34 = vld [vmem:[%s20418_s2 + $0x48] sm:$0xff]  ;;  %v80_v36 = vld [vmem:[%s20418_s2 + $0xb8] sm:$0xff] }
   0xd   :  { %133 = vmatpush1.msra.mxu0 %v87_v12  ;;  %10579 = vmatpush3.msra.mxu1 %v95_v21  ;;  %v63_v37 = vld [vmem:[%s20418_s2 + $0x30] sm:$0xff]  ;;  %v61_v38 = vld [vmem:[%s20418_s2 + $0x20] sm:$0xff]  ;;  %v60_v40 = vld [vmem:[%s20418_s2 + $0x18] sm:$0xff] }
   0xe   :  { %134 = vmatprep.subr.mxu0 %v85_v13  ;;  %10580 = vmatprep.subr.mxu1 %v92_v24  ;;  %v77_v39 = vld [vmem:[%s20418_s2 + $0xa0] sm:$0xff]  ;;  %v58_v41 = vld [vmem:[%s20418_s2 + $0x8] sm:$0xff]  ;;  %v8927_v45 = vld [vmem:[%s20418_s2 + $0x2f8] sm:$0xff] }
   0xf   :  { %135 = vmatpush1.msra.mxu0 %v84_v15  ;;  %10581 = vmatpush3.msra.mxu1 %v92_v24  ;;  %v74_v42 = vld [vmem:[%s20418_s2 + $0x88] sm:$0xff]  ;;  %v57_v43 = vld [vmem:[%s20418_s2] sm:$0xff]  ;;  %v71_v47 = vld [vmem:[%s20418_s2 + $0x70] sm:$0xff] }
  0x10   :  { %136 = vmatprep.subr.mxu0 %v82_v17  ;;  %10582 = vmatprep.subr.mxu1 %v89_v27  ;;  %v12646_v44 = vld [vmem:[%s20419_s0] sm:$0xff]  ;;  %v12662_v48 = vld [vmem:[%s20419_s0 + $0x8] sm:$0xff]  ;;  %v8918_v50 = vld [vmem:[%s20418_s2 + $0x2b0] sm:$0xff] }
  0x11   :  { %137 = vmatpush1.msra.mxu0 %v81_v19  ;;  %10583 = vmatpush3.msra.mxu1 %v89_v27  ;;  %v8924_v46 = vld [vmem:[%s20418_s2 + $0x2e0] sm:$0xff]  ;;  %v8921_v49 = vld [vmem:[%s20418_s2 + $0x2c8] sm:$0xff]  ;;  %v68_v51 = vld [vmem:[%s20418_s2 + $0x58] sm:$0xff] }
  0x12   :  { %138 = vmatprep.subr.mxu0 %v79_v20  ;;  %10584 = vmatprep.subr.mxu1 %v86_v30  ;;  %v12678_v52 = vld [vmem:[%s20419_s0 + $0x10] sm:$0xff]  ;;  %v8915_v53 = vld [vmem:[%s20418_s2 + $0x298] sm:$0xff]  ;;  %v8912_v54 = vld [vmem:[%s20418_s2 + $0x280] sm:$0xff] }
  0x13   :  { %139 = vmatpush1.msra.mxu0 %v78_v22  ;;  %10585 = vmatpush3.msra.mxu1 %v86_v30  ;;  %v65_v55 = vld [vmem:[%s20418_s2 + $0x40] sm:$0xff]  ;;  %v12694_v56 = vld [vmem:[%s20419_s0 + $0x18] sm:$0xff]  ;;  %v8909_v57 = vld [vmem:[%s20418_s2 + $0x268] sm:$0xff] }
  0x14   :  { %140 = vmatprep.subr.mxu0 %v76_v23  ;;  %10586 = vmatprep.subr.mxu1 %v83_v33  ;;  %v62_v58 = vld [vmem:[%s20418_s2 + $0x28] sm:$0xff]  ;;  %v8906_v59 = vld [vmem:[%s20418_s2 + $0x250] sm:$0xff]  ;;  %v12710_v60 = vld [vmem:[%s20419_s0 + $0x20] sm:$0xff] }
  0x15   :  { %141 = vmatpush1.msra.mxu0 %v75_v25  ;;  %10587 = vmatpush3.msra.mxu1 %v83_v33  ;;  %v59_v61 = vld [vmem:[%s20418_s2 + $0x10] sm:$0xff]  ;;  %v8903_v63 = vld [vmem:[%s20418_s2 + $0x238] sm:$0xff]  ;;  %v12727_v0 = vld [vmem:[%s20419_s0 + $0x28] sm:$0xff] }
  0x16   :  { %142 = vmatprep.subr.mxu0 %v73_v26  ;;  %10588 = vmatprep.subr.mxu1 %v80_v36  ;;  %v8926_v62 = vld [vmem:[%s20418_s2 + $0x2f0] sm:$0xff]  ;;  %v8925_v1 = vld [vmem:[%s20418_s2 + $0x2e8] sm:$0xff]  ;;  %v8923_v2 = vld [vmem:[%s20418_s2 + $0x2d8] sm:$0xff] }
  0x17   :  { %143 = vmatpush1.msra.mxu0 %v72_v28  ;;  %10589 = vmatpush3.msra.mxu1 %v80_v36  ;;  %v8922_v4 = vld [vmem:[%s20418_s2 + $0x2d0] sm:$0xff]  ;;  %v8920_v6 = vld [vmem:[%s20418_s2 + $0x2c0] sm:$0xff]  ;;  %v8919_v7 = vld [vmem:[%s20418_s2 + $0x2b8] sm:$0xff] }
  0x18   :  { %144 = vmatprep.subr.mxu0 %v70_v29  ;;  %10590 = vmatprep.subr.mxu1 %v77_v39  ;;  %v12744_v5 = vld [vmem:[%s20419_s0 + $0x30] sm:$0xff]  ;;  %v8917_v8 = vld [vmem:[%s20418_s2 + $0x2a8] sm:$0xff]  ;;  %v8900_v9 = vld [vmem:[%s20418_s2 + $0x220] sm:$0xff] }
  0x19   :  { %145 = vmatpush1.msra.mxu0 %v69_v31  ;;  %10591 = vmatpush3.msra.mxu1 %v77_v39  ;;  %v8916_v10 = vld [vmem:[%s20418_s2 + $0x2a0] sm:$0xff]  ;;  %v12768_v11 = vld [vmem:[%s20419_s0 + $0x38] sm:$0xff]  ;;  %v8914_v12 = vld [vmem:[%s20418_s2 + $0x290] sm:$0xff] }
  0x1a   :  { %146 = vmatprep.subr.mxu0 %v67_v32  ;;  %10592 = vmatprep.subr.mxu1 %v74_v42  ;;  %v8897_v13 = vld [vmem:[%s20418_s2 + $0x208] sm:$0xff]  ;;  %v12786_v15 = vld [vmem:[%s20419_s0 + $0x40] sm:$0xff]  ;;  %v8911_v16 = vld [vmem:[%s20418_s2 + $0x278] sm:$0xff] }
  0x1b   :  { %147 = vmatpush1.msra.mxu0 %v66_v34  ;;  %10593 = vmatpush3.msra.mxu1 %v74_v42  ;;  %v8913_v14 = vld [vmem:[%s20418_s2 + $0x288] sm:$0xff]  ;;  %v8910_v17 = vld [vmem:[%s20418_s2 + $0x270] sm:$0xff]  ;;  %v8908_v18 = vld [vmem:[%s20418_s2 + $0x260] sm:$0xff] }
  0x1c   :  { %148 = vmatprep.subr.mxu0 %v64_v35  ;;  %10594 = vmatprep.subr.mxu1 %v71_v47  ;;  %v8894_v19 = vld [vmem:[%s20418_s2 + $0x1f0] sm:$0xff]  ;;  %v12806_v20 = vld [vmem:[%s20419_s0 + $0x48] sm:$0xff]  ;;  %v8907_v21 = vld [vmem:[%s20418_s2 + $0x258] sm:$0xff] }
  0x1d   :  { %149 = vmatpush1.msra.mxu0 %v63_v37  ;;  %10595 = vmatpush3.msra.mxu1 %v71_v47  ;;  %v8905_v22 = vld [vmem:[%s20418_s2 + $0x248] sm:$0xff]  ;;  %v8904_v23 = vld [vmem:[%s20418_s2 + $0x240] sm:$0xff]  ;;  %v12823_v24 = vld [vmem:[%s20419_s0 + $0x50] sm:$0xff] }
  0x1e   :  { %150 = vmatprep.subr.mxu0 %v61_v38  ;;  %10596 = vmatprep.subr.mxu1 %v68_v51  ;;  %v8902_v25 = vld [vmem:[%s20418_s2 + $0x230] sm:$0xff]  ;;  %v8901_v26 = vld [vmem:[%s20418_s2 + $0x228] sm:$0xff]  ;;  %v8899_v27 = vld [vmem:[%s20418_s2 + $0x218] sm:$0xff] }
  0x1f   :  { %151 = vmatpush1.msra.mxu0 %v60_v40  ;;  %10597 = vmatpush3.msra.mxu1 %v68_v51  ;;  %v8891_v28 = vld [vmem:[%s20418_s2 + $0x1d8] sm:$0xff]  ;;  %v8898_v29 = vld [vmem:[%s20418_s2 + $0x210] sm:$0xff]  ;;  %v8896_v31 = vld [vmem:[%s20418_s2 + $0x200] sm:$0xff] }
  0x20   :  { %152 = vmatprep.subr.mxu0 %v58_v41  ;;  %10598 = vmatprep.subr.mxu1 %v65_v55  ;;  %v12847_v30 = vld [vmem:[%s20419_s0 + $0x58] sm:$0xff]  ;;  %v8888_v32 = vld [vmem:[%s20418_s2 + $0x1c0] sm:$0xff]  ;;  %v8893_v35 = vld [vmem:[%s20418_s2 + $0x1e8] sm:$0xff] }
  0x21   :  { %153 = vmatpush1.msra.mxu0 %v57_v43  ;;  %10599 = vmatpush3.msra.mxu1 %v65_v55  ;;  %v8895_v33 = vld [vmem:[%s20418_s2 + $0x1f8] sm:$0xff]  ;;  %v12865_v34 = vld [vmem:[%s20419_s0 + $0x60] sm:$0xff]  ;;  %v8890_v37 = vld [vmem:[%s20418_s2 + $0x1d0] sm:$0xff] }
  0x22   :  { %187 = vmatmul.mubr.f32.vlgmr.msra.gmra.mxu0 %v12646_v44  ;;  %10628 = vmatprep.subr.mxu0 %v8927_v45  ;;  %v8892_v36 = vld [vmem:[%s20418_s2 + $0x1e0] sm:$0xff]  ;;  %v8885_v38 = vld [vmem:[%s20418_s2 + $0x1a8] sm:$0xff]  ;;  %v8887_v41 = vld [vmem:[%s20418_s2 + $0x1b8] sm:$0xff] }
  0x23   :  { %10629 = vmatpush3.msra.mxu0 %v8927_v45  ;;  %192 = vmatprep.mubr.f32.mxu0 %v20431_v3  ;;  %v12885_v39 = vld [vmem:[%s20419_s0 + $0x68] sm:$0xff]  ;;  %v12897_v42 = vld [vmem:[%s20419_s0 + $0x70] sm:$0xff]  ;;  %v12906_v45 = vld [vmem:[%s20419_s0 + $0x78] sm:$0xff] }
  0x24   :  { %10630 = vmatprep.subr.mxu0 %v8924_v46  ;;  %10600 = vmatprep.subr.mxu1 %v62_v58  ;;  %v8889_v40 = vld [vmem:[%s20418_s2 + $0x1c8] sm:$0xff]  ;;  %v8886_v43 = vld [vmem:[%s20418_s2 + $0x1b0] sm:$0xff]  ;;  %v8883_v47 = vld [vmem:[%s20418_s2 + $0x198] sm:$0xff] }
  0x25   :  { %10631 = vmatpush3.msra.mxu0 %v8924_v46  ;;  %10601 = vmatpush3.msra.mxu1 %v62_v58  ;;  %v8884_v46 = vld [vmem:[%s20418_s2 + $0x1a0] sm:$0xff]  ;;  %v12946_v55 = vld [vmem:[%s20420_s4 + $0x168] sm:$0xff] }
  0x26   :  { %193 = vmatmul.mubr.f32.gmra.mxu0 %v12662_v48  ;;  %10632 = vmatprep.subr.mxu0 %v8921_v49  ;;  %v8880_v51 = vld [vmem:[%s20418_s2 + $0x180] sm:$0xff] }
  0x27   :  { %198 = vmatprep.mubr.f32.mxu0 %v20431_v3  ;;  %10633 = vmatpush3.msra.mxu0 %v8921_v49  ;;  %v8881_v49 = vld [vmem:[%s20418_s2 + $0x188] sm:$0xff]  ;;  %v12968_v58 = vld [vmem:[%s20420_s4 + $0x140] sm:$0xff] }
  0x28   :  { %10634 = vmatprep.subr.mxu0 %v8918_v50  ;;  %10604 = vmatprep.mubr.f32.mxu1 %v12646_v44 }
  0x29   :  { %10635 = vmatpush3.msra.mxu0 %v8918_v50  ;;  %10602 = vmatprep.subr.mxu1 %v59_v61  ;;  %v8882_v50 = vld [vmem:[%s20418_s2 + $0x190] sm:$0xff] }
  0x2a   :  { %199 = vmatmul.mubr.f32.gmra.mxu0 %v12678_v52  ;;  %10636 = vmatprep.subr.mxu0 %v8915_v53 }
  0x2b   :  { %204 = vmatprep.mubr.f32.mxu0 %v20431_v3  ;;  %10637 = vmatpush3.msra.mxu0 %v8915_v53  ;;  %v12932_v53 = vld [vmem:[%s20420_s4 + $0x170] sm:$0xff] }
  0x2c   :  { %10638 = vmatprep.subr.mxu0 %v8912_v54  ;;  %10603 = vmatpush3.msra.mxu1 %v59_v61  ;;  %v12987_v61 = vld [vmem:[%s20420_s4 + $0x128] sm:$0xff] }
  0x2d   :  { %10639 = vmatpush3.msra.mxu0 %v8912_v54  ;;  %10605 = vmatmul.mubr.f32.vlgmr.msra.gmra.mxu1 %v12662_v48  ;;  %v12939_v54 = vld [vmem:[%s20420_s4 + $0x178] sm:$0xff] }
  0x2e   :  { %205 = vmatmul.mubr.f32.gmra.mxu0 %v12694_v56  ;;  %10640 = vmatprep.subr.mxu0 %v8909_v57 }
  0x2f   :  { %210 = vmatprep.mubr.f32.mxu0 %v20431_v3  ;;  %10641 = vmatpush3.msra.mxu0 %v8909_v57  ;;  %v12953_v57 = vld [vmem:[%s20420_s4 + $0x158] sm:$0xff] }
  0x30   :  { %10642 = vmatprep.subr.mxu0 %v8906_v59  ;;  %543 = vmatprep.subr.mxu1 %v8926_v62  ;;  %v954_v62 = vld [vmem:[%s20420_s4 + $0x120] sm:$0xff] }
  0x31   :  { %10643 = vmatpush3.msra.mxu0 %v8906_v59  ;;  %544 = vmatpush1.msra.mxu1 %v8925_v1  ;;  %v12980_v59 = vld [vmem:[%s20420_s4 + $0x160] sm:$0xff]  ;;  %v951_v1 = vld [vmem:[%s20420_s4 + $0x108] sm:$0xff] }
  0x32   :  { %211 = vmatmul.mubr.f32.gmra.mxu0 %v12710_v60  ;;  %10644 = vmatprep.subr.mxu0 %v8903_v63 }
  0x33   :  { %216 = vmatprep.mubr.f32.mxu0 %v20431_v3  ;;  %545 = vmatprep.subr.mxu1 %v8923_v2  ;;  %v949_v2 = vld [vmem:[%s20420_s4 + $0xf8] sm:$0xff] }
  0x34   :  { %10607 = vmatprep.mubr.f32.mxu1 %v12678_v52  ;;  %546 = vmatpush1.msra.mxu1 %v8922_v4  ;;  %v13012_v4 = vld [vmem:[%s20420_s4 + $0x148] sm:$0xff] }
  0x35   :  { %10645 = vmatpush3.msra.mxu0 %v8903_v63  ;;  %10608 = vmatmul.mubr.f32.gmra.mxu1 %v12694_v56  ;;  %v952_v63 = vld [vmem:[%s20420_s4 + $0x110] sm:$0xff] }
  0x36   :  { %217 = vmatmul.mubr.f32.gmra.mxu0 %v12727_v0  ;;  %547 = vmatprep.subr.mxu1 %v8920_v6  ;;  %v946_v6 = vld [vmem:[%s20420_s4 + $0xe0] sm:$0xff] }
  0x37   :  { %222 = vmatprep.mubr.f32.mxu0 %v20431_v3  ;;  %548 = vmatpush1.msra.mxu1 %v8919_v7  ;;  %v945_v7 = vld [vmem:[%s20420_s4 + $0xd8] sm:$0xff] }
  0x38   :  { %549 = vmatprep.subr.mxu1 %v8917_v8  ;;  %10646 = vmatprep.subr.mxu0 %v8900_v9  ;;  %v943_v8 = vld [vmem:[%s20420_s4 + $0xc8] sm:$0xff] }
  0x39   :  { %10610 = vmatprep.mubr.f32.mxu1 %v12710_v60  ;;  %550 = vmatpush1.msra.mxu1 %v8916_v10  ;;  %v942_v10 = vld [vmem:[%s20420_s4 + $0xc0] sm:$0xff] }
  0x3a   :  { %223 = vmatmul.mubr.f32.gmra.mxu0 %v12744_v5  ;;  %10611 = vmatmul.mubr.f32.gmra.mxu1 %v12727_v0 }
  0x3b   :  { %228 = vmatprep.mubr.f32.mxu0 %v20431_v3  ;;  %10647 = vmatpush3.msra.mxu0 %v8900_v9  ;;  %v13035_v9 = vld [vmem:[%s20420_s4 + $0x130] sm:$0xff] }
  0x3c   :  { %551 = vmatprep.subr.mxu1 %v8914_v12  ;;  %10648 = vmatprep.subr.mxu0 %v8897_v13  ;;  %v939_v12 = vld [vmem:[%s20420_s4 + $0xa8] sm:$0xff] }
  0x3d   :  { %552 = vmatpush1.msra.mxu1 %v8913_v14  ;;  %10613 = vmatprep.mubr.f32.mxu1 %v12744_v5  ;;  %v13058_v14 = vld [vmem:[%s20420_s4 + $0x118] sm:$0xff] }
  0x3e   :  { %229 = vmatmul.mubr.f32.gmra.mxu0 %v12768_v11  ;;  %553 = vmatprep.subr.mxu1 %v8911_v16  ;;  %v936_v16 = vld [vmem:[%s20420_s4 + $0x90] sm:$0xff] }
  0x3f   :  { %234 = vmatprep.mubr.f32.mxu0 %v20431_v3  ;;  %554 = vmatpush1.msra.mxu1 %v8910_v17  ;;  %v933_v17 = vld [vmem:[%s20420_s4 + $0x78] sm:$0xff] }
  0x40   :  { %10649 = vmatpush3.msra.mxu0 %v8897_v13  ;;  %10614 = vmatmul.mubr.f32.gmra.mxu1 %v12768_v11  ;;  %v937_v13 = vld [vmem:[%s20420_s4 + $0x98] sm:$0xff] }
  0x41   :  { %555 = vmatprep.subr.mxu1 %v8908_v18  ;;  %10650 = vmatprep.subr.mxu0 %v8894_v19  ;;  %v931_v18 = vld [vmem:[%s20420_s4 + $0x68] sm:$0xff] }
  0x42   :  { %235 = vmatmul.mubr.f32.gmra.mxu0 %v12786_v15  ;;  %556 = vmatpush1.msra.mxu1 %v8907_v21  ;;  %v13086_v21 = vld [vmem:[%s20420_s4 + $0x60] sm:$0xff] }
  0x43   :  { %240 = vmatprep.mubr.f32.mxu0 %v20431_v3  ;;  %557 = vmatprep.subr.mxu1 %v8905_v22  ;;  %v927_v22 = vld [vmem:[%s20420_s4 + $0x48] sm:$0xff] }
  0x44   :  { %10616 = vmatprep.mubr.f32.mxu1 %v12786_v15  ;;  %558 = vmatpush1.msra.mxu1 %v8904_v23  ;;  %v925_v23 = vld [vmem:[%s20420_s4 + $0x38] sm:$0xff] }
  0x45   :  { %10651 = vmatpush3.msra.mxu0 %v8894_v19  ;;  %10617 = vmatmul.mubr.f32.gmra.mxu1 %v12806_v20  ;;  %v13081_v19 = vld [vmem:[%s20420_s4 + $0x100] sm:$0xff] }
  0x46   :  { %241 = vmatmul.mubr.f32.gmra.mxu0 %v12806_v20  ;;  %559 = vmatprep.subr.mxu1 %v8902_v25  ;;  %v13107_v25 = vld [vmem:[%s20420_s4 + $0xe8] sm:$0xff] }
  0x47   :  { %246 = vmatprep.mubr.f32.mxu0 %v20431_v3  ;;  %560 = vmatpush1.msra.mxu1 %v8901_v26  ;;  %v13112_v26 = vld [vmem:[%s20420_s4 + $0x30] sm:$0xff] }
  0x48   :  { %561 = vmatprep.subr.mxu1 %v8899_v27  ;;  %10652 = vmatprep.subr.mxu0 %v8891_v28  ;;  %v13126_v27 = vld [vmem:[%s20420_s4 + $0x18] sm:$0xff] }
  0x49   :  { %10619 = vmatprep.mubr.f32.mxu1 %v12823_v24  ;;  %562 = vmatpush1.msra.mxu1 %v8898_v29  ;;  %v13140_v29 = vld [vmem:[%s20420_s4 + $0xd0] sm:$0xff] }
  0x4a   :  { %247 = vmatmul.mubr.f32.gmra.mxu0 %v12823_v24  ;;  %10620 = vmatmul.mubr.f32.gmra.mxu1 %v12847_v30 }
  0x4b   :  { %252 = vmatprep.mubr.f32.mxu0 %v20431_v3  ;;  %10653 = vmatpush3.msra.mxu0 %v8891_v28  ;;  %v13133_v28 = vld [vmem:[%s20420_s4 + $0x8] sm:$0xff] }
  0x4c   :  { %563 = vmatprep.subr.mxu1 %v8896_v31  ;;  %10654 = vmatprep.subr.mxu0 %v8888_v32  ;;  %v8981_v31 = vld [vmem:[%s20420_s4 + $0x2f0] sm:$0xff] }
  0x4d   :  { %564 = vmatpush1.msra.mxu1 %v8895_v33  ;;  %10622 = vmatprep.mubr.f32.mxu1 %v12865_v34  ;;  %v8980_v33 = vld [vmem:[%s20420_s4 + $0x2e8] sm:$0xff] }
  0x4e   :  { %253 = vmatmul.mubr.f32.gmra.mxu0 %v12847_v30  ;;  %565 = vmatprep.subr.mxu1 %v8893_v35  ;;  %v13169_v35 = vld [vmem:[%s20420_s4 + $0xb8] sm:$0xff] }
  0x4f   :  { %258 = vmatprep.mubr.f32.mxu0 %v20431_v3  ;;  %566 = vmatpush1.msra.mxu1 %v8892_v36  ;;  %v8978_v36 = vld [vmem:[%s20420_s4 + $0x2d8] sm:$0xff] }
  0x50   :  { %10655 = vmatpush3.msra.mxu0 %v8888_v32  ;;  %10623 = vmatmul.mubr.f32.gmra.mxu1 %v12885_v39  ;;  %v13157_v32 = vld [vmem:[%s20421_s1] sm:$0xff] }
  0x51   :  { %567 = vmatprep.subr.mxu1 %v8890_v37  ;;  %10656 = vmatprep.subr.mxu0 %v8885_v38  ;;  %v8975_v37 = vld [vmem:[%s20420_s4 + $0x2c0] sm:$0xff] }
  0x52   :  { %259 = vmatmul.mubr.f32.gmra.mxu0 %v12865_v34  ;;  %568 = vmatpush1.msra.mxu1 %v8889_v40  ;;  %v13191_v40 = vld [vmem:[%s20420_s4 + $0xa0] sm:$0xff] }
  0x53   :  { %264 = vmatprep.mubr.f32.mxu0 %v20431_v3  ;;  %569 = vmatprep.subr.mxu1 %v8887_v41  ;;  %v8972_v41 = vld [vmem:[%s20420_s4 + $0x2a8] sm:$0xff] }
  0x54   :  { %10625 = vmatprep.mubr.f32.mxu1 %v12897_v42  ;;  %570 = vmatpush1.msra.mxu1 %v8886_v43  ;;  %v8969_v43 = vld [vmem:[%s20420_s4 + $0x290] sm:$0xff] }
  0x55   :  { %10657 = vmatpush3.msra.mxu0 %v8885_v38  ;;  %10626 = vmatmul.mubr.f32.gmra.mxu1 %v12906_v45  ;;  %v8974_v38 = vld [vmem:[%s20420_s4 + $0x2b8] sm:$0xff] }
  0x56   :  { %265 = vmatmul.mubr.f32.gmra.mxu0 %v12885_v39  ;;  %571 = vmatprep.subr.mxu1 %v8884_v46  ;;  %v8968_v46 = vld [vmem:[%s20420_s4 + $0x288] sm:$0xff] }
  0x57   :  { %270 = vmatprep.mubr.f32.mxu0 %v20431_v3  ;;  %572 = vmatpush1.msra.mxu1 %v8883_v47  ;;  %v13212_v47 = vld [vmem:[%s20420_s4 + $0x88] sm:$0xff] }
  0x58   :  { %573 = vmatprep.subr.mxu1 %v8881_v49  ;;  %10658 = vmatprep.subr.mxu0 %v8882_v50  ;;  %v8966_v49 = vld [vmem:[%s20420_s4 + $0x278] sm:$0xff] }
  0x59   :  { %574 = vmatpush1.msra.mxu1 %v8880_v51  ;;  %607 = vmatprep.mubr.f32.mxu1 %v20431_v3  ;;  %v8962_v51 = vld [vmem:[%s20420_s4 + $0x258] sm:$0xff] }
  0x5a   :  { %271 = vmatmul.mubr.f32.gmra.mxu0 %v12897_v42  ;;  %608 = vmatmul.mubr.f32.vlgmr.msra.gmra.mxu1 %v12646_v44 }
  0x5b   :  { %276 = vmatprep.mubr.f32.mxu0 %v20431_v3  ;;  %10659 = vmatpush3.msra.mxu0 %v8882_v50  ;;  %v8963_v50 = vld [vmem:[%s20420_s4 + $0x260] sm:$0xff] }
  0x5c   :  { %966 = vmatprep.subr.mxu0 %v12932_v53  ;;  %10684 = vmatprep.subr.mxu1 %v20431_v3 }
  0x5d   :  { %613 = vmatprep.mubr.f32.mxu1 %v20431_v3  ;;  %10685 = vmatpush3.msra.mxu1 %v12939_v54 }
  0x5e   :  { %277 = vmatmul.mubr.f32.gmra.mxu0 %v12906_v45  ;;  %614 = vmatmul.mubr.f32.gmra.mxu1 %v12662_v48 }
  0x5f   :  { %10660 = vmatprep.mubr.f32.mxu0 %v12646_v44  ;;  %v12961_v44 = vld [vmem:[%s20420_s4 + $0x150] sm:$0xff]  ;;  %10686 = vmatprep.subr.mxu1 %v20431_v3 }
  0x60   :  { %619 = vmatprep.mubr.f32.mxu1 %v20431_v3  ;;  %10687 = vmatpush3.msra.mxu1 %v12980_v59 }
  0x61   :  { %10688 = vmatprep.subr.mxu1 %v20431_v3 }
  0x62   :  { %10661 = vmatmul.mubr.f32.vlgmr.msra.gmra.mxu0 %v12662_v48  ;;  %v12974_v48 = vld [vmem:[%s20420_s4 + $0x138] sm:$0xff]  ;;  %620 = vmatmul.mubr.f32.gmra.mxu1 %v12678_v52 }
  0x63   :  { %967 = vmatpush1.msra.mxu0 %v12946_v55  ;;  %10663 = vmatprep.mubr.f32.mxu0 %v12678_v52  ;;  %v948_v52 = vld [vmem:[%s20420_s4 + $0xf0] sm:$0xff] }
  0x64   :  { %968 = vmatprep.subr.mxu0 %v12953_v57  ;;  %625 = vmatprep.mubr.f32.mxu1 %v20431_v3 }
  0x65   :  { %969 = vmatpush1.msra.mxu0 %v12961_v44  ;;  %10689 = vmatpush3.msra.mxu1 %v13012_v4 }
  0x66   :  { %970 = vmatprep.subr.mxu0 %v12968_v58  ;;  %10664 = vmatmul.mubr.f32.gmra.mxu0 %v12694_v56 }
  0x67   :  { %971 = vmatpush1.msra.mxu0 %v12974_v48  ;;  %10666 = vmatprep.mubr.f32.mxu0 %v12710_v60 }
  0x68   :  { %972 = vmatprep.subr.mxu0 %v12987_v61  ;;  %626 = vmatmul.mubr.f32.gmra.mxu1 %v12694_v56  ;;  %v940_v56 = vld [vmem:[%s20420_s4 + $0xb0] sm:$0xff] }
  0x69   :  { %973 = vmatpush1.msra.mxu0 %v954_v62  ;;  %10690 = vmatprep.subr.mxu1 %v20431_v3  ;;  %v13233_v62 = vld [vmem:[%s20420_s4 + $0x70] sm:$0xff] }
  0x6a   :  { %974 = vmatprep.subr.mxu0 %v952_v63  ;;  %10667 = vmatmul.mubr.f32.gmra.mxu0 %v12727_v0  ;;  %v8960_v63 = vld [vmem:[%s20420_s4 + $0x248] sm:$0xff] }
  0x6b   :  { %975 = vmatpush1.msra.mxu0 %v951_v1  ;;  %10669 = vmatprep.mubr.f32.mxu0 %v12744_v5  ;;  %v8957_v1 = vld [vmem:[%s20420_s4 + $0x230] sm:$0xff] }
  0x6c   :  { %976 = vmatprep.subr.mxu0 %v949_v2  ;;  %631 = vmatprep.mubr.f32.mxu1 %v20431_v3  ;;  %v8956_v2 = vld [vmem:[%s20420_s4 + $0x228] sm:$0xff] }
  0x6d   :  { %977 = vmatpush1.msra.mxu0 %v948_v52  ;;  %10691 = vmatpush3.msra.mxu1 %v13035_v9  ;;  %v13254_v52 = vld [vmem:[%s20420_s4 + $0x58] sm:$0xff] }
  0x6e   :  { %978 = vmatprep.subr.mxu0 %v946_v6  ;;  %10670 = vmatmul.mubr.f32.gmra.mxu0 %v12768_v11  ;;  %v8954_v6 = vld [vmem:[%s20420_s4 + $0x218] sm:$0xff] }
  0x6f   :  { %979 = vmatpush1.msra.mxu0 %v945_v7  ;;  %632 = vmatmul.mubr.f32.gmra.mxu1 %v12710_v60  ;;  %v934_v60 = vld [vmem:[%s20420_s4 + $0x80] sm:$0xff] }
  0x70   :  { %980 = vmatprep.subr.mxu0 %v943_v8  ;;  %10672 = vmatprep.mubr.f32.mxu0 %v12786_v15  ;;  %v8951_v7 = vld [vmem:[%s20420_s4 + $0x200] sm:$0xff]  ;;  %v8950_v8 = vld [vmem:[%s20420_s4 + $0x1f8] sm:$0xff] }
  0x71   :  { %981 = vmatpush1.msra.mxu0 %v942_v10  ;;  %10692 = vmatprep.subr.mxu1 %v20431_v3  ;;  %v13275_v10 = vld [vmem:[%s20420_s4 + $0x40] sm:$0xff] }
  0x72   :  { %982 = vmatprep.subr.mxu0 %v940_v56  ;;  %10673 = vmatmul.mubr.f32.gmra.mxu0 %v12806_v20  ;;  %v8948_v56 = vld [vmem:[%s20420_s4 + $0x1e8] sm:$0xff] }
  0x73   :  { %983 = vmatpush1.msra.mxu0 %v939_v12  ;;  %637 = vmatprep.mubr.f32.mxu1 %v20431_v3  ;;  %v8945_v12 = vld [vmem:[%s20420_s4 + $0x1d0] sm:$0xff] }
  0x74   :  { %984 = vmatprep.subr.mxu0 %v937_v13  ;;  %10693 = vmatpush3.msra.mxu1 %v13058_v14  ;;  %v8944_v13 = vld [vmem:[%s20420_s4 + $0x1c8] sm:$0xff] }
  0x75   :  { %985 = vmatpush1.msra.mxu0 %v936_v16  ;;  %638 = vmatmul.mubr.f32.gmra.mxu1 %v12727_v0  ;;  %v928_v0 = vld [vmem:[%s20420_s4 + $0x50] sm:$0xff]  ;;  %v13296_v16 = vld [vmem:[%s20420_s4 + $0x28] sm:$0xff] }
  0x76   :  { %10675 = vmatprep.mubr.f32.mxu0 %v12823_v24  ;;  %986 = vmatprep.subr.mxu0 %v934_v60  ;;  %v8942_v60 = vld [vmem:[%s20420_s4 + $0x1b8] sm:$0xff] }
  0x77   :  { %10676 = vmatmul.mubr.f32.gmra.mxu0 %v12847_v30  ;;  %10694 = vmatprep.subr.mxu1 %v20431_v3 }
  0x78   :  { %987 = vmatpush1.msra.mxu0 %v933_v17  ;;  %643 = vmatprep.mubr.f32.mxu1 %v20431_v3  ;;  %v8939_v17 = vld [vmem:[%s20420_s4 + $0x1a0] sm:$0xff] }
  0x79   :  { %988 = vmatprep.subr.mxu0 %v931_v18  ;;  %10695 = vmatpush3.msra.mxu1 %v13081_v19  ;;  %v13313_v18 = vld [vmem:[%s20420_s4 + $0x10] sm:$0xff] }
  0x7a   :  { %989 = vmatpush1.msra.mxu0 %v13086_v21  ;;  %644 = vmatmul.mubr.f32.gmra.mxu1 %v12744_v5  ;;  %v13119_v5 = vld [vmem:[%s20420_s4 + $0x20] sm:$0xff] }
  0x7b   :  { %10678 = vmatprep.mubr.f32.mxu0 %v12865_v34  ;;  %990 = vmatprep.subr.mxu0 %v928_v0  ;;  %v8938_v0 = vld [vmem:[%s20420_s4 + $0x198] sm:$0xff] }
  0x7c   :  { %10679 = vmatmul.mubr.f32.gmra.mxu0 %v12885_v39  ;;  %10696 = vmatprep.subr.mxu1 %v20431_v3 }
  0x7d   :  { %991 = vmatpush1.msra.mxu0 %v927_v22  ;;  %649 = vmatprep.mubr.f32.mxu1 %v20431_v3  ;;  %v8936_v22 = vld [vmem:[%s20420_s4 + $0x188] sm:$0xff] }
  0x7e   :  { %992 = vmatprep.subr.mxu0 %v925_v23  ;;  %10697 = vmatpush3.msra.mxu1 %v13107_v25  ;;  %v8935_v23 = vld [vmem:[%s20420_s4 + $0x180] sm:$0xff] }
  0x7f   :  { %993 = vmatpush1.msra.mxu0 %v13112_v26  ;;  %650 = vmatmul.mubr.f32.gmra.mxu1 %v12768_v11  ;;  %v13145_v11 = vld [vmem:[%s20420_s4] sm:$0xff] }
  0x80   :  { %10681 = vmatprep.mubr.f32.mxu0 %v12897_v42  ;;  %994 = vmatprep.subr.mxu0 %v13119_v5 }
  0x81   :  { %10682 = vmatmul.mubr.f32.gmra.mxu0 %v12906_v45  ;;  %10698 = vmatprep.subr.mxu1 %v20431_v3 }
  0x82   :  { %995 = vmatpush1.msra.mxu0 %v13126_v27  ;;  %655 = vmatprep.mubr.f32.mxu1 %v20431_v3 }
  0x83   :  { %996 = vmatprep.subr.mxu0 %v13133_v28  ;;  %10699 = vmatpush3.msra.mxu1 %v13140_v29 }
  0x84   :  { %997 = vmatpush1.msra.mxu0 %v13145_v11  ;;  %656 = vmatmul.mubr.f32.gmra.mxu1 %v12786_v15  ;;  %v8977_v15 = vld [vmem:[%s20420_s4 + $0x2d0] sm:$0xff] }
  0x85   :  { %1030 = vmatprep.mubr.f32.mxu0 %v20431_v3  ;;  %1180 = vmatprep.subr.mxu0 %v8981_v31  ;;  %v13338_v31 = vld [vmem:[%s20421_s1 + $0x8] sm:$0xff] }
  0x86   :  { %1031 = vmatmul.mubr.f32.vlgmr.msra.gmra.mxu0 %v13157_v32  ;;  %10700 = vmatprep.subr.mxu1 %v20431_v3 }
  0x87   :  { %1181 = vmatpush1.msra.mxu0 %v8980_v33  ;;  %661 = vmatprep.mubr.f32.mxu1 %v20431_v3  ;;  %v13344_v33 = vld [vmem:[%s20420_s4 + $0x2e0] sm:$0xff] }
  0x88   :  { %10701 = vmatpush3.msra.mxu1 %v13169_v35  ;;  %1182 = vmatprep.subr.mxu0 %v8978_v36  ;;  %v13353_v36 = vld [vmem:[%s20420_s4 + $0x2c8] sm:$0xff] }
  0x89   :  { %662 = vmatmul.mubr.f32.gmra.mxu1 %v12806_v20  ;;  %1183 = vmatpush1.msra.mxu0 %v8977_v15  ;;  %v8971_v20 = vld [vmem:[%s20420_s4 + $0x2a0] sm:$0xff]  ;;  %v13362_v15 = vld [vmem:[%s20420_s4 + $0x2b0] sm:$0xff] }
  0x8a   :  { %10702 = vmatprep.subr.mxu1 %v20431_v3  ;;  %1184 = vmatprep.subr.mxu0 %v8975_v37  ;;  %v13371_v37 = vld [vmem:[%s20420_s4 + $0x298] sm:$0xff] }
  0x8b   :  { %667 = vmatprep.mubr.f32.mxu1 %v20431_v3  ;;  %1185 = vmatpush1.msra.mxu0 %v8974_v38  ;;  %v13433_v38 = vld [vmem:[%s20420_s4 + $0x1d8] sm:$0xff] }
  0x8c   :  { %10703 = vmatpush3.msra.mxu1 %v13191_v40  ;;  %1186 = vmatprep.subr.mxu0 %v8972_v41  ;;  %v13440_v41 = vld [vmem:[%s20420_s4 + $0x1c0] sm:$0xff] }
  0x8d   :  { %668 = vmatmul.mubr.f32.gmra.mxu1 %v12823_v24  ;;  %1187 = vmatpush1.msra.mxu0 %v8971_v20  ;;  %v8965_v24 = vld [vmem:[%s20420_s4 + $0x270] sm:$0xff]  ;;  %v13447_v20 = vld [vmem:[%s20420_s4 + $0x1a8] sm:$0xff] }
  0x8e   :  { %10704 = vmatprep.subr.mxu1 %v20431_v3  ;;  %1188 = vmatprep.subr.mxu0 %v8969_v43  ;;  %v13454_v43 = vld [vmem:[%s20420_s4 + $0x190] sm:$0xff] }
  0x8f   :  { %673 = vmatprep.mubr.f32.mxu1 %v20431_v3  ;;  %1189 = vmatpush1.msra.mxu0 %v8968_v46 }
  0x90   :  { %10705 = vmatpush3.msra.mxu1 %v13212_v47  ;;  %1190 = vmatprep.subr.mxu0 %v8966_v49 }
  0x91   :  { %674 = vmatmul.mubr.f32.gmra.mxu1 %v12847_v30  ;;  %1191 = vmatpush1.msra.mxu0 %v8965_v24  ;;  %v8959_v30 = vld [vmem:[%s20420_s4 + $0x240] sm:$0xff] }
  0x92   :  { %10706 = vmatprep.subr.mxu1 %v20431_v3  ;;  %1192 = vmatprep.subr.mxu0 %v8963_v50  ;;  %v13525_v24 = vld [vmem:[%s20420_s4 + $0x120] sm:$0xff] }
  0x93   :  { %679 = vmatprep.mubr.f32.mxu1 %v20431_v3  ;;  %1193 = vmatpush1.msra.mxu0 %v8962_v51  ;;  %v13532_v51 = vld [vmem:[%s20420_s4 + $0x110] sm:$0xff] }
  0x94   :  { %10707 = vmatpush3.msra.mxu1 %v13233_v62  ;;  %1194 = vmatprep.subr.mxu0 %v8960_v63  ;;  %v13538_v63 = vld [vmem:[%s20420_s4 + $0x108] sm:$0xff] }
  0x95   :  { %680 = vmatmul.mubr.f32.gmra.mxu1 %v12865_v34  ;;  %1195 = vmatpush1.msra.mxu0 %v8959_v30  ;;  %v8953_v34 = vld [vmem:[%s20420_s4 + $0x210] sm:$0xff] }
  0x96   :  { %10708 = vmatprep.subr.mxu1 %v20431_v3  ;;  %1196 = vmatprep.subr.mxu0 %v8957_v1  ;;  %v13547_v1 = vld [vmem:[%s20420_s4 + $0xf8] sm:$0xff] }
  0x97   :  { %685 = vmatprep.mubr.f32.mxu1 %v20431_v3  ;;  %1197 = vmatpush1.msra.mxu0 %v8956_v2 }
  0x98   :  { %10709 = vmatpush3.msra.mxu1 %v13254_v52  ;;  %1198 = vmatprep.subr.mxu0 %v8954_v6 }
  0x99   :  { %686 = vmatmul.mubr.f32.gmra.mxu1 %v12885_v39  ;;  %1199 = vmatpush1.msra.mxu0 %v8953_v34  ;;  %v8947_v39 = vld [vmem:[%s20420_s4 + $0x1e0] sm:$0xff] }
  0x9a   :  { %10710 = vmatprep.subr.mxu1 %v20431_v3  ;;  %1200 = vmatprep.subr.mxu0 %v8951_v7  ;;  %v13566_v34 = vld [vmem:[%s20420_s4 + $0xe0] sm:$0xff] }
  0x9b   :  { %691 = vmatprep.mubr.f32.mxu1 %v20431_v3  ;;  %1201 = vmatpush1.msra.mxu0 %v8950_v8  ;;  %v13572_v8 = vld [vmem:[%s20420_s4 + $0xd8] sm:$0xff] }
  0x9c   :  { %10711 = vmatpush3.msra.mxu1 %v13275_v10  ;;  %1202 = vmatprep.subr.mxu0 %v8948_v56  ;;  %v13581_v56 = vld [vmem:[%s20420_s4 + $0xc8] sm:$0xff] }
  0x9d   :  { %692 = vmatmul.mubr.f32.gmra.mxu1 %v12897_v42  ;;  %1203 = vmatpush1.msra.mxu0 %v8947_v39  ;;  %v8941_v42 = vld [vmem:[%s20420_s4 + $0x1b0] sm:$0xff] }
  0x9e   :  { %10712 = vmatprep.subr.mxu1 %v20431_v3  ;;  %1204 = vmatprep.subr.mxu0 %v8945_v12 }
  0x9f   :  { %697 = vmatprep.mubr.f32.mxu1 %v20431_v3  ;;  %1205 = vmatpush1.msra.mxu0 %v8944_v13  ;;  %v13589_v13 = vld [vmem:[%s20420_s4 + $0xc0] sm:$0xff] }
  0xa0   :  { %10713 = vmatpush3.msra.mxu1 %v13296_v16  ;;  %1206 = vmatprep.subr.mxu0 %v8942_v60  ;;  %v13598_v60 = vld [vmem:[%s20420_s4 + $0xb0] sm:$0xff] }
  0xa1   :  { %698 = vmatmul.mubr.f32.gmra.mxu1 %v12906_v45  ;;  %1207 = vmatpush1.msra.mxu0 %v8941_v42  ;;  %v13332_v45 = vld [vmem:[%s20420_s4 + $0x2f8] sm:$0xff] }
  0xa2   :  { %10714 = vmatprep.subr.mxu1 %v20431_v3  ;;  %1208 = vmatprep.subr.mxu0 %v8939_v17 }
  0xa3   :  { %10715 = vmatpush3.msra.mxu1 %v13313_v18  ;;  %1209 = vmatpush1.msra.mxu0 %v8938_v0 }
  0xa4   :  { %10716 = vmatprep.mubr.msk.f32.mxu1 %vm12447_vm0, %v20431_v3  ;;  %1210 = vmatprep.subr.mxu0 %v8936_v22  ;;  %v13615_v22 = vld [vmem:[%s20420_s4 + $0x98] sm:$0xff] }
  0xa5   :  { %10719 = vmatprep.subr.mxu1 %v20431_v3  ;;  %10717 = vmatmul.mubr.f32.vlgmr.msra.gmra.mxu1 %v13157_v32 }
  0xa6   :  { %1211 = vmatpush1.msra.mxu0 %v8935_v23  ;;  %1244 = vmatprep.mubr.f32.mxu0 %v20431_v3 }
  0xa7   :  { %10720 = vmatpush3.msra.mxu1 %v13332_v45  ;;  %1245 = vmatmul.mubr.f32.vlgmr.msra.gmra.mxu0 %v13338_v31 }
  0xa8   :  { %10721 = vmatprep.subr.mxu1 %v20431_v3  ;;  %10751 = vmatprep.mubr.msk.f32.mxu1 %vm12447_vm0, %v20431_v3 }
  0xa9   :  { %10722 = vmatpush3.msra.mxu1 %v13344_v33  ;;  %1395 = vmatprep.subr.mxu0 %v12932_v53  ;;  %v13380_v53 = vld [vmem:[%s20420_s4 + $0x280] sm:$0xff] }
  0xaa   :  { %10723 = vmatprep.subr.mxu1 %v20431_v3  ;;  %1396 = vmatpush1.msra.mxu0 %v12946_v55  ;;  %v13389_v55 = vld [vmem:[%s20420_s4 + $0x268] sm:$0xff] }
  0xab   :  { %10724 = vmatpush3.msra.mxu1 %v13353_v36  ;;  %1397 = vmatprep.subr.mxu0 %v12953_v57  ;;  %v13398_v57 = vld [vmem:[%s20420_s4 + $0x250] sm:$0xff] }
  0xac   :  { %10725 = vmatprep.subr.mxu1 %v20431_v3  ;;  %1398 = vmatpush1.msra.mxu0 %v12961_v44  ;;  %v13405_v44 = vld [vmem:[%s20420_s4 + $0x238] sm:$0xff] }
  0xad   :  { %10726 = vmatpush3.msra.mxu1 %v13362_v15  ;;  %1399 = vmatprep.subr.mxu0 %v12968_v58  ;;  %v13412_v58 = vld [vmem:[%s20420_s4 + $0x220] sm:$0xff] }
  0xae   :  { %10727 = vmatprep.subr.mxu1 %v20431_v3  ;;  %1400 = vmatpush1.msra.mxu0 %v12974_v48  ;;  %v13419_v48 = vld [vmem:[%s20420_s4 + $0x208] sm:$0xff] }
  0xaf   :  { %10728 = vmatpush3.msra.mxu1 %v13371_v37  ;;  %1401 = vmatprep.subr.mxu0 %v12987_v61  ;;  %v13426_v61 = vld [vmem:[%s20420_s4 + $0x1f0] sm:$0xff] }
  0xb0   :  { %10729 = vmatprep.subr.mxu1 %v20431_v3  ;;  %1459 = vmatprep.mubr.f32.mxu0 %v20431_v3 }
  0xb1   :  { %10730 = vmatpush3.msra.mxu1 %v13380_v53  ;;  %1402 = vmatpush1.msra.mxu0 %v13525_v24 }
  0xb2   :  { %10731 = vmatprep.subr.mxu1 %v20431_v3  ;;  %1403 = vmatprep.subr.mxu0 %v13532_v51 }
  0xb3   :  { %10732 = vmatpush3.msra.mxu1 %v13389_v55  ;;  %1404 = vmatpush1.msra.mxu0 %v13538_v63 }
  0xb4   :  { %10733 = vmatprep.subr.mxu1 %v20431_v3  ;;  %1405 = vmatprep.subr.mxu0 %v13547_v1 }
  0xb5   :  { %10734 = vmatpush3.msra.mxu1 %v13398_v57 }
  0xb6   :  { %10735 = vmatprep.subr.mxu1 %v20431_v3 }
  0xb7   :  { %10736 = vmatpush3.msra.mxu1 %v13405_v44 }
  0xb8   :  { %10737 = vmatprep.subr.mxu1 %v20431_v3 }
  0xb9   :  { %10738 = vmatpush3.msra.mxu1 %v13412_v58 }
  0xba   :  { %10739 = vmatprep.subr.mxu1 %v20431_v3 }
  0xbb   :  { %10740 = vmatpush3.msra.mxu1 %v13419_v48 }
  0xbc   :  { %10741 = vmatprep.subr.mxu1 %v20431_v3 }
  0xbd   :  { %10742 = vmatpush3.msra.mxu1 %v13426_v61 }
  0xbe   :  { %10743 = vmatprep.subr.mxu1 %v20431_v3 }
  0xbf   :  { %10744 = vmatpush3.msra.mxu1 %v13433_v38 }
  0xc0   :  { %10745 = vmatprep.subr.mxu1 %v20431_v3 }
  0xc1   :  { %10746 = vmatpush3.msra.mxu1 %v13440_v41 }
  0xc2   :  { %10747 = vmatprep.subr.mxu1 %v20431_v3 }
  0xc3   :  { %10748 = vmatpush3.msra.mxu1 %v13447_v20 }
  0xc4   :  { %10749 = vmatprep.subr.mxu1 %v20431_v3 }
  0xc5   :  { %10750 = vmatpush3.msra.mxu1 %v13454_v43 }
  0xc6   :  { %10752 = vmatmul.mubr.f32.vlgmr.msra.gmra.mxu1 %v13338_v31  ;;  %10754 = vmatprep.subr.mxu1 %v20431_v3 }
  0xc7   :  { %10755 = vmatpush3.msra.mxu1 %v12939_v54  ;;  %10786 = vmatprep.mubr.msk.f32.mxu1 %vm12447_vm0, %v20431_v3  ;;  %v107_v54 = vlaneseq }
  0xc8   :  { %10756 = vmatprep.subr.mxu1 %v20431_v3 }
  0xc9   :  { %10757 = vmatpush3.msra.mxu1 %v12980_v59  ;;  %v13483_v59 = vshrl.u32 %v107_v54, 7  ;;  %v13623_v54 = vld [vmem:[%s20420_s4 + $0x90] sm:$0xff] }
  0xca   :  { %10758 = vmatprep.subr.mxu1 %v20431_v3 }
  0xcb   :  { %10759 = vmatpush3.msra.mxu1 %v13012_v4  ;;  %v20433_v4 = vsub.s32 0, %v13483_v59  ;;  %v20434_v50 = vsub.s32 2, %v13483_v59 }
  0xcc   :  { %10760 = vmatprep.subr.mxu1 %v20431_v3 }
  0xcd   :  { %10761 = vmatpush3.msra.mxu1 %v13035_v9  ;;  %v13494_v9 = vld [vmem:[%s20422_s3] sm:$0x7] }
  0xce   :  { %10762 = vmatprep.subr.mxu1 %v20431_v3  ;;  %v13560_v6 = vrot.slane %v13494_v9, %v20434_v50 }
  0xcf   :  { %10763 = vmatpush3.msra.mxu1 %v13058_v14 }
  0xd0   :  { %10764 = vmatprep.subr.mxu1 %v20431_v3  ;;  %20672 = vst [vmem:[#allocation11_spill] sm:$0xff] %v13560_v6 }
  0xd1   :  { %10765 = vmatpush3.msra.mxu1 %v13081_v19 }
  0xd2   :  { %10766 = vmatprep.subr.mxu1 %v20431_v3 }
  0xd3   :  { %10767 = vmatpush3.msra.mxu1 %v13107_v25  ;;  %v13506_v25 = vrot.slane %v13494_v9, %v20433_v4  ;;  %v13649_v4 = vld [vmem:[%s20420_s4 + $0x68] sm:$0xff] }
  0xd4   :  { %10768 = vmatprep.subr.mxu1 %v20431_v3 }
  0xd5   :  { %10769 = vmatpush3.msra.mxu1 %v13140_v29 }
  0xd6   :  { %10770 = vmatprep.subr.mxu1 %v20431_v3 }
  0xd7   :  { %10771 = vmatpush3.msra.mxu1 %v13169_v35 }
  0xd8   :  { %10772 = vmatprep.subr.mxu1 %v20431_v3 }
  0xd9   :  { %10773 = vmatpush3.msra.mxu1 %v13191_v40 }
  0xda   :  { %10774 = vmatprep.subr.mxu1 %v20431_v3 }
  0xdb   :  { %10775 = vmatpush3.msra.mxu1 %v13212_v47 }
  0xdc   :  { %10776 = vmatprep.subr.mxu1 %v20431_v3 }
  0xdd   :  { %10777 = vmatpush3.msra.mxu1 %v13233_v62 }
  0xde   :  { %10778 = vmatprep.subr.mxu1 %v20431_v3 }
  0xdf   :  { %10779 = vmatpush3.msra.mxu1 %v13254_v52  ;;  %v13555_v52 = vld [vmem:[%s20420_s4 + $0xf0] sm:$0xff] }
  0xe0   :  { %10780 = vmatprep.subr.mxu1 %v20431_v3  ;;  %1406 = vmatpush1.msra.mxu0 %v13555_v52 }
  0xe1   :  { %10781 = vmatpush3.msra.mxu1 %v13275_v10  ;;  %1407 = vmatprep.subr.mxu0 %v13566_v34 }
  0xe2   :  { %v13496_v14 = vpop.f32.mrf.mxu0  ;;  %10782 = vmatprep.subr.mxu1 %v20431_v3  ;;  %1408 = vmatpush1.msra.mxu0 %v13572_v8 }
  0xe3   :  { %10783 = vmatpush3.msra.mxu1 %v13296_v16  ;;  %1409 = vmatprep.subr.mxu0 %v13581_v56 }
  0xe4   :  { %v13500_v19 = vpop.f32.mrf.mxu0  ;;  %10784 = vmatprep.subr.mxu1 %v20431_v3  ;;  %1410 = vmatpush1.msra.mxu0 %v13589_v13 }
  0xe5   :  { %10785 = vmatpush3.msra.mxu1 %v13313_v18  ;;  %1411 = vmatprep.subr.mxu0 %v13598_v60  ;;  %v13606_v18 = vld [vmem:[%s20420_s4 + $0xa8] sm:$0xff] }
  0xe6   :  { %v194_v29 = vpop.f32.mrf.mxu0  ;;  %10789 = vmatprep.subr.mxu1 %v20431_v3  ;;  %1412 = vmatpush1.msra.mxu0 %v13606_v18 }
  0xe7   :  { %v13511_v35 = vadd.f32 %v194_v29, %v13506_v25  ;;  %1413 = vmatprep.subr.mxu0 %v13615_v22 }
  0xe8   :  { %v13514_v40 = vpop.f32.mrf.mxu0  ;;  %1414 = vmatpush1.msra.mxu0 %v13623_v54 }
  0xe9   :  { %20667 = vst [vmem:[#allocation6_spill] sm:$0xff] %v13514_v40 }
  0xea   :  { %v200_v46 = vpop.f32.mrf.mxu0 }
  0xeb   :  { %v13518_v47 = vadd.f32 %v200_v46, %v13506_v25  ;;  %v13629_v46 = vld [vmem:[%s20420_s4 + $0x80] sm:$0xff] }
  0xec   :  { %v13520_v49 = vpop.f32.mrf.mxu0  ;;  %1415 = vmatprep.subr.mxu0 %v13629_v46 }
  0xed   :  { %20668 = vst [vmem:[#allocation7_spill] sm:$0xff] %v13518_v47  ;;  %20669 = vst [vmem:[#allocation8_spill] sm:$0xff] %v13520_v49  ;;  %v10606_v12 = vpop.f32.mrf.mxu1 }
  0xee   :  { %v206_v62 = vpop.f32.mrf.mxu0  ;;  %v13592_v16 = vadd.f32 %v10606_v12, %v13560_v6  ;;  %v13638_v12 = vld [vmem:[%s20420_s4 + $0x78] sm:$0xff] }
  0xef   :  { %v13541_v30 = vadd.f32 %v206_v62, %v13506_v25  ;;  %v13600_v17 = vpop.f32.mrf.mxu1  ;;  %1416 = vmatpush1.msra.mxu0 %v13638_v12 }
  0xf0   :  { %v13549_v2 = vpop.f32.mrf.mxu0  ;;  %20675 = vst [vmem:[#allocation14_spill] sm:$0xff] %v13592_v16  ;;  %1417 = vmatprep.subr.mxu0 %v13649_v4 }
  0xf1   :  { %20670 = vst [vmem:[#allocation9_spill] sm:$0xff] %v13541_v30  ;;  %20671 = vst [vmem:[#allocation10_spill] sm:$0xff] %v13549_v2  ;;  %1418 = vmatpush1.msra.mxu0 %v13086_v21  ;;  %v13676_v21 = vld [vmem:[%s20420_s4 + $0x38] sm:$0xff] }
  0xf2   :  { %v212_v7 = vpop.f32.mrf.mxu0 }
  0xf3   :  { %v13575_v10 = vadd.f32 %v212_v7, %v13506_v25 }
  0xf4   :  { %v13583_v39 = vpop.f32.mrf.mxu0 }
  0xf5   :  { %20673 = vst [vmem:[#allocation12_spill] sm:$0xff] %v13575_v10  ;;  %20674 = vst [vmem:[#allocation13_spill] sm:$0xff] %v13583_v39  ;;  %v10609_v29 = vpop.f32.mrf.mxu1 }
  0xf6   :  { %v218_v42 = vpop.f32.mrf.mxu0  ;;  %v13632_v7 = vadd.f32 %v10609_v29, %v13560_v6 }
  0xf7   :  { %v13609_v0 = vadd.f32 %v218_v42, %v13506_v25  ;;  %v13643_v3 = vpop.f32.mrf.mxu1 }
  0xf8   :  { %v13617_v23 = vpop.f32.mrf.mxu0  ;;  %20678 = vst [vmem:[#allocation17_spill] sm:$0xff] %v13632_v7  ;;  %20680 = vst [vmem:[#allocation19_spill] sm:$0xff] %v13643_v3 }
  0xf9   :  { %20676 = vst [vmem:[#allocation15_spill] sm:$0xff] %v13609_v0  ;;  %20677 = vst [vmem:[#allocation16_spill] sm:$0xff] %v13617_v23  ;;  %v13664_v23 = vld [vmem:[%s20420_s4 + $0x48] sm:$0xff] }
  0xfa   :  { %v224_v62 = vpop.f32.mrf.mxu0 }
  0xfb   :  { %v13641_v42 = vadd.f32 %v224_v62, %v13506_v25  ;;  %v13658_v62 = vld [vmem:[%s20420_s4 + $0x50] sm:$0xff] }
  0xfc   :  { %v13651_v29 = vpop.f32.mrf.mxu0  ;;  %1419 = vmatprep.subr.mxu0 %v13658_v62 }
  0xfd   :  { %20679 = vst [vmem:[#allocation18_spill] sm:$0xff] %v13641_v42  ;;  %20681 = vst [vmem:[#allocation20_spill] sm:$0xff] %v13651_v29  ;;  %v10612_v42 = vpop.f32.mrf.mxu1  ;;  %1420 = vmatpush1.msra.mxu0 %v13664_v23 }
  0xfe   :  { %v230_v50 = vpop.f32.mrf.mxu0  ;;  %v13670_v0 = vadd.f32 %v10612_v42, %v13560_v6  ;;  %1421 = vmatprep.subr.mxu0 %v13676_v21 }
  0xff   :  { %v13667_v29 = vadd.f32 %v230_v50, %v13506_v25  ;;  %v13680_v10 = vpop.f32.mrf.mxu1  ;;  %1422 = vmatpush1.msra.mxu0 %v13112_v26 }
 0x100   :  { %20683 = vst [vmem:[#allocation22_spill] sm:$0xff] %v13670_v0  ;;  %v13678_v39 = vpop.f32.mrf.mxu0  ;;  %20685 = vst [vmem:[#allocation24_spill] sm:$0xff] %v13680_v10  ;;  %1423 = vmatprep.subr.mxu0 %v13119_v5 }
 0x101   :  { %20682 = vst [vmem:[#allocation21_spill] sm:$0xff] %v13667_v29  ;;  %20684 = vst [vmem:[#allocation23_spill] sm:$0xff] %v13678_v39  ;;  %1424 = vmatpush1.msra.mxu0 %v13126_v27  ;;  %v13692_v29 = vld [vmem:[%s20420_s4 + $0x2f0] sm:$0xff]  ;;  %v10615_v0 = vpop.f32.mrf.mxu1 }
 0x102   :  { %v236_v50 = vpop.f32.mrf.mxu0  ;;  %1425 = vmatprep.subr.mxu0 %v13133_v28  ;;  %v13698_v26 = vadd.f32 %v10615_v0, %v13560_v6 }
 0x103   :  { %v13686_v42 = vadd.f32 %v236_v50, %v13506_v25  ;;  %1426 = vmatpush1.msra.mxu0 %v13145_v11  ;;  %v13701_v50 = vpop.f32.mrf.mxu1 }
 0x104   :  { %v13694_v39 = vpop.f32.mrf.mxu0  ;;  %20688 = vst [vmem:[#allocation27_spill] sm:$0xff] %v13698_v26  ;;  %20689 = vst [vmem:[#allocation28_spill] sm:$0xff] %v13701_v50  ;;  %1608 = vmatprep.subr.mxu0 %v13692_v29 }
 0x105   :  { %20686 = vst [vmem:[#allocation25_spill] sm:$0xff] %v13686_v42  ;;  %20687 = vst [vmem:[#allocation26_spill] sm:$0xff] %v13694_v39  ;;  %v10618_v10 = vpop.f32.mrf.mxu1 }
 0x106   :  { %v242_v5 = vpop.f32.mrf.mxu0  ;;  %v13710_v7 = vadd.f32 %v10618_v10, %v13560_v6 }
 0x107   :  { %v13705_v27 = vadd.f32 %v242_v5, %v13506_v25  ;;  %v13715_v0 = vpop.f32.mrf.mxu1 }
 0x108   :  { %v13707_v42 = vpop.f32.mrf.mxu0  ;;  %20692 = vst [vmem:[#allocation31_spill] sm:$0xff] %v13710_v7  ;;  %20694 = vst [vmem:[#allocation33_spill] sm:$0xff] %v13715_v0 }
 0x109   :  { %20690 = vst [vmem:[#allocation29_spill] sm:$0xff] %v13705_v27  ;;  %20691 = vst [vmem:[#allocation30_spill] sm:$0xff] %v13707_v42 }
 0x10a   :  { %v248_v39 = vpop.f32.mrf.mxu0  ;;  %v10621_v50 = vpop.f32.mrf.mxu1 }
 0x10b   :  { %v13713_v28 = vadd.f32 %v248_v39, %v13506_v25  ;;  %v13723_v5 = vadd.f32 %v10621_v50, %v13560_v6 }
 0x10c   :  { %v13717_v11 = vpop.f32.mrf.mxu0  ;;  %v13727_v27 = vpop.f32.mrf.mxu1 }
 0x10d   :  { %20693 = vst [vmem:[#allocation32_spill] sm:$0xff] %v13713_v28  ;;  %20695 = vst [vmem:[#allocation34_spill] sm:$0xff] %v13717_v11 }
 0x10e   :  { %v254_v26 = vpop.f32.mrf.mxu0  ;;  %20697 = vst [vmem:[#allocation36_spill] sm:$0xff] %v13723_v5  ;;  %20699 = vst [vmem:[#allocation38_spill] sm:$0xff] %v13727_v27 }
 0x10f   :  { %v13720_v2 = vadd.f32 %v254_v26, %v13506_v25 }
 0x110   :  { %v13725_v42 = vpop.f32.mrf.mxu0  ;;  %v10624_v7 = vpop.f32.mrf.mxu1 }
 0x111   :  { %20696 = vst [vmem:[#allocation35_spill] sm:$0xff] %v13720_v2  ;;  %20698 = vst [vmem:[#allocation37_spill] sm:$0xff] %v13725_v42  ;;  %v13735_v11 = vadd.f32 %v10624_v7, %v13560_v6 }
 0x112   :  { %v260_v10 = vpop.f32.mrf.mxu0  ;;  %v13737_v26 = vpop.f32.mrf.mxu1 }
 0x113   :  { %v13730_v39 = vadd.f32 %v260_v10, %v13506_v25  ;;  %20702 = vst [vmem:[#allocation41_spill] sm:$0xff] %v13735_v11  ;;  %20703 = vst [vmem:[#allocation42_spill] sm:$0xff] %v13737_v26  ;;  %v13757_v11 = vld [vmem:[%s20422_s3 + $0x3] sm:$0x7] }
 0x114   :  { %v13732_v28 = vpop.f32.mrf.mxu0 }
 0x115   :  { %20700 = vst [vmem:[#allocation39_spill] sm:$0xff] %v13730_v39  ;;  %20701 = vst [vmem:[#allocation40_spill] sm:$0xff] %v13732_v28  ;;  %v10627_v42 = vpop.f32.mrf.mxu1 }
 0x116   :  { %v266_v0 = vpop.f32.mrf.mxu0  ;;  %v13745_v27 = vadd.f32 %v10627_v42, %v13560_v6  ;;  %v20712_v42 = vsub.s32 2, %v13483_v59 }
 0x117   :  { %v13740_v50 = vadd.f32 %v266_v0, %v13506_v25  ;;  %v13750_v28 = vpop.f32.mrf.mxu1 }
 0x118   :  { %v13742_v5 = vpop.f32.mrf.mxu0  ;;  %20706 = vst [vmem:[#allocation45_spill] sm:$0xff] %v13745_v27  ;;  %20708 = vst [vmem:[#allocation47_spill] sm:$0xff] %v13750_v28 }
 0x119   :  { %20704 = vst [vmem:[#allocation43_spill] sm:$0xff] %v13740_v50  ;;  %20705 = vst [vmem:[#allocation44_spill] sm:$0xff] %v13742_v5 }
 0x11a   :  { %v272_v2 = vpop.f32.mrf.mxu0  ;;  %v13759_v50 = vpop.f32.mrf.mxu1 }
 0x11b   :  { %v13748_v10 = vadd.f32 %v272_v2, %v13506_v25  ;;  %20710 = vst [vmem:[#allocation49_spill] sm:$0xff] %v13759_v50  ;;  %v13767_v2 = vrot.slane %v13757_v11, %v20712_v42 }
 0x11c   :  { %v13752_v7 = vpop.f32.mrf.mxu0  ;;  %v13771_v28 = vpop.f32.mrf.mxu1 }
 0x11d   :  { %20707 = vst [vmem:[#allocation46_spill] sm:$0xff] %v13748_v10  ;;  %20709 = vst [vmem:[#allocation48_spill] sm:$0xff] %v13752_v7 }
 0x11e   :  { %v278_v0 = vpop.f32.mrf.mxu0  ;;  %20713 = vst [vmem:[#allocation51_spill] sm:$0xff] %v13767_v2  ;;  %20715 = vst [vmem:[#allocation53_spill] sm:$0xff] %v13771_v28  ;;  %v13773_v10 = vpop.f32.mrf.mxu1 }
 0x11f   :  { %v13762_v5 = vadd.f32 %v278_v0, %v13506_v25  ;;  %20716 = vst [vmem:[#allocation54_spill] sm:$0xff] %v13773_v10 }
 0x120   :  { %v13769_v27 = vpop.f32.mrf.mxu0  ;;  %v13780_v50 = vpop.f32.mrf.mxu1 }
 0x121   :  { %20711 = vst [vmem:[#allocation50_spill] sm:$0xff] %v13762_v5  ;;  %20714 = vst [vmem:[#allocation52_spill] sm:$0xff] %v13769_v27 }
 0x122   :  { %v10662_v7 = vpop.f32.mrf.mxu0  ;;  %20719 = vst [vmem:[#allocation57_spill] sm:$0xff] %v13780_v50  ;;  %v13785_v42 = vpop.f32.mrf.mxu1 }
 0x123   :  { %v13776_v26 = vadd.f32 %v10662_v7, %v13767_v2  ;;  %20721 = vst [vmem:[#allocation59_spill] sm:$0xff] %v13785_v42 }
 0x124   :  { %v13778_v39 = vpop.f32.mrf.mxu0  ;;  %v13789_v27 = vpop.f32.mrf.mxu1 }
 0x125   :  { %20717 = vst [vmem:[#allocation55_spill] sm:$0xff] %v13776_v26  ;;  %20718 = vst [vmem:[#allocation56_spill] sm:$0xff] %v13778_v39 }
 0x126   :  { %v10665_v0 = vpop.f32.mrf.mxu0  ;;  %20723 = vst [vmem:[#allocation61_spill] sm:$0xff] %v13789_v27 }
 0x127   :  { %v13783_v5 = vadd.f32 %v10665_v0, %v13767_v2 }
 0x128   :  { %v13787_v30 = vpop.f32.mrf.mxu0  ;;  %v13797_v39 = vpop.f32.mrf.mxu1 }
 0x129   :  { %20720 = vst [vmem:[#allocation58_spill] sm:$0xff] %v13783_v5  ;;  %20722 = vst [vmem:[#allocation60_spill] sm:$0xff] %v13787_v30 }
 0x12a   :  { %v10668_v28 = vpop.f32.mrf.mxu0  ;;  %20726 = vst [vmem:[#allocation64_spill] sm:$0xff] %v13797_v39  ;;  %v13799_v3 = vpop.f32.mrf.mxu1 }
 0x12b   :  { %v13792_v10 = vadd.f32 %v10668_v28, %v13767_v2  ;;  %20727 = vst [vmem:[#allocation65_spill] sm:$0xff] %v13799_v3 }
 0x12c   :  { %v790_v7 = vpop.f32.mrf.mxu0 }
 0x12d   :  { %20724 = vst [vmem:[#allocation62_spill] sm:$0xff] %v13792_v10  ;;  %v13795_v26 = vadd.f32 %v790_v7, %v13767_v2 }
 0x12e   :  { %v10671_v50 = vpop.f32.mrf.mxu0 }
 0x12f   :  { %20725 = vst [vmem:[#allocation63_spill] sm:$0xff] %v13795_v26  ;;  %v13802_v0 = vadd.f32 %v10671_v50, %v13767_v2  ;;  %v13807_v27 = vpop.f32.mrf.mxu1 }
 0x130   :  { %v800_v42 = vpop.f32.mrf.mxu0  ;;  %20730 = vst [vmem:[#allocation68_spill] sm:$0xff] %v13807_v27 }
 0x131   :  { %20728 = vst [vmem:[#allocation66_spill] sm:$0xff] %v13802_v0  ;;  %v13805_v30 = vadd.f32 %v800_v42, %v13767_v2  ;;  %v13809_v5 = vpop.f32.mrf.mxu1 }
 0x132   :  { %v10674_v28 = vpop.f32.mrf.mxu0  ;;  %20731 = vst [vmem:[#allocation69_spill] sm:$0xff] %v13809_v5 }
 0x133   :  { %20729 = vst [vmem:[#allocation67_spill] sm:$0xff] %v13805_v30  ;;  %v13812_v7 = vadd.f32 %v10674_v28, %v13767_v2 }
 0x134   :  { %v810_v26 = vpop.f32.mrf.mxu0 }
 0x135   :  { %20732 = vst [vmem:[#allocation70_spill] sm:$0xff] %v13812_v7  ;;  %v13815_v39 = vadd.f32 %v810_v26, %v13767_v2  ;;  %v13817_v3 = vpop.f32.mrf.mxu1 }
 0x136   :  { %20734 = vst [vmem:[#allocation72_spill] sm:$0xff] %v13817_v3 }
 0x137   :  { %20733 = vst [vmem:[#allocation71_spill] sm:$0xff] %v13815_v39  ;;  %v10677_v50 = vpop.f32.mrf.mxu0  ;;  %v13819_v10 = vpop.f32.mrf.mxu1 }
 0x138   :  { %20735 = vst [vmem:[#allocation73_spill] sm:$0xff] %v13819_v10  ;;  %v13822_v42 = vadd.f32 %v10677_v50, %v13767_v2 }
 0x139   :  { %v820_v30 = vpop.f32.mrf.mxu0 }
 0x13a   :  { %20736 = vst [vmem:[#allocation74_spill] sm:$0xff] %v13822_v42  ;;  %v13825_v27 = vadd.f32 %v820_v30, %v13767_v2  ;;  %v13827_v5 = vpop.f32.mrf.mxu1 }
 0x13b   :  { %20738 = vst [vmem:[#allocation76_spill] sm:$0xff] %v13827_v5 }
 0x13c   :  { %20737 = vst [vmem:[#allocation75_spill] sm:$0xff] %v13825_v27  ;;  %v10680_v28 = vpop.f32.mrf.mxu0  ;;  %v13829_v0 = vpop.f32.mrf.mxu1 }
 0x13d   :  { %20739 = vst [vmem:[#allocation77_spill] sm:$0xff] %v13829_v0  ;;  %v13832_v26 = vadd.f32 %v10680_v28, %v13767_v2  ;;  %v189_v0 = vadd.f32 %v13496_v14, %v13506_v25 }
 0x13e   :  { %v830_v39 = vpop.f32.mrf.mxu0 }
 0x13f   :  { %20740 = vst [vmem:[#allocation78_spill] sm:$0xff] %v13832_v26  ;;  %v13835_v3 = vadd.f32 %v830_v39, %v13767_v2  ;;  %v13837_v10 = vpop.f32.mrf.mxu1 }
 0x140   :  { %20742 = vst [vmem:[#allocation80_spill] sm:$0xff] %v13837_v10 }
 0x141   :  { %20741 = vst [vmem:[#allocation79_spill] sm:$0xff] %v13835_v3  ;;  %v13839_v50 = vpop.f32.mrf.mxu0  ;;  %v13841_v7 = vpop.f32.mrf.mxu1  ;;  %v113_v3 = vsub.s32 1, %v13483_v59 }
 0x142   :  { %20743 = vst [vmem:[#allocation81_spill] sm:$0xff] %v13841_v7 }
 0x143   :  { %v840_v30 = vpop.f32.mrf.mxu0 }
 0x144   :  { %v13844_v27 = vadd.f32 %v840_v30, %v13767_v2  ;;  %v13848_v5 = vpop.f32.mrf.mxu1  ;;  %v13858_v30 = vrot.slane %v13494_v9, %v113_v3 }
 0x145   :  { %20745 = vst [vmem:[#allocation83_spill] sm:$0xff] %v13848_v5 }
 0x146   :  { %20744 = vst [vmem:[#allocation82_spill] sm:$0xff] %v13844_v27  ;;  %v1032_v28 = vpop.f32.mrf.mxu0  ;;  %v13850_v42 = vpop.f32.mrf.mxu1  ;;  %20749 = vst [vmem:[#allocation87_spill] sm:$0xff] %v13858_v30 }
 0x147   :  { %20746 = vst [vmem:[#allocation84_spill] sm:$0xff] %v13850_v42  ;;  %v1107_v39 = vadd.f32 %v1032_v28, %v189_v0  ;;  %v191_v42 = vadd.f32 %v13500_v19, %v13858_v30 }
 0x148   :  { %v1034_v14 = vpop.f32.mrf.mxu0 }
 0x149   :  { %v8933_v10 = vmul.f32 -1.442695, %v1107_v39  ;;  %v13853_v26 = vpop.f32.mrf.mxu1  ;;  %v1108_v28 = vadd.f32 %v1034_v14, %v191_v42  ;;  %v20760_v14 = vsub.s32 0, %v13483_v59  ;;  %v350_v59 = vadd.f32 %v13600_v17, %v13560_v6 }
 0x14a   :  { %20747 = vst [vmem:[#allocation85_spill] sm:$0xff] %v13853_v26 }
 0x14b   :  { %12114 = vpow2.f32 %v8933_v10  ;;  %v13855_v7 = vpop.f32.mrf.mxu1  ;;  %v8934_v10 = vmul.f32 -1.442695, %v1108_v28 }
 0x14c   :  { %20748 = vst [vmem:[#allocation86_spill] sm:$0xff] %v13855_v7 }
 0x14d   :  { %v13860_v49 = vpop.f32.mrf.mxu1  ;;  %12116 = vpow2.f32 %v8934_v10 }
 0x14e   :  { %20750 = vst [vmem:[#allocation88_spill] sm:$0xff] %v13860_v49 }
 0x14f   :  { %v13862_v25 = vpop.f32.mrf.mxu1 }
 0x150   :  { %20751 = vst [vmem:[#allocation89_spill] sm:$0xff] %v13862_v25 }
 0x151   :  { %v13866_v0 = vpop.f32.mrf.mxu1 }
 0x152   :  { %20752 = vst [vmem:[#allocation90_spill] sm:$0xff] %v13866_v0 }
 0x153   :  { %v13868_v39 = vpop.f32.mrf.mxu1 }
 0x154   :  { %20753 = vst [vmem:[#allocation91_spill] sm:$0xff] %v13868_v39  ;;  %v13885_v39 = vrot.slane %v13757_v11, %v20760_v14 }
 0x155   :  { %v13870_v5 = vpop.f32.mrf.mxu1 }
 0x156   :  { %20754 = vst [vmem:[#allocation92_spill] sm:$0xff] %v13870_v5  ;;  %20761 = vst [vmem:[#allocation98_spill] sm:$0xff] %v13885_v39 }
 0x157   :  { %v13872_v7 = vpop.f32.mrf.mxu1 }
 0x158   :  { %20755 = vst [vmem:[#allocation93_spill] sm:$0xff] %v13872_v7  ;;  %v12115_v9 = vpop.eup %12114 }
 0x159   :  { %v1115_v26 = vadd.f32 1.0, %v12115_v9  ;;  %v13874_v47 = vpop.f32.mrf.mxu1  ;;  %v13890_v9 = vld [vmem:[%s20423_s5] ss:$0 sm:$0xff] }
 0x15a   :  { %20756 = vst [vmem:[#allocation94_spill] sm:$0xff] %v13874_v47  ;;  %20762 = vst [vmem:[#allocation99_spill] sm:$0xff] %v13890_v9  ;;  %v12117_v0 = vpop.eup %12116 }
 0x15b   :  { %12118 = vrcp.f32 %v1115_v26  ;;  %v13876_v25 = vpop.f32.mrf.mxu1 }
 0x15c   :  { %20757 = vst [vmem:[#allocation95_spill] sm:$0xff] %v13876_v25 }
 0x15d   :  { %v13878_v49 = vpop.f32.mrf.mxu1 }
 0x15e   :  { %20758 = vst [vmem:[#allocation96_spill] sm:$0xff] %v13878_v49 }
 0x15f   :  { %v13880_v19 = vpop.f32.mrf.mxu1 }
 0x160   :  { %20759 = vst [vmem:[#allocation97_spill] sm:$0xff] %v13880_v19  ;;  %v1116_v19 = vadd.f32 1.0, %v12117_v0  ;;  %v13951_v0 = vld [vmem:[%s20420_s4 + $0x2a0] sm:$0xff] }
 0x161   :  { %v699_v42 = vpop.f32.mrf.mxu1 }
 0x162   :  { %v700_v26 = vadd.f32 %v699_v42, %v13885_v39  ;;  %v13897_v42 = vrot.slane %v13757_v11, %v113_v3  ;;  %v13906_v3 = vld [vmem:[%s20420_s4 + $0x2e8] sm:$0xff]  ;;  %v13932_v11 = vld [vmem:[%s20420_s4 + $0x2b8] sm:$0xff] }
 0x163   :  { %v701_v28 = vpop.f32.mrf.mxu1 }
 0x165   :  { %v1103_v10 = vpop.f32.mrf.mxu1 }
 0x166   :  { %v1121_v7 = vadd.f32 %v13890_v9, %v1103_v10  ;;  %v702_v10 = vadd.f32 %v701_v28, %v13897_v42 }
 0x167   :  { %v1246_v25 = vpop.f32.mrf.mxu0  ;;  %v10718_v47 = vpop.f32.mrf.mxu1 }
 0x168   :  { %v12119_v5 = vpop.eup %12118  ;;  %v1321_v27 = vadd.f32 %v1246_v25, %v700_v26  ;;  %v13980_v26 = vld [vmem:[%s20420_s4 + $0x270] sm:$0xff] }
 0x169   :  { %v1122_v14 = vmul.f32 %v12119_v5, %v1121_v7  ;;  %v1248_v39 = vpop.f32.mrf.mxu0 }
 0x16a   :  { %v8983_v49 = vmul.f32 -1.442695, %v1321_v27  ;;  %v1322_v9 = vadd.f32 %v1248_v39, %v702_v10  ;;  %v20764_v27 = vmov 0.0   ;;  %v13958_v39 = vld [vmem:[%s20420_s4 + $0x290] sm:$0xff]  ;;  %v13994_v10 = vld [vmem:[%s20420_s4 + $0x258] sm:$0xff] }
 0x16b   :  { %v1123_v16 = vadd.f32 %v1122_v14, %v350_v59 }
 0x16c   :  { %v8984_v40 = vmul.f32 -1.442695, %v1322_v9 }
 0x16d   :  { %12120 = vtanh.f32 %v1123_v16 }
 0x16e   :  { %12122 = vpow2.f32 %v8983_v49  ;;  %v13911_v49 = vld [vmem:[%s20420_s4 + $0x2d8] sm:$0xff] }
 0x16f   :  { %12124 = vrcp.f32 %v1116_v19  ;;  %v13965_v19 = vld [vmem:[%s20420_s4 + $0x288] sm:$0xff] }
 0x170   :  { %12126 = vpow2.f32 %v8984_v40  ;;  %v13925_v40 = vld [vmem:[%s20420_s4 + $0x2c0] sm:$0xff] }
 0x17a   :  { %v12121_v47 = vpop.eup %12120 }
 0x17b   :  { %v12123_v30 = vpop.eup %12122  ;;  %v1125_v17 = vsub.f32 %v13157_v32, %v12121_v47  ;;  %v13918_v32 = vld [vmem:[%s20420_s4 + $0x2d0] sm:$0xff] }
 0x17c   :  { %v12125_v5 = vpop.eup %12124  ;;  %v1329_v7 = vadd.f32 1.0, %v12123_v30  ;;  %v13944_v30 = vld [vmem:[%s20423_s5 + $0x1] ss:$0 sm:$0xff] }
 0x17d   :  { %v1126_v25 = vmul.f32 %v12125_v5, %v1125_v17  ;;  %v12127_v59 = vpop.eup %12126  ;;  %v14010_v5 = vld [vmem:[%s20420_s4 + $0x240] sm:$0xff] }
 0x17e   :  { %12128 = vrcp.f32 %v1329_v7 }
 0x17f   :  { %v13901_v16 = vadd.f32 %v12121_v47, %v1126_v25  ;;  %v846_v47 = vadd.f32 %v13839_v50, %v13767_v2  ;;  %v1330_v50 = vadd.f32 1.0, %v12127_v59  ;;  %v14024_v25 = vld [vmem:[%s20420_s4 + $0x228] sm:$0xff] }
 0x180   :  { %v14080_v59 = vld [vmem:[%s20420_s4 + $0x1c8] sm:$0xff] }
 0x181   :  { %20763 = vst [vmem:[#allocation100_spill] sm:$0xff] %v13901_v16  ;;  %1460 = vmatmul.mubr.f32.vlgmr.msra.gmra.mxu0 %v13901_v16  ;;  %10787 = vmatmul.mubr.f32.vlgmr.msra.gmra.mxu1 %v13901_v16 }
 0x182   :  { %1609 = vmatpush1.msra.mxu0 %v13906_v3  ;;  %10790 = vmatpush3.msra.mxu1 %v13332_v45  ;;  %v13939_v45 = vld [vmem:[%s20420_s4 + $0x2a8] sm:$0xff] }
 0x183   :  { %1610 = vmatprep.subr.mxu0 %v13911_v49  ;;  %10791 = vmatprep.subr.mxu1 %v20764_v27 }
 0x184   :  { %1611 = vmatpush1.msra.mxu0 %v13918_v32  ;;  %10792 = vmatpush3.msra.mxu1 %v13344_v33 }
 0x185   :  { %1612 = vmatprep.subr.mxu0 %v13925_v40  ;;  %10793 = vmatprep.subr.mxu1 %v20764_v27 }
 0x186   :  { %v1317_v33 = vpop.f32.mrf.mxu1  ;;  %1613 = vmatpush1.msra.mxu0 %v13932_v11  ;;  %10794 = vmatpush3.msra.mxu1 %v13353_v36  ;;  %v13973_v36 = vld [vmem:[%s20420_s4 + $0x278] sm:$0xff] }
 0x187   :  { %1614 = vmatprep.subr.mxu0 %v13939_v45  ;;  %10795 = vmatprep.subr.mxu1 %v20764_v27  ;;  %v1335_v28 = vadd.f32 %v13944_v30, %v1317_v33  ;;  %v14038_v33 = vld [vmem:[%s20420_s4 + $0x210] sm:$0xff] }
 0x188   :  { %v10753_v9 = vpop.f32.mrf.mxu1  ;;  %1615 = vmatpush1.msra.mxu0 %v13951_v0  ;;  %10796 = vmatpush3.msra.mxu1 %v13362_v15  ;;  %v13987_v15 = vld [vmem:[%s20420_s4 + $0x260] sm:$0xff] }
 0x189   :  { %1616 = vmatprep.subr.mxu0 %v13958_v39  ;;  %10797 = vmatprep.subr.mxu1 %v20764_v27  ;;  %v14066_v9 = vld [vmem:[%s20420_s4 + $0x1e0] sm:$0xff] }
 0x18a   :  { %1617 = vmatpush1.msra.mxu0 %v13965_v19  ;;  %10798 = vmatpush3.msra.mxu1 %v13371_v37  ;;  %v14003_v37 = vld [vmem:[%s20420_s4 + $0x248] sm:$0xff] }
 0x18b   :  { %v12129_v14 = vpop.eup %12128  ;;  %1618 = vmatprep.subr.mxu0 %v13973_v36  ;;  %10799 = vmatprep.subr.mxu1 %v20764_v27 }
 0x18c   :  { %v1336_v17 = vmul.f32 %v12129_v14, %v1335_v28  ;;  %1619 = vmatpush1.msra.mxu0 %v13980_v26  ;;  %10800 = vmatpush3.msra.mxu1 %v13380_v53  ;;  %v14017_v53 = vld [vmem:[%s20420_s4 + $0x230] sm:$0xff]  ;;  %v14052_v28 = vld [vmem:[%s20420_s4 + $0x1f8] sm:$0xff] }
 0x18d   :  { %1620 = vmatprep.subr.mxu0 %v13987_v15  ;;  %10801 = vmatprep.subr.mxu1 %v20764_v27  ;;  %v14094_v14 = vld [vmem:[%s20420_s4 + $0x1b0] sm:$0xff] }
 0x18e   :  { %v1337_v7 = vadd.f32 %v1336_v17, %v846_v47  ;;  %1621 = vmatpush1.msra.mxu0 %v13994_v10  ;;  %10802 = vmatpush3.msra.mxu1 %v13389_v55  ;;  %v14031_v55 = vld [vmem:[%s20420_s4 + $0x218] sm:$0xff] }
 0x18f   :  { %1622 = vmatprep.subr.mxu0 %v14003_v37  ;;  %10803 = vmatprep.subr.mxu1 %v20764_v27  ;;  %v14108_v47 = vld [vmem:[%s20420_s4 + $0x198] sm:$0xff] }
 0x190   :  { %12130 = vtanh.f32 %v1337_v7  ;;  %1623 = vmatpush1.msra.mxu0 %v14010_v5  ;;  %10804 = vmatpush3.msra.mxu1 %v13398_v57  ;;  %v14045_v57 = vld [vmem:[%s20420_s4 + $0x200] sm:$0xff] }
 0x191   :  { %1624 = vmatprep.subr.mxu0 %v14017_v53  ;;  %10805 = vmatprep.subr.mxu1 %v20764_v27  ;;  %12132 = vrcp.f32 %v1330_v50  ;;  %v14122_v50 = vld [vmem:[%s20420_s4 + $0x180] sm:$0xff] }
 0x192   :  { %1625 = vmatpush1.msra.mxu0 %v14024_v25  ;;  %10806 = vmatpush3.msra.mxu1 %v13405_v44  ;;  %v14059_v44 = vld [vmem:[%s20420_s4 + $0x1e8] sm:$0xff] }
 0x193   :  { %1626 = vmatprep.subr.mxu0 %v14031_v55  ;;  %10807 = vmatprep.subr.mxu1 %v20764_v27 }
 0x194   :  { %1627 = vmatpush1.msra.mxu0 %v14038_v33  ;;  %10808 = vmatpush3.msra.mxu1 %v13412_v58  ;;  %v14073_v58 = vld [vmem:[%s20420_s4 + $0x1d0] sm:$0xff] }
 0x195   :  { %1628 = vmatprep.subr.mxu0 %v14045_v57  ;;  %10809 = vmatprep.subr.mxu1 %v20764_v27 }
 0x196   :  { %1629 = vmatpush1.msra.mxu0 %v14052_v28  ;;  %10810 = vmatpush3.msra.mxu1 %v13419_v48  ;;  %v14087_v48 = vld [vmem:[%s20420_s4 + $0x1b8] sm:$0xff] }
 0x197   :  { %1630 = vmatprep.subr.mxu0 %v14059_v44  ;;  %10811 = vmatprep.subr.mxu1 %v20764_v27 }
 0x198   :  { %1631 = vmatpush1.msra.mxu0 %v14066_v9  ;;  %10812 = vmatpush3.msra.mxu1 %v13426_v61  ;;  %v14101_v61 = vld [vmem:[%s20420_s4 + $0x1a0] sm:$0xff] }
 0x199   :  { %1632 = vmatprep.subr.mxu0 %v14073_v58  ;;  %10813 = vmatprep.subr.mxu1 %v20764_v27 }
 0x19a   :  { %1633 = vmatpush1.msra.mxu0 %v14080_v59  ;;  %10814 = vmatpush3.msra.mxu1 %v13433_v38  ;;  %v14115_v38 = vld [vmem:[%s20420_s4 + $0x188] sm:$0xff] }
 0x19b   :  { %1634 = vmatprep.subr.mxu0 %v14087_v48  ;;  %10815 = vmatprep.subr.mxu1 %v20764_v27 }
 0x19c   :  { %1635 = vmatpush1.msra.mxu0 %v14094_v14  ;;  %10816 = vmatpush3.msra.mxu1 %v13440_v41 }
 0x19d   :  { %v12131_v17 = vpop.eup %12130  ;;  %1636 = vmatprep.subr.mxu0 %v14101_v61  ;;  %10817 = vmatprep.subr.mxu1 %v20764_v27 }
 0x19e   :  { %1637 = vmatpush1.msra.mxu0 %v14108_v47  ;;  %10818 = vmatpush3.msra.mxu1 %v13447_v20  ;;  %v1339_v41 = vsub.f32 %v13338_v31, %v12131_v17  ;;  %v12133_v7 = vpop.eup %12132  ;;  %v14145_v31 = vld [vmem:[%s20420_s4 + $0x170] sm:$0xff]  ;;  %v14151_v20 = vld [vmem:[%s20420_s4 + $0x168] sm:$0xff] }
 0x19f   :  { %1638 = vmatprep.subr.mxu0 %v14115_v38  ;;  %10819 = vmatprep.subr.mxu1 %v20764_v27 }
 0x1a0   :  { %1639 = vmatpush1.msra.mxu0 %v14122_v50  ;;  %1672 = vmatprep.mubr.f32.mxu0 %v20764_v27  ;;  %v1340_v2 = vmul.f32 %v12133_v7, %v1339_v41  ;;  %v14175_v41 = vld [vmem:[%s20420_s4 + $0x160] sm:$0xff] }
 0x1a1   :  { %10820 = vmatpush3.msra.mxu1 %v13454_v43  ;;  %10821 = vmatprep.mubr.msk.f32.mxu1 %vm12447_vm0, %v20764_v27  ;;  %v14156_v43 = vld [vmem:[%s20420_s4 + $0x178] sm:$0xff]  ;;  %20768 = vst [vmem:[#allocation104_spill] sm:$0xff] %v14175_v41  ;;  %v14182_v7 = vld [vmem:[%s20420_s4 + $0x140] sm:$0xff] }
 0x1a2   :  { %v14134_v6 = vadd.f32 %v12131_v17, %v1340_v2  ;;  %10824 = vmatprep.subr.mxu1 %v20764_v27  ;;  %1823 = vmatprep.subr.mxu0 %v14145_v31  ;;  %v14163_v2 = vld [vmem:[%s20420_s4 + $0x158] sm:$0xff]  ;;  %v14170_v17 = vld [vmem:[%s20420_s4 + $0x150] sm:$0xff]  ;;  %20769 = vst [vmem:[#allocation105_spill] sm:$0xff] %v14182_v7 }
 0x1a3   :  { %20766 = vst [vmem:[#allocation102_spill] sm:$0xff] %v14163_v2  ;;  %20767 = vst [vmem:[#allocation103_spill] sm:$0xff] %v14170_v17 }
 0x1a4   :  { %20765 = vst [vmem:[#allocation101_spill] sm:$0xff] %v14134_v6  ;;  %1673 = vmatmul.mubr.f32.vlgmr.msra.gmra.mxu0 %v14134_v6  ;;  %10822 = vmatmul.mubr.f32.vlgmr.msra.gmra.mxu1 %v14134_v6 }
 0x1a5   :  { %1887 = vmatprep.mubr.f32.mxu0 %v20764_v27  ;;  %10856 = vmatprep.mubr.msk.f32.mxu1 %vm12447_vm0, %v20764_v27 }
 0x1a6   :  { %1824 = vmatpush1.msra.mxu0 %v14151_v20  ;;  %10825 = vmatpush3.msra.mxu1 %v14156_v43 }
 0x1a7   :  { %1825 = vmatprep.subr.mxu0 %v14163_v2  ;;  %10826 = vmatprep.subr.mxu1 %v20764_v27  ;;  %v14189_v2 = vld [vmem:[%s20420_s4 + $0x138] sm:$0xff] }
 0x1a8   :  { %1826 = vmatpush1.msra.mxu0 %v14170_v17  ;;  %10827 = vmatpush3.msra.mxu1 %v14175_v41  ;;  %v14194_v17 = vld [vmem:[%s20420_s4 + $0x148] sm:$0xff]  ;;  %v14208_v41 = vld [vmem:[%s20420_s4 + $0x130] sm:$0xff] }
 0x1a9   :  { %1827 = vmatprep.subr.mxu0 %v14182_v7  ;;  %10828 = vmatprep.subr.mxu1 %v20764_v27  ;;  %20770 = vst [vmem:[#allocation106_spill] sm:$0xff] %v14194_v17  ;;  %v14201_v7 = vld [vmem:[%s20420_s4 + $0x128] sm:$0xff] }
 0x1aa   :  { %1828 = vmatpush1.msra.mxu0 %v14189_v2  ;;  %10829 = vmatpush3.msra.mxu1 %v14194_v17  ;;  %v14217_v17 = vld [vmem:[%s20420_s4 + $0x118] sm:$0xff] }
 0x1ab   :  { %1829 = vmatprep.subr.mxu0 %v14201_v7  ;;  %10830 = vmatprep.subr.mxu1 %v20764_v27  ;;  %20771 = vst [vmem:[#allocation107_spill] sm:$0xff] %v14217_v17 }
 0x1ac   :  { %1830 = vmatpush1.msra.mxu0 %v13525_v24  ;;  %10831 = vmatpush3.msra.mxu1 %v14208_v41  ;;  %v14226_v24 = vld [vmem:[%s20420_s4 + $0x100] sm:$0xff] }
 0x1ad   :  { %1831 = vmatprep.subr.mxu0 %v13532_v51  ;;  %10832 = vmatprep.subr.mxu1 %v20764_v27  ;;  %20772 = vst [vmem:[#allocation108_spill] sm:$0xff] %v14226_v24  ;;  %v14235_v51 = vld [vmem:[%s20420_s4 + $0xe8] sm:$0xff] }
 0x1ae   :  { %1832 = vmatpush1.msra.mxu0 %v13538_v63  ;;  %10833 = vmatpush3.msra.mxu1 %v14217_v17  ;;  %20773 = vst [vmem:[#allocation109_spill] sm:$0xff] %v14235_v51  ;;  %v14244_v63 = vld [vmem:[%s20420_s4 + $0xd0] sm:$0xff] }
 0x1af   :  { %1833 = vmatprep.subr.mxu0 %v13547_v1  ;;  %10834 = vmatprep.subr.mxu1 %v20764_v27  ;;  %20774 = vst [vmem:[#allocation110_spill] sm:$0xff] %v14244_v63  ;;  %v14253_v1 = vld [vmem:[%s20420_s4 + $0xb8] sm:$0xff] }
 0x1b0   :  { %1834 = vmatpush1.msra.mxu0 %v13555_v52  ;;  %10835 = vmatpush3.msra.mxu1 %v14226_v24  ;;  %20775 = vst [vmem:[#allocation111_spill] sm:$0xff] %v14253_v1  ;;  %v14262_v52 = vld [vmem:[%s20420_s4 + $0xa0] sm:$0xff] }
 0x1b1   :  { %1835 = vmatprep.subr.mxu0 %v13566_v34  ;;  %10836 = vmatprep.subr.mxu1 %v20764_v27  ;;  %20776 = vst [vmem:[#allocation112_spill] sm:$0xff] %v14262_v52  ;;  %v14271_v34 = vld [vmem:[%s20420_s4 + $0x88] sm:$0xff]  ;;  %v20794_v24 = vld [vmem:[#allocation14_spill] sm:$0xff] }
 0x1b2   :  { %1836 = vmatpush1.msra.mxu0 %v13572_v8  ;;  %10837 = vmatpush3.msra.mxu1 %v14235_v51  ;;  %20777 = vst [vmem:[#allocation113_spill] sm:$0xff] %v14271_v34  ;;  %v14280_v8 = vld [vmem:[%s20420_s4 + $0x60] sm:$0xff]  ;;  %v20793_v51 = vld [vmem:[#allocation96_spill] sm:$0xff] }
 0x1b3   :  { %1837 = vmatprep.subr.mxu0 %v13581_v56  ;;  %10838 = vmatprep.subr.mxu1 %v20764_v27  ;;  %20778 = vst [vmem:[#allocation114_spill] sm:$0xff] %v14280_v8  ;;  %v14285_v56 = vld [vmem:[%s20420_s4 + $0x70] sm:$0xff] }
 0x1b4   :  { %1838 = vmatpush1.msra.mxu0 %v13589_v13  ;;  %10839 = vmatpush3.msra.mxu1 %v14244_v63  ;;  %20779 = vst [vmem:[#allocation115_spill] sm:$0xff] %v14285_v56  ;;  %v14303_v13 = vld [vmem:[%s20420_s4 + $0x30] sm:$0xff]  ;;  %v20792_v63 = vld [vmem:[#allocation98_spill] sm:$0xff] }
 0x1b5   :  { %1839 = vmatprep.subr.mxu0 %v13598_v60  ;;  %10840 = vmatprep.subr.mxu1 %v20764_v27  ;;  %20781 = vst [vmem:[#allocation117_spill] sm:$0xff] %v14303_v13  ;;  %v14308_v60 = vld [vmem:[%s20420_s4 + $0x40] sm:$0xff] }
 0x1b6   :  { %1840 = vmatpush1.msra.mxu0 %v13606_v18  ;;  %10841 = vmatpush3.msra.mxu1 %v14253_v1  ;;  %20782 = vst [vmem:[#allocation118_spill] sm:$0xff] %v14308_v60  ;;  %v14315_v18 = vld [vmem:[%s20420_s4 + $0x20] sm:$0xff] }
 0x1b7   :  { %1841 = vmatprep.subr.mxu0 %v13615_v22  ;;  %10842 = vmatprep.subr.mxu1 %v20764_v27  ;;  %20783 = vst [vmem:[#allocation119_spill] sm:$0xff] %v14315_v18  ;;  %v14322_v22 = vld [vmem:[%s20420_s4 + $0x18] sm:$0xff] }
 0x1b8   :  { %1842 = vmatpush1.msra.mxu0 %v13623_v54  ;;  %10843 = vmatpush3.msra.mxu1 %v14262_v52  ;;  %20784 = vst [vmem:[#allocation120_spill] sm:$0xff] %v14322_v22  ;;  %v14334_v54 = vld [vmem:[%s20420_s4 + $0x8] sm:$0xff] }
 0x1b9   :  { %1843 = vmatprep.subr.mxu0 %v13629_v46  ;;  %10844 = vmatprep.subr.mxu1 %v20764_v27  ;;  %20786 = vst [vmem:[#allocation122_spill] sm:$0xff] %v14334_v54  ;;  %v14341_v46 = vld [vmem:[%s20420_s4] sm:$0xff] }
 0x1ba   :  { %1844 = vmatpush1.msra.mxu0 %v13638_v12  ;;  %10845 = vmatpush3.msra.mxu1 %v14271_v34  ;;  %20787 = vst [vmem:[#allocation123_spill] sm:$0xff] %v14341_v46  ;;  %v14346_v12 = vld [vmem:[%s20420_s4 + $0x10] sm:$0xff] }
 0x1bb   :  { %1845 = vmatprep.subr.mxu0 %v13649_v4  ;;  %10846 = vmatprep.subr.mxu1 %v20764_v27  ;;  %v14294_v4 = vld [vmem:[%s20420_s4 + $0x58] sm:$0xff]  ;;  %20788 = vst [vmem:[#allocation124_spill] sm:$0xff] %v14346_v12 }
 0x1bc   :  { %1846 = vmatpush1.msra.mxu0 %v14280_v8  ;;  %10847 = vmatpush3.msra.mxu1 %v14285_v56  ;;  %20780 = vst [vmem:[#allocation116_spill] sm:$0xff] %v14294_v4  ;;  %v20789_v8 = vld [vmem:[#allocation87_spill] sm:$0xff] }
 0x1bd   :  { %1847 = vmatprep.subr.mxu0 %v13658_v62  ;;  %10848 = vmatprep.subr.mxu1 %v20764_v27 }
 0x1be   :  { %1848 = vmatpush1.msra.mxu0 %v13664_v23  ;;  %10849 = vmatpush3.msra.mxu1 %v14294_v4  ;;  %v14327_v23 = vld [vmem:[%s20420_s4 + $0x28] sm:$0xff] }
 0x1bf   :  { %1849 = vmatprep.subr.mxu0 %v13676_v21  ;;  %10850 = vmatprep.subr.mxu1 %v20764_v27  ;;  %20785 = vst [vmem:[#allocation121_spill] sm:$0xff] %v14327_v23 }
 0x1c0   :  { %1850 = vmatpush1.msra.mxu0 %v14303_v13  ;;  %10851 = vmatpush3.msra.mxu1 %v14308_v60 }
 0x1c1   :  { %1851 = vmatprep.subr.mxu0 %v14315_v18  ;;  %10852 = vmatprep.subr.mxu1 %v20764_v27 }
 0x1c2   :  { %1852 = vmatpush1.msra.mxu0 %v14322_v22  ;;  %10853 = vmatpush3.msra.mxu1 %v14327_v23  ;;  %v20790_v23 = vld [vmem:[#allocation6_spill] sm:$0xff] }
 0x1c3   :  { %1853 = vmatprep.subr.mxu0 %v14334_v54  ;;  %10854 = vmatprep.subr.mxu1 %v20764_v27  ;;  %v197_v60 = vadd.f32 %v20790_v23, %v20789_v8 }
 0x1c4   :  { %1854 = vmatpush1.msra.mxu0 %v14341_v46  ;;  %10855 = vmatpush3.msra.mxu1 %v14346_v12  ;;  %v20791_v12 = vld [vmem:[#allocation99_spill] sm:$0xff] }
 0x1c5   :  { %2036 = vmatprep.subr.mxu0 %v13692_v29  ;;  %10859 = vmatprep.subr.mxu1 %v20764_v27 }
 0x241   :  { %v1461_v62 = vpop.f32.mrf.mxu0  ;;  %v1532_v21 = vpop.f32.mrf.mxu1 }
 0x242   :  { %v1536_v54 = vadd.f32 %v1461_v62, %v13511_v35  ;;  %v1550_v52 = vadd.f32 %v20791_v12, %v1532_v21  ;;  %v694_v35 = vadd.f32 %v20793_v51, %v20792_v63 }
 0x243   :  { %v10788_v22 = vpop.f32.mrf.mxu1  ;;  %v1463_v13 = vpop.f32.mrf.mxu0 }
 0x244   :  { %v8985_v18 = vmul.f32 -1.442695, %v1536_v54  ;;  %v1537_v4 = vadd.f32 %v1463_v13, %v197_v60 }
 0x246   :  { %12134 = vpow2.f32 %v8985_v18  ;;  %v8986_v56 = vmul.f32 -1.442695, %v1537_v4 }
 0x248   :  { %12136 = vpow2.f32 %v8986_v56  ;;  %v20795_v56 = vld [vmem:[#allocation97_spill] sm:$0xff] }
 0x249   :  { %v696_v60 = vadd.f32 %v20795_v56, %v13897_v42  ;;  %v14576_v56 = vld [vmem:[%s20420_s4 + $0x108] sm:$0xff] }
 0x253   :  { %v12135_v46 = vpop.eup %12134 }
 0x254   :  { %v1544_v34 = vadd.f32 1.0, %v12135_v46 }
 0x255   :  { %v12137_v29 = vpop.eup %12136 }
 0x256   :  { %12138 = vrcp.f32 %v1544_v34  ;;  %v1545_v23 = vadd.f32 1.0, %v12137_v29 }
 0x263   :  { %v12139_v1 = vpop.eup %12138 }
 0x264   :  { %v1551_v22 = vmul.f32 %v12139_v1, %v1550_v52  ;;  %v1674_v54 = vpop.f32.mrf.mxu0  ;;  %v1745_v18 = vpop.f32.mrf.mxu1 }
 0x265   :  { %v1749_v62 = vadd.f32 %v1674_v54, %v694_v35 }
 0x266   :  { %v1552_v17 = vadd.f32 %v1551_v22, %v20794_v24  ;;  %v10823_v13 = vpop.f32.mrf.mxu1  ;;  %v1676_v34 = vpop.f32.mrf.mxu0  ;;  %v14374_v22 = vld [vmem:[%s20420_s4 + $0x2e0] sm:$0xff] }
 0x267   :  { %v9035_v4 = vmul.f32 -1.442695, %v1749_v62  ;;  %v1750_v46 = vadd.f32 %v1676_v34, %v696_v60  ;;  %v20813_v62 = vld [vmem:[#allocation118_spill] sm:$0xff]  ;;  %v20815_v13 = vld [vmem:[#allocation124_spill] sm:$0xff]  ;;  %v14582_v60 = vld [vmem:[%s20420_s4 + $0xf8] sm:$0xff] }
 0x268   :  { %12140 = vtanh.f32 %v1552_v17  ;;  %v14367_v17 = vld [vmem:[%s20420_s4 + $0x2f8] sm:$0xff]  ;;  %v14570_v34 = vld [vmem:[%s20420_s4 + $0x110] sm:$0xff] }
 0x269   :  { %12142 = vpow2.f32 %v9035_v4  ;;  %v9036_v21 = vmul.f32 -1.442695, %v1750_v46  ;;  %v14564_v4 = vld [vmem:[%s20420_s4 + $0x120] sm:$0xff]  ;;  %v14588_v46 = vld [vmem:[%s20420_s4 + $0xf0] sm:$0xff] }
 0x26a   :  { %12144 = vrcp.f32 %v1545_v23  ;;  %v20814_v23 = vld [vmem:[#allocation121_spill] sm:$0xff] }
 0x26b   :  { %12146 = vpow2.f32 %v9036_v21  ;;  %v14594_v21 = vld [vmem:[%s20420_s4 + $0xe0] sm:$0xff] }
 0x275   :  { %v12141_v12 = vpop.eup %12140 }
 0x276   :  { %v12143_v51 = vpop.eup %12142  ;;  %v1554_v1 = vsub.f32 %v13901_v16, %v12141_v12 }
 0x277   :  { %v12145_v52 = vpop.eup %12144  ;;  %v1757_v35 = vadd.f32 1.0, %v12143_v51  ;;  %v14600_v51 = vld [vmem:[%s20420_s4 + $0xd8] sm:$0xff] }
 0x278   :  { %v1555_v24 = vmul.f32 %v12145_v52, %v1554_v1  ;;  %v14606_v1 = vld [vmem:[%s20420_s4 + $0xc8] sm:$0xff]  ;;  %v14612_v52 = vld [vmem:[%s20420_s4 + $0xc0] sm:$0xff] }
 0x279   :  { %12148 = vrcp.f32 %v1757_v35  ;;  %v14618_v35 = vld [vmem:[%s20420_s4 + $0xb0] sm:$0xff] }
 0x27a   :  { %v14362_v29 = vadd.f32 %v12141_v12, %v1555_v24  ;;  %v14383_v12 = vld [vmem:[%s20420_s4 + $0x2c8] sm:$0xff] }
 0x27b   :  { %v14624_v24 = vld [vmem:[%s20420_s4 + $0xa8] sm:$0xff] }
 0x27c   :  { %20796 = vst [vmem:[#allocation6_spill] sm:$0xff] %v14362_v29  ;;  %1888 = vmatmul.mubr.f32.vlgmr.msra.gmra.mxu0 %v14362_v29  ;;  %10857 = vmatmul.mubr.f32.vlgmr.msra.gmra.mxu1 %v14362_v29 }
 0x27d   :  { %2037 = vmatpush1.msra.mxu0 %v13906_v3  ;;  %10860 = vmatpush3.msra.mxu1 %v14367_v17  ;;  %v14392_v3 = vld [vmem:[%s20420_s4 + $0x2b0] sm:$0xff] }
 0x27e   :  { %2038 = vmatprep.subr.mxu0 %v13911_v49  ;;  %10861 = vmatprep.subr.mxu1 %v20764_v27  ;;  %v14401_v49 = vld [vmem:[%s20420_s4 + $0x298] sm:$0xff] }
 0x27f   :  { %2039 = vmatpush1.msra.mxu0 %v13918_v32  ;;  %10862 = vmatpush3.msra.mxu1 %v14374_v22  ;;  %v14410_v32 = vld [vmem:[%s20420_s4 + $0x280] sm:$0xff] }
 0x280   :  { %2040 = vmatprep.subr.mxu0 %v13925_v40  ;;  %10863 = vmatprep.subr.mxu1 %v20764_v27  ;;  %v12147_v40 = vpop.eup %12146 }
 0x281   :  { %2041 = vmatpush1.msra.mxu0 %v13932_v11  ;;  %10864 = vmatpush3.msra.mxu1 %v14383_v12  ;;  %v1763_v11 = vadd.f32 %v13944_v30, %v1745_v18  ;;  %v1758_v18 = vadd.f32 1.0, %v12147_v40  ;;  %v14630_v40 = vld [vmem:[%s20420_s4 + $0x98] sm:$0xff] }
 0x282   :  { %2042 = vmatprep.subr.mxu0 %v13939_v45  ;;  %10865 = vmatprep.subr.mxu1 %v20764_v27 }
 0x283   :  { %2043 = vmatpush1.msra.mxu0 %v13951_v0  ;;  %10866 = vmatpush3.msra.mxu1 %v14392_v3  ;;  %v14420_v0 = vld [vmem:[%s20420_s4 + $0x268] sm:$0xff] }
 0x284   :  { %2044 = vmatprep.subr.mxu0 %v13958_v39  ;;  %10867 = vmatprep.subr.mxu1 %v20764_v27 }
 0x285   :  { %2045 = vmatpush1.msra.mxu0 %v13965_v19  ;;  %10868 = vmatpush3.msra.mxu1 %v14401_v49  ;;  %v14429_v19 = vld [vmem:[%s20420_s4 + $0x250] sm:$0xff] }
 0x286   :  { %v12149_v45 = vpop.eup %12148  ;;  %2046 = vmatprep.subr.mxu0 %v13973_v36  ;;  %10869 = vmatprep.subr.mxu1 %v20764_v27  ;;  %v20797_v36 = vld [vmem:[#allocation82_spill] sm:$0xff] }
 0x287   :  { %v1764_v39 = vmul.f32 %v12149_v45, %v1763_v11  ;;  %2047 = vmatpush1.msra.mxu0 %v13980_v26  ;;  %10870 = vmatpush3.msra.mxu1 %v14410_v32  ;;  %v14439_v26 = vld [vmem:[%s20420_s4 + $0x238] sm:$0xff]  ;;  %v14636_v11 = vld [vmem:[%s20420_s4 + $0x90] sm:$0xff]  ;;  %v14642_v45 = vld [vmem:[%s20420_s4 + $0x80] sm:$0xff] }
 0x288   :  { %2048 = vmatprep.subr.mxu0 %v13987_v15  ;;  %10871 = vmatprep.subr.mxu1 %v20764_v27  ;;  %v14448_v15 = vld [vmem:[%s20420_s4 + $0x220] sm:$0xff] }
 0x289   :  { %v1765_v54 = vadd.f32 %v1764_v39, %v20797_v36  ;;  %2049 = vmatpush1.msra.mxu0 %v13994_v10  ;;  %10872 = vmatpush3.msra.mxu1 %v14420_v0  ;;  %v14457_v10 = vld [vmem:[%s20420_s4 + $0x208] sm:$0xff]  ;;  %v14648_v39 = vld [vmem:[%s20420_s4 + $0x78] sm:$0xff] }
 0x28a   :  { %2050 = vmatprep.subr.mxu0 %v14003_v37  ;;  %10873 = vmatprep.subr.mxu1 %v20764_v27  ;;  %v14466_v37 = vld [vmem:[%s20420_s4 + $0x1f0] sm:$0xff]  ;;  %v14654_v36 = vld [vmem:[%s20420_s4 + $0x68] sm:$0xff] }
 0x28b   :  { %12150 = vtanh.f32 %v1765_v54  ;;  %2051 = vmatpush1.msra.mxu0 %v14010_v5  ;;  %10874 = vmatpush3.msra.mxu1 %v14429_v19  ;;  %v14475_v5 = vld [vmem:[%s20420_s4 + $0x1d8] sm:$0xff]  ;;  %v20816_v54 = vld [vmem:[#allocation114_spill] sm:$0xff] }
 0x28c   :  { %2052 = vmatprep.subr.mxu0 %v14017_v53  ;;  %10875 = vmatprep.subr.mxu1 %v20764_v27  ;;  %12152 = vrcp.f32 %v1758_v18  ;;  %v14484_v53 = vld [vmem:[%s20420_s4 + $0x1c0] sm:$0xff]  ;;  %v14661_v18 = vld [vmem:[%s20420_s4 + $0x50] sm:$0xff] }
 0x28d   :  { %2053 = vmatpush1.msra.mxu0 %v14024_v25  ;;  %10876 = vmatpush3.msra.mxu1 %v14439_v26  ;;  %v14493_v25 = vld [vmem:[%s20420_s4 + $0x1a8] sm:$0xff] }
 0x28e   :  { %2054 = vmatprep.subr.mxu0 %v14031_v55  ;;  %10877 = vmatprep.subr.mxu1 %v20764_v27 }
 0x28f   :  { %2055 = vmatpush1.msra.mxu0 %v14038_v33  ;;  %10878 = vmatpush3.msra.mxu1 %v14448_v15  ;;  %v14504_v33 = vld [vmem:[%s20420_s4 + $0x190] sm:$0xff] }
 0x290   :  { %2056 = vmatprep.subr.mxu0 %v14045_v57  ;;  %10879 = vmatprep.subr.mxu1 %v20764_v27 }
 0x291   :  { %2057 = vmatpush1.msra.mxu0 %v14052_v28  ;;  %10880 = vmatpush3.msra.mxu1 %v14457_v10 }
 0x292   :  { %2058 = vmatprep.subr.mxu0 %v14059_v44  ;;  %10881 = vmatprep.subr.mxu1 %v20764_v27 }
 0x293   :  { %2059 = vmatpush1.msra.mxu0 %v14066_v9  ;;  %10882 = vmatpush3.msra.mxu1 %v14466_v37 }
 0x294   :  { %2060 = vmatprep.subr.mxu0 %v14073_v58  ;;  %10883 = vmatprep.subr.mxu1 %v20764_v27  ;;  %v20799_v58 = vld [vmem:[#allocation102_spill] sm:$0xff] }
 0x295   :  { %2061 = vmatpush1.msra.mxu0 %v14080_v59  ;;  %10884 = vmatpush3.msra.mxu1 %v14475_v5  ;;  %v20800_v59 = vld [vmem:[#allocation103_spill] sm:$0xff] }
 0x296   :  { %2062 = vmatprep.subr.mxu0 %v14087_v48  ;;  %10885 = vmatprep.subr.mxu1 %v20764_v27  ;;  %v20801_v48 = vld [vmem:[#allocation104_spill] sm:$0xff] }
 0x297   :  { %2063 = vmatpush1.msra.mxu0 %v14094_v14  ;;  %10886 = vmatpush3.msra.mxu1 %v14484_v53  ;;  %v20802_v14 = vld [vmem:[#allocation105_spill] sm:$0xff] }
 0x298   :  { %v12151_v55 = vpop.eup %12150  ;;  %2064 = vmatprep.subr.mxu0 %v14101_v61  ;;  %10887 = vmatprep.subr.mxu1 %v20764_v27  ;;  %v20803_v61 = vld [vmem:[#allocation106_spill] sm:$0xff] }
 0x299   :  { %2065 = vmatpush1.msra.mxu0 %v14108_v47  ;;  %10888 = vmatpush3.msra.mxu1 %v14493_v25  ;;  %v1767_v57 = vsub.f32 %v14134_v6, %v12151_v55  ;;  %v12153_v28 = vpop.eup %12152  ;;  %v20804_v47 = vld [vmem:[#allocation107_spill] sm:$0xff] }
 0x29a   :  { %2066 = vmatprep.subr.mxu0 %v14115_v38  ;;  %10889 = vmatprep.subr.mxu1 %v20764_v27  ;;  %v20805_v38 = vld [vmem:[#allocation108_spill] sm:$0xff] }
 0x29b   :  { %2067 = vmatpush1.msra.mxu0 %v14122_v50  ;;  %2100 = vmatprep.mubr.f32.mxu0 %v20764_v27  ;;  %v1768_v44 = vmul.f32 %v12153_v28, %v1767_v57  ;;  %v20806_v50 = vld [vmem:[#allocation109_spill] sm:$0xff] }
 0x29c   :  { %10890 = vmatpush3.msra.mxu1 %v14504_v33  ;;  %10891 = vmatprep.mubr.msk.f32.mxu1 %vm12447_vm0, %v20764_v27  ;;  %v14673_v57 = vld [vmem:[%s20420_s4 + $0x38] sm:$0xff] }
 0x29d   :  { %v14514_v9 = vadd.f32 %v12151_v55, %v1768_v44  ;;  %2251 = vmatprep.subr.mxu0 %v14145_v31  ;;  %10894 = vmatprep.subr.mxu1 %v20764_v27  ;;  %v20807_v31 = vld [vmem:[#allocation110_spill] sm:$0xff]  ;;  %v14667_v55 = vld [vmem:[%s20420_s4 + $0x48] sm:$0xff]  ;;  %v20817_v28 = vld [vmem:[#allocation117_spill] sm:$0xff] }
 0x29e   :  { %v20818_v44 = vld [vmem:[#allocation119_spill] sm:$0xff] }
 0x29f   :  { %20798 = vst [vmem:[#allocation96_spill] sm:$0xff] %v14514_v9  ;;  %2101 = vmatmul.mubr.f32.vlgmr.msra.gmra.mxu0 %v14514_v9  ;;  %10892 = vmatmul.mubr.f32.vlgmr.msra.gmra.mxu1 %v14514_v9 }
 0x2a0   :  { %2252 = vmatpush1.msra.mxu0 %v14151_v20  ;;  %10895 = vmatpush3.msra.mxu1 %v14156_v43  ;;  %v20808_v20 = vld [vmem:[#allocation111_spill] sm:$0xff]  ;;  %v20809_v43 = vld [vmem:[#allocation112_spill] sm:$0xff] }
 0x2a1   :  { %2253 = vmatprep.subr.mxu0 %v20799_v58  ;;  %10896 = vmatprep.subr.mxu1 %v20764_v27  ;;  %v20819_v58 = vld [vmem:[#allocation120_spill] sm:$0xff] }
 0x2a2   :  { %2254 = vmatpush1.msra.mxu0 %v20800_v59  ;;  %10897 = vmatpush3.msra.mxu1 %v20801_v48  ;;  %v20820_v59 = vld [vmem:[#allocation122_spill] sm:$0xff]  ;;  %v20821_v48 = vld [vmem:[#allocation123_spill] sm:$0xff] }
 0x2a3   :  { %2255 = vmatprep.subr.mxu0 %v20802_v14  ;;  %10898 = vmatprep.subr.mxu1 %v20764_v27  ;;  %v14684_v14 = vld [vmem:[%s20420_s4 + $0x2f0] sm:$0xff] }
 0x2a4   :  { %2256 = vmatpush1.msra.mxu0 %v14189_v2  ;;  %10899 = vmatpush3.msra.mxu1 %v20803_v61  ;;  %v20810_v2 = vld [vmem:[#allocation113_spill] sm:$0xff] }
 0x2a5   :  { %2257 = vmatprep.subr.mxu0 %v14201_v7  ;;  %10900 = vmatprep.subr.mxu1 %v20764_v27  ;;  %v20812_v7 = vld [vmem:[#allocation116_spill] sm:$0xff] }
 0x2a6   :  { %10901 = vmatpush3.msra.mxu1 %v14208_v41  ;;  %2315 = vmatprep.mubr.f32.mxu0 %v20764_v27  ;;  %v20811_v41 = vld [vmem:[#allocation115_spill] sm:$0xff] }
 0x2a7   :  { %10902 = vmatprep.subr.mxu1 %v20764_v27  ;;  %10926 = vmatprep.mubr.msk.f32.mxu1 %vm12447_vm0, %v20764_v27 }
 0x2a8   :  { %10903 = vmatpush3.msra.mxu1 %v20804_v47  ;;  %2258 = vmatpush1.msra.mxu0 %v14564_v4 }
 0x2a9   :  { %10904 = vmatprep.subr.mxu1 %v20764_v27  ;;  %2259 = vmatprep.subr.mxu0 %v14570_v34 }
 0x2aa   :  { %10905 = vmatpush3.msra.mxu1 %v20805_v38  ;;  %2260 = vmatpush1.msra.mxu0 %v14576_v56  ;;  %v20822_v38 = vld [vmem:[#allocation7_spill] sm:$0xff] }
 0x2ab   :  { %10906 = vmatprep.subr.mxu1 %v20764_v27  ;;  %2261 = vmatprep.subr.mxu0 %v14582_v60 }
 0x2ac   :  { %10907 = vmatpush3.msra.mxu1 %v20806_v50  ;;  %2262 = vmatpush1.msra.mxu0 %v14588_v46 }
 0x2ad   :  { %10908 = vmatprep.subr.mxu1 %v20764_v27  ;;  %2263 = vmatprep.subr.mxu0 %v14594_v21 }
 0x2ae   :  { %10909 = vmatpush3.msra.mxu1 %v20807_v31  ;;  %2264 = vmatpush1.msra.mxu0 %v14600_v51 }
 0x2af   :  { %10910 = vmatprep.subr.mxu1 %v20764_v27  ;;  %2265 = vmatprep.subr.mxu0 %v14606_v1 }
 0x2b0   :  { %10911 = vmatpush3.msra.mxu1 %v20808_v20  ;;  %2266 = vmatpush1.msra.mxu0 %v14612_v52 }
 0x2b1   :  { %10912 = vmatprep.subr.mxu1 %v20764_v27  ;;  %2267 = vmatprep.subr.mxu0 %v14618_v35 }
 0x2b2   :  { %10913 = vmatpush3.msra.mxu1 %v20809_v43  ;;  %2268 = vmatpush1.msra.mxu0 %v14624_v24 }
 0x2b3   :  { %10914 = vmatprep.subr.mxu1 %v20764_v27  ;;  %2269 = vmatprep.subr.mxu0 %v14630_v40 }
 0x2b4   :  { %10915 = vmatpush3.msra.mxu1 %v20810_v2  ;;  %2270 = vmatpush1.msra.mxu0 %v14636_v11  ;;  %v20823_v2 = vld [vmem:[#allocation8_spill] sm:$0xff] }
 0x2b5   :  { %10916 = vmatprep.subr.mxu1 %v20764_v27  ;;  %2271 = vmatprep.subr.mxu0 %v14642_v45 }
 0x2b6   :  { %10917 = vmatpush3.msra.mxu1 %v20811_v41  ;;  %2272 = vmatpush1.msra.mxu0 %v14648_v39  ;;  %v203_v41 = vadd.f32 %v20823_v2, %v20789_v8 }
 0x2b7   :  { %10918 = vmatprep.subr.mxu1 %v20764_v27  ;;  %2273 = vmatprep.subr.mxu0 %v14654_v36 }
 0x2b8   :  { %10919 = vmatpush3.msra.mxu1 %v20812_v7  ;;  %2274 = vmatpush1.msra.mxu0 %v20816_v54 }
 0x2b9   :  { %10920 = vmatprep.subr.mxu1 %v20764_v27  ;;  %2275 = vmatprep.subr.mxu0 %v14661_v18 }
 0x2ba   :  { %10921 = vmatpush3.msra.mxu1 %v20813_v62  ;;  %2276 = vmatpush1.msra.mxu0 %v14667_v55 }
 0x2bb   :  { %10922 = vmatprep.subr.mxu1 %v20764_v27  ;;  %2277 = vmatprep.subr.mxu0 %v14673_v57 }
 0x2bc   :  { %10923 = vmatpush3.msra.mxu1 %v20814_v23  ;;  %2278 = vmatpush1.msra.mxu0 %v20817_v28  ;;  %v20824_v28 = vld [vmem:[#allocation99_spill] sm:$0xff] }
 0x2bd   :  { %10924 = vmatprep.subr.mxu1 %v20764_v27  ;;  %2279 = vmatprep.subr.mxu0 %v20818_v44 }
 0x2be   :  { %10925 = vmatpush3.msra.mxu1 %v20815_v13  ;;  %2280 = vmatpush1.msra.mxu0 %v20819_v58 }
 0x2bf   :  { %10929 = vmatprep.subr.mxu1 %v20764_v27  ;;  %2281 = vmatprep.subr.mxu0 %v20820_v59  ;;  %v20825_v59 = vld [vmem:[#allocation94_spill] sm:$0xff] }
 0x2c0   :  { %2282 = vmatpush1.msra.mxu0 %v20821_v48  ;;  %v688_v48 = vadd.f32 %v20825_v59, %v20792_v63 }
 0x2c1   :  { %2464 = vmatprep.subr.mxu0 %v14684_v14 }
 0x33c   :  { %v1889_v61 = vpop.f32.mrf.mxu0  ;;  %v1960_v47 = vpop.f32.mrf.mxu1 }
 0x33d   :  { %v1964_v50 = vadd.f32 %v1889_v61, %v20822_v38  ;;  %v1978_v44 = vadd.f32 %v20824_v28, %v1960_v47  ;;  %v20826_v61 = vld [vmem:[#allocation11_spill] sm:$0xff] }
 0x33e   :  { %v10858_v31 = vpop.f32.mrf.mxu1  ;;  %v1891_v43 = vpop.f32.mrf.mxu0  ;;  %v20827_v38 = vld [vmem:[#allocation19_spill] sm:$0xff] }
 0x33f   :  { %v9037_v20 = vmul.f32 -1.442695, %v1964_v50  ;;  %v1965_v7 = vadd.f32 %v1891_v43, %v203_v41  ;;  %v360_v50 = vadd.f32 %v20827_v38, %v20826_v61  ;;  %v20828_v47 = vld [vmem:[#allocation95_spill] sm:$0xff]  ;;  %v14980_v61 = vld [vmem:[%s20420_s4 + $0x138] sm:$0xff] }
 0x341   :  { %12154 = vpow2.f32 %v9037_v20  ;;  %v9038_v62 = vmul.f32 -1.442695, %v1965_v7 }
 0x343   :  { %12156 = vpow2.f32 %v9038_v62 }
 0x34e   :  { %v12155_v23 = vpop.eup %12154 }
 0x34f   :  { %v1972_v13 = vadd.f32 1.0, %v12155_v23 }
 0x350   :  { %v12157_v54 = vpop.eup %12156 }
 0x351   :  { %12158 = vrcp.f32 %v1972_v13  ;;  %v1973_v41 = vadd.f32 1.0, %v12157_v54  ;;  %v690_v13 = vadd.f32 %v20828_v47, %v13897_v42  ;;  %v14786_v47 = vld [vmem:[%s20420_s4 + $0x258] sm:$0xff] }
 0x35e   :  { %v12159_v58 = vpop.eup %12158 }
 0x35f   :  { %v1979_v31 = vmul.f32 %v12159_v58, %v1978_v44  ;;  %v2102_v20 = vpop.f32.mrf.mxu0  ;;  %v2173_v6 = vpop.f32.mrf.mxu1 }
 0x360   :  { %v2177_v2 = vadd.f32 %v2102_v20, %v688_v48  ;;  %v14729_v20 = vld [vmem:[%s20420_s4 + $0x2b8] sm:$0xff] }
 0x361   :  { %v1980_v43 = vadd.f32 %v1979_v31, %v360_v50  ;;  %v10893_v7 = vpop.f32.mrf.mxu1  ;;  %v2104_v62 = vpop.f32.mrf.mxu0  ;;  %v14703_v50 = vld [vmem:[%s20420_s4 + $0x2e8] sm:$0xff]  ;;  %v14708_v31 = vld [vmem:[%s20420_s4 + $0x2d8] sm:$0xff] }
 0x362   :  { %v9087_v23 = vmul.f32 -1.442695, %v2177_v2  ;;  %v2178_v28 = vadd.f32 %v2104_v62, %v690_v13  ;;  %v14743_v2 = vld [vmem:[%s20420_s4 + $0x2a0] sm:$0xff] }
 0x363   :  { %12160 = vtanh.f32 %v1980_v43  ;;  %v14757_v43 = vld [vmem:[%s20420_s4 + $0x288] sm:$0xff]  ;;  %v20830_v13 = vld [vmem:[#allocation78_spill] sm:$0xff] }
 0x364   :  { %12162 = vpow2.f32 %v9087_v23  ;;  %v9088_v59 = vmul.f32 -1.442695, %v2178_v28  ;;  %v2191_v23 = vadd.f32 %v13944_v30, %v2173_v6  ;;  %v14793_v30 = vld [vmem:[%s20420_s4 + $0x248] sm:$0xff] }
 0x365   :  { %12164 = vrcp.f32 %v1973_v41  ;;  %v14771_v41 = vld [vmem:[%s20420_s4 + $0x270] sm:$0xff] }
 0x366   :  { %12166 = vpow2.f32 %v9088_v59 }
 0x370   :  { %v12161_v16 = vpop.eup %12160 }
 0x371   :  { %v12163_v63 = vpop.eup %12162  ;;  %v1982_v44 = vsub.f32 %v14362_v29, %v12161_v16 }
 0x372   :  { %v12165_v58 = vpop.eup %12164  ;;  %v2185_v38 = vadd.f32 1.0, %v12163_v63  ;;  %v14715_v63 = vld [vmem:[%s20420_s4 + $0x2d0] sm:$0xff] }
 0x373   :  { %v1983_v48 = vmul.f32 %v12165_v58, %v1982_v44  ;;  %v12167_v7 = vpop.eup %12166  ;;  %v14815_v44 = vld [vmem:[%s20420_s4 + $0x228] sm:$0xff]  ;;  %v14829_v58 = vld [vmem:[%s20420_s4 + $0x210] sm:$0xff] }
 0x374   :  { %12168 = vrcp.f32 %v2185_v38  ;;  %v2186_v59 = vadd.f32 1.0, %v12167_v7  ;;  %v14843_v38 = vld [vmem:[%s20420_s4 + $0x1f8] sm:$0xff]  ;;  %v14871_v7 = vld [vmem:[%s20420_s4 + $0x1c8] sm:$0xff] }
 0x375   :  { %v14698_v54 = vadd.f32 %v12161_v16, %v1983_v48  ;;  %v14722_v16 = vld [vmem:[%s20420_s4 + $0x2c0] sm:$0xff] }
 0x376   :  { %v14857_v48 = vld [vmem:[%s20420_s4 + $0x1e0] sm:$0xff] }
 0x377   :  { %20829 = vst [vmem:[#allocation14_spill] sm:$0xff] %v14698_v54  ;;  %2316 = vmatmul.mubr.f32.vlgmr.msra.gmra.mxu0 %v14698_v54  ;;  %10927 = vmatmul.mubr.f32.vlgmr.msra.gmra.mxu1 %v14698_v54 }
 0x378   :  { %2465 = vmatpush1.msra.mxu0 %v14703_v50  ;;  %10930 = vmatpush3.msra.mxu1 %v14367_v17  ;;  %v14736_v17 = vld [vmem:[%s20420_s4 + $0x2a8] sm:$0xff] }
 0x379   :  { %2466 = vmatprep.subr.mxu0 %v14708_v31  ;;  %10931 = vmatprep.subr.mxu1 %v20764_v27 }
 0x37a   :  { %2467 = vmatpush1.msra.mxu0 %v14715_v63  ;;  %10932 = vmatpush3.msra.mxu1 %v14374_v22  ;;  %v14750_v22 = vld [vmem:[%s20420_s4 + $0x290] sm:$0xff] }
 0x37b   :  { %2468 = vmatprep.subr.mxu0 %v14722_v16  ;;  %10933 = vmatprep.subr.mxu1 %v20764_v27 }
 0x37c   :  { %2469 = vmatpush1.msra.mxu0 %v14729_v20  ;;  %10934 = vmatpush3.msra.mxu1 %v14383_v12  ;;  %v14764_v12 = vld [vmem:[%s20420_s4 + $0x278] sm:$0xff] }
 0x37d   :  { %2470 = vmatprep.subr.mxu0 %v14736_v17  ;;  %10935 = vmatprep.subr.mxu1 %v20764_v27 }
 0x37e   :  { %2471 = vmatpush1.msra.mxu0 %v14743_v2  ;;  %10936 = vmatpush3.msra.mxu1 %v14392_v3  ;;  %v14779_v3 = vld [vmem:[%s20420_s4 + $0x260] sm:$0xff] }
 0x37f   :  { %2472 = vmatprep.subr.mxu0 %v14750_v22  ;;  %10937 = vmatprep.subr.mxu1 %v20764_v27 }
 0x380   :  { %2473 = vmatpush1.msra.mxu0 %v14757_v43  ;;  %10938 = vmatpush3.msra.mxu1 %v14401_v49  ;;  %v14800_v49 = vld [vmem:[%s20420_s4 + $0x240] sm:$0xff] }
 0x381   :  { %v12169_v62 = vpop.eup %12168  ;;  %2474 = vmatprep.subr.mxu0 %v14764_v12  ;;  %10939 = vmatprep.subr.mxu1 %v20764_v27 }
 0x382   :  { %v2192_v6 = vmul.f32 %v12169_v62, %v2191_v23  ;;  %2475 = vmatpush1.msra.mxu0 %v14771_v41  ;;  %10940 = vmatpush3.msra.mxu1 %v14410_v32  ;;  %v14808_v32 = vld [vmem:[%s20420_s4 + $0x230] sm:$0xff]  ;;  %v14899_v62 = vld [vmem:[%s20420_s4 + $0x198] sm:$0xff] }
 0x383   :  { %2476 = vmatprep.subr.mxu0 %v14779_v3  ;;  %10941 = vmatprep.subr.mxu1 %v20764_v27  ;;  %v14885_v23 = vld [vmem:[%s20420_s4 + $0x1b0] sm:$0xff] }
 0x384   :  { %v2193_v28 = vadd.f32 %v2192_v6, %v20830_v13  ;;  %2477 = vmatpush1.msra.mxu0 %v14786_v47  ;;  %10942 = vmatpush3.msra.mxu1 %v14420_v0  ;;  %v14822_v0 = vld [vmem:[%s20420_s4 + $0x218] sm:$0xff]  ;;  %v14913_v13 = vld [vmem:[%s20420_s4 + $0x180] sm:$0xff] }
 0x385   :  { %2478 = vmatprep.subr.mxu0 %v14793_v30  ;;  %10943 = vmatprep.subr.mxu1 %v20764_v27 }
 0x386   :  { %12170 = vtanh.f32 %v2193_v28  ;;  %2479 = vmatpush1.msra.mxu0 %v14800_v49  ;;  %10944 = vmatpush3.msra.mxu1 %v14429_v19  ;;  %v14836_v19 = vld [vmem:[%s20420_s4 + $0x200] sm:$0xff] }
 0x387   :  { %2480 = vmatprep.subr.mxu0 %v14808_v32  ;;  %10945 = vmatprep.subr.mxu1 %v20764_v27  ;;  %12172 = vrcp.f32 %v2186_v59 }
 0x388   :  { %2481 = vmatpush1.msra.mxu0 %v14815_v44  ;;  %10946 = vmatpush3.msra.mxu1 %v14439_v26  ;;  %v14850_v26 = vld [vmem:[%s20420_s4 + $0x1e8] sm:$0xff] }
 0x389   :  { %2482 = vmatprep.subr.mxu0 %v14822_v0  ;;  %10947 = vmatprep.subr.mxu1 %v20764_v27 }
 0x38a   :  { %2483 = vmatpush1.msra.mxu0 %v14829_v58  ;;  %10948 = vmatpush3.msra.mxu1 %v14448_v15  ;;  %v14864_v15 = vld [vmem:[%s20420_s4 + $0x1d0] sm:$0xff] }
 0x38b   :  { %2484 = vmatprep.subr.mxu0 %v14836_v19  ;;  %10949 = vmatprep.subr.mxu1 %v20764_v27 }
 0x38c   :  { %2485 = vmatpush1.msra.mxu0 %v14843_v38  ;;  %10950 = vmatpush3.msra.mxu1 %v14457_v10  ;;  %v14878_v10 = vld [vmem:[%s20420_s4 + $0x1b8] sm:$0xff] }
 0x38d   :  { %2486 = vmatprep.subr.mxu0 %v14850_v26  ;;  %10951 = vmatprep.subr.mxu1 %v20764_v27 }
 0x38e   :  { %2487 = vmatpush1.msra.mxu0 %v14857_v48  ;;  %10952 = vmatpush3.msra.mxu1 %v14466_v37  ;;  %v14892_v37 = vld [vmem:[%s20420_s4 + $0x1a0] sm:$0xff] }
 0x38f   :  { %2488 = vmatprep.subr.mxu0 %v14864_v15  ;;  %10953 = vmatprep.subr.mxu1 %v20764_v27 }
 0x390   :  { %2489 = vmatpush1.msra.mxu0 %v14871_v7  ;;  %10954 = vmatpush3.msra.mxu1 %v14475_v5  ;;  %v14906_v5 = vld [vmem:[%s20420_s4 + $0x188] sm:$0xff] }
 0x391   :  { %2490 = vmatprep.subr.mxu0 %v14878_v10  ;;  %10955 = vmatprep.subr.mxu1 %v20764_v27 }
 0x392   :  { %2491 = vmatpush1.msra.mxu0 %v14885_v23  ;;  %10956 = vmatpush3.msra.mxu1 %v14484_v53 }
 0x393   :  { %v12171_v6 = vpop.eup %12170  ;;  %2492 = vmatprep.subr.mxu0 %v14892_v37  ;;  %10957 = vmatprep.subr.mxu1 %v20764_v27 }
 0x394   :  { %2493 = vmatpush1.msra.mxu0 %v14899_v62  ;;  %10958 = vmatpush3.msra.mxu1 %v14493_v25  ;;  %v2195_v53 = vsub.f32 %v14514_v9, %v12171_v6  ;;  %v12173_v28 = vpop.eup %12172  ;;  %v14936_v25 = vld [vmem:[%s20420_s4 + $0x170] sm:$0xff]  ;;  %v14973_v9 = vld [vmem:[%s20420_s4 + $0x140] sm:$0xff] }
 0x395   :  { %2494 = vmatprep.subr.mxu0 %v14906_v5  ;;  %10959 = vmatprep.subr.mxu1 %v20764_v27  ;;  %20834 = vst [vmem:[#allocation103_spill] sm:$0xff] %v14973_v9 }
 0x396   :  { %2495 = vmatpush1.msra.mxu0 %v14913_v13  ;;  %2528 = vmatprep.mubr.f32.mxu0 %v20764_v27  ;;  %v2196_v59 = vmul.f32 %v12173_v28, %v2195_v53  ;;  %v14954_v53 = vld [vmem:[%s20420_s4 + $0x158] sm:$0xff]  ;;  %v14961_v28 = vld [vmem:[%s20420_s4 + $0x150] sm:$0xff] }
 0x397   :  { %10960 = vmatpush3.msra.mxu1 %v14504_v33  ;;  %10961 = vmatprep.mubr.msk.f32.mxu1 %vm12447_vm0, %v20764_v27  ;;  %v14942_v33 = vld [vmem:[%s20420_s4 + $0x168] sm:$0xff]  ;;  %20832 = vst [vmem:[#allocation82_spill] sm:$0xff] %v14961_v28 }
 0x398   :  { %v14925_v29 = vadd.f32 %v12171_v6, %v2196_v59  ;;  %10964 = vmatprep.subr.mxu1 %v20764_v27  ;;  %2679 = vmatprep.subr.mxu0 %v14936_v25  ;;  %v14947_v6 = vld [vmem:[%s20420_s4 + $0x178] sm:$0xff]  ;;  %v14966_v59 = vld [vmem:[%s20420_s4 + $0x160] sm:$0xff] }
 0x399   :  { %20833 = vst [vmem:[#allocation102_spill] sm:$0xff] %v14966_v59 }
 0x39a   :  { %20831 = vst [vmem:[#allocation97_spill] sm:$0xff] %v14925_v29  ;;  %2529 = vmatmul.mubr.f32.vlgmr.msra.gmra.mxu0 %v14925_v29  ;;  %10962 = vmatmul.mubr.f32.vlgmr.msra.gmra.mxu1 %v14925_v29 }
 0x39b   :  { %2743 = vmatprep.mubr.f32.mxu0 %v20764_v27  ;;  %10996 = vmatprep.mubr.msk.f32.mxu1 %vm12447_vm0, %v20764_v27 }
 0x39c   :  { %2680 = vmatpush1.msra.mxu0 %v14942_v33  ;;  %10965 = vmatpush3.msra.mxu1 %v14947_v6 }
 0x39d   :  { %2681 = vmatprep.subr.mxu0 %v14954_v53  ;;  %10966 = vmatprep.subr.mxu1 %v20764_v27 }
 0x39e   :  { %2682 = vmatpush1.msra.mxu0 %v14961_v28  ;;  %10967 = vmatpush3.msra.mxu1 %v14966_v59  ;;  %v14985_v28 = vld [vmem:[%s20420_s4 + $0x148] sm:$0xff]  ;;  %v14999_v59 = vld [vmem:[%s20420_s4 + $0x130] sm:$0xff] }
 0x39f   :  { %2683 = vmatprep.subr.mxu0 %v14973_v9  ;;  %10968 = vmatprep.subr.mxu1 %v20764_v27  ;;  %20835 = vst [vmem:[#allocation104_spill] sm:$0xff] %v14985_v28  ;;  %v14992_v9 = vld [vmem:[%s20420_s4 + $0x128] sm:$0xff] }
 0x3a0   :  { %2684 = vmatpush1.msra.mxu0 %v14980_v61  ;;  %10969 = vmatpush3.msra.mxu1 %v14985_v28  ;;  %v15008_v28 = vld [vmem:[%s20420_s4 + $0x118] sm:$0xff] }
 0x3a1   :  { %2685 = vmatprep.subr.mxu0 %v14992_v9  ;;  %10970 = vmatprep.subr.mxu1 %v20764_v27 }
 0x3a2   :  { %2686 = vmatpush1.msra.mxu0 %v14564_v4  ;;  %10971 = vmatpush3.msra.mxu1 %v14999_v59  ;;  %v15017_v4 = vld [vmem:[%s20420_s4 + $0x100] sm:$0xff] }
 0x3a3   :  { %2687 = vmatprep.subr.mxu0 %v14570_v34  ;;  %10972 = vmatprep.subr.mxu1 %v20764_v27  ;;  %20836 = vst [vmem:[#allocation105_spill] sm:$0xff] %v15017_v4  ;;  %v15026_v34 = vld [vmem:[%s20420_s4 + $0xe8] sm:$0xff] }
 0x3a4   :  { %2688 = vmatpush1.msra.mxu0 %v14576_v56  ;;  %10973 = vmatpush3.msra.mxu1 %v15008_v28  ;;  %20837 = vst [vmem:[#allocation106_spill] sm:$0xff] %v15026_v34  ;;  %v15035_v56 = vld [vmem:[%s20420_s4 + $0xd0] sm:$0xff] }
 0x3a5   :  { %2689 = vmatprep.subr.mxu0 %v14582_v60  ;;  %10974 = vmatprep.subr.mxu1 %v20764_v27  ;;  %20838 = vst [vmem:[#allocation107_spill] sm:$0xff] %v15035_v56  ;;  %v15044_v60 = vld [vmem:[%s20420_s4 + $0xb8] sm:$0xff] }
 0x3a6   :  { %2690 = vmatpush1.msra.mxu0 %v14588_v46  ;;  %10975 = vmatpush3.msra.mxu1 %v15017_v4  ;;  %20839 = vst [vmem:[#allocation108_spill] sm:$0xff] %v15044_v60  ;;  %v15053_v46 = vld [vmem:[%s20420_s4 + $0xa0] sm:$0xff] }
 0x3a7   :  { %2691 = vmatprep.subr.mxu0 %v14594_v21  ;;  %10976 = vmatprep.subr.mxu1 %v20764_v27  ;;  %20840 = vst [vmem:[#allocation109_spill] sm:$0xff] %v15053_v46  ;;  %v15062_v21 = vld [vmem:[%s20420_s4 + $0x88] sm:$0xff] }
 0x3a8   :  { %2692 = vmatpush1.msra.mxu0 %v14600_v51  ;;  %10977 = vmatpush3.msra.mxu1 %v15026_v34  ;;  %20841 = vst [vmem:[#allocation110_spill] sm:$0xff] %v15062_v21  ;;  %v15071_v51 = vld [vmem:[%s20420_s4 + $0x60] sm:$0xff] }
 0x3a9   :  { %2693 = vmatprep.subr.mxu0 %v14606_v1  ;;  %10978 = vmatprep.subr.mxu1 %v20764_v27  ;;  %20842 = vst [vmem:[#allocation111_spill] sm:$0xff] %v15071_v51  ;;  %v15076_v1 = vld [vmem:[%s20420_s4 + $0x70] sm:$0xff] }
 0x3aa   :  { %2694 = vmatpush1.msra.mxu0 %v14612_v52  ;;  %10979 = vmatpush3.msra.mxu1 %v15035_v56  ;;  %20843 = vst [vmem:[#allocation112_spill] sm:$0xff] %v15076_v1  ;;  %v15085_v52 = vld [vmem:[%s20420_s4 + $0x58] sm:$0xff] }
 0x3ab   :  { %2695 = vmatprep.subr.mxu0 %v14618_v35  ;;  %10980 = vmatprep.subr.mxu1 %v20764_v27  ;;  %20844 = vst [vmem:[#allocation113_spill] sm:$0xff] %v15085_v52  ;;  %v15094_v35 = vld [vmem:[%s20420_s4 + $0x30] sm:$0xff]  ;;  %v20859_v56 = vld [vmem:[#allocation93_spill] sm:$0xff] }
 0x3ac   :  { %2696 = vmatpush1.msra.mxu0 %v14624_v24  ;;  %10981 = vmatpush3.msra.mxu1 %v15044_v60  ;;  %20845 = vst [vmem:[#allocation115_spill] sm:$0xff] %v15094_v35  ;;  %v15099_v24 = vld [vmem:[%s20420_s4 + $0x40] sm:$0xff] }
 0x3ad   :  { %2697 = vmatprep.subr.mxu0 %v14630_v40  ;;  %10982 = vmatprep.subr.mxu1 %v20764_v27  ;;  %20846 = vst [vmem:[#allocation116_spill] sm:$0xff] %v15099_v24  ;;  %v15106_v40 = vld [vmem:[%s20420_s4 + $0x20] sm:$0xff] }
 0x3ae   :  { %2698 = vmatpush1.msra.mxu0 %v14636_v11  ;;  %10983 = vmatpush3.msra.mxu1 %v15053_v46  ;;  %20847 = vst [vmem:[#allocation118_spill] sm:$0xff] %v15106_v40  ;;  %v15113_v11 = vld [vmem:[%s20420_s4 + $0x18] sm:$0xff] }
 0x3af   :  { %2699 = vmatprep.subr.mxu0 %v14642_v45  ;;  %10984 = vmatprep.subr.mxu1 %v20764_v27  ;;  %20848 = vst [vmem:[#allocation121_spill] sm:$0xff] %v15113_v11  ;;  %v15118_v45 = vld [vmem:[%s20420_s4 + $0x28] sm:$0xff] }
 0x3b0   :  { %2700 = vmatpush1.msra.mxu0 %v14648_v39  ;;  %10985 = vmatpush3.msra.mxu1 %v15062_v21  ;;  %20849 = vst [vmem:[#allocation124_spill] sm:$0xff] %v15118_v45  ;;  %v15125_v39 = vld [vmem:[%s20420_s4 + $0x8] sm:$0xff] }
 0x3b1   :  { %2701 = vmatprep.subr.mxu0 %v14654_v36  ;;  %10986 = vmatprep.subr.mxu1 %v20764_v27  ;;  %20850 = vst [vmem:[#allocation114_spill] sm:$0xff] %v15125_v39  ;;  %v15132_v36 = vld [vmem:[%s20420_s4] sm:$0xff] }
 0x3b2   :  { %2702 = vmatpush1.msra.mxu0 %v15071_v51  ;;  %10987 = vmatpush3.msra.mxu1 %v15076_v1  ;;  %20851 = vst [vmem:[#allocation117_spill] sm:$0xff] %v15132_v36 }
 0x3b3   :  { %2703 = vmatprep.subr.mxu0 %v14661_v18  ;;  %10988 = vmatprep.subr.mxu1 %v20764_v27  ;;  %v15137_v18 = vld [vmem:[%s20420_s4 + $0x10] sm:$0xff] }
 0x3b4   :  { %2704 = vmatpush1.msra.mxu0 %v14667_v55  ;;  %10989 = vmatpush3.msra.mxu1 %v15085_v52  ;;  %20852 = vst [vmem:[#allocation119_spill] sm:$0xff] %v15137_v18 }
 0x3b5   :  { %2705 = vmatprep.subr.mxu0 %v14673_v57  ;;  %10990 = vmatprep.subr.mxu1 %v20764_v27 }
 0x3b6   :  { %2706 = vmatpush1.msra.mxu0 %v15094_v35  ;;  %10991 = vmatpush3.msra.mxu1 %v15099_v24 }
 0x3b7   :  { %2707 = vmatprep.subr.mxu0 %v15106_v40  ;;  %10992 = vmatprep.subr.mxu1 %v20764_v27 }
 0x3b8   :  { %2708 = vmatpush1.msra.mxu0 %v15113_v11  ;;  %10993 = vmatpush3.msra.mxu1 %v15118_v45  ;;  %v20854_v45 = vld [vmem:[#allocation10_spill] sm:$0xff] }
 0x3b9   :  { %2709 = vmatprep.subr.mxu0 %v15125_v39  ;;  %10994 = vmatprep.subr.mxu1 %v20764_v27  ;;  %v20853_v39 = vld [vmem:[#allocation9_spill] sm:$0xff]  ;;  %v209_v24 = vadd.f32 %v20854_v45, %v20789_v8 }
 0x3ba   :  { %2710 = vmatpush1.msra.mxu0 %v15132_v36  ;;  %10995 = vmatpush3.msra.mxu1 %v15137_v18  ;;  %v15149_v18 = vld [vmem:[%s20423_s5] ss:$0 sm:$0xff] }
 0x3bb   :  { %2892 = vmatprep.subr.mxu0 %v14684_v14  ;;  %10999 = vmatprep.subr.mxu1 %v20764_v27  ;;  %20855 = vst [vmem:[#allocation120_spill] sm:$0xff] %v15149_v18 }
 0x437   :  { %v2317_v55 = vpop.f32.mrf.mxu0  ;;  %v2388_v57 = vpop.f32.mrf.mxu1 }
 0x438   :  { %v2392_v11 = vadd.f32 %v2317_v55, %v20853_v39  ;;  %v20857_v39 = vld [vmem:[#allocation92_spill] sm:$0xff] }
 0x439   :  { %v10928_v40 = vpop.f32.mrf.mxu1  ;;  %v2319_v51 = vpop.f32.mrf.mxu0 }
 0x43a   :  { %v9089_v35 = vmul.f32 -1.442695, %v2392_v11  ;;  %v2393_v52 = vadd.f32 %v2319_v51, %v209_v24  ;;  %v2406_v40 = vadd.f32 %v15149_v18, %v2388_v57  ;;  %v20858_v24 = vld [vmem:[#allocation17_spill] sm:$0xff]  ;;  %v684_v57 = vadd.f32 %v20859_v56, %v13897_v42  ;;  %v15170_v56 = vld [vmem:[%s20420_s4 + $0x2e0] sm:$0xff] }
 0x43c   :  { %12174 = vpow2.f32 %v9089_v35  ;;  %v9090_v1 = vmul.f32 -1.442695, %v2393_v52  ;;  %v20856_v35 = vld [vmem:[#allocation98_spill] sm:$0xff] }
 0x43d   :  { %v682_v55 = vadd.f32 %v20857_v39, %v20856_v35 }
 0x43e   :  { %12176 = vpow2.f32 %v9090_v1 }
 0x449   :  { %v12175_v36 = vpop.eup %12174 }
 0x44a   :  { %v2400_v21 = vadd.f32 1.0, %v12175_v36 }
 0x44b   :  { %v12177_v14 = vpop.eup %12176 }
 0x44c   :  { %12178 = vrcp.f32 %v2400_v21  ;;  %v2401_v1 = vadd.f32 1.0, %v12177_v14 }
 0x459   :  { %v12179_v11 = vpop.eup %12178 }
 0x45a   :  { %v2407_v46 = vmul.f32 %v12179_v11, %v2406_v40  ;;  %v2530_v45 = vpop.f32.mrf.mxu0  ;;  %v2601_v51 = vpop.f32.mrf.mxu1 }
 0x45b   :  { %v2605_v52 = vadd.f32 %v2530_v45, %v682_v55  ;;  %v15371_v45 = vld [vmem:[%s20420_s4 + $0x110] sm:$0xff] }
 0x45c   :  { %v2408_v36 = vadd.f32 %v2407_v46, %v20858_v24  ;;  %v10963_v21 = vpop.f32.mrf.mxu1  ;;  %v2532_v60 = vpop.f32.mrf.mxu0  ;;  %v15389_v24 = vld [vmem:[%s20420_s4 + $0xf0] sm:$0xff] }
 0x45d   :  { %v9139_v8 = vmul.f32 -1.442695, %v2605_v52  ;;  %v2606_v18 = vadd.f32 %v2532_v60, %v684_v57  ;;  %v15383_v52 = vld [vmem:[%s20420_s4 + $0xf8] sm:$0xff]  ;;  %v15407_v21 = vld [vmem:[%s20420_s4 + $0xc8] sm:$0xff]  ;;  %v15413_v57 = vld [vmem:[%s20420_s4 + $0xc0] sm:$0xff] }
 0x45e   :  { %12180 = vtanh.f32 %v2408_v36  ;;  %v15395_v36 = vld [vmem:[%s20420_s4 + $0xe0] sm:$0xff] }
 0x45f   :  { %12182 = vpow2.f32 %v9139_v8  ;;  %v9140_v34 = vmul.f32 -1.442695, %v2606_v18  ;;  %v15163_v8 = vld [vmem:[%s20420_s4 + $0x2f8] sm:$0xff] }
 0x460   :  { %12184 = vrcp.f32 %v2401_v1  ;;  %v15401_v1 = vld [vmem:[%s20420_s4 + $0xd8] sm:$0xff] }
 0x461   :  { %12186 = vpow2.f32 %v9140_v34 }
 0x46b   :  { %v12181_v4 = vpop.eup %12180 }
 0x46c   :  { %v12183_v39 = vpop.eup %12182  ;;  %v2410_v40 = vsub.f32 %v14698_v54, %v12181_v4 }
 0x46d   :  { %v12185_v11 = vpop.eup %12184  ;;  %v2613_v55 = vadd.f32 1.0, %v12183_v39  ;;  %v15419_v39 = vld [vmem:[%s20420_s4 + $0xb0] sm:$0xff] }
 0x46e   :  { %v2411_v46 = vmul.f32 %v12185_v11, %v2410_v40  ;;  %v15425_v40 = vld [vmem:[%s20420_s4 + $0xa8] sm:$0xff]  ;;  %v15431_v11 = vld [vmem:[%s20420_s4 + $0x98] sm:$0xff] }
 0x46f   :  { %12188 = vrcp.f32 %v2613_v55  ;;  %v15437_v55 = vld [vmem:[%s20420_s4 + $0x90] sm:$0xff] }
 0x470   :  { %v15158_v14 = vadd.f32 %v12181_v4, %v2411_v46  ;;  %v15179_v4 = vld [vmem:[%s20420_s4 + $0x2c8] sm:$0xff]  ;;  %v15443_v46 = vld [vmem:[%s20420_s4 + $0x80] sm:$0xff] }
 0x472   :  { %20860 = vst [vmem:[#allocation122_spill] sm:$0xff] %v15158_v14  ;;  %2744 = vmatmul.mubr.f32.vlgmr.msra.gmra.mxu0 %v15158_v14  ;;  %10997 = vmatmul.mubr.f32.vlgmr.msra.gmra.mxu1 %v15158_v14 }
 0x473   :  { %2893 = vmatpush1.msra.mxu0 %v14703_v50  ;;  %11000 = vmatpush3.msra.mxu1 %v15163_v8  ;;  %v15188_v50 = vld [vmem:[%s20420_s4 + $0x2b0] sm:$0xff] }
 0x474   :  { %2894 = vmatprep.subr.mxu0 %v14708_v31  ;;  %11001 = vmatprep.subr.mxu1 %v20764_v27  ;;  %v15197_v31 = vld [vmem:[%s20420_s4 + $0x298] sm:$0xff] }
 0x475   :  { %2895 = vmatpush1.msra.mxu0 %v14715_v63  ;;  %11002 = vmatpush3.msra.mxu1 %v15170_v56  ;;  %v15206_v63 = vld [vmem:[%s20420_s4 + $0x280] sm:$0xff] }
 0x476   :  { %2896 = vmatprep.subr.mxu0 %v14722_v16  ;;  %11003 = vmatprep.subr.mxu1 %v20764_v27  ;;  %v12187_v16 = vpop.eup %12186 }
 0x477   :  { %2897 = vmatpush1.msra.mxu0 %v14729_v20  ;;  %11004 = vmatpush3.msra.mxu1 %v15179_v4  ;;  %v15211_v20 = vld [vmem:[%s20423_s5 + $0x1] ss:$0 sm:$0xff]  ;;  %v2614_v18 = vadd.f32 1.0, %v12187_v16  ;;  %v15449_v16 = vld [vmem:[%s20420_s4 + $0x78] sm:$0xff] }
 0x478   :  { %2898 = vmatprep.subr.mxu0 %v14736_v17  ;;  %11005 = vmatprep.subr.mxu1 %v20764_v27  ;;  %v2619_v17 = vadd.f32 %v15211_v20, %v2601_v51  ;;  %v15377_v51 = vld [vmem:[%s20420_s4 + $0x108] sm:$0xff] }
 0x479   :  { %2899 = vmatpush1.msra.mxu0 %v14743_v2  ;;  %11006 = vmatpush3.msra.mxu1 %v15188_v50 }
 0x47a   :  { %2900 = vmatprep.subr.mxu0 %v14750_v22  ;;  %11007 = vmatprep.subr.mxu1 %v20764_v27  ;;  %v15221_v22 = vld [vmem:[%s20420_s4 + $0x268] sm:$0xff] }
 0x47b   :  { %2901 = vmatpush1.msra.mxu0 %v14757_v43  ;;  %11008 = vmatpush3.msra.mxu1 %v15197_v31  ;;  %v15230_v43 = vld [vmem:[%s20420_s4 + $0x250] sm:$0xff] }
 0x47c   :  { %v12189_v2 = vpop.eup %12188  ;;  %2902 = vmatprep.subr.mxu0 %v14764_v12  ;;  %11009 = vmatprep.subr.mxu1 %v20764_v27  ;;  %v20861_v12 = vld [vmem:[#allocation79_spill] sm:$0xff] }
 0x47d   :  { %v2620_v34 = vmul.f32 %v12189_v2, %v2619_v17  ;;  %2903 = vmatpush1.msra.mxu0 %v14771_v41  ;;  %11010 = vmatpush3.msra.mxu1 %v15206_v63  ;;  %v15240_v41 = vld [vmem:[%s20420_s4 + $0x238] sm:$0xff]  ;;  %v15455_v17 = vld [vmem:[%s20420_s4 + $0x68] sm:$0xff] }
 0x47e   :  { %2904 = vmatprep.subr.mxu0 %v14779_v3  ;;  %11011 = vmatprep.subr.mxu1 %v20764_v27  ;;  %v15249_v3 = vld [vmem:[%s20420_s4 + $0x220] sm:$0xff]  ;;  %v20878_v2 = vld [vmem:[#allocation111_spill] sm:$0xff] }
 0x47f   :  { %v2621_v60 = vadd.f32 %v2620_v34, %v20861_v12  ;;  %2905 = vmatpush1.msra.mxu0 %v14786_v47  ;;  %11012 = vmatpush3.msra.mxu1 %v15221_v22  ;;  %v15258_v47 = vld [vmem:[%s20420_s4 + $0x208] sm:$0xff]  ;;  %v15462_v34 = vld [vmem:[%s20420_s4 + $0x50] sm:$0xff] }
 0x480   :  { %2906 = vmatprep.subr.mxu0 %v14793_v30  ;;  %11013 = vmatprep.subr.mxu1 %v20764_v27  ;;  %v15267_v30 = vld [vmem:[%s20420_s4 + $0x1f0] sm:$0xff]  ;;  %v15468_v12 = vld [vmem:[%s20420_s4 + $0x48] sm:$0xff] }
 0x481   :  { %12190 = vtanh.f32 %v2621_v60  ;;  %2907 = vmatpush1.msra.mxu0 %v14800_v49  ;;  %11014 = vmatpush3.msra.mxu1 %v15230_v43  ;;  %v15276_v49 = vld [vmem:[%s20420_s4 + $0x1d8] sm:$0xff] }
 0x482   :  { %2908 = vmatprep.subr.mxu0 %v14808_v32  ;;  %11015 = vmatprep.subr.mxu1 %v20764_v27  ;;  %12192 = vrcp.f32 %v2614_v18  ;;  %v15285_v32 = vld [vmem:[%s20420_s4 + $0x1c0] sm:$0xff]  ;;  %v15474_v60 = vld [vmem:[%s20420_s4 + $0x38] sm:$0xff]  ;;  %v20879_v18 = vld [vmem:[#allocation115_spill] sm:$0xff] }
 0x483   :  { %2909 = vmatpush1.msra.mxu0 %v14815_v44  ;;  %11016 = vmatpush3.msra.mxu1 %v15240_v41  ;;  %v15294_v44 = vld [vmem:[%s20420_s4 + $0x1a8] sm:$0xff] }
 0x484   :  { %2910 = vmatprep.subr.mxu0 %v14822_v0  ;;  %11017 = vmatprep.subr.mxu1 %v20764_v27 }
 0x485   :  { %2911 = vmatpush1.msra.mxu0 %v14829_v58  ;;  %11018 = vmatpush3.msra.mxu1 %v15249_v3  ;;  %v15305_v58 = vld [vmem:[%s20420_s4 + $0x190] sm:$0xff] }
 0x486   :  { %2912 = vmatprep.subr.mxu0 %v14836_v19  ;;  %11019 = vmatprep.subr.mxu1 %v20764_v27 }
 0x487   :  { %2913 = vmatpush1.msra.mxu0 %v14843_v38  ;;  %11020 = vmatpush3.msra.mxu1 %v15258_v47 }
 0x488   :  { %2914 = vmatprep.subr.mxu0 %v14850_v26  ;;  %11021 = vmatprep.subr.mxu1 %v20764_v27 }
 0x489   :  { %2915 = vmatpush1.msra.mxu0 %v14857_v48  ;;  %11022 = vmatpush3.msra.mxu1 %v15267_v30 }
 0x48a   :  { %2916 = vmatprep.subr.mxu0 %v14864_v15  ;;  %11023 = vmatprep.subr.mxu1 %v20764_v27  ;;  %v20863_v15 = vld [vmem:[#allocation82_spill] sm:$0xff] }
 0x48b   :  { %2917 = vmatpush1.msra.mxu0 %v14871_v7  ;;  %11024 = vmatpush3.msra.mxu1 %v15276_v49  ;;  %v20864_v7 = vld [vmem:[#allocation102_spill] sm:$0xff] }
 0x48c   :  { %2918 = vmatprep.subr.mxu0 %v14878_v10  ;;  %11025 = vmatprep.subr.mxu1 %v20764_v27  ;;  %v20865_v10 = vld [vmem:[#allocation103_spill] sm:$0xff] }
 0x48d   :  { %2919 = vmatpush1.msra.mxu0 %v14885_v23  ;;  %11026 = vmatpush3.msra.mxu1 %v15285_v32  ;;  %v20866_v23 = vld [vmem:[#allocation104_spill] sm:$0xff] }
 0x48e   :  { %v12191_v0 = vpop.eup %12190  ;;  %2920 = vmatprep.subr.mxu0 %v14892_v37  ;;  %11027 = vmatprep.subr.mxu1 %v20764_v27  ;;  %v20869_v37 = vld [vmem:[#allocation107_spill] sm:$0xff] }
 0x48f   :  { %2921 = vmatpush1.msra.mxu0 %v14899_v62  ;;  %11028 = vmatpush3.msra.mxu1 %v15294_v44  ;;  %v2623_v19 = vsub.f32 %v14925_v29, %v12191_v0  ;;  %v12193_v38 = vpop.eup %12192  ;;  %v20870_v62 = vld [vmem:[#allocation108_spill] sm:$0xff] }
 0x490   :  { %2922 = vmatprep.subr.mxu0 %v14906_v5  ;;  %11029 = vmatprep.subr.mxu1 %v20764_v27  ;;  %v20871_v5 = vld [vmem:[#allocation109_spill] sm:$0xff] }
 0x491   :  { %2923 = vmatpush1.msra.mxu0 %v14913_v13  ;;  %2956 = vmatprep.mubr.f32.mxu0 %v20764_v27  ;;  %v2624_v26 = vmul.f32 %v12193_v38, %v2623_v19  ;;  %v20872_v13 = vld [vmem:[#allocation110_spill] sm:$0xff]  ;;  %v20881_v19 = vld [vmem:[#allocation121_spill] sm:$0xff] }
 0x492   :  { %11030 = vmatpush3.msra.mxu1 %v15305_v58  ;;  %11031 = vmatprep.mubr.msk.f32.mxu1 %vm12447_vm0, %v20764_v27  ;;  %v20882_v38 = vld [vmem:[#allocation114_spill] sm:$0xff] }
 0x493   :  { %v15315_v48 = vadd.f32 %v12191_v0, %v2624_v26  ;;  %3107 = vmatprep.subr.mxu0 %v14936_v25  ;;  %11034 = vmatprep.subr.mxu1 %v20764_v27  ;;  %v20873_v25 = vld [vmem:[#allocation112_spill] sm:$0xff]  ;;  %v20880_v0 = vld [vmem:[#allocation118_spill] sm:$0xff]  ;;  %v20883_v26 = vld [vmem:[#allocation117_spill] sm:$0xff] }
 0x495   :  { %20862 = vst [vmem:[#allocation123_spill] sm:$0xff] %v15315_v48  ;;  %2957 = vmatmul.mubr.f32.vlgmr.msra.gmra.mxu0 %v15315_v48  ;;  %11032 = vmatmul.mubr.f32.vlgmr.msra.gmra.mxu1 %v15315_v48 }
 0x496   :  { %3108 = vmatpush1.msra.mxu0 %v14942_v33  ;;  %11035 = vmatpush3.msra.mxu1 %v14947_v6  ;;  %v20874_v33 = vld [vmem:[#allocation113_spill] sm:$0xff]  ;;  %v20875_v6 = vld [vmem:[#allocation116_spill] sm:$0xff] }
 0x497   :  { %3109 = vmatprep.subr.mxu0 %v14954_v53  ;;  %11036 = vmatprep.subr.mxu1 %v20764_v27  ;;  %v20876_v53 = vld [vmem:[#allocation124_spill] sm:$0xff] }
 0x498   :  { %3110 = vmatpush1.msra.mxu0 %v20863_v15  ;;  %11037 = vmatpush3.msra.mxu1 %v20864_v7  ;;  %v15485_v15 = vld [vmem:[%s20420_s4 + $0x2f0] sm:$0xff] }
 0x499   :  { %3111 = vmatprep.subr.mxu0 %v20865_v10  ;;  %11038 = vmatprep.subr.mxu1 %v20764_v27 }
 0x49a   :  { %3112 = vmatpush1.msra.mxu0 %v14980_v61  ;;  %11039 = vmatpush3.msra.mxu1 %v20866_v23  ;;  %v20867_v61 = vld [vmem:[#allocation105_spill] sm:$0xff]  ;;  %v20884_v23 = vld [vmem:[#allocation12_spill] sm:$0xff] }
 0x49b   :  { %3113 = vmatprep.subr.mxu0 %v14992_v9  ;;  %11040 = vmatprep.subr.mxu1 %v20764_v27  ;;  %v20868_v9 = vld [vmem:[#allocation106_spill] sm:$0xff] }
 0x49c   :  { %11041 = vmatpush3.msra.mxu1 %v14999_v59  ;;  %3171 = vmatprep.mubr.f32.mxu0 %v20764_v27  ;;  %v15365_v59 = vld [vmem:[%s20420_s4 + $0x120] sm:$0xff] }
 0x49d   :  { %11042 = vmatprep.subr.mxu1 %v20764_v27  ;;  %11066 = vmatprep.mubr.msk.f32.mxu1 %vm12447_vm0, %v20764_v27 }
 0x49e   :  { %11043 = vmatpush3.msra.mxu1 %v15008_v28  ;;  %v20877_v28 = vld [vmem:[#allocation119_spill] sm:$0xff]  ;;  %3114 = vmatpush1.msra.mxu0 %v15365_v59 }
 0x49f   :  { %11044 = vmatprep.subr.mxu1 %v20764_v27  ;;  %3115 = vmatprep.subr.mxu0 %v15371_v45 }
 0x4a0   :  { %11045 = vmatpush3.msra.mxu1 %v20867_v61  ;;  %3116 = vmatpush1.msra.mxu0 %v15377_v51 }
 0x4a1   :  { %11046 = vmatprep.subr.mxu1 %v20764_v27  ;;  %3117 = vmatprep.subr.mxu0 %v15383_v52 }
 0x4a2   :  { %11047 = vmatpush3.msra.mxu1 %v20868_v9  ;;  %3118 = vmatpush1.msra.mxu0 %v15389_v24 }
 0x4a3   :  { %11048 = vmatprep.subr.mxu1 %v20764_v27  ;;  %3119 = vmatprep.subr.mxu0 %v15395_v36 }
 0x4a4   :  { %11049 = vmatpush3.msra.mxu1 %v20869_v37  ;;  %3120 = vmatpush1.msra.mxu0 %v15401_v1 }
 0x4a5   :  { %11050 = vmatprep.subr.mxu1 %v20764_v27  ;;  %3121 = vmatprep.subr.mxu0 %v15407_v21 }
 0x4a6   :  { %11051 = vmatpush3.msra.mxu1 %v20870_v62  ;;  %3122 = vmatpush1.msra.mxu0 %v15413_v57 }
 0x4a7   :  { %11052 = vmatprep.subr.mxu1 %v20764_v27  ;;  %3123 = vmatprep.subr.mxu0 %v15419_v39 }
 0x4a8   :  { %11053 = vmatpush3.msra.mxu1 %v20871_v5  ;;  %3124 = vmatpush1.msra.mxu0 %v15425_v40  ;;  %v20885_v5 = vld [vmem:[#allocation87_spill] sm:$0xff] }
 0x4a9   :  { %11054 = vmatprep.subr.mxu1 %v20764_v27  ;;  %3125 = vmatprep.subr.mxu0 %v15431_v11 }
 0x4aa   :  { %11055 = vmatpush3.msra.mxu1 %v20872_v13  ;;  %3126 = vmatpush1.msra.mxu0 %v15437_v55  ;;  %v20886_v13 = vld [vmem:[#allocation13_spill] sm:$0xff] }
 0x4ab   :  { %11056 = vmatprep.subr.mxu1 %v20764_v27  ;;  %3127 = vmatprep.subr.mxu0 %v15443_v46 }
 0x4ac   :  { %11057 = vmatpush3.msra.mxu1 %v20873_v25  ;;  %3128 = vmatpush1.msra.mxu0 %v15449_v16  ;;  %v215_v25 = vadd.f32 %v20886_v13, %v20885_v5 }
 0x4ad   :  { %11058 = vmatprep.subr.mxu1 %v20764_v27  ;;  %3129 = vmatprep.subr.mxu0 %v15455_v17 }
 0x4ae   :  { %11059 = vmatpush3.msra.mxu1 %v20874_v33  ;;  %3130 = vmatpush1.msra.mxu0 %v20878_v2 }
 0x4af   :  { %11060 = vmatprep.subr.mxu1 %v20764_v27  ;;  %3131 = vmatprep.subr.mxu0 %v15462_v34 }
 0x4b0   :  { %11061 = vmatpush3.msra.mxu1 %v20875_v6  ;;  %3132 = vmatpush1.msra.mxu0 %v15468_v12 }
 0x4b1   :  { %11062 = vmatprep.subr.mxu1 %v20764_v27  ;;  %3133 = vmatprep.subr.mxu0 %v15474_v60 }
 0x4b2   :  { %11063 = vmatpush3.msra.mxu1 %v20876_v53  ;;  %3134 = vmatpush1.msra.mxu0 %v20879_v18  ;;  %v20887_v18 = vld [vmem:[#allocation120_spill] sm:$0xff] }
 0x4b3   :  { %11064 = vmatprep.subr.mxu1 %v20764_v27  ;;  %3135 = vmatprep.subr.mxu0 %v20880_v0 }
 0x4b4   :  { %11065 = vmatpush3.msra.mxu1 %v20877_v28  ;;  %3136 = vmatpush1.msra.mxu0 %v20881_v19 }
 0x4b5   :  { %11069 = vmatprep.subr.mxu1 %v20764_v27  ;;  %3137 = vmatprep.subr.mxu0 %v20882_v38  ;;  %v20888_v38 = vld [vmem:[#allocation90_spill] sm:$0xff] }
 0x4b6   :  { %3138 = vmatpush1.msra.mxu0 %v20883_v26  ;;  %v676_v26 = vadd.f32 %v20888_v38, %v20856_v35 }
 0x4b7   :  { %3320 = vmatprep.subr.mxu0 %v15485_v15 }
 0x532   :  { %v2745_v7 = vpop.f32.mrf.mxu0  ;;  %v2816_v10 = vpop.f32.mrf.mxu1 }
 0x533   :  { %v2820_v61 = vadd.f32 %v2745_v7, %v20884_v23  ;;  %v2834_v0 = vadd.f32 %v20887_v18, %v2816_v10  ;;  %v20889_v7 = vld [vmem:[#allocation11_spill] sm:$0xff]  ;;  %v20890_v23 = vld [vmem:[#allocation24_spill] sm:$0xff] }
 0x534   :  { %v10998_v9 = vpop.f32.mrf.mxu1  ;;  %v2747_v62 = vpop.f32.mrf.mxu0  ;;  %v20891_v10 = vld [vmem:[#allocation91_spill] sm:$0xff] }
 0x535   :  { %v9141_v37 = vmul.f32 -1.442695, %v2820_v61  ;;  %v2821_v33 = vadd.f32 %v2747_v62, %v215_v25  ;;  %v370_v61 = vadd.f32 %v20890_v23, %v20889_v7 }
 0x537   :  { %12194 = vpow2.f32 %v9141_v37  ;;  %v9142_v6 = vmul.f32 -1.442695, %v2821_v33 }
 0x539   :  { %12196 = vpow2.f32 %v9142_v6 }
 0x544   :  { %v12195_v53 = vpop.eup %12194 }
 0x545   :  { %v2828_v28 = vadd.f32 1.0, %v12195_v53 }
 0x546   :  { %v12197_v2 = vpop.eup %12196 }
 0x547   :  { %12198 = vrcp.f32 %v2828_v28  ;;  %v2829_v25 = vadd.f32 1.0, %v12197_v2  ;;  %v678_v28 = vadd.f32 %v20891_v10, %v13897_v42  ;;  %v15601_v10 = vld [vmem:[%s20420_s4 + $0x240] sm:$0xff] }
 0x554   :  { %v12199_v19 = vpop.eup %12198 }
 0x555   :  { %v2835_v9 = vmul.f32 %v12199_v19, %v2834_v0  ;;  %v2958_v37 = vpop.f32.mrf.mxu0  ;;  %v3029_v29 = vpop.f32.mrf.mxu1 }
 0x556   :  { %v3033_v13 = vadd.f32 %v2958_v37, %v676_v26  ;;  %v15544_v37 = vld [vmem:[%s20420_s4 + $0x2a0] sm:$0xff] }
 0x557   :  { %v2836_v62 = vadd.f32 %v2835_v9, %v370_v61  ;;  %v11033_v33 = vpop.f32.mrf.mxu1  ;;  %v2960_v6 = vpop.f32.mrf.mxu0  ;;  %v15504_v61 = vld [vmem:[%s20420_s4 + $0x2e8] sm:$0xff]  ;;  %v15530_v9 = vld [vmem:[%s20420_s4 + $0x2b8] sm:$0xff] }
 0x558   :  { %v9191_v53 = vmul.f32 -1.442695, %v3033_v13  ;;  %v3034_v54 = vadd.f32 %v2960_v6, %v678_v28  ;;  %v15558_v13 = vld [vmem:[%s20420_s4 + $0x288] sm:$0xff]  ;;  %v3047_v33 = vadd.f32 %v15211_v20, %v3029_v29  ;;  %v15587_v6 = vld [vmem:[%s20420_s4 + $0x258] sm:$0xff]  ;;  %v20893_v28 = vld [vmem:[#allocation74_spill] sm:$0xff] }
 0x559   :  { %12200 = vtanh.f32 %v2836_v62  ;;  %v15572_v62 = vld [vmem:[%s20420_s4 + $0x270] sm:$0xff] }
 0x55a   :  { %12202 = vpow2.f32 %v9191_v53  ;;  %v9192_v38 = vmul.f32 -1.442695, %v3034_v54  ;;  %v15509_v54 = vld [vmem:[%s20420_s4 + $0x2d8] sm:$0xff] }
 0x55b   :  { %12204 = vrcp.f32 %v2829_v25 }
 0x55c   :  { %12206 = vpow2.f32 %v9192_v38 }
 0x566   :  { %v12201_v35 = vpop.eup %12200 }
 0x567   :  { %v12203_v18 = vpop.eup %12202  ;;  %v2838_v0 = vsub.f32 %v15158_v14, %v12201_v35 }
 0x568   :  { %v12205_v19 = vpop.eup %12204  ;;  %v3041_v23 = vadd.f32 1.0, %v12203_v18  ;;  %v15516_v18 = vld [vmem:[%s20420_s4 + $0x2d0] sm:$0xff] }
 0x569   :  { %v2839_v26 = vmul.f32 %v12205_v19, %v2838_v0  ;;  %v12207_v25 = vpop.eup %12206  ;;  %v15616_v19 = vld [vmem:[%s20420_s4 + $0x228] sm:$0xff] }
 0x56a   :  { %12208 = vrcp.f32 %v3041_v23  ;;  %v3042_v0 = vadd.f32 1.0, %v12207_v25  ;;  %v15630_v23 = vld [vmem:[%s20420_s4 + $0x210] sm:$0xff]  ;;  %v15658_v25 = vld [vmem:[%s20420_s4 + $0x1e0] sm:$0xff] }
 0x56b   :  { %v15499_v2 = vadd.f32 %v12201_v35, %v2839_v26  ;;  %v15523_v35 = vld [vmem:[%s20420_s4 + $0x2c0] sm:$0xff]  ;;  %v15644_v26 = vld [vmem:[%s20420_s4 + $0x1f8] sm:$0xff] }
 0x56d   :  { %20892 = vst [vmem:[#allocation7_spill] sm:$0xff] %v15499_v2  ;;  %3172 = vmatmul.mubr.f32.vlgmr.msra.gmra.mxu0 %v15499_v2  ;;  %11067 = vmatmul.mubr.f32.vlgmr.msra.gmra.mxu1 %v15499_v2 }
 0x56e   :  { %3321 = vmatpush1.msra.mxu0 %v15504_v61  ;;  %11070 = vmatpush3.msra.mxu1 %v15163_v8  ;;  %v15537_v8 = vld [vmem:[%s20420_s4 + $0x2a8] sm:$0xff] }
 0x56f   :  { %3322 = vmatprep.subr.mxu0 %v15509_v54  ;;  %11071 = vmatprep.subr.mxu1 %v20764_v27 }
 0x570   :  { %3323 = vmatpush1.msra.mxu0 %v15516_v18  ;;  %11072 = vmatpush3.msra.mxu1 %v15170_v56  ;;  %v15551_v56 = vld [vmem:[%s20420_s4 + $0x290] sm:$0xff] }
 0x571   :  { %3324 = vmatprep.subr.mxu0 %v15523_v35  ;;  %11073 = vmatprep.subr.mxu1 %v20764_v27 }
 0x572   :  { %3325 = vmatpush1.msra.mxu0 %v15530_v9  ;;  %11074 = vmatpush3.msra.mxu1 %v15179_v4  ;;  %v15565_v4 = vld [vmem:[%s20420_s4 + $0x278] sm:$0xff] }
 0x573   :  { %3326 = vmatprep.subr.mxu0 %v15537_v8  ;;  %11075 = vmatprep.subr.mxu1 %v20764_v27 }
 0x574   :  { %3327 = vmatpush1.msra.mxu0 %v15544_v37  ;;  %11076 = vmatpush3.msra.mxu1 %v15188_v50  ;;  %v15580_v50 = vld [vmem:[%s20420_s4 + $0x260] sm:$0xff] }
 0x575   :  { %3328 = vmatprep.subr.mxu0 %v15551_v56  ;;  %11077 = vmatprep.subr.mxu1 %v20764_v27 }
 0x576   :  { %3329 = vmatpush1.msra.mxu0 %v15558_v13  ;;  %11078 = vmatpush3.msra.mxu1 %v15197_v31  ;;  %v15594_v31 = vld [vmem:[%s20420_s4 + $0x248] sm:$0xff] }
 0x577   :  { %v12209_v53 = vpop.eup %12208  ;;  %3330 = vmatprep.subr.mxu0 %v15565_v4  ;;  %11079 = vmatprep.subr.mxu1 %v20764_v27 }
 0x578   :  { %v3048_v29 = vmul.f32 %v12209_v53, %v3047_v33  ;;  %3331 = vmatpush1.msra.mxu0 %v15572_v62  ;;  %11080 = vmatpush3.msra.mxu1 %v15206_v63  ;;  %v15609_v63 = vld [vmem:[%s20420_s4 + $0x230] sm:$0xff]  ;;  %v15672_v33 = vld [vmem:[%s20420_s4 + $0x1c8] sm:$0xff] }
 0x579   :  { %3332 = vmatprep.subr.mxu0 %v15580_v50  ;;  %11081 = vmatprep.subr.mxu1 %v20764_v27  ;;  %v15686_v53 = vld [vmem:[%s20420_s4 + $0x1b0] sm:$0xff] }
 0x57a   :  { %v3049_v38 = vadd.f32 %v3048_v29, %v20893_v28  ;;  %3333 = vmatpush1.msra.mxu0 %v15587_v6  ;;  %11082 = vmatpush3.msra.mxu1 %v15221_v22  ;;  %v15623_v22 = vld [vmem:[%s20420_s4 + $0x218] sm:$0xff] }
 0x57b   :  { %3334 = vmatprep.subr.mxu0 %v15594_v31  ;;  %11083 = vmatprep.subr.mxu1 %v20764_v27  ;;  %v15700_v29 = vld [vmem:[%s20420_s4 + $0x198] sm:$0xff] }
 0x57c   :  { %12210 = vtanh.f32 %v3049_v38  ;;  %3335 = vmatpush1.msra.mxu0 %v15601_v10  ;;  %11084 = vmatpush3.msra.mxu1 %v15230_v43  ;;  %v15637_v43 = vld [vmem:[%s20420_s4 + $0x200] sm:$0xff] }
 0x57d   :  { %3336 = vmatprep.subr.mxu0 %v15609_v63  ;;  %11085 = vmatprep.subr.mxu1 %v20764_v27  ;;  %12212 = vrcp.f32 %v3042_v0  ;;  %v15714_v38 = vld [vmem:[%s20420_s4 + $0x180] sm:$0xff] }
 0x57e   :  { %3337 = vmatpush1.msra.mxu0 %v15616_v19  ;;  %11086 = vmatpush3.msra.mxu1 %v15240_v41  ;;  %v15651_v41 = vld [vmem:[%s20420_s4 + $0x1e8] sm:$0xff] }
 0x57f   :  { %3338 = vmatprep.subr.mxu0 %v15623_v22  ;;  %11087 = vmatprep.subr.mxu1 %v20764_v27 }
 0x580   :  { %3339 = vmatpush1.msra.mxu0 %v15630_v23  ;;  %11088 = vmatpush3.msra.mxu1 %v15249_v3  ;;  %v15665_v3 = vld [vmem:[%s20420_s4 + $0x1d0] sm:$0xff] }
 0x581   :  { %3340 = vmatprep.subr.mxu0 %v15637_v43  ;;  %11089 = vmatprep.subr.mxu1 %v20764_v27 }
 0x582   :  { %3341 = vmatpush1.msra.mxu0 %v15644_v26  ;;  %11090 = vmatpush3.msra.mxu1 %v15258_v47  ;;  %v15679_v47 = vld [vmem:[%s20420_s4 + $0x1b8] sm:$0xff] }
 0x583   :  { %3342 = vmatprep.subr.mxu0 %v15651_v41  ;;  %11091 = vmatprep.subr.mxu1 %v20764_v27 }
 0x584   :  { %3343 = vmatpush1.msra.mxu0 %v15658_v25  ;;  %11092 = vmatpush3.msra.mxu1 %v15267_v30  ;;  %v15693_v30 = vld [vmem:[%s20420_s4 + $0x1a0] sm:$0xff] }
 0x585   :  { %3344 = vmatprep.subr.mxu0 %v15665_v3  ;;  %11093 = vmatprep.subr.mxu1 %v20764_v27 }
 0x586   :  { %3345 = vmatpush1.msra.mxu0 %v15672_v33  ;;  %11094 = vmatpush3.msra.mxu1 %v15276_v49  ;;  %v15707_v49 = vld [vmem:[%s20420_s4 + $0x188] sm:$0xff] }
 0x587   :  { %3346 = vmatprep.subr.mxu0 %v15679_v47  ;;  %11095 = vmatprep.subr.mxu1 %v20764_v27 }
 0x588   :  { %3347 = vmatpush1.msra.mxu0 %v15686_v53  ;;  %11096 = vmatpush3.msra.mxu1 %v15285_v32 }
 0x589   :  { %v12211_v28 = vpop.eup %12210  ;;  %3348 = vmatprep.subr.mxu0 %v15693_v30  ;;  %11097 = vmatprep.subr.mxu1 %v20764_v27 }
 0x58a   :  { %3349 = vmatpush1.msra.mxu0 %v15700_v29  ;;  %11098 = vmatpush3.msra.mxu1 %v15294_v44  ;;  %v3051_v32 = vsub.f32 %v15315_v48, %v12211_v28  ;;  %v12213_v0 = vpop.eup %12212  ;;  %v15737_v44 = vld [vmem:[%s20420_s4 + $0x170] sm:$0xff]  ;;  %v15774_v48 = vld [vmem:[%s20420_s4 + $0x140] sm:$0xff] }
 0x58b   :  { %3350 = vmatprep.subr.mxu0 %v15707_v49  ;;  %11099 = vmatprep.subr.mxu1 %v20764_v27  ;;  %20898 = vst [vmem:[#allocation95_spill] sm:$0xff] %v15774_v48 }
 0x58c   :  { %3351 = vmatpush1.msra.mxu0 %v15714_v38  ;;  %3384 = vmatprep.mubr.f32.mxu0 %v20764_v27  ;;  %v3052_v14 = vmul.f32 %v12213_v0, %v3051_v32  ;;  %v15762_v32 = vld [vmem:[%s20420_s4 + $0x150] sm:$0xff]  ;;  %v15767_v0 = vld [vmem:[%s20420_s4 + $0x160] sm:$0xff] }
 0x58d   :  { %11100 = vmatpush3.msra.mxu1 %v15305_v58  ;;  %11101 = vmatprep.mubr.msk.f32.mxu1 %vm12447_vm0, %v20764_v27  ;;  %v15748_v58 = vld [vmem:[%s20420_s4 + $0x178] sm:$0xff]  ;;  %20896 = vst [vmem:[#allocation94_spill] sm:$0xff] %v15762_v32  ;;  %20897 = vst [vmem:[#allocation19_spill] sm:$0xff] %v15767_v0 }
 0x58e   :  { %v15726_v7 = vadd.f32 %v12211_v28, %v3052_v14  ;;  %11104 = vmatprep.subr.mxu1 %v20764_v27  ;;  %3535 = vmatprep.subr.mxu0 %v15737_v44  ;;  %v15743_v14 = vld [vmem:[%s20420_s4 + $0x168] sm:$0xff]  ;;  %v15755_v28 = vld [vmem:[%s20420_s4 + $0x158] sm:$0xff] }
 0x58f   :  { %20895 = vst [vmem:[#allocation99_spill] sm:$0xff] %v15755_v28 }
 0x590   :  { %20894 = vst [vmem:[#allocation8_spill] sm:$0xff] %v15726_v7  ;;  %3385 = vmatmul.mubr.f32.vlgmr.msra.gmra.mxu0 %v15726_v7  ;;  %11102 = vmatmul.mubr.f32.vlgmr.msra.gmra.mxu1 %v15726_v7 }
 0x591   :  { %3599 = vmatprep.mubr.f32.mxu0 %v20764_v27  ;;  %11136 = vmatprep.mubr.msk.f32.mxu1 %vm12447_vm0, %v20764_v27 }
 0x592   :  { %3536 = vmatpush1.msra.mxu0 %v15743_v14  ;;  %11105 = vmatpush3.msra.mxu1 %v15748_v58 }
 0x593   :  { %3537 = vmatprep.subr.mxu0 %v15755_v28  ;;  %11106 = vmatprep.subr.mxu1 %v20764_v27  ;;  %v15781_v28 = vld [vmem:[%s20420_s4 + $0x138] sm:$0xff] }
 0x594   :  { %3538 = vmatpush1.msra.mxu0 %v15762_v32  ;;  %11107 = vmatpush3.msra.mxu1 %v15767_v0  ;;  %v15786_v32 = vld [vmem:[%s20420_s4 + $0x148] sm:$0xff]  ;;  %v15800_v0 = vld [vmem:[%s20420_s4 + $0x130] sm:$0xff] }
 0x595   :  { %3539 = vmatprep.subr.mxu0 %v15774_v48  ;;  %11108 = vmatprep.subr.mxu1 %v20764_v27  ;;  %20899 = vst [vmem:[#allocation78_spill] sm:$0xff] %v15786_v32  ;;  %v15793_v48 = vld [vmem:[%s20420_s4 + $0x128] sm:$0xff] }
 0x596   :  { %3540 = vmatpush1.msra.mxu0 %v15781_v28  ;;  %11109 = vmatpush3.msra.mxu1 %v15786_v32  ;;  %v15809_v32 = vld [vmem:[%s20420_s4 + $0x118] sm:$0xff] }
 0x597   :  { %3541 = vmatprep.subr.mxu0 %v15793_v48  ;;  %11110 = vmatprep.subr.mxu1 %v20764_v27  ;;  %20900 = vst [vmem:[#allocation9_spill] sm:$0xff] %v15809_v32 }
 0x598   :  { %3542 = vmatpush1.msra.mxu0 %v15365_v59  ;;  %11111 = vmatpush3.msra.mxu1 %v15800_v0  ;;  %v15818_v59 = vld [vmem:[%s20420_s4 + $0x100] sm:$0xff] }
 0x599   :  { %3543 = vmatprep.subr.mxu0 %v15371_v45  ;;  %11112 = vmatprep.subr.mxu1 %v20764_v27  ;;  %20901 = vst [vmem:[#allocation10_spill] sm:$0xff] %v15818_v59  ;;  %v15827_v45 = vld [vmem:[%s20420_s4 + $0xe8] sm:$0xff] }
 0x59a   :  { %3544 = vmatpush1.msra.mxu0 %v15377_v51  ;;  %11113 = vmatpush3.msra.mxu1 %v15809_v32  ;;  %20902 = vst [vmem:[#allocation92_spill] sm:$0xff] %v15827_v45  ;;  %v15836_v51 = vld [vmem:[%s20420_s4 + $0xd0] sm:$0xff] }
 0x59b   :  { %3545 = vmatprep.subr.mxu0 %v15383_v52  ;;  %11114 = vmatprep.subr.mxu1 %v20764_v27  ;;  %20903 = vst [vmem:[#allocation17_spill] sm:$0xff] %v15836_v51  ;;  %v15845_v52 = vld [vmem:[%s20420_s4 + $0xb8] sm:$0xff] }
 0x59c   :  { %3546 = vmatpush1.msra.mxu0 %v15389_v24  ;;  %11115 = vmatpush3.msra.mxu1 %v15818_v59  ;;  %20904 = vst [vmem:[#allocation93_spill] sm:$0xff] %v15845_v52  ;;  %v15854_v24 = vld [vmem:[%s20420_s4 + $0xa0] sm:$0xff] }
 0x59d   :  { %3547 = vmatprep.subr.mxu0 %v15395_v36  ;;  %11116 = vmatprep.subr.mxu1 %v20764_v27  ;;  %20905 = vst [vmem:[#allocation79_spill] sm:$0xff] %v15854_v24  ;;  %v15863_v36 = vld [vmem:[%s20420_s4 + $0x88] sm:$0xff]  ;;  %v20923_v59 = vld [vmem:[#allocation22_spill] sm:$0xff] }
 0x59e   :  { %3548 = vmatpush1.msra.mxu0 %v15401_v1  ;;  %11117 = vmatpush3.msra.mxu1 %v15827_v45  ;;  %20906 = vst [vmem:[#allocation82_spill] sm:$0xff] %v15863_v36  ;;  %v15872_v1 = vld [vmem:[%s20420_s4 + $0x60] sm:$0xff]  ;;  %v20922_v45 = vld [vmem:[#allocation88_spill] sm:$0xff] }
 0x59f   :  { %3549 = vmatprep.subr.mxu0 %v15407_v21  ;;  %11118 = vmatprep.subr.mxu1 %v20764_v27  ;;  %20907 = vst [vmem:[#allocation102_spill] sm:$0xff] %v15872_v1  ;;  %v15877_v21 = vld [vmem:[%s20420_s4 + $0x70] sm:$0xff] }
 0x5a0   :  { %3550 = vmatpush1.msra.mxu0 %v15413_v57  ;;  %11119 = vmatpush3.msra.mxu1 %v15836_v51  ;;  %20908 = vst [vmem:[#allocation103_spill] sm:$0xff] %v15877_v21  ;;  %v15886_v57 = vld [vmem:[%s20420_s4 + $0x58] sm:$0xff]  ;;  %v20921_v51 = vld [vmem:[#allocation98_spill] sm:$0xff] }
 0x5a1   :  { %3551 = vmatprep.subr.mxu0 %v15419_v39  ;;  %11120 = vmatprep.subr.mxu1 %v20764_v27  ;;  %20909 = vst [vmem:[#allocation104_spill] sm:$0xff] %v15886_v57  ;;  %v15895_v39 = vld [vmem:[%s20420_s4 + $0x30] sm:$0xff] }
 0x5a2   :  { %3552 = vmatpush1.msra.mxu0 %v15425_v40  ;;  %11121 = vmatpush3.msra.mxu1 %v15845_v52  ;;  %20910 = vst [vmem:[#allocation105_spill] sm:$0xff] %v15895_v39  ;;  %v15900_v40 = vld [vmem:[%s20420_s4 + $0x40] sm:$0xff] }
 0x5a3   :  { %3553 = vmatprep.subr.mxu0 %v15431_v11  ;;  %11122 = vmatprep.subr.mxu1 %v20764_v27  ;;  %20911 = vst [vmem:[#allocation106_spill] sm:$0xff] %v15900_v40  ;;  %v15907_v11 = vld [vmem:[%s20420_s4 + $0x20] sm:$0xff] }
 0x5a4   :  { %3554 = vmatpush1.msra.mxu0 %v15437_v55  ;;  %11123 = vmatpush3.msra.mxu1 %v15854_v24  ;;  %20912 = vst [vmem:[#allocation107_spill] sm:$0xff] %v15907_v11  ;;  %v15914_v55 = vld [vmem:[%s20420_s4 + $0x18] sm:$0xff] }
 0x5a5   :  { %3555 = vmatprep.subr.mxu0 %v15443_v46  ;;  %11124 = vmatprep.subr.mxu1 %v20764_v27  ;;  %20913 = vst [vmem:[#allocation108_spill] sm:$0xff] %v15914_v55  ;;  %v15919_v46 = vld [vmem:[%s20420_s4 + $0x28] sm:$0xff] }
 0x5a6   :  { %3556 = vmatpush1.msra.mxu0 %v15449_v16  ;;  %11125 = vmatpush3.msra.mxu1 %v15863_v36  ;;  %20914 = vst [vmem:[#allocation109_spill] sm:$0xff] %v15919_v46  ;;  %v15926_v16 = vld [vmem:[%s20420_s4 + $0x8] sm:$0xff] }
 0x5a7   :  { %3557 = vmatprep.subr.mxu0 %v15455_v17  ;;  %11126 = vmatprep.subr.mxu1 %v20764_v27  ;;  %20915 = vst [vmem:[#allocation110_spill] sm:$0xff] %v15926_v16  ;;  %v15933_v17 = vld [vmem:[%s20420_s4] sm:$0xff] }
 0x5a8   :  { %3558 = vmatpush1.msra.mxu0 %v15872_v1  ;;  %11127 = vmatpush3.msra.mxu1 %v15877_v21  ;;  %20916 = vst [vmem:[#allocation112_spill] sm:$0xff] %v15933_v17 }
 0x5a9   :  { %3559 = vmatprep.subr.mxu0 %v15462_v34  ;;  %11128 = vmatprep.subr.mxu1 %v20764_v27  ;;  %v15938_v34 = vld [vmem:[%s20420_s4 + $0x10] sm:$0xff] }
 0x5aa   :  { %3560 = vmatpush1.msra.mxu0 %v15468_v12  ;;  %11129 = vmatpush3.msra.mxu1 %v15886_v57  ;;  %20917 = vst [vmem:[#allocation113_spill] sm:$0xff] %v15938_v34 }
 0x5ab   :  { %3561 = vmatprep.subr.mxu0 %v15474_v60  ;;  %11130 = vmatprep.subr.mxu1 %v20764_v27 }
 0x5ac   :  { %3562 = vmatpush1.msra.mxu0 %v15895_v39  ;;  %11131 = vmatpush3.msra.mxu1 %v15900_v40 }
 0x5ad   :  { %3563 = vmatprep.subr.mxu0 %v15907_v11  ;;  %11132 = vmatprep.subr.mxu1 %v20764_v27 }
 0x5ae   :  { %3564 = vmatpush1.msra.mxu0 %v15914_v55  ;;  %11133 = vmatpush3.msra.mxu1 %v15919_v46  ;;  %v20919_v46 = vld [vmem:[#allocation16_spill] sm:$0xff] }
 0x5af   :  { %3565 = vmatprep.subr.mxu0 %v15926_v16  ;;  %11134 = vmatprep.subr.mxu1 %v20764_v27  ;;  %v20918_v16 = vld [vmem:[#allocation15_spill] sm:$0xff]  ;;  %v221_v40 = vadd.f32 %v20919_v46, %v20885_v5 }
 0x5b0   :  { %3566 = vmatpush1.msra.mxu0 %v15933_v17  ;;  %11135 = vmatpush3.msra.mxu1 %v15938_v34  ;;  %v20920_v34 = vld [vmem:[#allocation120_spill] sm:$0xff] }
 0x5b1   :  { %3748 = vmatprep.subr.mxu0 %v15485_v15  ;;  %11139 = vmatprep.subr.mxu1 %v20764_v27 }
 0x62d   :  { %v3173_v12 = vpop.f32.mrf.mxu0  ;;  %v3244_v60 = vpop.f32.mrf.mxu1 }
 0x62e   :  { %v3248_v55 = vadd.f32 %v3173_v12, %v20918_v16  ;;  %v3262_v24 = vadd.f32 %v20920_v34, %v3244_v60  ;;  %v670_v16 = vadd.f32 %v20922_v45, %v20921_v51 }
 0x62f   :  { %v11068_v11 = vpop.f32.mrf.mxu1  ;;  %v3175_v1 = vpop.f32.mrf.mxu0 }
 0x630   :  { %v9193_v39 = vmul.f32 -1.442695, %v3248_v55  ;;  %v3249_v57 = vadd.f32 %v3175_v1, %v221_v40 }
 0x632   :  { %12214 = vpow2.f32 %v9193_v39  ;;  %v9194_v21 = vmul.f32 -1.442695, %v3249_v57 }
 0x634   :  { %12216 = vpow2.f32 %v9194_v21  ;;  %v20924_v21 = vld [vmem:[#allocation89_spill] sm:$0xff] }
 0x635   :  { %v672_v40 = vadd.f32 %v20924_v21, %v13897_v42  ;;  %v16168_v21 = vld [vmem:[%s20420_s4 + $0x108] sm:$0xff] }
 0x63f   :  { %v12215_v17 = vpop.eup %12214 }
 0x640   :  { %v3256_v36 = vadd.f32 1.0, %v12215_v17 }
 0x641   :  { %v12217_v15 = vpop.eup %12216 }
 0x642   :  { %12218 = vrcp.f32 %v3256_v36  ;;  %v3257_v46 = vadd.f32 1.0, %v12217_v15 }
 0x64f   :  { %v12219_v52 = vpop.eup %12218 }
 0x650   :  { %v3263_v11 = vmul.f32 %v12219_v52, %v3262_v24  ;;  %v3386_v55 = vpop.f32.mrf.mxu0  ;;  %v3457_v39 = vpop.f32.mrf.mxu1 }
 0x651   :  { %v3461_v12 = vadd.f32 %v3386_v55, %v670_v16  ;;  %v15975_v55 = vld [vmem:[%s20420_s4 + $0x2c8] sm:$0xff] }
 0x652   :  { %v3264_v32 = vadd.f32 %v3263_v11, %v20923_v59  ;;  %v11103_v1 = vpop.f32.mrf.mxu1  ;;  %v3388_v36 = vpop.f32.mrf.mxu0  ;;  %v15966_v11 = vld [vmem:[%s20420_s4 + $0x2e0] sm:$0xff] }
 0x653   :  { %v9243_v57 = vmul.f32 -1.442695, %v3461_v12  ;;  %v3462_v17 = vadd.f32 %v3388_v36, %v672_v40  ;;  %v20942_v12 = vld [vmem:[#allocation106_spill] sm:$0xff]  ;;  %v20944_v1 = vld [vmem:[#allocation113_spill] sm:$0xff]  ;;  %v16162_v36 = vld [vmem:[%s20420_s4 + $0x110] sm:$0xff] }
 0x654   :  { %12220 = vtanh.f32 %v3264_v32  ;;  %v15959_v32 = vld [vmem:[%s20420_s4 + $0x2f8] sm:$0xff] }
 0x655   :  { %12222 = vpow2.f32 %v9243_v57  ;;  %v9244_v34 = vmul.f32 -1.442695, %v3462_v17  ;;  %v16156_v57 = vld [vmem:[%s20420_s4 + $0x120] sm:$0xff]  ;;  %v16174_v40 = vld [vmem:[%s20420_s4 + $0xf8] sm:$0xff]  ;;  %v16180_v17 = vld [vmem:[%s20420_s4 + $0xf0] sm:$0xff] }
 0x656   :  { %12224 = vrcp.f32 %v3257_v46  ;;  %v20943_v46 = vld [vmem:[#allocation109_spill] sm:$0xff] }
 0x657   :  { %12226 = vpow2.f32 %v9244_v34  ;;  %v16186_v34 = vld [vmem:[%s20420_s4 + $0xe0] sm:$0xff] }
 0x661   :  { %v12221_v60 = vpop.eup %12220 }
 0x662   :  { %v12223_v45 = vpop.eup %12222  ;;  %v3266_v52 = vsub.f32 %v15499_v2, %v12221_v60 }
 0x663   :  { %v12225_v24 = vpop.eup %12224  ;;  %v3469_v16 = vadd.f32 1.0, %v12223_v45  ;;  %v16198_v45 = vld [vmem:[%s20420_s4 + $0xc8] sm:$0xff] }
 0x664   :  { %v3267_v59 = vmul.f32 %v12225_v24, %v3266_v52  ;;  %v16204_v52 = vld [vmem:[%s20420_s4 + $0xc0] sm:$0xff]  ;;  %v16210_v24 = vld [vmem:[%s20420_s4 + $0xb0] sm:$0xff] }
 0x665   :  { %12228 = vrcp.f32 %v3469_v16  ;;  %v16216_v16 = vld [vmem:[%s20420_s4 + $0xa8] sm:$0xff] }
 0x666   :  { %v15954_v15 = vadd.f32 %v12221_v60, %v3267_v59  ;;  %v16192_v60 = vld [vmem:[%s20420_s4 + $0xd8] sm:$0xff] }
 0x667   :  { %v16222_v59 = vld [vmem:[%s20420_s4 + $0x98] sm:$0xff] }
 0x668   :  { %20925 = vst [vmem:[#allocation116_spill] sm:$0xff] %v15954_v15  ;;  %3600 = vmatmul.mubr.f32.vlgmr.msra.gmra.mxu0 %v15954_v15  ;;  %11137 = vmatmul.mubr.f32.vlgmr.msra.gmra.mxu1 %v15954_v15 }
 0x669   :  { %3749 = vmatpush1.msra.mxu0 %v15504_v61  ;;  %11140 = vmatpush3.msra.mxu1 %v15959_v32  ;;  %v15984_v61 = vld [vmem:[%s20420_s4 + $0x2b0] sm:$0xff] }
 0x66a   :  { %3750 = vmatprep.subr.mxu0 %v15509_v54  ;;  %11141 = vmatprep.subr.mxu1 %v20764_v27  ;;  %v15993_v54 = vld [vmem:[%s20420_s4 + $0x298] sm:$0xff] }
 0x66b   :  { %3751 = vmatpush1.msra.mxu0 %v15516_v18  ;;  %11142 = vmatpush3.msra.mxu1 %v15966_v11  ;;  %v16002_v18 = vld [vmem:[%s20420_s4 + $0x280] sm:$0xff] }
 0x66c   :  { %3752 = vmatprep.subr.mxu0 %v15523_v35  ;;  %11143 = vmatprep.subr.mxu1 %v20764_v27  ;;  %v12227_v35 = vpop.eup %12226 }
 0x66d   :  { %3753 = vmatpush1.msra.mxu0 %v15530_v9  ;;  %11144 = vmatpush3.msra.mxu1 %v15975_v55  ;;  %v3475_v9 = vadd.f32 %v15211_v20, %v3457_v39  ;;  %v16021_v20 = vld [vmem:[%s20420_s4 + $0x250] sm:$0xff]  ;;  %v3470_v39 = vadd.f32 1.0, %v12227_v35 }
 0x66e   :  { %3754 = vmatprep.subr.mxu0 %v15537_v8  ;;  %11145 = vmatprep.subr.mxu1 %v20764_v27  ;;  %v16228_v35 = vld [vmem:[%s20420_s4 + $0x90] sm:$0xff] }
 0x66f   :  { %3755 = vmatpush1.msra.mxu0 %v15544_v37  ;;  %11146 = vmatpush3.msra.mxu1 %v15984_v61  ;;  %v16012_v37 = vld [vmem:[%s20420_s4 + $0x268] sm:$0xff] }
 0x670   :  { %3756 = vmatprep.subr.mxu0 %v15551_v56  ;;  %11147 = vmatprep.subr.mxu1 %v20764_v27 }
 0x671   :  { %3757 = vmatpush1.msra.mxu0 %v15558_v13  ;;  %11148 = vmatpush3.msra.mxu1 %v15993_v54  ;;  %v20926_v13 = vld [vmem:[#allocation75_spill] sm:$0xff] }
 0x672   :  { %v12229_v8 = vpop.eup %12228  ;;  %3758 = vmatprep.subr.mxu0 %v15565_v4  ;;  %11149 = vmatprep.subr.mxu1 %v20764_v27 }
 0x673   :  { %v3476_v56 = vmul.f32 %v12229_v8, %v3475_v9  ;;  %3759 = vmatpush1.msra.mxu0 %v15572_v62  ;;  %11150 = vmatpush3.msra.mxu1 %v16002_v18  ;;  %v16031_v62 = vld [vmem:[%s20420_s4 + $0x238] sm:$0xff]  ;;  %v16234_v9 = vld [vmem:[%s20420_s4 + $0x80] sm:$0xff] }
 0x674   :  { %3760 = vmatprep.subr.mxu0 %v15580_v50  ;;  %11151 = vmatprep.subr.mxu1 %v20764_v27  ;;  %v16040_v50 = vld [vmem:[%s20420_s4 + $0x220] sm:$0xff]  ;;  %v16240_v8 = vld [vmem:[%s20420_s4 + $0x78] sm:$0xff] }
 0x675   :  { %v3477_v4 = vadd.f32 %v3476_v56, %v20926_v13  ;;  %3761 = vmatpush1.msra.mxu0 %v15587_v6  ;;  %11152 = vmatpush3.msra.mxu1 %v16012_v37  ;;  %v16049_v6 = vld [vmem:[%s20420_s4 + $0x208] sm:$0xff]  ;;  %v20945_v13 = vld [vmem:[#allocation102_spill] sm:$0xff] }
 0x676   :  { %3762 = vmatprep.subr.mxu0 %v15594_v31  ;;  %11153 = vmatprep.subr.mxu1 %v20764_v27  ;;  %v16058_v31 = vld [vmem:[%s20420_s4 + $0x1f0] sm:$0xff]  ;;  %v16246_v56 = vld [vmem:[%s20420_s4 + $0x68] sm:$0xff] }
 0x677   :  { %12230 = vtanh.f32 %v3477_v4  ;;  %3763 = vmatpush1.msra.mxu0 %v15601_v10  ;;  %11154 = vmatpush3.msra.mxu1 %v16021_v20  ;;  %v16067_v10 = vld [vmem:[%s20420_s4 + $0x1d8] sm:$0xff]  ;;  %v16253_v4 = vld [vmem:[%s20420_s4 + $0x50] sm:$0xff] }
 0x678   :  { %3764 = vmatprep.subr.mxu0 %v15609_v63  ;;  %11155 = vmatprep.subr.mxu1 %v20764_v27  ;;  %12232 = vrcp.f32 %v3470_v39  ;;  %v16076_v63 = vld [vmem:[%s20420_s4 + $0x1c0] sm:$0xff]  ;;  %v16259_v39 = vld [vmem:[%s20420_s4 + $0x48] sm:$0xff] }
 0x679   :  { %3765 = vmatpush1.msra.mxu0 %v15616_v19  ;;  %11156 = vmatpush3.msra.mxu1 %v16031_v62  ;;  %v16085_v19 = vld [vmem:[%s20420_s4 + $0x1a8] sm:$0xff] }
 0x67a   :  { %3766 = vmatprep.subr.mxu0 %v15623_v22  ;;  %11157 = vmatprep.subr.mxu1 %v20764_v27 }
 0x67b   :  { %3767 = vmatpush1.msra.mxu0 %v15630_v23  ;;  %11158 = vmatpush3.msra.mxu1 %v16040_v50  ;;  %v16096_v23 = vld [vmem:[%s20420_s4 + $0x190] sm:$0xff] }
 0x67c   :  { %3768 = vmatprep.subr.mxu0 %v15637_v43  ;;  %11159 = vmatprep.subr.mxu1 %v20764_v27 }
 0x67d   :  { %3769 = vmatpush1.msra.mxu0 %v15644_v26  ;;  %11160 = vmatpush3.msra.mxu1 %v16049_v6 }
 0x67e   :  { %3770 = vmatprep.subr.mxu0 %v15651_v41  ;;  %11161 = vmatprep.subr.mxu1 %v20764_v27 }
 0x67f   :  { %3771 = vmatpush1.msra.mxu0 %v15658_v25  ;;  %11162 = vmatpush3.msra.mxu1 %v16058_v31 }
 0x680   :  { %3772 = vmatprep.subr.mxu0 %v15665_v3  ;;  %11163 = vmatprep.subr.mxu1 %v20764_v27  ;;  %v20928_v3 = vld [vmem:[#allocation99_spill] sm:$0xff] }
 0x681   :  { %3773 = vmatpush1.msra.mxu0 %v15672_v33  ;;  %11164 = vmatpush3.msra.mxu1 %v16067_v10  ;;  %v20929_v33 = vld [vmem:[#allocation94_spill] sm:$0xff] }
 0x682   :  { %3774 = vmatprep.subr.mxu0 %v15679_v47  ;;  %11165 = vmatprep.subr.mxu1 %v20764_v27  ;;  %v20930_v47 = vld [vmem:[#allocation19_spill] sm:$0xff] }
 0x683   :  { %3775 = vmatpush1.msra.mxu0 %v15686_v53  ;;  %11166 = vmatpush3.msra.mxu1 %v16076_v63  ;;  %v20931_v53 = vld [vmem:[#allocation95_spill] sm:$0xff] }
 0x684   :  { %v12231_v22 = vpop.eup %12230  ;;  %3776 = vmatprep.subr.mxu0 %v15693_v30  ;;  %11167 = vmatprep.subr.mxu1 %v20764_v27  ;;  %v20932_v30 = vld [vmem:[#allocation78_spill] sm:$0xff] }
 0x685   :  { %3777 = vmatpush1.msra.mxu0 %v15700_v29  ;;  %11168 = vmatpush3.msra.mxu1 %v16085_v19  ;;  %v3479_v43 = vsub.f32 %v15726_v7, %v12231_v22  ;;  %v12233_v26 = vpop.eup %12232  ;;  %v20933_v29 = vld [vmem:[#allocation9_spill] sm:$0xff] }
 0x686   :  { %3778 = vmatprep.subr.mxu0 %v15707_v49  ;;  %11169 = vmatprep.subr.mxu1 %v20764_v27  ;;  %v20934_v49 = vld [vmem:[#allocation10_spill] sm:$0xff] }
 0x687   :  { %3779 = vmatpush1.msra.mxu0 %v15714_v38  ;;  %3812 = vmatprep.mubr.f32.mxu0 %v20764_v27  ;;  %v3480_v41 = vmul.f32 %v12233_v26, %v3479_v43  ;;  %v20936_v38 = vld [vmem:[#allocation17_spill] sm:$0xff]  ;;  %v20947_v26 = vld [vmem:[#allocation107_spill] sm:$0xff] }
 0x688   :  { %11170 = vmatpush3.msra.mxu1 %v16096_v23  ;;  %11171 = vmatprep.mubr.msk.f32.mxu1 %vm12447_vm0, %v20764_v27  ;;  %v20946_v43 = vld [vmem:[#allocation105_spill] sm:$0xff] }
 0x689   :  { %v16106_v25 = vadd.f32 %v12231_v22, %v3480_v41  ;;  %3963 = vmatprep.subr.mxu0 %v15737_v44  ;;  %11174 = vmatprep.subr.mxu1 %v20764_v27  ;;  %v20937_v44 = vld [vmem:[#allocation93_spill] sm:$0xff]  ;;  %v20948_v41 = vld [vmem:[#allocation108_spill] sm:$0xff] }
 0x68a   :  { %v16265_v22 = vld [vmem:[%s20420_s4 + $0x38] sm:$0xff] }
 0x68b   :  { %20927 = vst [vmem:[#allocation124_spill] sm:$0xff] %v16106_v25  ;;  %3813 = vmatmul.mubr.f32.vlgmr.msra.gmra.mxu0 %v16106_v25  ;;  %11172 = vmatmul.mubr.f32.vlgmr.msra.gmra.mxu1 %v16106_v25 }
 0x68c   :  { %3964 = vmatpush1.msra.mxu0 %v15743_v14  ;;  %11175 = vmatpush3.msra.mxu1 %v15748_v58  ;;  %v20938_v14 = vld [vmem:[#allocation79_spill] sm:$0xff]  ;;  %v20939_v58 = vld [vmem:[#allocation82_spill] sm:$0xff] }
 0x68d   :  { %3965 = vmatprep.subr.mxu0 %v20928_v3  ;;  %11176 = vmatprep.subr.mxu1 %v20764_v27  ;;  %v20949_v3 = vld [vmem:[#allocation110_spill] sm:$0xff] }
 0x68e   :  { %3966 = vmatpush1.msra.mxu0 %v20929_v33  ;;  %11177 = vmatpush3.msra.mxu1 %v20930_v47  ;;  %v20950_v33 = vld [vmem:[#allocation112_spill] sm:$0xff] }
 0x68f   :  { %3967 = vmatprep.subr.mxu0 %v20931_v53  ;;  %11178 = vmatprep.subr.mxu1 %v20764_v27  ;;  %v16276_v47 = vld [vmem:[%s20420_s4 + $0x2f0] sm:$0xff] }
 0x690   :  { %3968 = vmatpush1.msra.mxu0 %v15781_v28  ;;  %11179 = vmatpush3.msra.mxu1 %v20932_v30  ;;  %v20940_v28 = vld [vmem:[#allocation103_spill] sm:$0xff] }
 0x691   :  { %3969 = vmatprep.subr.mxu0 %v15793_v48  ;;  %11180 = vmatprep.subr.mxu1 %v20764_v27  ;;  %v20935_v48 = vld [vmem:[#allocation92_spill] sm:$0xff] }
 0x692   :  { %11181 = vmatpush3.msra.mxu1 %v15800_v0  ;;  %4027 = vmatprep.mubr.f32.mxu0 %v20764_v27  ;;  %v20941_v0 = vld [vmem:[#allocation104_spill] sm:$0xff] }
 0x693   :  { %11182 = vmatprep.subr.mxu1 %v20764_v27  ;;  %11206 = vmatprep.mubr.msk.f32.mxu1 %vm12447_vm0, %v20764_v27 }
 0x694   :  { %11183 = vmatpush3.msra.mxu1 %v20933_v29  ;;  %3970 = vmatpush1.msra.mxu0 %v16156_v57  ;;  %v20951_v29 = vld [vmem:[#allocation18_spill] sm:$0xff] }
 0x695   :  { %11184 = vmatprep.subr.mxu1 %v20764_v27  ;;  %3971 = vmatprep.subr.mxu0 %v16162_v36 }
 0x696   :  { %11185 = vmatpush3.msra.mxu1 %v20934_v49  ;;  %3972 = vmatpush1.msra.mxu0 %v16168_v21 }
 0x697   :  { %11186 = vmatprep.subr.mxu1 %v20764_v27  ;;  %3973 = vmatprep.subr.mxu0 %v16174_v40 }
 0x698   :  { %11187 = vmatpush3.msra.mxu1 %v20935_v48  ;;  %3974 = vmatpush1.msra.mxu0 %v16180_v17 }
 0x699   :  { %11188 = vmatprep.subr.mxu1 %v20764_v27  ;;  %3975 = vmatprep.subr.mxu0 %v16186_v34 }
 0x69a   :  { %11189 = vmatpush3.msra.mxu1 %v20936_v38  ;;  %3976 = vmatpush1.msra.mxu0 %v16192_v60 }
 0x69b   :  { %11190 = vmatprep.subr.mxu1 %v20764_v27  ;;  %3977 = vmatprep.subr.mxu0 %v16198_v45 }
 0x69c   :  { %11191 = vmatpush3.msra.mxu1 %v20937_v44  ;;  %3978 = vmatpush1.msra.mxu0 %v16204_v52 }
 0x69d   :  { %11192 = vmatprep.subr.mxu1 %v20764_v27  ;;  %3979 = vmatprep.subr.mxu0 %v16210_v24 }
 0x69e   :  { %11193 = vmatpush3.msra.mxu1 %v20938_v14  ;;  %3980 = vmatpush1.msra.mxu0 %v16216_v16  ;;  %v20952_v14 = vld [vmem:[#allocation20_spill] sm:$0xff] }
 0x69f   :  { %11194 = vmatprep.subr.mxu1 %v20764_v27  ;;  %3981 = vmatprep.subr.mxu0 %v16222_v59 }
 0x6a0   :  { %11195 = vmatpush3.msra.mxu1 %v20939_v58  ;;  %3982 = vmatpush1.msra.mxu0 %v16228_v35  ;;  %v227_v58 = vadd.f32 %v20952_v14, %v20885_v5 }
 0x6a1   :  { %11196 = vmatprep.subr.mxu1 %v20764_v27  ;;  %3983 = vmatprep.subr.mxu0 %v16234_v9 }
 0x6a2   :  { %11197 = vmatpush3.msra.mxu1 %v20940_v28  ;;  %3984 = vmatpush1.msra.mxu0 %v16240_v8 }
 0x6a3   :  { %11198 = vmatprep.subr.mxu1 %v20764_v27  ;;  %3985 = vmatprep.subr.mxu0 %v16246_v56 }
 0x6a4   :  { %11199 = vmatpush3.msra.mxu1 %v20941_v0  ;;  %3986 = vmatpush1.msra.mxu0 %v20945_v13  ;;  %v16285_v13 = vld [vmem:[%s20423_s5] ss:$0 sm:$0xff] }
 0x6a5   :  { %11200 = vmatprep.subr.mxu1 %v20764_v27  ;;  %3987 = vmatprep.subr.mxu0 %v16253_v4  ;;  %20953 = vst [vmem:[#allocation119_spill] sm:$0xff] %v16285_v13 }
 0x6a6   :  { %11201 = vmatpush3.msra.mxu1 %v20942_v12  ;;  %3988 = vmatpush1.msra.mxu0 %v16259_v39 }
 0x6a7   :  { %11202 = vmatprep.subr.mxu1 %v20764_v27  ;;  %3989 = vmatprep.subr.mxu0 %v16265_v22 }
 0x6a8   :  { %11203 = vmatpush3.msra.mxu1 %v20943_v46  ;;  %3990 = vmatpush1.msra.mxu0 %v20946_v43 }
 0x6a9   :  { %11204 = vmatprep.subr.mxu1 %v20764_v27  ;;  %3991 = vmatprep.subr.mxu0 %v20947_v26 }
 0x6aa   :  { %11205 = vmatpush3.msra.mxu1 %v20944_v1  ;;  %3992 = vmatpush1.msra.mxu0 %v20948_v41  ;;  %v20954_v41 = vld [vmem:[#allocation85_spill] sm:$0xff] }
 0x6ab   :  { %11209 = vmatprep.subr.mxu1 %v20764_v27  ;;  %3993 = vmatprep.subr.mxu0 %v20949_v3  ;;  %v664_v3 = vadd.f32 %v20954_v41, %v20921_v51 }
 0x6ac   :  { %3994 = vmatpush1.msra.mxu0 %v20950_v33  ;;  %v20955_v33 = vld [vmem:[#allocation11_spill] sm:$0xff] }
 0x6ad   :  { %4176 = vmatprep.subr.mxu0 %v16276_v47 }
 0x728   :  { %v3601_v53 = vpop.f32.mrf.mxu0  ;;  %v3672_v30 = vpop.f32.mrf.mxu1 }
 0x729   :  { %v3676_v49 = vadd.f32 %v3601_v53, %v20951_v29  ;;  %v3690_v43 = vadd.f32 %v16285_v13, %v3672_v30  ;;  %v20956_v53 = vld [vmem:[#allocation28_spill] sm:$0xff]  ;;  %v20957_v30 = vld [vmem:[#allocation86_spill] sm:$0xff] }
 0x72a   :  { %v11138_v48 = vpop.f32.mrf.mxu1  ;;  %v3603_v44 = vpop.f32.mrf.mxu0  ;;  %v380_v29 = vadd.f32 %v20956_v53, %v20955_v33 }
 0x72b   :  { %v9245_v38 = vmul.f32 -1.442695, %v3676_v49  ;;  %v3677_v28 = vadd.f32 %v3603_v44, %v227_v58 }
 0x72d   :  { %12234 = vpow2.f32 %v9245_v38  ;;  %v9246_v0 = vmul.f32 -1.442695, %v3677_v28 }
 0x72f   :  { %12236 = vpow2.f32 %v9246_v0 }
 0x73a   :  { %v12235_v12 = vpop.eup %12234 }
 0x73b   :  { %v3684_v46 = vadd.f32 1.0, %v12235_v12 }
 0x73c   :  { %v12237_v1 = vpop.eup %12236 }
 0x73d   :  { %12238 = vrcp.f32 %v3684_v46  ;;  %v3685_v58 = vadd.f32 1.0, %v12237_v1  ;;  %v666_v46 = vadd.f32 %v20957_v30, %v13897_v42  ;;  %v16388_v30 = vld [vmem:[%s20420_s4 + $0x258] sm:$0xff] }
 0x74a   :  { %v12239_v26 = vpop.eup %12238 }
 0x74b   :  { %v3691_v49 = vmul.f32 %v12239_v26, %v3690_v43  ;;  %v3814_v48 = vpop.f32.mrf.mxu0  ;;  %v3885_v38 = vpop.f32.mrf.mxu1 }
 0x74c   :  { %v3889_v44 = vadd.f32 %v3814_v48, %v664_v3  ;;  %v16340_v48 = vld [vmem:[%s20420_s4 + $0x2a0] sm:$0xff] }
 0x74d   :  { %v3692_v14 = vadd.f32 %v3691_v49, %v380_v29  ;;  %v11173_v28 = vpop.f32.mrf.mxu1  ;;  %v3816_v12 = vpop.f32.mrf.mxu0  ;;  %v16300_v29 = vld [vmem:[%s20420_s4 + $0x2e8] sm:$0xff]  ;;  %v16326_v49 = vld [vmem:[%s20420_s4 + $0x2b8] sm:$0xff] }
 0x74e   :  { %v9295_v0 = vmul.f32 -1.442695, %v3889_v44  ;;  %v3890_v7 = vadd.f32 %v3816_v12, %v666_v46  ;;  %v16354_v44 = vld [vmem:[%s20420_s4 + $0x288] sm:$0xff]  ;;  %v16373_v28 = vld [vmem:[%s20423_s5 + $0x1] ss:$0 sm:$0xff] }
 0x74f   :  { %12240 = vtanh.f32 %v3692_v14  ;;  %v16368_v14 = vld [vmem:[%s20420_s4 + $0x270] sm:$0xff]  ;;  %v16402_v46 = vld [vmem:[%s20420_s4 + $0x240] sm:$0xff] }
 0x750   :  { %12242 = vpow2.f32 %v9295_v0  ;;  %v9296_v41 = vmul.f32 -1.442695, %v3890_v7  ;;  %v16305_v7 = vld [vmem:[%s20420_s4 + $0x2d8] sm:$0xff]  ;;  %v16381_v0 = vld [vmem:[%s20420_s4 + $0x260] sm:$0xff] }
 0x751   :  { %12244 = vrcp.f32 %v3685_v58 }
 0x752   :  { %12246 = vpow2.f32 %v9296_v41  ;;  %v20959_v41 = vld [vmem:[#allocation70_spill] sm:$0xff] }
 0x75c   :  { %v12241_v2 = vpop.eup %12240 }
 0x75d   :  { %v12243_v51 = vpop.eup %12242  ;;  %v3694_v43 = vsub.f32 %v15954_v15, %v12241_v2 }
 0x75e   :  { %v12245_v26 = vpop.eup %12244  ;;  %v3897_v53 = vadd.f32 1.0, %v12243_v51  ;;  %v16312_v51 = vld [vmem:[%s20420_s4 + $0x2d0] sm:$0xff] }
 0x75f   :  { %v3695_v3 = vmul.f32 %v12245_v26, %v3694_v43  ;;  %v12247_v58 = vpop.eup %12246 }
 0x760   :  { %12248 = vrcp.f32 %v3897_v53  ;;  %v3898_v26 = vadd.f32 1.0, %v12247_v58  ;;  %v16417_v53 = vld [vmem:[%s20420_s4 + $0x228] sm:$0xff]  ;;  %v16445_v58 = vld [vmem:[%s20420_s4 + $0x1f8] sm:$0xff] }
 0x761   :  { %v16295_v1 = vadd.f32 %v12241_v2, %v3695_v3  ;;  %v16319_v2 = vld [vmem:[%s20420_s4 + $0x2c0] sm:$0xff]  ;;  %v16431_v3 = vld [vmem:[%s20420_s4 + $0x210] sm:$0xff] }
 0x763   :  { %20958 = vst [vmem:[#allocation111_spill] sm:$0xff] %v16295_v1  ;;  %4028 = vmatmul.mubr.f32.vlgmr.msra.gmra.mxu0 %v16295_v1  ;;  %11207 = vmatmul.mubr.f32.vlgmr.msra.gmra.mxu1 %v16295_v1 }
 0x764   :  { %4177 = vmatpush1.msra.mxu0 %v16300_v29  ;;  %11210 = vmatpush3.msra.mxu1 %v15959_v32  ;;  %v16333_v32 = vld [vmem:[%s20420_s4 + $0x2a8] sm:$0xff] }
 0x765   :  { %4178 = vmatprep.subr.mxu0 %v16305_v7  ;;  %11211 = vmatprep.subr.mxu1 %v20764_v27 }
 0x766   :  { %4179 = vmatpush1.msra.mxu0 %v16312_v51  ;;  %11212 = vmatpush3.msra.mxu1 %v15966_v11  ;;  %v16347_v11 = vld [vmem:[%s20420_s4 + $0x290] sm:$0xff] }
 0x767   :  { %4180 = vmatprep.subr.mxu0 %v16319_v2  ;;  %11213 = vmatprep.subr.mxu1 %v20764_v27 }
 0x768   :  { %4181 = vmatpush1.msra.mxu0 %v16326_v49  ;;  %11214 = vmatpush3.msra.mxu1 %v15975_v55  ;;  %v16361_v55 = vld [vmem:[%s20420_s4 + $0x278] sm:$0xff] }
 0x769   :  { %4182 = vmatprep.subr.mxu0 %v16333_v32  ;;  %11215 = vmatprep.subr.mxu1 %v20764_v27 }
 0x76a   :  { %4183 = vmatpush1.msra.mxu0 %v16340_v48  ;;  %11216 = vmatpush3.msra.mxu1 %v15984_v61  ;;  %v3903_v61 = vadd.f32 %v16373_v28, %v3885_v38 }
 0x76b   :  { %4184 = vmatprep.subr.mxu0 %v16347_v11  ;;  %11217 = vmatprep.subr.mxu1 %v20764_v27 }
 0x76c   :  { %4185 = vmatpush1.msra.mxu0 %v16354_v44  ;;  %11218 = vmatpush3.msra.mxu1 %v15993_v54  ;;  %v16395_v54 = vld [vmem:[%s20420_s4 + $0x248] sm:$0xff] }
 0x76d   :  { %v12249_v12 = vpop.eup %12248  ;;  %4186 = vmatprep.subr.mxu0 %v16361_v55  ;;  %11219 = vmatprep.subr.mxu1 %v20764_v27 }
 0x76e   :  { %v3904_v38 = vmul.f32 %v12249_v12, %v3903_v61  ;;  %4187 = vmatpush1.msra.mxu0 %v16368_v14  ;;  %11220 = vmatpush3.msra.mxu1 %v16002_v18  ;;  %v16410_v18 = vld [vmem:[%s20420_s4 + $0x230] sm:$0xff]  ;;  %v16459_v61 = vld [vmem:[%s20420_s4 + $0x1e0] sm:$0xff]  ;;  %v16473_v12 = vld [vmem:[%s20420_s4 + $0x1c8] sm:$0xff] }
 0x76f   :  { %4188 = vmatprep.subr.mxu0 %v16381_v0  ;;  %11221 = vmatprep.subr.mxu1 %v20764_v27 }
 0x770   :  { %v3905_v43 = vadd.f32 %v3904_v38, %v20959_v41  ;;  %4189 = vmatpush1.msra.mxu0 %v16388_v30  ;;  %11222 = vmatpush3.msra.mxu1 %v16012_v37  ;;  %v16424_v37 = vld [vmem:[%s20420_s4 + $0x218] sm:$0xff]  ;;  %v16487_v38 = vld [vmem:[%s20420_s4 + $0x1b0] sm:$0xff] }
 0x771   :  { %4190 = vmatprep.subr.mxu0 %v16395_v54  ;;  %11223 = vmatprep.subr.mxu1 %v20764_v27  ;;  %v16501_v41 = vld [vmem:[%s20420_s4 + $0x198] sm:$0xff] }
 0x772   :  { %12250 = vtanh.f32 %v3905_v43  ;;  %4191 = vmatpush1.msra.mxu0 %v16402_v46  ;;  %11224 = vmatpush3.msra.mxu1 %v16021_v20  ;;  %v16438_v20 = vld [vmem:[%s20420_s4 + $0x200] sm:$0xff]  ;;  %20960 = vst [vmem:[#allocation115_spill] sm:$0xff] %v16501_v41 }
 0x773   :  { %4192 = vmatprep.subr.mxu0 %v16410_v18  ;;  %11225 = vmatprep.subr.mxu1 %v20764_v27  ;;  %12252 = vrcp.f32 %v3898_v26  ;;  %v16515_v26 = vld [vmem:[%s20420_s4 + $0x180] sm:$0xff] }
 0x774   :  { %4193 = vmatpush1.msra.mxu0 %v16417_v53  ;;  %11226 = vmatpush3.msra.mxu1 %v16031_v62  ;;  %v16452_v62 = vld [vmem:[%s20420_s4 + $0x1e8] sm:$0xff] }
 0x775   :  { %4194 = vmatprep.subr.mxu0 %v16424_v37  ;;  %11227 = vmatprep.subr.mxu1 %v20764_v27 }
 0x776   :  { %4195 = vmatpush1.msra.mxu0 %v16431_v3  ;;  %11228 = vmatpush3.msra.mxu1 %v16040_v50  ;;  %v16466_v50 = vld [vmem:[%s20420_s4 + $0x1d0] sm:$0xff] }
 0x777   :  { %4196 = vmatprep.subr.mxu0 %v16438_v20  ;;  %11229 = vmatprep.subr.mxu1 %v20764_v27 }
 0x778   :  { %4197 = vmatpush1.msra.mxu0 %v16445_v58  ;;  %11230 = vmatpush3.msra.mxu1 %v16049_v6  ;;  %v16480_v6 = vld [vmem:[%s20420_s4 + $0x1b8] sm:$0xff] }
 0x779   :  { %4198 = vmatprep.subr.mxu0 %v16452_v62  ;;  %11231 = vmatprep.subr.mxu1 %v20764_v27 }
 0x77a   :  { %4199 = vmatpush1.msra.mxu0 %v16459_v61  ;;  %11232 = vmatpush3.msra.mxu1 %v16058_v31  ;;  %v16494_v31 = vld [vmem:[%s20420_s4 + $0x1a0] sm:$0xff] }
 0x77b   :  { %4200 = vmatprep.subr.mxu0 %v16466_v50  ;;  %11233 = vmatprep.subr.mxu1 %v20764_v27 }
 0x77c   :  { %4201 = vmatpush1.msra.mxu0 %v16473_v12  ;;  %11234 = vmatpush3.msra.mxu1 %v16067_v10  ;;  %v16508_v10 = vld [vmem:[%s20420_s4 + $0x188] sm:$0xff] }
 0x77d   :  { %4202 = vmatprep.subr.mxu0 %v16480_v6  ;;  %11235 = vmatprep.subr.mxu1 %v20764_v27 }
 0x77e   :  { %4203 = vmatpush1.msra.mxu0 %v16487_v38  ;;  %11236 = vmatpush3.msra.mxu1 %v16076_v63 }
 0x77f   :  { %v12251_v43 = vpop.eup %12250  ;;  %4204 = vmatprep.subr.mxu0 %v16494_v31  ;;  %11237 = vmatprep.subr.mxu1 %v20764_v27 }
 0x780   :  { %4205 = vmatpush1.msra.mxu0 %v16501_v41  ;;  %11238 = vmatpush3.msra.mxu1 %v16085_v19  ;;  %v3907_v63 = vsub.f32 %v16106_v25, %v12251_v43  ;;  %v12253_v15 = vpop.eup %12252  ;;  %v16544_v19 = vld [vmem:[%s20420_s4 + $0x168] sm:$0xff]  ;;  %v16575_v25 = vld [vmem:[%s20420_s4 + $0x140] sm:$0xff] }
 0x781   :  { %4206 = vmatprep.subr.mxu0 %v16508_v10  ;;  %11239 = vmatprep.subr.mxu1 %v20764_v27  ;;  %20965 = vst [vmem:[#allocation12_spill] sm:$0xff] %v16575_v25 }
 0x782   :  { %4207 = vmatpush1.msra.mxu0 %v16515_v26  ;;  %4240 = vmatprep.mubr.f32.mxu0 %v20764_v27  ;;  %v3908_v33 = vmul.f32 %v12253_v15, %v3907_v63  ;;  %v16538_v15 = vld [vmem:[%s20420_s4 + $0x170] sm:$0xff]  ;;  %v16568_v63 = vld [vmem:[%s20420_s4 + $0x160] sm:$0xff] }
 0x783   :  { %11240 = vmatpush3.msra.mxu1 %v16096_v23  ;;  %11241 = vmatprep.mubr.msk.f32.mxu1 %vm12447_vm0, %v20764_v27  ;;  %v16549_v23 = vld [vmem:[%s20420_s4 + $0x178] sm:$0xff]  ;;  %20964 = vst [vmem:[#allocation117_spill] sm:$0xff] %v16568_v63 }
 0x784   :  { %v16527_v41 = vadd.f32 %v12251_v43, %v3908_v33  ;;  %11244 = vmatprep.subr.mxu1 %v20764_v27  ;;  %4391 = vmatprep.subr.mxu0 %v16538_v15  ;;  %v16556_v33 = vld [vmem:[%s20420_s4 + $0x158] sm:$0xff]  ;;  %v16563_v43 = vld [vmem:[%s20420_s4 + $0x150] sm:$0xff] }
 0x785   :  { %20962 = vst [vmem:[#allocation121_spill] sm:$0xff] %v16556_v33  ;;  %20963 = vst [vmem:[#allocation114_spill] sm:$0xff] %v16563_v43 }
 0x786   :  { %20961 = vst [vmem:[#allocation118_spill] sm:$0xff] %v16527_v41  ;;  %4241 = vmatmul.mubr.f32.vlgmr.msra.gmra.mxu0 %v16527_v41  ;;  %11242 = vmatmul.mubr.f32.vlgmr.msra.gmra.mxu1 %v16527_v41 }
 0x787   :  { %4455 = vmatprep.mubr.f32.mxu0 %v20764_v27  ;;  %11276 = vmatprep.mubr.msk.f32.mxu1 %vm12447_vm0, %v20764_v27 }
 0x788   :  { %4392 = vmatpush1.msra.mxu0 %v16544_v19  ;;  %11245 = vmatpush3.msra.mxu1 %v16549_v23 }
 0x789   :  { %4393 = vmatprep.subr.mxu0 %v16556_v33  ;;  %11246 = vmatprep.subr.mxu1 %v20764_v27  ;;  %v16582_v33 = vld [vmem:[%s20420_s4 + $0x138] sm:$0xff] }
 0x78a   :  { %4394 = vmatpush1.msra.mxu0 %v16563_v43  ;;  %11247 = vmatpush3.msra.mxu1 %v16568_v63  ;;  %v16587_v43 = vld [vmem:[%s20420_s4 + $0x148] sm:$0xff]  ;;  %v16601_v63 = vld [vmem:[%s20420_s4 + $0x130] sm:$0xff] }
 0x78b   :  { %4395 = vmatprep.subr.mxu0 %v16575_v25  ;;  %11248 = vmatprep.subr.mxu1 %v20764_v27  ;;  %20966 = vst [vmem:[#allocation13_spill] sm:$0xff] %v16587_v43  ;;  %v16594_v25 = vld [vmem:[%s20420_s4 + $0x128] sm:$0xff] }
 0x78c   :  { %4396 = vmatpush1.msra.mxu0 %v16582_v33  ;;  %11249 = vmatpush3.msra.mxu1 %v16587_v43  ;;  %v16610_v43 = vld [vmem:[%s20420_s4 + $0x118] sm:$0xff] }
 0x78d   :  { %4397 = vmatprep.subr.mxu0 %v16594_v25  ;;  %11250 = vmatprep.subr.mxu1 %v20764_v27 }
 0x78e   :  { %4398 = vmatpush1.msra.mxu0 %v16156_v57  ;;  %11251 = vmatpush3.msra.mxu1 %v16601_v63  ;;  %v16619_v57 = vld [vmem:[%s20420_s4 + $0x100] sm:$0xff] }
 0x78f   :  { %4399 = vmatprep.subr.mxu0 %v16162_v36  ;;  %11252 = vmatprep.subr.mxu1 %v20764_v27  ;;  %20967 = vst [vmem:[#allocation90_spill] sm:$0xff] %v16619_v57  ;;  %v16628_v36 = vld [vmem:[%s20420_s4 + $0xe8] sm:$0xff] }
 0x790   :  { %4400 = vmatpush1.msra.mxu0 %v16168_v21  ;;  %11253 = vmatpush3.msra.mxu1 %v16610_v43  ;;  %20968 = vst [vmem:[#allocation24_spill] sm:$0xff] %v16628_v36  ;;  %v16637_v21 = vld [vmem:[%s20420_s4 + $0xd0] sm:$0xff] }
 0x791   :  { %4401 = vmatprep.subr.mxu0 %v16174_v40  ;;  %11254 = vmatprep.subr.mxu1 %v20764_v27  ;;  %20969 = vst [vmem:[#allocation91_spill] sm:$0xff] %v16637_v21  ;;  %v16646_v40 = vld [vmem:[%s20420_s4 + $0xb8] sm:$0xff] }
 0x792   :  { %4402 = vmatpush1.msra.mxu0 %v16180_v17  ;;  %11255 = vmatpush3.msra.mxu1 %v16619_v57  ;;  %20970 = vst [vmem:[#allocation74_spill] sm:$0xff] %v16646_v40  ;;  %v16655_v17 = vld [vmem:[%s20420_s4 + $0xa0] sm:$0xff] }
 0x793   :  { %4403 = vmatprep.subr.mxu0 %v16186_v34  ;;  %11256 = vmatprep.subr.mxu1 %v20764_v27  ;;  %20971 = vst [vmem:[#allocation15_spill] sm:$0xff] %v16655_v17  ;;  %v16664_v34 = vld [vmem:[%s20420_s4 + $0x88] sm:$0xff] }
 0x794   :  { %4404 = vmatpush1.msra.mxu0 %v16192_v60  ;;  %11257 = vmatpush3.msra.mxu1 %v16628_v36  ;;  %20972 = vst [vmem:[#allocation16_spill] sm:$0xff] %v16664_v34  ;;  %v16673_v60 = vld [vmem:[%s20420_s4 + $0x60] sm:$0xff]  ;;  %v20988_v36 = vld [vmem:[#allocation27_spill] sm:$0xff] }
 0x795   :  { %4405 = vmatprep.subr.mxu0 %v16198_v45  ;;  %11258 = vmatprep.subr.mxu1 %v20764_v27  ;;  %20973 = vst [vmem:[#allocation120_spill] sm:$0xff] %v16673_v60  ;;  %v16678_v45 = vld [vmem:[%s20420_s4 + $0x70] sm:$0xff] }
 0x796   :  { %4406 = vmatpush1.msra.mxu0 %v16204_v52  ;;  %11259 = vmatpush3.msra.mxu1 %v16637_v21  ;;  %20974 = vst [vmem:[#allocation88_spill] sm:$0xff] %v16678_v45  ;;  %v16687_v52 = vld [vmem:[%s20420_s4 + $0x58] sm:$0xff]  ;;  %v20987_v21 = vld [vmem:[#allocation83_spill] sm:$0xff] }
 0x797   :  { %4407 = vmatprep.subr.mxu0 %v16210_v24  ;;  %11260 = vmatprep.subr.mxu1 %v20764_v27  ;;  %20975 = vst [vmem:[#allocation22_spill] sm:$0xff] %v16687_v52  ;;  %v16696_v24 = vld [vmem:[%s20420_s4 + $0x30] sm:$0xff] }
 0x798   :  { %4408 = vmatpush1.msra.mxu0 %v16216_v16  ;;  %11261 = vmatpush3.msra.mxu1 %v16646_v40  ;;  %20976 = vst [vmem:[#allocation89_spill] sm:$0xff] %v16696_v24  ;;  %v16701_v16 = vld [vmem:[%s20420_s4 + $0x40] sm:$0xff] }
 0x799   :  { %4409 = vmatprep.subr.mxu0 %v16222_v59  ;;  %11262 = vmatprep.subr.mxu1 %v20764_v27  ;;  %20977 = vst [vmem:[#allocation75_spill] sm:$0xff] %v16701_v16  ;;  %v16708_v59 = vld [vmem:[%s20420_s4 + $0x20] sm:$0xff] }
 0x79a   :  { %4410 = vmatpush1.msra.mxu0 %v16228_v35  ;;  %11263 = vmatpush3.msra.mxu1 %v16655_v17  ;;  %20978 = vst [vmem:[#allocation99_spill] sm:$0xff] %v16708_v59  ;;  %v16715_v35 = vld [vmem:[%s20420_s4 + $0x18] sm:$0xff]  ;;  %v20986_v40 = vld [vmem:[#allocation98_spill] sm:$0xff] }
 0x79b   :  { %4411 = vmatprep.subr.mxu0 %v16234_v9  ;;  %11264 = vmatprep.subr.mxu1 %v20764_v27  ;;  %20979 = vst [vmem:[#allocation94_spill] sm:$0xff] %v16715_v35  ;;  %v16720_v9 = vld [vmem:[%s20420_s4 + $0x28] sm:$0xff] }
 0x79c   :  { %4412 = vmatpush1.msra.mxu0 %v16240_v8  ;;  %11265 = vmatpush3.msra.mxu1 %v16664_v34  ;;  %20980 = vst [vmem:[#allocation19_spill] sm:$0xff] %v16720_v9  ;;  %v16727_v8 = vld [vmem:[%s20420_s4 + $0x8] sm:$0xff] }
 0x79d   :  { %4413 = vmatprep.subr.mxu0 %v16246_v56  ;;  %11266 = vmatprep.subr.mxu1 %v20764_v27  ;;  %20981 = vst [vmem:[#allocation95_spill] sm:$0xff] %v16727_v8  ;;  %v16734_v56 = vld [vmem:[%s20420_s4] sm:$0xff] }
 0x79e   :  { %4414 = vmatpush1.msra.mxu0 %v16673_v60  ;;  %11267 = vmatpush3.msra.mxu1 %v16678_v45  ;;  %20982 = vst [vmem:[#allocation78_spill] sm:$0xff] %v16734_v56 }
 0x79f   :  { %4415 = vmatprep.subr.mxu0 %v16253_v4  ;;  %11268 = vmatprep.subr.mxu1 %v20764_v27  ;;  %v16739_v4 = vld [vmem:[%s20420_s4 + $0x10] sm:$0xff] }
 0x7a0   :  { %4416 = vmatpush1.msra.mxu0 %v16259_v39  ;;  %11269 = vmatpush3.msra.mxu1 %v16687_v52  ;;  %20983 = vst [vmem:[#allocation9_spill] sm:$0xff] %v16739_v4 }
 0x7a1   :  { %4417 = vmatprep.subr.mxu0 %v16265_v22  ;;  %11270 = vmatprep.subr.mxu1 %v20764_v27 }
 0x7a2   :  { %4418 = vmatpush1.msra.mxu0 %v16696_v24  ;;  %11271 = vmatpush3.msra.mxu1 %v16701_v16 }
 0x7a3   :  { %4419 = vmatprep.subr.mxu0 %v16708_v59  ;;  %11272 = vmatprep.subr.mxu1 %v20764_v27 }
 0x7a4   :  { %4420 = vmatpush1.msra.mxu0 %v16715_v35  ;;  %11273 = vmatpush3.msra.mxu1 %v16720_v9  ;;  %v20985_v9 = vld [vmem:[#allocation23_spill] sm:$0xff] }
 0x7a5   :  { %4421 = vmatprep.subr.mxu0 %v16727_v8  ;;  %11274 = vmatprep.subr.mxu1 %v20764_v27  ;;  %v20984_v8 = vld [vmem:[#allocation21_spill] sm:$0xff]  ;;  %v233_v16 = vadd.f32 %v20985_v9, %v20885_v5 }
 0x7a6   :  { %4422 = vmatpush1.msra.mxu0 %v16734_v56  ;;  %11275 = vmatpush3.msra.mxu1 %v16739_v4 }
 0x7a7   :  { %4604 = vmatprep.subr.mxu0 %v16276_v47  ;;  %11279 = vmatprep.subr.mxu1 %v20764_v27 }
 0x823   :  { %v4029_v39 = vpop.f32.mrf.mxu0  ;;  %v4100_v22 = vpop.f32.mrf.mxu1 }
 0x824   :  { %v4104_v35 = vadd.f32 %v4029_v39, %v20984_v8  ;;  %v4118_v4 = vadd.f32 %v16285_v13, %v4100_v22  ;;  %v658_v8 = vadd.f32 %v20987_v21, %v20986_v40 }
 0x825   :  { %v11208_v59 = vpop.f32.mrf.mxu1  ;;  %v4031_v60 = vpop.f32.mrf.mxu0 }
 0x826   :  { %v9297_v24 = vmul.f32 -1.442695, %v4104_v35  ;;  %v4105_v52 = vadd.f32 %v4031_v60, %v233_v16 }
 0x828   :  { %12254 = vpow2.f32 %v9297_v24  ;;  %v9298_v45 = vmul.f32 -1.442695, %v4105_v52 }
 0x82a   :  { %12256 = vpow2.f32 %v9298_v45  ;;  %v20989_v45 = vld [vmem:[#allocation84_spill] sm:$0xff] }
 0x82b   :  { %v660_v16 = vadd.f32 %v20989_v45, %v13897_v42  ;;  %v16969_v45 = vld [vmem:[%s20420_s4 + $0x108] sm:$0xff] }
 0x835   :  { %v12255_v56 = vpop.eup %12254 }
 0x836   :  { %v4112_v34 = vadd.f32 1.0, %v12255_v56 }
 0x837   :  { %v12257_v47 = vpop.eup %12256 }
 0x838   :  { %12258 = vrcp.f32 %v4112_v34  ;;  %v4113_v9 = vadd.f32 1.0, %v12257_v47 }
 0x845   :  { %v12259_v17 = vpop.eup %12258 }
 0x846   :  { %v4119_v59 = vmul.f32 %v12259_v17, %v4118_v4  ;;  %v4242_v35 = vpop.f32.mrf.mxu0  ;;  %v4313_v24 = vpop.f32.mrf.mxu1 }
 0x847   :  { %v4317_v39 = vadd.f32 %v4242_v35, %v658_v8 }
 0x848   :  { %v4120_v57 = vadd.f32 %v4119_v59, %v20988_v36  ;;  %v11243_v60 = vpop.f32.mrf.mxu1  ;;  %v4244_v34 = vpop.f32.mrf.mxu0  ;;  %v16767_v59 = vld [vmem:[%s20420_s4 + $0x2e0] sm:$0xff] }
 0x849   :  { %v9347_v52 = vmul.f32 -1.442695, %v4317_v39  ;;  %v4318_v56 = vadd.f32 %v4244_v34, %v660_v16  ;;  %v21007_v39 = vld [vmem:[#allocation75_spill] sm:$0xff]  ;;  %v21009_v60 = vld [vmem:[#allocation9_spill] sm:$0xff]  ;;  %v16963_v34 = vld [vmem:[%s20420_s4 + $0x110] sm:$0xff] }
 0x84a   :  { %12260 = vtanh.f32 %v4120_v57  ;;  %v16760_v57 = vld [vmem:[%s20420_s4 + $0x2f8] sm:$0xff] }
 0x84b   :  { %12262 = vpow2.f32 %v9347_v52  ;;  %v9348_v22 = vmul.f32 -1.442695, %v4318_v56  ;;  %v16957_v52 = vld [vmem:[%s20420_s4 + $0x120] sm:$0xff]  ;;  %v16975_v16 = vld [vmem:[%s20420_s4 + $0xf8] sm:$0xff]  ;;  %v16981_v56 = vld [vmem:[%s20420_s4 + $0xf0] sm:$0xff] }
 0x84c   :  { %12264 = vrcp.f32 %v4113_v9  ;;  %v21008_v9 = vld [vmem:[#allocation19_spill] sm:$0xff] }
 0x84d   :  { %12266 = vpow2.f32 %v9348_v22  ;;  %v16987_v22 = vld [vmem:[%s20420_s4 + $0xe0] sm:$0xff] }
 0x857   :  { %v12261_v13 = vpop.eup %12260 }
 0x858   :  { %v12263_v21 = vpop.eup %12262  ;;  %v4122_v17 = vsub.f32 %v16295_v1, %v12261_v13 }
 0x859   :  { %v12265_v4 = vpop.eup %12264  ;;  %v4325_v8 = vadd.f32 1.0, %v12263_v21  ;;  %v16993_v21 = vld [vmem:[%s20420_s4 + $0xd8] sm:$0xff] }
 0x85a   :  { %v4123_v36 = vmul.f32 %v12265_v4, %v4122_v17  ;;  %v16999_v17 = vld [vmem:[%s20420_s4 + $0xc8] sm:$0xff]  ;;  %v17005_v4 = vld [vmem:[%s20420_s4 + $0xc0] sm:$0xff] }
 0x85b   :  { %12268 = vrcp.f32 %v4325_v8  ;;  %v17011_v8 = vld [vmem:[%s20420_s4 + $0xb0] sm:$0xff] }
 0x85c   :  { %v16755_v47 = vadd.f32 %v12261_v13, %v4123_v36  ;;  %v16776_v13 = vld [vmem:[%s20420_s4 + $0x2c8] sm:$0xff] }
 0x85d   :  { %v17017_v36 = vld [vmem:[%s20420_s4 + $0xa8] sm:$0xff] }
 0x85e   :  { %20990 = vst [vmem:[#allocation10_spill] sm:$0xff] %v16755_v47  ;;  %4456 = vmatmul.mubr.f32.vlgmr.msra.gmra.mxu0 %v16755_v47  ;;  %11277 = vmatmul.mubr.f32.vlgmr.msra.gmra.mxu1 %v16755_v47 }
 0x85f   :  { %4605 = vmatpush1.msra.mxu0 %v16300_v29  ;;  %11280 = vmatpush3.msra.mxu1 %v16760_v57  ;;  %v16785_v29 = vld [vmem:[%s20420_s4 + $0x2b0] sm:$0xff] }
 0x860   :  { %4606 = vmatprep.subr.mxu0 %v16305_v7  ;;  %11281 = vmatprep.subr.mxu1 %v20764_v27  ;;  %v16794_v7 = vld [vmem:[%s20420_s4 + $0x298] sm:$0xff] }
 0x861   :  { %4607 = vmatpush1.msra.mxu0 %v16312_v51  ;;  %11282 = vmatpush3.msra.mxu1 %v16767_v59  ;;  %v16803_v51 = vld [vmem:[%s20420_s4 + $0x280] sm:$0xff] }
 0x862   :  { %4608 = vmatprep.subr.mxu0 %v16319_v2  ;;  %11283 = vmatprep.subr.mxu1 %v20764_v27  ;;  %v12267_v2 = vpop.eup %12266 }
 0x863   :  { %4609 = vmatpush1.msra.mxu0 %v16326_v49  ;;  %11284 = vmatpush3.msra.mxu1 %v16776_v13  ;;  %v4331_v49 = vadd.f32 %v16373_v28, %v4313_v24  ;;  %v4326_v24 = vadd.f32 1.0, %v12267_v2  ;;  %v17023_v2 = vld [vmem:[%s20420_s4 + $0x98] sm:$0xff] }
 0x864   :  { %4610 = vmatprep.subr.mxu0 %v16333_v32  ;;  %11285 = vmatprep.subr.mxu1 %v20764_v27 }
 0x865   :  { %4611 = vmatpush1.msra.mxu0 %v16340_v48  ;;  %11286 = vmatpush3.msra.mxu1 %v16785_v29  ;;  %v16813_v48 = vld [vmem:[%s20420_s4 + $0x268] sm:$0xff] }
 0x866   :  { %4612 = vmatprep.subr.mxu0 %v16347_v11  ;;  %11287 = vmatprep.subr.mxu1 %v20764_v27 }
 0x867   :  { %4613 = vmatpush1.msra.mxu0 %v16354_v44  ;;  %11288 = vmatpush3.msra.mxu1 %v16794_v7  ;;  %v16822_v44 = vld [vmem:[%s20420_s4 + $0x250] sm:$0xff] }
 0x868   :  { %v12269_v32 = vpop.eup %12268  ;;  %4614 = vmatprep.subr.mxu0 %v16361_v55  ;;  %11289 = vmatprep.subr.mxu1 %v20764_v27  ;;  %v20991_v55 = vld [vmem:[#allocation71_spill] sm:$0xff] }
 0x869   :  { %v4332_v11 = vmul.f32 %v12269_v32, %v4331_v49  ;;  %4615 = vmatpush1.msra.mxu0 %v16368_v14  ;;  %11290 = vmatpush3.msra.mxu1 %v16803_v51  ;;  %v16832_v14 = vld [vmem:[%s20420_s4 + $0x238] sm:$0xff]  ;;  %v17029_v49 = vld [vmem:[%s20420_s4 + $0x90] sm:$0xff]  ;;  %v17035_v32 = vld [vmem:[%s20420_s4 + $0x80] sm:$0xff] }
 0x86a   :  { %4616 = vmatprep.subr.mxu0 %v16381_v0  ;;  %11291 = vmatprep.subr.mxu1 %v20764_v27  ;;  %v16841_v0 = vld [vmem:[%s20420_s4 + $0x220] sm:$0xff] }
 0x86b   :  { %v4333_v35 = vadd.f32 %v4332_v11, %v20991_v55  ;;  %4617 = vmatpush1.msra.mxu0 %v16388_v30  ;;  %11292 = vmatpush3.msra.mxu1 %v16813_v48  ;;  %v16850_v30 = vld [vmem:[%s20420_s4 + $0x208] sm:$0xff]  ;;  %v17041_v11 = vld [vmem:[%s20420_s4 + $0x78] sm:$0xff] }
 0x86c   :  { %4618 = vmatprep.subr.mxu0 %v16395_v54  ;;  %11293 = vmatprep.subr.mxu1 %v20764_v27  ;;  %v16859_v54 = vld [vmem:[%s20420_s4 + $0x1f0] sm:$0xff]  ;;  %v17047_v55 = vld [vmem:[%s20420_s4 + $0x68] sm:$0xff] }
 0x86d   :  { %12270 = vtanh.f32 %v4333_v35  ;;  %4619 = vmatpush1.msra.mxu0 %v16402_v46  ;;  %11294 = vmatpush3.msra.mxu1 %v16822_v44  ;;  %v16868_v46 = vld [vmem:[%s20420_s4 + $0x1d8] sm:$0xff]  ;;  %v21010_v35 = vld [vmem:[#allocation120_spill] sm:$0xff] }
 0x86e   :  { %4620 = vmatprep.subr.mxu0 %v16410_v18  ;;  %11295 = vmatprep.subr.mxu1 %v20764_v27  ;;  %12272 = vrcp.f32 %v4326_v24  ;;  %v16877_v18 = vld [vmem:[%s20420_s4 + $0x1c0] sm:$0xff]  ;;  %v17054_v24 = vld [vmem:[%s20420_s4 + $0x50] sm:$0xff] }
 0x86f   :  { %4621 = vmatpush1.msra.mxu0 %v16417_v53  ;;  %11296 = vmatpush3.msra.mxu1 %v16832_v14  ;;  %v16886_v53 = vld [vmem:[%s20420_s4 + $0x1a8] sm:$0xff] }
 0x870   :  { %4622 = vmatprep.subr.mxu0 %v16424_v37  ;;  %11297 = vmatprep.subr.mxu1 %v20764_v27 }
 0x871   :  { %4623 = vmatpush1.msra.mxu0 %v16431_v3  ;;  %11298 = vmatpush3.msra.mxu1 %v16841_v0  ;;  %v20992_v3 = vld [vmem:[#allocation115_spill] sm:$0xff] }
 0x872   :  { %4624 = vmatprep.subr.mxu0 %v16438_v20  ;;  %11299 = vmatprep.subr.mxu1 %v20764_v27  ;;  %v16897_v20 = vld [vmem:[%s20420_s4 + $0x190] sm:$0xff] }
 0x873   :  { %4625 = vmatpush1.msra.mxu0 %v16445_v58  ;;  %11300 = vmatpush3.msra.mxu1 %v16850_v30 }
 0x874   :  { %4626 = vmatprep.subr.mxu0 %v16452_v62  ;;  %11301 = vmatprep.subr.mxu1 %v20764_v27 }
 0x875   :  { %4627 = vmatpush1.msra.mxu0 %v16459_v61  ;;  %11302 = vmatpush3.msra.mxu1 %v16859_v54 }
 0x876   :  { %4628 = vmatprep.subr.mxu0 %v16466_v50  ;;  %11303 = vmatprep.subr.mxu1 %v20764_v27 }
 0x877   :  { %4629 = vmatpush1.msra.mxu0 %v16473_v12  ;;  %11304 = vmatpush3.msra.mxu1 %v16868_v46  ;;  %v20994_v12 = vld [vmem:[#allocation121_spill] sm:$0xff] }
 0x878   :  { %4630 = vmatprep.subr.mxu0 %v16480_v6  ;;  %11305 = vmatprep.subr.mxu1 %v20764_v27  ;;  %v20995_v6 = vld [vmem:[#allocation114_spill] sm:$0xff] }
 0x879   :  { %4631 = vmatpush1.msra.mxu0 %v16487_v38  ;;  %11306 = vmatpush3.msra.mxu1 %v16877_v18  ;;  %v20996_v38 = vld [vmem:[#allocation117_spill] sm:$0xff] }
 0x87a   :  { %v12271_v37 = vpop.eup %12270  ;;  %4632 = vmatprep.subr.mxu0 %v16494_v31  ;;  %11307 = vmatprep.subr.mxu1 %v20764_v27  ;;  %v20997_v31 = vld [vmem:[#allocation12_spill] sm:$0xff] }
 0x87b   :  { %4633 = vmatpush1.msra.mxu0 %v20992_v3  ;;  %11308 = vmatpush3.msra.mxu1 %v16886_v53  ;;  %v4335_v58 = vsub.f32 %v16527_v41, %v12271_v37  ;;  %v12273_v62 = vpop.eup %12272  ;;  %v17066_v3 = vld [vmem:[%s20420_s4 + $0x38] sm:$0xff] }
 0x87c   :  { %4634 = vmatprep.subr.mxu0 %v16508_v10  ;;  %11309 = vmatprep.subr.mxu1 %v20764_v27  ;;  %v20998_v10 = vld [vmem:[#allocation13_spill] sm:$0xff] }
 0x87d   :  { %4635 = vmatpush1.msra.mxu0 %v16515_v26  ;;  %4668 = vmatprep.mubr.f32.mxu0 %v20764_v27  ;;  %v4336_v61 = vmul.f32 %v12273_v62, %v4335_v58  ;;  %v20999_v26 = vld [vmem:[#allocation90_spill] sm:$0xff]  ;;  %v21011_v58 = vld [vmem:[#allocation89_spill] sm:$0xff]  ;;  %v21012_v62 = vld [vmem:[#allocation99_spill] sm:$0xff] }
 0x87e   :  { %11310 = vmatpush3.msra.mxu1 %v16897_v20  ;;  %11311 = vmatprep.mubr.msk.f32.mxu1 %vm12447_vm0, %v20764_v27 }
 0x87f   :  { %v16907_v50 = vadd.f32 %v12271_v37, %v4336_v61  ;;  %4819 = vmatprep.subr.mxu0 %v16538_v15  ;;  %11314 = vmatprep.subr.mxu1 %v20764_v27  ;;  %v21001_v15 = vld [vmem:[#allocation91_spill] sm:$0xff]  ;;  %v21013_v61 = vld [vmem:[#allocation94_spill] sm:$0xff] }
 0x880   :  { %v17060_v37 = vld [vmem:[%s20420_s4 + $0x48] sm:$0xff] }
 0x881   :  { %20993 = vst [vmem:[#allocation92_spill] sm:$0xff] %v16907_v50  ;;  %4669 = vmatmul.mubr.f32.vlgmr.msra.gmra.mxu0 %v16907_v50  ;;  %11312 = vmatmul.mubr.f32.vlgmr.msra.gmra.mxu1 %v16907_v50 }
 0x882   :  { %4820 = vmatpush1.msra.mxu0 %v16544_v19  ;;  %11315 = vmatpush3.msra.mxu1 %v16549_v23  ;;  %v21002_v19 = vld [vmem:[#allocation74_spill] sm:$0xff]  ;;  %v21003_v23 = vld [vmem:[#allocation15_spill] sm:$0xff] }
 0x883   :  { %4821 = vmatprep.subr.mxu0 %v20994_v12  ;;  %11316 = vmatprep.subr.mxu1 %v20764_v27  ;;  %v21014_v12 = vld [vmem:[#allocation95_spill] sm:$0xff] }
 0x884   :  { %4822 = vmatpush1.msra.mxu0 %v20995_v6  ;;  %11317 = vmatpush3.msra.mxu1 %v20996_v38  ;;  %v21015_v6 = vld [vmem:[#allocation78_spill] sm:$0xff]  ;;  %v17077_v38 = vld [vmem:[%s20420_s4 + $0x2f0] sm:$0xff] }
 0x885   :  { %4823 = vmatprep.subr.mxu0 %v20997_v31  ;;  %11318 = vmatprep.subr.mxu1 %v20764_v27 }
 0x886   :  { %4824 = vmatpush1.msra.mxu0 %v16582_v33  ;;  %11319 = vmatpush3.msra.mxu1 %v20998_v10  ;;  %v21004_v33 = vld [vmem:[#allocation16_spill] sm:$0xff] }
 0x887   :  { %4825 = vmatprep.subr.mxu0 %v16594_v25  ;;  %11320 = vmatprep.subr.mxu1 %v20764_v27  ;;  %v21000_v25 = vld [vmem:[#allocation24_spill] sm:$0xff] }
 0x888   :  { %11321 = vmatpush3.msra.mxu1 %v16601_v63  ;;  %4883 = vmatprep.mubr.f32.mxu0 %v20764_v27  ;;  %v21006_v63 = vld [vmem:[#allocation22_spill] sm:$0xff] }
 0x889   :  { %11322 = vmatprep.subr.mxu1 %v20764_v27  ;;  %11346 = vmatprep.mubr.msk.f32.mxu1 %vm12447_vm0, %v20764_v27 }
 0x88a   :  { %11323 = vmatpush3.msra.mxu1 %v16610_v43  ;;  %v21005_v43 = vld [vmem:[#allocation88_spill] sm:$0xff]  ;;  %4826 = vmatpush1.msra.mxu0 %v16957_v52 }
 0x88b   :  { %11324 = vmatprep.subr.mxu1 %v20764_v27  ;;  %4827 = vmatprep.subr.mxu0 %v16963_v34 }
 0x88c   :  { %11325 = vmatpush3.msra.mxu1 %v20999_v26  ;;  %4828 = vmatpush1.msra.mxu0 %v16969_v45  ;;  %v21016_v26 = vld [vmem:[#allocation25_spill] sm:$0xff] }
 0x88d   :  { %11326 = vmatprep.subr.mxu1 %v20764_v27  ;;  %4829 = vmatprep.subr.mxu0 %v16975_v16 }
 0x88e   :  { %11327 = vmatpush3.msra.mxu1 %v21000_v25  ;;  %4830 = vmatpush1.msra.mxu0 %v16981_v56 }
 0x88f   :  { %11328 = vmatprep.subr.mxu1 %v20764_v27  ;;  %4831 = vmatprep.subr.mxu0 %v16987_v22 }
 0x890   :  { %11329 = vmatpush3.msra.mxu1 %v21001_v15  ;;  %4832 = vmatpush1.msra.mxu0 %v16993_v21 }
 0x891   :  { %11330 = vmatprep.subr.mxu1 %v20764_v27  ;;  %4833 = vmatprep.subr.mxu0 %v16999_v17 }
 0x892   :  { %11331 = vmatpush3.msra.mxu1 %v21002_v19  ;;  %4834 = vmatpush1.msra.mxu0 %v17005_v4 }
 0x893   :  { %11332 = vmatprep.subr.mxu1 %v20764_v27  ;;  %4835 = vmatprep.subr.mxu0 %v17011_v8 }
 0x894   :  { %11333 = vmatpush3.msra.mxu1 %v21003_v23  ;;  %4836 = vmatpush1.msra.mxu0 %v17017_v36 }
 0x895   :  { %11334 = vmatprep.subr.mxu1 %v20764_v27  ;;  %4837 = vmatprep.subr.mxu0 %v17023_v2 }
 0x896   :  { %11335 = vmatpush3.msra.mxu1 %v21004_v33  ;;  %4838 = vmatpush1.msra.mxu0 %v17029_v49  ;;  %v21017_v33 = vld [vmem:[#allocation26_spill] sm:$0xff] }
 0x897   :  { %11336 = vmatprep.subr.mxu1 %v20764_v27  ;;  %4839 = vmatprep.subr.mxu0 %v17035_v32 }
 0x898   :  { %11337 = vmatpush3.msra.mxu1 %v21005_v43  ;;  %4840 = vmatpush1.msra.mxu0 %v17041_v11  ;;  %v239_v43 = vadd.f32 %v21017_v33, %v20885_v5 }
 0x899   :  { %11338 = vmatprep.subr.mxu1 %v20764_v27  ;;  %4841 = vmatprep.subr.mxu0 %v17047_v55 }
 0x89a   :  { %11339 = vmatpush3.msra.mxu1 %v21006_v63  ;;  %4842 = vmatpush1.msra.mxu0 %v21010_v35 }
 0x89b   :  { %11340 = vmatprep.subr.mxu1 %v20764_v27  ;;  %4843 = vmatprep.subr.mxu0 %v17054_v24 }
 0x89c   :  { %11341 = vmatpush3.msra.mxu1 %v21007_v39  ;;  %4844 = vmatpush1.msra.mxu0 %v17060_v37 }
 0x89d   :  { %11342 = vmatprep.subr.mxu1 %v20764_v27  ;;  %4845 = vmatprep.subr.mxu0 %v17066_v3 }
 0x89e   :  { %11343 = vmatpush3.msra.mxu1 %v21008_v9  ;;  %4846 = vmatpush1.msra.mxu0 %v21011_v58  ;;  %v21018_v58 = vld [vmem:[#allocation119_spill] sm:$0xff] }
 0x89f   :  { %11344 = vmatprep.subr.mxu1 %v20764_v27  ;;  %4847 = vmatprep.subr.mxu0 %v21012_v62 }
 0x8a0   :  { %11345 = vmatpush3.msra.mxu1 %v21009_v60  ;;  %4848 = vmatpush1.msra.mxu0 %v21013_v61 }
 0x8a1   :  { %11349 = vmatprep.subr.mxu1 %v20764_v27  ;;  %4849 = vmatprep.subr.mxu0 %v21014_v12  ;;  %v21019_v12 = vld [vmem:[#allocation80_spill] sm:$0xff] }
 0x8a2   :  { %4850 = vmatpush1.msra.mxu0 %v21015_v6  ;;  %v652_v6 = vadd.f32 %v21019_v12, %v20986_v40 }
 0x8a3   :  { %5032 = vmatprep.subr.mxu0 %v17077_v38 }
 0x91e   :  { %v4457_v31 = vpop.f32.mrf.mxu0  ;;  %v4528_v10 = vpop.f32.mrf.mxu1 }
 0x91f   :  { %v4532_v25 = vadd.f32 %v4457_v31, %v21016_v26  ;;  %v4546_v62 = vadd.f32 %v21018_v58, %v4528_v10  ;;  %v21020_v31 = vld [vmem:[#allocation11_spill] sm:$0xff]  ;;  %v21021_v26 = vld [vmem:[#allocation33_spill] sm:$0xff] }
 0x920   :  { %v11278_v15 = vpop.f32.mrf.mxu1  ;;  %v4459_v23 = vpop.f32.mrf.mxu0  ;;  %v21022_v10 = vld [vmem:[#allocation81_spill] sm:$0xff] }
 0x921   :  { %v9349_v19 = vmul.f32 -1.442695, %v4532_v25  ;;  %v4533_v63 = vadd.f32 %v4459_v23, %v239_v43  ;;  %v390_v25 = vadd.f32 %v21021_v26, %v21020_v31  ;;  %v17373_v31 = vld [vmem:[%s20420_s4 + $0x138] sm:$0xff] }
 0x923   :  { %12274 = vpow2.f32 %v9349_v19  ;;  %v9350_v39 = vmul.f32 -1.442695, %v4533_v63 }
 0x925   :  { %12276 = vpow2.f32 %v9350_v39 }
 0x930   :  { %v12275_v9 = vpop.eup %12274 }
 0x931   :  { %v4540_v60 = vadd.f32 1.0, %v12275_v9 }
 0x932   :  { %v12277_v35 = vpop.eup %12276 }
 0x933   :  { %12278 = vrcp.f32 %v4540_v60  ;;  %v4541_v43 = vadd.f32 1.0, %v12277_v35  ;;  %v654_v60 = vadd.f32 %v21022_v10, %v13897_v42  ;;  %v17179_v10 = vld [vmem:[%s20420_s4 + $0x258] sm:$0xff] }
 0x940   :  { %v12279_v61 = vpop.eup %12278 }
 0x941   :  { %v4547_v15 = vmul.f32 %v12279_v61, %v4546_v62  ;;  %v4670_v19 = vpop.f32.mrf.mxu0  ;;  %v4741_v41 = vpop.f32.mrf.mxu1 }
 0x942   :  { %v4745_v33 = vadd.f32 %v4670_v19, %v652_v6  ;;  %v17122_v19 = vld [vmem:[%s20420_s4 + $0x2b8] sm:$0xff] }
 0x943   :  { %v4548_v23 = vadd.f32 %v4547_v15, %v390_v25  ;;  %v11313_v63 = vpop.f32.mrf.mxu1  ;;  %v4672_v39 = vpop.f32.mrf.mxu0  ;;  %v17096_v25 = vld [vmem:[%s20420_s4 + $0x2e8] sm:$0xff]  ;;  %v17101_v15 = vld [vmem:[%s20420_s4 + $0x2d8] sm:$0xff] }
 0x944   :  { %v9399_v9 = vmul.f32 -1.442695, %v4745_v33  ;;  %v4746_v58 = vadd.f32 %v4672_v39, %v654_v60  ;;  %v17136_v33 = vld [vmem:[%s20420_s4 + $0x2a0] sm:$0xff] }
 0x945   :  { %12280 = vtanh.f32 %v4548_v23  ;;  %v17150_v23 = vld [vmem:[%s20420_s4 + $0x288] sm:$0xff]  ;;  %v21024_v60 = vld [vmem:[#allocation66_spill] sm:$0xff] }
 0x946   :  { %12282 = vpow2.f32 %v9399_v9  ;;  %v9400_v12 = vmul.f32 -1.442695, %v4746_v58  ;;  %v4759_v9 = vadd.f32 %v16373_v28, %v4741_v41  ;;  %v17186_v41 = vld [vmem:[%s20420_s4 + $0x248] sm:$0xff] }
 0x947   :  { %12284 = vrcp.f32 %v4541_v43  ;;  %v17164_v43 = vld [vmem:[%s20420_s4 + $0x270] sm:$0xff] }
 0x948   :  { %12286 = vpow2.f32 %v9400_v12 }
 0x952   :  { %v12281_v1 = vpop.eup %12280 }
 0x953   :  { %v12283_v40 = vpop.eup %12282  ;;  %v4550_v62 = vsub.f32 %v16755_v47, %v12281_v1 }
 0x954   :  { %v12285_v61 = vpop.eup %12284  ;;  %v4753_v26 = vadd.f32 1.0, %v12283_v40  ;;  %v17108_v40 = vld [vmem:[%s20420_s4 + $0x2d0] sm:$0xff] }
 0x955   :  { %v4551_v6 = vmul.f32 %v12285_v61, %v4550_v62  ;;  %v12287_v63 = vpop.eup %12286  ;;  %v17208_v62 = vld [vmem:[%s20420_s4 + $0x228] sm:$0xff]  ;;  %v17222_v61 = vld [vmem:[%s20420_s4 + $0x210] sm:$0xff] }
 0x956   :  { %12288 = vrcp.f32 %v4753_v26  ;;  %v4754_v12 = vadd.f32 1.0, %v12287_v63  ;;  %v17236_v26 = vld [vmem:[%s20420_s4 + $0x1f8] sm:$0xff]  ;;  %v17264_v63 = vld [vmem:[%s20420_s4 + $0x1c8] sm:$0xff] }
 0x957   :  { %v17091_v35 = vadd.f32 %v12281_v1, %v4551_v6  ;;  %v17115_v1 = vld [vmem:[%s20420_s4 + $0x2c0] sm:$0xff] }
 0x958   :  { %v17250_v6 = vld [vmem:[%s20420_s4 + $0x1e0] sm:$0xff] }
 0x959   :  { %21023 = vst [vmem:[#allocation17_spill] sm:$0xff] %v17091_v35  ;;  %4884 = vmatmul.mubr.f32.vlgmr.msra.gmra.mxu0 %v17091_v35  ;;  %11347 = vmatmul.mubr.f32.vlgmr.msra.gmra.mxu1 %v17091_v35 }
 0x95a   :  { %5033 = vmatpush1.msra.mxu0 %v17096_v25  ;;  %11350 = vmatpush3.msra.mxu1 %v16760_v57  ;;  %v17129_v57 = vld [vmem:[%s20420_s4 + $0x2a8] sm:$0xff] }
 0x95b   :  { %5034 = vmatprep.subr.mxu0 %v17101_v15  ;;  %11351 = vmatprep.subr.mxu1 %v20764_v27 }
 0x95c   :  { %5035 = vmatpush1.msra.mxu0 %v17108_v40  ;;  %11352 = vmatpush3.msra.mxu1 %v16767_v59  ;;  %v17143_v59 = vld [vmem:[%s20420_s4 + $0x290] sm:$0xff] }
 0x95d   :  { %5036 = vmatprep.subr.mxu0 %v17115_v1  ;;  %11353 = vmatprep.subr.mxu1 %v20764_v27 }
 0x95e   :  { %5037 = vmatpush1.msra.mxu0 %v17122_v19  ;;  %11354 = vmatpush3.msra.mxu1 %v16776_v13  ;;  %v17157_v13 = vld [vmem:[%s20420_s4 + $0x278] sm:$0xff] }
 0x95f   :  { %5038 = vmatprep.subr.mxu0 %v17129_v57  ;;  %11355 = vmatprep.subr.mxu1 %v20764_v27 }
 0x960   :  { %5039 = vmatpush1.msra.mxu0 %v17136_v33  ;;  %11356 = vmatpush3.msra.mxu1 %v16785_v29  ;;  %v17172_v29 = vld [vmem:[%s20420_s4 + $0x260] sm:$0xff] }
 0x961   :  { %5040 = vmatprep.subr.mxu0 %v17143_v59  ;;  %11357 = vmatprep.subr.mxu1 %v20764_v27 }
 0x962   :  { %5041 = vmatpush1.msra.mxu0 %v17150_v23  ;;  %11358 = vmatpush3.msra.mxu1 %v16794_v7  ;;  %v17193_v7 = vld [vmem:[%s20420_s4 + $0x240] sm:$0xff] }
 0x963   :  { %v12289_v39 = vpop.eup %12288  ;;  %5042 = vmatprep.subr.mxu0 %v17157_v13  ;;  %11359 = vmatprep.subr.mxu1 %v20764_v27 }
 0x964   :  { %v4760_v28 = vmul.f32 %v12289_v39, %v4759_v9  ;;  %5043 = vmatpush1.msra.mxu0 %v17164_v43  ;;  %11360 = vmatpush3.msra.mxu1 %v16803_v51  ;;  %v17201_v51 = vld [vmem:[%s20420_s4 + $0x230] sm:$0xff]  ;;  %v17292_v39 = vld [vmem:[%s20420_s4 + $0x198] sm:$0xff] }
 0x965   :  { %5044 = vmatprep.subr.mxu0 %v17172_v29  ;;  %11361 = vmatprep.subr.mxu1 %v20764_v27  ;;  %v17278_v9 = vld [vmem:[%s20420_s4 + $0x1b0] sm:$0xff] }
 0x966   :  { %v4761_v58 = vadd.f32 %v4760_v28, %v21024_v60  ;;  %5045 = vmatpush1.msra.mxu0 %v17179_v10  ;;  %11362 = vmatpush3.msra.mxu1 %v16813_v48  ;;  %v17215_v48 = vld [vmem:[%s20420_s4 + $0x218] sm:$0xff]  ;;  %v17306_v60 = vld [vmem:[%s20420_s4 + $0x180] sm:$0xff] }
 0x967   :  { %5046 = vmatprep.subr.mxu0 %v17186_v41  ;;  %11363 = vmatprep.subr.mxu1 %v20764_v27 }
 0x968   :  { %12290 = vtanh.f32 %v4761_v58  ;;  %5047 = vmatpush1.msra.mxu0 %v17193_v7  ;;  %11364 = vmatpush3.msra.mxu1 %v16822_v44  ;;  %v17229_v44 = vld [vmem:[%s20420_s4 + $0x200] sm:$0xff] }
 0x969   :  { %5048 = vmatprep.subr.mxu0 %v17201_v51  ;;  %11365 = vmatprep.subr.mxu1 %v20764_v27  ;;  %12292 = vrcp.f32 %v4754_v12 }
 0x96a   :  { %5049 = vmatpush1.msra.mxu0 %v17208_v62  ;;  %11366 = vmatpush3.msra.mxu1 %v16832_v14  ;;  %v17243_v14 = vld [vmem:[%s20420_s4 + $0x1e8] sm:$0xff] }
 0x96b   :  { %5050 = vmatprep.subr.mxu0 %v17215_v48  ;;  %11367 = vmatprep.subr.mxu1 %v20764_v27 }
 0x96c   :  { %5051 = vmatpush1.msra.mxu0 %v17222_v61  ;;  %11368 = vmatpush3.msra.mxu1 %v16841_v0  ;;  %v17257_v0 = vld [vmem:[%s20420_s4 + $0x1d0] sm:$0xff] }
 0x96d   :  { %5052 = vmatprep.subr.mxu0 %v17229_v44  ;;  %11369 = vmatprep.subr.mxu1 %v20764_v27 }
 0x96e   :  { %5053 = vmatpush1.msra.mxu0 %v17236_v26  ;;  %11370 = vmatpush3.msra.mxu1 %v16850_v30  ;;  %v17271_v30 = vld [vmem:[%s20420_s4 + $0x1b8] sm:$0xff] }
 0x96f   :  { %5054 = vmatprep.subr.mxu0 %v17243_v14  ;;  %11371 = vmatprep.subr.mxu1 %v20764_v27 }
 0x970   :  { %5055 = vmatpush1.msra.mxu0 %v17250_v6  ;;  %11372 = vmatpush3.msra.mxu1 %v16859_v54  ;;  %v17285_v54 = vld [vmem:[%s20420_s4 + $0x1a0] sm:$0xff] }
 0x971   :  { %5056 = vmatprep.subr.mxu0 %v17257_v0  ;;  %11373 = vmatprep.subr.mxu1 %v20764_v27 }
 0x972   :  { %5057 = vmatpush1.msra.mxu0 %v17264_v63  ;;  %11374 = vmatpush3.msra.mxu1 %v16868_v46  ;;  %v17299_v46 = vld [vmem:[%s20420_s4 + $0x188] sm:$0xff] }
 0x973   :  { %5058 = vmatprep.subr.mxu0 %v17271_v30  ;;  %11375 = vmatprep.subr.mxu1 %v20764_v27 }
 0x974   :  { %5059 = vmatpush1.msra.mxu0 %v17278_v9  ;;  %11376 = vmatpush3.msra.mxu1 %v16877_v18 }
 0x975   :  { %v12291_v28 = vpop.eup %12290  ;;  %5060 = vmatprep.subr.mxu0 %v17285_v54  ;;  %11377 = vmatprep.subr.mxu1 %v20764_v27 }
 0x976   :  { %5061 = vmatpush1.msra.mxu0 %v17292_v39  ;;  %11378 = vmatpush3.msra.mxu1 %v16886_v53  ;;  %v4763_v18 = vsub.f32 %v16907_v50, %v12291_v28  ;;  %v12293_v58 = vpop.eup %12292  ;;  %v17329_v53 = vld [vmem:[%s20420_s4 + $0x170] sm:$0xff]  ;;  %v17366_v50 = vld [vmem:[%s20420_s4 + $0x140] sm:$0xff] }
 0x977   :  { %5062 = vmatprep.subr.mxu0 %v17299_v46  ;;  %11379 = vmatprep.subr.mxu1 %v20764_v27  ;;  %21028 = vst [vmem:[#allocation103_spill] sm:$0xff] %v17366_v50 }
 0x978   :  { %5063 = vmatpush1.msra.mxu0 %v17306_v60  ;;  %5096 = vmatprep.mubr.f32.mxu0 %v20764_v27  ;;  %v4764_v12 = vmul.f32 %v12293_v58, %v4763_v18  ;;  %v17347_v18 = vld [vmem:[%s20420_s4 + $0x158] sm:$0xff]  ;;  %v17354_v58 = vld [vmem:[%s20420_s4 + $0x150] sm:$0xff] }
 0x979   :  { %11380 = vmatpush3.msra.mxu1 %v16897_v20  ;;  %11381 = vmatprep.mubr.msk.f32.mxu1 %vm12447_vm0, %v20764_v27  ;;  %v17335_v20 = vld [vmem:[%s20420_s4 + $0x168] sm:$0xff]  ;;  %21026 = vst [vmem:[#allocation79_spill] sm:$0xff] %v17354_v58 }
 0x97a   :  { %v17318_v47 = vadd.f32 %v12291_v28, %v4764_v12  ;;  %11384 = vmatprep.subr.mxu1 %v20764_v27  ;;  %5247 = vmatprep.subr.mxu0 %v17329_v53  ;;  %v17340_v28 = vld [vmem:[%s20420_s4 + $0x178] sm:$0xff]  ;;  %v17359_v12 = vld [vmem:[%s20420_s4 + $0x160] sm:$0xff] }
 0x97b   :  { %21027 = vst [vmem:[#allocation82_spill] sm:$0xff] %v17359_v12 }
 0x97c   :  { %21025 = vst [vmem:[#allocation93_spill] sm:$0xff] %v17318_v47  ;;  %5097 = vmatmul.mubr.f32.vlgmr.msra.gmra.mxu0 %v17318_v47  ;;  %11382 = vmatmul.mubr.f32.vlgmr.msra.gmra.mxu1 %v17318_v47 }
 0x97d   :  { %5311 = vmatprep.mubr.f32.mxu0 %v20764_v27  ;;  %11416 = vmatprep.mubr.msk.f32.mxu1 %vm12447_vm0, %v20764_v27 }
 0x97e   :  { %5248 = vmatpush1.msra.mxu0 %v17335_v20  ;;  %11385 = vmatpush3.msra.mxu1 %v17340_v28 }
 0x97f   :  { %5249 = vmatprep.subr.mxu0 %v17347_v18  ;;  %11386 = vmatprep.subr.mxu1 %v20764_v27 }
 0x980   :  { %5250 = vmatpush1.msra.mxu0 %v17354_v58  ;;  %11387 = vmatpush3.msra.mxu1 %v17359_v12  ;;  %v17378_v58 = vld [vmem:[%s20420_s4 + $0x148] sm:$0xff]  ;;  %v17392_v12 = vld [vmem:[%s20420_s4 + $0x130] sm:$0xff] }
 0x981   :  { %5251 = vmatprep.subr.mxu0 %v17366_v50  ;;  %11388 = vmatprep.subr.mxu1 %v20764_v27  ;;  %21029 = vst [vmem:[#allocation104_spill] sm:$0xff] %v17378_v58  ;;  %v17385_v50 = vld [vmem:[%s20420_s4 + $0x128] sm:$0xff] }
 0x982   :  { %5252 = vmatpush1.msra.mxu0 %v17373_v31  ;;  %11389 = vmatpush3.msra.mxu1 %v17378_v58  ;;  %v17401_v58 = vld [vmem:[%s20420_s4 + $0x118] sm:$0xff] }
 0x983   :  { %5253 = vmatprep.subr.mxu0 %v17385_v50  ;;  %11390 = vmatprep.subr.mxu1 %v20764_v27 }
 0x984   :  { %5254 = vmatpush1.msra.mxu0 %v16957_v52  ;;  %11391 = vmatpush3.msra.mxu1 %v17392_v12  ;;  %v17410_v52 = vld [vmem:[%s20420_s4 + $0x100] sm:$0xff] }
 0x985   :  { %5255 = vmatprep.subr.mxu0 %v16963_v34  ;;  %11392 = vmatprep.subr.mxu1 %v20764_v27  ;;  %21030 = vst [vmem:[#allocation106_spill] sm:$0xff] %v17410_v52  ;;  %v17419_v34 = vld [vmem:[%s20420_s4 + $0xe8] sm:$0xff] }
 0x986   :  { %5256 = vmatpush1.msra.mxu0 %v16969_v45  ;;  %11393 = vmatpush3.msra.mxu1 %v17401_v58  ;;  %21031 = vst [vmem:[#allocation109_spill] sm:$0xff] %v17419_v34  ;;  %v17428_v45 = vld [vmem:[%s20420_s4 + $0xd0] sm:$0xff] }
 0x987   :  { %5257 = vmatprep.subr.mxu0 %v16975_v16  ;;  %11394 = vmatprep.subr.mxu1 %v20764_v27  ;;  %21032 = vst [vmem:[#allocation113_spill] sm:$0xff] %v17428_v45  ;;  %v17437_v16 = vld [vmem:[%s20420_s4 + $0xb8] sm:$0xff] }
 0x988   :  { %5258 = vmatpush1.msra.mxu0 %v16981_v56  ;;  %11395 = vmatpush3.msra.mxu1 %v17410_v52  ;;  %21033 = vst [vmem:[#allocation102_spill] sm:$0xff] %v17437_v16  ;;  %v17446_v56 = vld [vmem:[%s20420_s4 + $0xa0] sm:$0xff] }
 0x989   :  { %5259 = vmatprep.subr.mxu0 %v16987_v22  ;;  %11396 = vmatprep.subr.mxu1 %v20764_v27  ;;  %21034 = vst [vmem:[#allocation105_spill] sm:$0xff] %v17446_v56  ;;  %v17455_v22 = vld [vmem:[%s20420_s4 + $0x88] sm:$0xff] }
 0x98a   :  { %5260 = vmatpush1.msra.mxu0 %v16993_v21  ;;  %11397 = vmatpush3.msra.mxu1 %v17419_v34  ;;  %21035 = vst [vmem:[#allocation107_spill] sm:$0xff] %v17455_v22  ;;  %v17464_v21 = vld [vmem:[%s20420_s4 + $0x60] sm:$0xff] }
 0x98b   :  { %5261 = vmatprep.subr.mxu0 %v16999_v17  ;;  %11398 = vmatprep.subr.mxu1 %v20764_v27  ;;  %21036 = vst [vmem:[#allocation108_spill] sm:$0xff] %v17464_v21  ;;  %v17469_v17 = vld [vmem:[%s20420_s4 + $0x70] sm:$0xff] }
 0x98c   :  { %5262 = vmatpush1.msra.mxu0 %v17005_v4  ;;  %11399 = vmatpush3.msra.mxu1 %v17428_v45  ;;  %21037 = vst [vmem:[#allocation110_spill] sm:$0xff] %v17469_v17  ;;  %v17478_v4 = vld [vmem:[%s20420_s4 + $0x58] sm:$0xff] }
 0x98d   :  { %5263 = vmatprep.subr.mxu0 %v17011_v8  ;;  %11400 = vmatprep.subr.mxu1 %v20764_v27  ;;  %21038 = vst [vmem:[#allocation112_spill] sm:$0xff] %v17478_v4  ;;  %v17487_v8 = vld [vmem:[%s20420_s4 + $0x30] sm:$0xff]  ;;  %v21053_v45 = vld [vmem:[#allocation77_spill] sm:$0xff] }
 0x98e   :  { %5264 = vmatpush1.msra.mxu0 %v17017_v36  ;;  %11401 = vmatpush3.msra.mxu1 %v17437_v16  ;;  %21039 = vst [vmem:[#allocation18_spill] sm:$0xff] %v17487_v8  ;;  %v17492_v36 = vld [vmem:[%s20420_s4 + $0x40] sm:$0xff] }
 0x98f   :  { %5265 = vmatprep.subr.mxu0 %v17023_v2  ;;  %11402 = vmatprep.subr.mxu1 %v20764_v27  ;;  %21040 = vst [vmem:[#allocation20_spill] sm:$0xff] %v17492_v36  ;;  %v17499_v2 = vld [vmem:[%s20420_s4 + $0x20] sm:$0xff] }
 0x990   :  { %5266 = vmatpush1.msra.mxu0 %v17029_v49  ;;  %11403 = vmatpush3.msra.mxu1 %v17446_v56  ;;  %21041 = vst [vmem:[#allocation85_spill] sm:$0xff] %v17499_v2  ;;  %v17506_v49 = vld [vmem:[%s20420_s4 + $0x18] sm:$0xff] }
 0x991   :  { %5267 = vmatprep.subr.mxu0 %v17035_v32  ;;  %11404 = vmatprep.subr.mxu1 %v20764_v27  ;;  %21042 = vst [vmem:[#allocation28_spill] sm:$0xff] %v17506_v49  ;;  %v17511_v32 = vld [vmem:[%s20420_s4 + $0x28] sm:$0xff] }
 0x992   :  { %5268 = vmatpush1.msra.mxu0 %v17041_v11  ;;  %11405 = vmatpush3.msra.mxu1 %v17455_v22  ;;  %21043 = vst [vmem:[#allocation86_spill] sm:$0xff] %v17511_v32  ;;  %v17518_v11 = vld [vmem:[%s20420_s4 + $0x8] sm:$0xff] }
 0x993   :  { %5269 = vmatprep.subr.mxu0 %v17047_v55  ;;  %11406 = vmatprep.subr.mxu1 %v20764_v27  ;;  %21044 = vst [vmem:[#allocation70_spill] sm:$0xff] %v17518_v11  ;;  %v17525_v55 = vld [vmem:[%s20420_s4] sm:$0xff] }
 0x994   :  { %5270 = vmatpush1.msra.mxu0 %v17464_v21  ;;  %11407 = vmatpush3.msra.mxu1 %v17469_v17  ;;  %21045 = vst [vmem:[#allocation21_spill] sm:$0xff] %v17525_v55 }
 0x995   :  { %5271 = vmatprep.subr.mxu0 %v17054_v24  ;;  %11408 = vmatprep.subr.mxu1 %v20764_v27  ;;  %v17530_v24 = vld [vmem:[%s20420_s4 + $0x10] sm:$0xff] }
 0x996   :  { %5272 = vmatpush1.msra.mxu0 %v17060_v37  ;;  %11409 = vmatpush3.msra.mxu1 %v17478_v4  ;;  %21046 = vst [vmem:[#allocation23_spill] sm:$0xff] %v17530_v24 }
 0x997   :  { %5273 = vmatprep.subr.mxu0 %v17066_v3  ;;  %11410 = vmatprep.subr.mxu1 %v20764_v27 }
 0x998   :  { %5274 = vmatpush1.msra.mxu0 %v17487_v8  ;;  %11411 = vmatpush3.msra.mxu1 %v17492_v36 }
 0x999   :  { %5275 = vmatprep.subr.mxu0 %v17499_v2  ;;  %11412 = vmatprep.subr.mxu1 %v20764_v27 }
 0x99a   :  { %5276 = vmatpush1.msra.mxu0 %v17506_v49  ;;  %11413 = vmatpush3.msra.mxu1 %v17511_v32  ;;  %v21048_v32 = vld [vmem:[#allocation30_spill] sm:$0xff] }
 0x99b   :  { %5277 = vmatprep.subr.mxu0 %v17518_v11  ;;  %11414 = vmatprep.subr.mxu1 %v20764_v27  ;;  %v21047_v11 = vld [vmem:[#allocation29_spill] sm:$0xff]  ;;  %v245_v36 = vadd.f32 %v21048_v32, %v20885_v5 }
 0x99c   :  { %5278 = vmatpush1.msra.mxu0 %v17525_v55  ;;  %11415 = vmatpush3.msra.mxu1 %v17530_v24  ;;  %v17542_v24 = vld [vmem:[%s20423_s5] ss:$0 sm:$0xff] }
 0x99d   :  { %5460 = vmatprep.subr.mxu0 %v17077_v38  ;;  %11419 = vmatprep.subr.mxu1 %v20764_v27  ;;  %21049 = vst [vmem:[#allocation83_spill] sm:$0xff] %v17542_v24 }
 0xa19   :  { %v4885_v37 = vpop.f32.mrf.mxu0  ;;  %v4956_v3 = vpop.f32.mrf.mxu1 }
 0xa1a   :  { %v4960_v49 = vadd.f32 %v4885_v37, %v21047_v11  ;;  %v21051_v11 = vld [vmem:[#allocation76_spill] sm:$0xff] }
 0xa1b   :  { %v11348_v2 = vpop.f32.mrf.mxu1  ;;  %v4887_v21 = vpop.f32.mrf.mxu0 }
 0xa1c   :  { %v9401_v8 = vmul.f32 -1.442695, %v4960_v49  ;;  %v4961_v4 = vadd.f32 %v4887_v21, %v245_v36  ;;  %v4974_v2 = vadd.f32 %v17542_v24, %v4956_v3  ;;  %v21052_v36 = vld [vmem:[#allocation31_spill] sm:$0xff]  ;;  %v648_v3 = vadd.f32 %v21053_v45, %v13897_v42  ;;  %v17563_v45 = vld [vmem:[%s20420_s4 + $0x2e0] sm:$0xff] }
 0xa1e   :  { %12294 = vpow2.f32 %v9401_v8  ;;  %v9402_v17 = vmul.f32 -1.442695, %v4961_v4  ;;  %v21050_v8 = vld [vmem:[#allocation98_spill] sm:$0xff] }
 0xa1f   :  { %v646_v37 = vadd.f32 %v21051_v11, %v21050_v8 }
 0xa20   :  { %12296 = vpow2.f32 %v9402_v17 }
 0xa2b   :  { %v12295_v55 = vpop.eup %12294 }
 0xa2c   :  { %v4968_v22 = vadd.f32 1.0, %v12295_v55 }
 0xa2d   :  { %v12297_v38 = vpop.eup %12296 }
 0xa2e   :  { %12298 = vrcp.f32 %v4968_v22  ;;  %v4969_v17 = vadd.f32 1.0, %v12297_v38 }
 0xa3b   :  { %v12299_v49 = vpop.eup %12298 }
 0xa3c   :  { %v4975_v56 = vmul.f32 %v12299_v49, %v4974_v2  ;;  %v5098_v32 = vpop.f32.mrf.mxu0  ;;  %v5169_v21 = vpop.f32.mrf.mxu1 }
 0xa3d   :  { %v5173_v4 = vadd.f32 %v5098_v32, %v646_v37  ;;  %v17764_v32 = vld [vmem:[%s20420_s4 + $0x110] sm:$0xff] }
 0xa3e   :  { %v4976_v55 = vadd.f32 %v4975_v56, %v21052_v36  ;;  %v11383_v22 = vpop.f32.mrf.mxu1  ;;  %v5100_v16 = vpop.f32.mrf.mxu0  ;;  %v17782_v36 = vld [vmem:[%s20420_s4 + $0xf0] sm:$0xff] }
 0xa3f   :  { %v9451_v5 = vmul.f32 -1.442695, %v5173_v4  ;;  %v5174_v24 = vadd.f32 %v5100_v16, %v648_v3  ;;  %v17776_v4 = vld [vmem:[%s20420_s4 + $0xf8] sm:$0xff]  ;;  %v17800_v22 = vld [vmem:[%s20420_s4 + $0xc8] sm:$0xff]  ;;  %v17806_v3 = vld [vmem:[%s20420_s4 + $0xc0] sm:$0xff] }
 0xa40   :  { %12300 = vtanh.f32 %v4976_v55  ;;  %v17788_v55 = vld [vmem:[%s20420_s4 + $0xe0] sm:$0xff] }
 0xa41   :  { %12302 = vpow2.f32 %v9451_v5  ;;  %v9452_v34 = vmul.f32 -1.442695, %v5174_v24  ;;  %v17556_v5 = vld [vmem:[%s20420_s4 + $0x2f8] sm:$0xff] }
 0xa42   :  { %12304 = vrcp.f32 %v4969_v17  ;;  %v17794_v17 = vld [vmem:[%s20420_s4 + $0xd8] sm:$0xff] }
 0xa43   :  { %12306 = vpow2.f32 %v9452_v34 }
 0xa4d   :  { %v12301_v52 = vpop.eup %12300 }
 0xa4e   :  { %v12303_v11 = vpop.eup %12302  ;;  %v4978_v2 = vsub.f32 %v17091_v35, %v12301_v52 }
 0xa4f   :  { %v12305_v49 = vpop.eup %12304  ;;  %v5181_v37 = vadd.f32 1.0, %v12303_v11  ;;  %v17812_v11 = vld [vmem:[%s20420_s4 + $0xb0] sm:$0xff] }
 0xa50   :  { %v4979_v56 = vmul.f32 %v12305_v49, %v4978_v2  ;;  %v17818_v2 = vld [vmem:[%s20420_s4 + $0xa8] sm:$0xff]  ;;  %v17824_v49 = vld [vmem:[%s20420_s4 + $0x98] sm:$0xff] }
 0xa51   :  { %12308 = vrcp.f32 %v5181_v37  ;;  %v17830_v37 = vld [vmem:[%s20420_s4 + $0x90] sm:$0xff] }
 0xa52   :  { %v17551_v38 = vadd.f32 %v12301_v52, %v4979_v56  ;;  %v17572_v52 = vld [vmem:[%s20420_s4 + $0x2c8] sm:$0xff]  ;;  %v17836_v56 = vld [vmem:[%s20420_s4 + $0x80] sm:$0xff] }
 0xa54   :  { %21054 = vst [vmem:[#allocation27_spill] sm:$0xff] %v17551_v38  ;;  %5312 = vmatmul.mubr.f32.vlgmr.msra.gmra.mxu0 %v17551_v38  ;;  %11417 = vmatmul.mubr.f32.vlgmr.msra.gmra.mxu1 %v17551_v38 }
 0xa55   :  { %5461 = vmatpush1.msra.mxu0 %v17096_v25  ;;  %11420 = vmatpush3.msra.mxu1 %v17556_v5  ;;  %v17581_v25 = vld [vmem:[%s20420_s4 + $0x2b0] sm:$0xff] }
 0xa56   :  { %5462 = vmatprep.subr.mxu0 %v17101_v15  ;;  %11421 = vmatprep.subr.mxu1 %v20764_v27  ;;  %v17590_v15 = vld [vmem:[%s20420_s4 + $0x298] sm:$0xff] }
 0xa57   :  { %5463 = vmatpush1.msra.mxu0 %v17108_v40  ;;  %11422 = vmatpush3.msra.mxu1 %v17563_v45  ;;  %v17599_v40 = vld [vmem:[%s20420_s4 + $0x280] sm:$0xff] }
 0xa58   :  { %5464 = vmatprep.subr.mxu0 %v17115_v1  ;;  %11423 = vmatprep.subr.mxu1 %v20764_v27  ;;  %v12307_v1 = vpop.eup %12306 }
 0xa59   :  { %5465 = vmatpush1.msra.mxu0 %v17122_v19  ;;  %11424 = vmatpush3.msra.mxu1 %v17572_v52  ;;  %v17604_v19 = vld [vmem:[%s20423_s5 + $0x1] ss:$0 sm:$0xff]  ;;  %v5182_v24 = vadd.f32 1.0, %v12307_v1  ;;  %v17842_v1 = vld [vmem:[%s20420_s4 + $0x78] sm:$0xff] }
 0xa5a   :  { %5466 = vmatprep.subr.mxu0 %v17129_v57  ;;  %11425 = vmatprep.subr.mxu1 %v20764_v27  ;;  %v5187_v57 = vadd.f32 %v17604_v19, %v5169_v21  ;;  %v17770_v21 = vld [vmem:[%s20420_s4 + $0x108] sm:$0xff] }
 0xa5b   :  { %5467 = vmatpush1.msra.mxu0 %v17136_v33  ;;  %11426 = vmatpush3.msra.mxu1 %v17581_v25 }
 0xa5c   :  { %5468 = vmatprep.subr.mxu0 %v17143_v59  ;;  %11427 = vmatprep.subr.mxu1 %v20764_v27  ;;  %v17614_v59 = vld [vmem:[%s20420_s4 + $0x268] sm:$0xff] }
 0xa5d   :  { %5469 = vmatpush1.msra.mxu0 %v17150_v23  ;;  %11428 = vmatpush3.msra.mxu1 %v17590_v15  ;;  %v17623_v23 = vld [vmem:[%s20420_s4 + $0x250] sm:$0xff] }
 0xa5e   :  { %v12309_v33 = vpop.eup %12308  ;;  %5470 = vmatprep.subr.mxu0 %v17157_v13  ;;  %11429 = vmatprep.subr.mxu1 %v20764_v27  ;;  %v21055_v13 = vld [vmem:[#allocation67_spill] sm:$0xff] }
 0xa5f   :  { %v5188_v34 = vmul.f32 %v12309_v33, %v5187_v57  ;;  %5471 = vmatpush1.msra.mxu0 %v17164_v43  ;;  %11430 = vmatpush3.msra.mxu1 %v17599_v40  ;;  %v17633_v43 = vld [vmem:[%s20420_s4 + $0x238] sm:$0xff]  ;;  %v17848_v57 = vld [vmem:[%s20420_s4 + $0x68] sm:$0xff]  ;;  %v21072_v33 = vld [vmem:[#allocation108_spill] sm:$0xff] }
 0xa60   :  { %5472 = vmatprep.subr.mxu0 %v17172_v29  ;;  %11431 = vmatprep.subr.mxu1 %v20764_v27  ;;  %v17642_v29 = vld [vmem:[%s20420_s4 + $0x220] sm:$0xff] }
 0xa61   :  { %v5189_v16 = vadd.f32 %v5188_v34, %v21055_v13  ;;  %5473 = vmatpush1.msra.mxu0 %v17179_v10  ;;  %11432 = vmatpush3.msra.mxu1 %v17614_v59  ;;  %v17651_v10 = vld [vmem:[%s20420_s4 + $0x208] sm:$0xff]  ;;  %v17855_v34 = vld [vmem:[%s20420_s4 + $0x50] sm:$0xff] }
 0xa62   :  { %5474 = vmatprep.subr.mxu0 %v17186_v41  ;;  %11433 = vmatprep.subr.mxu1 %v20764_v27  ;;  %v17660_v41 = vld [vmem:[%s20420_s4 + $0x1f0] sm:$0xff]  ;;  %v17861_v13 = vld [vmem:[%s20420_s4 + $0x48] sm:$0xff] }
 0xa63   :  { %12310 = vtanh.f32 %v5189_v16  ;;  %5475 = vmatpush1.msra.mxu0 %v17193_v7  ;;  %11434 = vmatpush3.msra.mxu1 %v17623_v23  ;;  %v17669_v7 = vld [vmem:[%s20420_s4 + $0x1d8] sm:$0xff] }
 0xa64   :  { %5476 = vmatprep.subr.mxu0 %v17201_v51  ;;  %11435 = vmatprep.subr.mxu1 %v20764_v27  ;;  %12312 = vrcp.f32 %v5182_v24  ;;  %v17678_v51 = vld [vmem:[%s20420_s4 + $0x1c0] sm:$0xff]  ;;  %v17867_v16 = vld [vmem:[%s20420_s4 + $0x38] sm:$0xff] }
 0xa65   :  { %5477 = vmatpush1.msra.mxu0 %v17208_v62  ;;  %11436 = vmatpush3.msra.mxu1 %v17633_v43  ;;  %v17687_v62 = vld [vmem:[%s20420_s4 + $0x1a8] sm:$0xff]  ;;  %v21073_v24 = vld [vmem:[#allocation18_spill] sm:$0xff] }
 0xa66   :  { %5478 = vmatprep.subr.mxu0 %v17215_v48  ;;  %11437 = vmatprep.subr.mxu1 %v20764_v27 }
 0xa67   :  { %5479 = vmatpush1.msra.mxu0 %v17222_v61  ;;  %11438 = vmatpush3.msra.mxu1 %v17642_v29  ;;  %v17698_v61 = vld [vmem:[%s20420_s4 + $0x190] sm:$0xff] }
 0xa68   :  { %5480 = vmatprep.subr.mxu0 %v17229_v44  ;;  %11439 = vmatprep.subr.mxu1 %v20764_v27 }
 0xa69   :  { %5481 = vmatpush1.msra.mxu0 %v17236_v26  ;;  %11440 = vmatpush3.msra.mxu1 %v17651_v10 }
 0xa6a   :  { %5482 = vmatprep.subr.mxu0 %v17243_v14  ;;  %11441 = vmatprep.subr.mxu1 %v20764_v27 }
 0xa6b   :  { %5483 = vmatpush1.msra.mxu0 %v17250_v6  ;;  %11442 = vmatpush3.msra.mxu1 %v17660_v41 }
 0xa6c   :  { %5484 = vmatprep.subr.mxu0 %v17257_v0  ;;  %11443 = vmatprep.subr.mxu1 %v20764_v27  ;;  %v21057_v0 = vld [vmem:[#allocation79_spill] sm:$0xff] }
 0xa6d   :  { %5485 = vmatpush1.msra.mxu0 %v17264_v63  ;;  %11444 = vmatpush3.msra.mxu1 %v17669_v7  ;;  %v21058_v63 = vld [vmem:[#allocation82_spill] sm:$0xff] }
 0xa6e   :  { %5486 = vmatprep.subr.mxu0 %v17271_v30  ;;  %11445 = vmatprep.subr.mxu1 %v20764_v27  ;;  %v21059_v30 = vld [vmem:[#allocation103_spill] sm:$0xff] }
 0xa6f   :  { %5487 = vmatpush1.msra.mxu0 %v17278_v9  ;;  %11446 = vmatpush3.msra.mxu1 %v17678_v51  ;;  %v21060_v9 = vld [vmem:[#allocation104_spill] sm:$0xff] }
 0xa70   :  { %v12311_v48 = vpop.eup %12310  ;;  %5488 = vmatprep.subr.mxu0 %v17285_v54  ;;  %11447 = vmatprep.subr.mxu1 %v20764_v27  ;;  %v21063_v54 = vld [vmem:[#allocation113_spill] sm:$0xff] }
 0xa71   :  { %5489 = vmatpush1.msra.mxu0 %v17292_v39  ;;  %11448 = vmatpush3.msra.mxu1 %v17687_v62  ;;  %v5191_v44 = vsub.f32 %v17318_v47, %v12311_v48  ;;  %v12313_v26 = vpop.eup %12312  ;;  %v21064_v39 = vld [vmem:[#allocation102_spill] sm:$0xff] }
 0xa72   :  { %5490 = vmatprep.subr.mxu0 %v17299_v46  ;;  %11449 = vmatprep.subr.mxu1 %v20764_v27  ;;  %v21065_v46 = vld [vmem:[#allocation105_spill] sm:$0xff] }
 0xa73   :  { %5491 = vmatpush1.msra.mxu0 %v17306_v60  ;;  %5524 = vmatprep.mubr.f32.mxu0 %v20764_v27  ;;  %v5192_v14 = vmul.f32 %v12313_v26, %v5191_v44  ;;  %v21066_v60 = vld [vmem:[#allocation107_spill] sm:$0xff]  ;;  %v21075_v44 = vld [vmem:[#allocation28_spill] sm:$0xff]  ;;  %v21076_v26 = vld [vmem:[#allocation70_spill] sm:$0xff] }
 0xa74   :  { %11450 = vmatpush3.msra.mxu1 %v17698_v61  ;;  %11451 = vmatprep.mubr.msk.f32.mxu1 %vm12447_vm0, %v20764_v27 }
 0xa75   :  { %v17708_v6 = vadd.f32 %v12311_v48, %v5192_v14  ;;  %5675 = vmatprep.subr.mxu0 %v17329_v53  ;;  %11454 = vmatprep.subr.mxu1 %v20764_v27  ;;  %v21067_v53 = vld [vmem:[#allocation110_spill] sm:$0xff]  ;;  %v21074_v48 = vld [vmem:[#allocation85_spill] sm:$0xff] }
 0xa76   :  { %v21077_v14 = vld [vmem:[#allocation21_spill] sm:$0xff] }
 0xa77   :  { %21056 = vst [vmem:[#allocation84_spill] sm:$0xff] %v17708_v6  ;;  %5525 = vmatmul.mubr.f32.vlgmr.msra.gmra.mxu0 %v17708_v6  ;;  %11452 = vmatmul.mubr.f32.vlgmr.msra.gmra.mxu1 %v17708_v6 }
 0xa78   :  { %5676 = vmatpush1.msra.mxu0 %v17335_v20  ;;  %11455 = vmatpush3.msra.mxu1 %v17340_v28  ;;  %v21068_v20 = vld [vmem:[#allocation112_spill] sm:$0xff] }
 0xa79   :  { %5677 = vmatprep.subr.mxu0 %v17347_v18  ;;  %11456 = vmatprep.subr.mxu1 %v20764_v27  ;;  %v21069_v28 = vld [vmem:[#allocation20_spill] sm:$0xff]  ;;  %v21070_v18 = vld [vmem:[#allocation86_spill] sm:$0xff] }
 0xa7a   :  { %5678 = vmatpush1.msra.mxu0 %v21057_v0  ;;  %11457 = vmatpush3.msra.mxu1 %v21058_v63  ;;  %v17878_v0 = vld [vmem:[%s20420_s4 + $0x2f0] sm:$0xff] }
 0xa7b   :  { %5679 = vmatprep.subr.mxu0 %v21059_v30  ;;  %11458 = vmatprep.subr.mxu1 %v20764_v27 }
 0xa7c   :  { %5680 = vmatpush1.msra.mxu0 %v17373_v31  ;;  %11459 = vmatpush3.msra.mxu1 %v21060_v9  ;;  %v21061_v31 = vld [vmem:[#allocation106_spill] sm:$0xff]  ;;  %v21078_v9 = vld [vmem:[#allocation32_spill] sm:$0xff] }
 0xa7d   :  { %5681 = vmatprep.subr.mxu0 %v17385_v50  ;;  %11460 = vmatprep.subr.mxu1 %v20764_v27  ;;  %v21062_v50 = vld [vmem:[#allocation109_spill] sm:$0xff] }
 0xa7e   :  { %11461 = vmatpush3.msra.mxu1 %v17392_v12  ;;  %5739 = vmatprep.mubr.f32.mxu0 %v20764_v27  ;;  %v17758_v12 = vld [vmem:[%s20420_s4 + $0x120] sm:$0xff] }
 0xa7f   :  { %11462 = vmatprep.subr.mxu1 %v20764_v27  ;;  %11486 = vmatprep.mubr.msk.f32.mxu1 %vm12447_vm0, %v20764_v27 }
 0xa80   :  { %11463 = vmatpush3.msra.mxu1 %v17401_v58  ;;  %v21071_v58 = vld [vmem:[#allocation23_spill] sm:$0xff]  ;;  %5682 = vmatpush1.msra.mxu0 %v17758_v12 }
 0xa81   :  { %11464 = vmatprep.subr.mxu1 %v20764_v27  ;;  %5683 = vmatprep.subr.mxu0 %v17764_v32 }
 0xa82   :  { %11465 = vmatpush3.msra.mxu1 %v21061_v31  ;;  %5684 = vmatpush1.msra.mxu0 %v17770_v21 }
 0xa83   :  { %11466 = vmatprep.subr.mxu1 %v20764_v27  ;;  %5685 = vmatprep.subr.mxu0 %v17776_v4 }
 0xa84   :  { %11467 = vmatpush3.msra.mxu1 %v21062_v50  ;;  %5686 = vmatpush1.msra.mxu0 %v17782_v36 }
 0xa85   :  { %11468 = vmatprep.subr.mxu1 %v20764_v27  ;;  %5687 = vmatprep.subr.mxu0 %v17788_v55 }
 0xa86   :  { %11469 = vmatpush3.msra.mxu1 %v21063_v54  ;;  %5688 = vmatpush1.msra.mxu0 %v17794_v17 }
 0xa87   :  { %11470 = vmatprep.subr.mxu1 %v20764_v27  ;;  %5689 = vmatprep.subr.mxu0 %v17800_v22 }
 0xa88   :  { %11471 = vmatpush3.msra.mxu1 %v21064_v39  ;;  %5690 = vmatpush1.msra.mxu0 %v17806_v3 }
 0xa89   :  { %11472 = vmatprep.subr.mxu1 %v20764_v27  ;;  %5691 = vmatprep.subr.mxu0 %v17812_v11 }
 0xa8a   :  { %11473 = vmatpush3.msra.mxu1 %v21065_v46  ;;  %5692 = vmatpush1.msra.mxu0 %v17818_v2  ;;  %v21079_v46 = vld [vmem:[#allocation87_spill] sm:$0xff] }
 0xa8b   :  { %11474 = vmatprep.subr.mxu1 %v20764_v27  ;;  %5693 = vmatprep.subr.mxu0 %v17824_v49 }
 0xa8c   :  { %11475 = vmatpush3.msra.mxu1 %v21066_v60  ;;  %5694 = vmatpush1.msra.mxu0 %v17830_v37  ;;  %v21080_v60 = vld [vmem:[#allocation34_spill] sm:$0xff] }
 0xa8d   :  { %11476 = vmatprep.subr.mxu1 %v20764_v27  ;;  %5695 = vmatprep.subr.mxu0 %v17836_v56 }
 0xa8e   :  { %11477 = vmatpush3.msra.mxu1 %v21067_v53  ;;  %5696 = vmatpush1.msra.mxu0 %v17842_v1  ;;  %v251_v53 = vadd.f32 %v21080_v60, %v21079_v46 }
 0xa8f   :  { %11478 = vmatprep.subr.mxu1 %v20764_v27  ;;  %5697 = vmatprep.subr.mxu0 %v17848_v57 }
 0xa90   :  { %11479 = vmatpush3.msra.mxu1 %v21068_v20  ;;  %5698 = vmatpush1.msra.mxu0 %v21072_v33 }
 0xa91   :  { %11480 = vmatprep.subr.mxu1 %v20764_v27  ;;  %5699 = vmatprep.subr.mxu0 %v17855_v34 }
 0xa92   :  { %11481 = vmatpush3.msra.mxu1 %v21069_v28  ;;  %5700 = vmatpush1.msra.mxu0 %v17861_v13 }
 0xa93   :  { %11482 = vmatprep.subr.mxu1 %v20764_v27  ;;  %5701 = vmatprep.subr.mxu0 %v17867_v16 }
 0xa94   :  { %11483 = vmatpush3.msra.mxu1 %v21070_v18  ;;  %5702 = vmatpush1.msra.mxu0 %v21073_v24  ;;  %v21081_v24 = vld [vmem:[#allocation83_spill] sm:$0xff] }
 0xa95   :  { %11484 = vmatprep.subr.mxu1 %v20764_v27  ;;  %5703 = vmatprep.subr.mxu0 %v21074_v48 }
 0xa96   :  { %11485 = vmatpush3.msra.mxu1 %v21071_v58  ;;  %5704 = vmatpush1.msra.mxu0 %v21075_v44 }
 0xa97   :  { %11489 = vmatprep.subr.mxu1 %v20764_v27  ;;  %5705 = vmatprep.subr.mxu0 %v21076_v26  ;;  %v21082_v26 = vld [vmem:[#allocation72_spill] sm:$0xff] }
 0xa98   :  { %5706 = vmatpush1.msra.mxu0 %v21077_v14  ;;  %v640_v14 = vadd.f32 %v21082_v26, %v21050_v8 }
 0xa99   :  { %5888 = vmatprep.subr.mxu0 %v17878_v0 }
 0xb14   :  { %v5313_v63 = vpop.f32.mrf.mxu0  ;;  %v5384_v30 = vpop.f32.mrf.mxu1 }
 0xb15   :  { %v5388_v31 = vadd.f32 %v5313_v63, %v21078_v9  ;;  %v5402_v48 = vadd.f32 %v21081_v24, %v5384_v30  ;;  %v21083_v63 = vld [vmem:[#allocation11_spill] sm:$0xff]  ;;  %v21084_v9 = vld [vmem:[#allocation38_spill] sm:$0xff]  ;;  %v21085_v30 = vld [vmem:[#allocation73_spill] sm:$0xff] }
 0xb16   :  { %v11418_v50 = vpop.f32.mrf.mxu1  ;;  %v5315_v39 = vpop.f32.mrf.mxu0 }
 0xb17   :  { %v9453_v54 = vmul.f32 -1.442695, %v5388_v31  ;;  %v5389_v20 = vadd.f32 %v5315_v39, %v251_v53  ;;  %v400_v31 = vadd.f32 %v21084_v9, %v21083_v63 }
 0xb19   :  { %12314 = vpow2.f32 %v9453_v54  ;;  %v9454_v28 = vmul.f32 -1.442695, %v5389_v20 }
 0xb1b   :  { %12316 = vpow2.f32 %v9454_v28 }
 0xb26   :  { %v12315_v18 = vpop.eup %12314 }
 0xb27   :  { %v5396_v58 = vadd.f32 1.0, %v12315_v18 }
 0xb28   :  { %v12317_v33 = vpop.eup %12316 }
 0xb29   :  { %12318 = vrcp.f32 %v5396_v58  ;;  %v5397_v53 = vadd.f32 1.0, %v12317_v33  ;;  %v642_v58 = vadd.f32 %v21085_v30, %v13897_v42  ;;  %v17994_v30 = vld [vmem:[%s20420_s4 + $0x240] sm:$0xff] }
 0xb36   :  { %v12319_v44 = vpop.eup %12318 }
 0xb37   :  { %v5403_v50 = vmul.f32 %v12319_v44, %v5402_v48  ;;  %v5526_v54 = vpop.f32.mrf.mxu0  ;;  %v5597_v35 = vpop.f32.mrf.mxu1 }
 0xb38   :  { %v5601_v60 = vadd.f32 %v5526_v54, %v640_v14  ;;  %v17937_v54 = vld [vmem:[%s20420_s4 + $0x2a0] sm:$0xff] }
 0xb39   :  { %v5404_v39 = vadd.f32 %v5403_v50, %v400_v31  ;;  %v11453_v20 = vpop.f32.mrf.mxu1  ;;  %v5528_v28 = vpop.f32.mrf.mxu0  ;;  %v17897_v31 = vld [vmem:[%s20420_s4 + $0x2e8] sm:$0xff]  ;;  %v17923_v50 = vld [vmem:[%s20420_s4 + $0x2b8] sm:$0xff] }
 0xb3a   :  { %v9503_v18 = vmul.f32 -1.442695, %v5601_v60  ;;  %v5602_v47 = vadd.f32 %v5528_v28, %v642_v58  ;;  %v17951_v60 = vld [vmem:[%s20420_s4 + $0x288] sm:$0xff]  ;;  %v5615_v20 = vadd.f32 %v17604_v19, %v5597_v35  ;;  %v17980_v28 = vld [vmem:[%s20420_s4 + $0x258] sm:$0xff]  ;;  %v21087_v58 = vld [vmem:[#allocation62_spill] sm:$0xff] }
 0xb3b   :  { %12320 = vtanh.f32 %v5404_v39  ;;  %v17965_v39 = vld [vmem:[%s20420_s4 + $0x270] sm:$0xff] }
 0xb3c   :  { %12322 = vpow2.f32 %v9503_v18  ;;  %v9504_v26 = vmul.f32 -1.442695, %v5602_v47  ;;  %v17902_v47 = vld [vmem:[%s20420_s4 + $0x2d8] sm:$0xff] }
 0xb3d   :  { %12324 = vrcp.f32 %v5397_v53 }
 0xb3e   :  { %12326 = vpow2.f32 %v9504_v26 }
 0xb48   :  { %v12321_v8 = vpop.eup %12320 }
 0xb49   :  { %v12323_v24 = vpop.eup %12322  ;;  %v5406_v48 = vsub.f32 %v17551_v38, %v12321_v8 }
 0xb4a   :  { %v12325_v44 = vpop.eup %12324  ;;  %v5609_v9 = vadd.f32 1.0, %v12323_v24  ;;  %v17909_v24 = vld [vmem:[%s20420_s4 + $0x2d0] sm:$0xff] }
 0xb4b   :  { %v5407_v14 = vmul.f32 %v12325_v44, %v5406_v48  ;;  %v12327_v53 = vpop.eup %12326  ;;  %v18009_v44 = vld [vmem:[%s20420_s4 + $0x228] sm:$0xff] }
 0xb4c   :  { %12328 = vrcp.f32 %v5609_v9  ;;  %v5610_v48 = vadd.f32 1.0, %v12327_v53  ;;  %v18023_v9 = vld [vmem:[%s20420_s4 + $0x210] sm:$0xff]  ;;  %v18051_v53 = vld [vmem:[%s20420_s4 + $0x1e0] sm:$0xff] }
 0xb4d   :  { %v17892_v33 = vadd.f32 %v12321_v8, %v5407_v14  ;;  %v17916_v8 = vld [vmem:[%s20420_s4 + $0x2c0] sm:$0xff]  ;;  %v18037_v14 = vld [vmem:[%s20420_s4 + $0x1f8] sm:$0xff] }
 0xb4f   :  { %21086 = vst [vmem:[#allocation71_spill] sm:$0xff] %v17892_v33  ;;  %5740 = vmatmul.mubr.f32.vlgmr.msra.gmra.mxu0 %v17892_v33  ;;  %11487 = vmatmul.mubr.f32.vlgmr.msra.gmra.mxu1 %v17892_v33 }
 0xb50   :  { %5889 = vmatpush1.msra.mxu0 %v17897_v31  ;;  %11490 = vmatpush3.msra.mxu1 %v17556_v5  ;;  %v17930_v5 = vld [vmem:[%s20420_s4 + $0x2a8] sm:$0xff] }
 0xb51   :  { %5890 = vmatprep.subr.mxu0 %v17902_v47  ;;  %11491 = vmatprep.subr.mxu1 %v20764_v27 }
 0xb52   :  { %5891 = vmatpush1.msra.mxu0 %v17909_v24  ;;  %11492 = vmatpush3.msra.mxu1 %v17563_v45  ;;  %v17944_v45 = vld [vmem:[%s20420_s4 + $0x290] sm:$0xff] }
 0xb53   :  { %5892 = vmatprep.subr.mxu0 %v17916_v8  ;;  %11493 = vmatprep.subr.mxu1 %v20764_v27 }
 0xb54   :  { %5893 = vmatpush1.msra.mxu0 %v17923_v50  ;;  %11494 = vmatpush3.msra.mxu1 %v17572_v52  ;;  %v17958_v52 = vld [vmem:[%s20420_s4 + $0x278] sm:$0xff] }
 0xb55   :  { %5894 = vmatprep.subr.mxu0 %v17930_v5  ;;  %11495 = vmatprep.subr.mxu1 %v20764_v27 }
 0xb56   :  { %5895 = vmatpush1.msra.mxu0 %v17937_v54  ;;  %11496 = vmatpush3.msra.mxu1 %v17581_v25  ;;  %v17973_v25 = vld [vmem:[%s20420_s4 + $0x260] sm:$0xff] }
 0xb57   :  { %5896 = vmatprep.subr.mxu0 %v17944_v45  ;;  %11497 = vmatprep.subr.mxu1 %v20764_v27 }
 0xb58   :  { %5897 = vmatpush1.msra.mxu0 %v17951_v60  ;;  %11498 = vmatpush3.msra.mxu1 %v17590_v15  ;;  %v17987_v15 = vld [vmem:[%s20420_s4 + $0x248] sm:$0xff] }
 0xb59   :  { %v12329_v18 = vpop.eup %12328  ;;  %5898 = vmatprep.subr.mxu0 %v17958_v52  ;;  %11499 = vmatprep.subr.mxu1 %v20764_v27 }
 0xb5a   :  { %v5616_v35 = vmul.f32 %v12329_v18, %v5615_v20  ;;  %5899 = vmatpush1.msra.mxu0 %v17965_v39  ;;  %11500 = vmatpush3.msra.mxu1 %v17599_v40  ;;  %v18002_v40 = vld [vmem:[%s20420_s4 + $0x230] sm:$0xff]  ;;  %v18065_v20 = vld [vmem:[%s20420_s4 + $0x1c8] sm:$0xff] }
 0xb5b   :  { %5900 = vmatprep.subr.mxu0 %v17973_v25  ;;  %11501 = vmatprep.subr.mxu1 %v20764_v27  ;;  %v18079_v18 = vld [vmem:[%s20420_s4 + $0x1b0] sm:$0xff] }
 0xb5c   :  { %v5617_v26 = vadd.f32 %v5616_v35, %v21087_v58  ;;  %5901 = vmatpush1.msra.mxu0 %v17980_v28  ;;  %11502 = vmatpush3.msra.mxu1 %v17614_v59  ;;  %v18016_v59 = vld [vmem:[%s20420_s4 + $0x218] sm:$0xff] }
 0xb5d   :  { %5902 = vmatprep.subr.mxu0 %v17987_v15  ;;  %11503 = vmatprep.subr.mxu1 %v20764_v27  ;;  %v18093_v35 = vld [vmem:[%s20420_s4 + $0x198] sm:$0xff] }
 0xb5e   :  { %12330 = vtanh.f32 %v5617_v26  ;;  %5903 = vmatpush1.msra.mxu0 %v17994_v30  ;;  %11504 = vmatpush3.msra.mxu1 %v17623_v23  ;;  %v18030_v23 = vld [vmem:[%s20420_s4 + $0x200] sm:$0xff] }
 0xb5f   :  { %5904 = vmatprep.subr.mxu0 %v18002_v40  ;;  %11505 = vmatprep.subr.mxu1 %v20764_v27  ;;  %12332 = vrcp.f32 %v5610_v48  ;;  %v18107_v26 = vld [vmem:[%s20420_s4 + $0x180] sm:$0xff] }
 0xb60   :  { %5905 = vmatpush1.msra.mxu0 %v18009_v44  ;;  %11506 = vmatpush3.msra.mxu1 %v17633_v43  ;;  %v18044_v43 = vld [vmem:[%s20420_s4 + $0x1e8] sm:$0xff] }
 0xb61   :  { %5906 = vmatprep.subr.mxu0 %v18016_v59  ;;  %11507 = vmatprep.subr.mxu1 %v20764_v27 }
 0xb62   :  { %5907 = vmatpush1.msra.mxu0 %v18023_v9  ;;  %11508 = vmatpush3.msra.mxu1 %v17642_v29  ;;  %v18058_v29 = vld [vmem:[%s20420_s4 + $0x1d0] sm:$0xff] }
 0xb63   :  { %5908 = vmatprep.subr.mxu0 %v18030_v23  ;;  %11509 = vmatprep.subr.mxu1 %v20764_v27 }
 0xb64   :  { %5909 = vmatpush1.msra.mxu0 %v18037_v14  ;;  %11510 = vmatpush3.msra.mxu1 %v17651_v10  ;;  %v18072_v10 = vld [vmem:[%s20420_s4 + $0x1b8] sm:$0xff] }
 0xb65   :  { %5910 = vmatprep.subr.mxu0 %v18044_v43  ;;  %11511 = vmatprep.subr.mxu1 %v20764_v27 }
 0xb66   :  { %5911 = vmatpush1.msra.mxu0 %v18051_v53  ;;  %11512 = vmatpush3.msra.mxu1 %v17660_v41  ;;  %v18086_v41 = vld [vmem:[%s20420_s4 + $0x1a0] sm:$0xff] }
 0xb67   :  { %5912 = vmatprep.subr.mxu0 %v18058_v29  ;;  %11513 = vmatprep.subr.mxu1 %v20764_v27 }
 0xb68   :  { %5913 = vmatpush1.msra.mxu0 %v18065_v20  ;;  %11514 = vmatpush3.msra.mxu1 %v17669_v7  ;;  %v18100_v7 = vld [vmem:[%s20420_s4 + $0x188] sm:$0xff] }
 0xb69   :  { %5914 = vmatprep.subr.mxu0 %v18072_v10  ;;  %11515 = vmatprep.subr.mxu1 %v20764_v27 }
 0xb6a   :  { %5915 = vmatpush1.msra.mxu0 %v18079_v18  ;;  %11516 = vmatpush3.msra.mxu1 %v17678_v51 }
 0xb6b   :  { %v12331_v58 = vpop.eup %12330  ;;  %5916 = vmatprep.subr.mxu0 %v18086_v41  ;;  %11517 = vmatprep.subr.mxu1 %v20764_v27 }
 0xb6c   :  { %5917 = vmatpush1.msra.mxu0 %v18093_v35  ;;  %11518 = vmatpush3.msra.mxu1 %v17687_v62  ;;  %v5619_v51 = vsub.f32 %v17708_v6, %v12331_v58  ;;  %v12333_v48 = vpop.eup %12332  ;;  %v18130_v62 = vld [vmem:[%s20420_s4 + $0x170] sm:$0xff]  ;;  %v18167_v6 = vld [vmem:[%s20420_s4 + $0x140] sm:$0xff] }
 0xb6d   :  { %5918 = vmatprep.subr.mxu0 %v18100_v7  ;;  %11519 = vmatprep.subr.mxu1 %v20764_v27  ;;  %21092 = vst [vmem:[#allocation12_spill] sm:$0xff] %v18167_v6 }
 0xb6e   :  { %5919 = vmatpush1.msra.mxu0 %v18107_v26  ;;  %5952 = vmatprep.mubr.f32.mxu0 %v20764_v27  ;;  %v5620_v38 = vmul.f32 %v12333_v48, %v5619_v51  ;;  %v18155_v51 = vld [vmem:[%s20420_s4 + $0x150] sm:$0xff]  ;;  %v18160_v48 = vld [vmem:[%s20420_s4 + $0x160] sm:$0xff] }
 0xb6f   :  { %11520 = vmatpush3.msra.mxu1 %v17698_v61  ;;  %11521 = vmatprep.mubr.msk.f32.mxu1 %vm12447_vm0, %v20764_v27  ;;  %v18141_v61 = vld [vmem:[%s20420_s4 + $0x178] sm:$0xff]  ;;  %21090 = vst [vmem:[#allocation114_spill] sm:$0xff] %v18155_v51  ;;  %21091 = vst [vmem:[#allocation117_spill] sm:$0xff] %v18160_v48 }
 0xb70   :  { %v18119_v63 = vadd.f32 %v12331_v58, %v5620_v38  ;;  %11524 = vmatprep.subr.mxu1 %v20764_v27  ;;  %6103 = vmatprep.subr.mxu0 %v18130_v62  ;;  %v18136_v38 = vld [vmem:[%s20420_s4 + $0x168] sm:$0xff]  ;;  %v18148_v58 = vld [vmem:[%s20420_s4 + $0x158] sm:$0xff] }
 0xb71   :  { %21089 = vst [vmem:[#allocation121_spill] sm:$0xff] %v18148_v58 }
 0xb72   :  { %21088 = vst [vmem:[#allocation115_spill] sm:$0xff] %v18119_v63  ;;  %5953 = vmatmul.mubr.f32.vlgmr.msra.gmra.mxu0 %v18119_v63  ;;  %11522 = vmatmul.mubr.f32.vlgmr.msra.gmra.mxu1 %v18119_v63 }
 0xb73   :  { %6167 = vmatprep.mubr.f32.mxu0 %v20764_v27  ;;  %11556 = vmatprep.mubr.msk.f32.mxu1 %vm12447_vm0, %v20764_v27 }
 0xb74   :  { %6104 = vmatpush1.msra.mxu0 %v18136_v38  ;;  %11525 = vmatpush3.msra.mxu1 %v18141_v61 }
 0xb75   :  { %6105 = vmatprep.subr.mxu0 %v18148_v58  ;;  %11526 = vmatprep.subr.mxu1 %v20764_v27  ;;  %v18174_v58 = vld [vmem:[%s20420_s4 + $0x138] sm:$0xff] }
 0xb76   :  { %6106 = vmatpush1.msra.mxu0 %v18155_v51  ;;  %11527 = vmatpush3.msra.mxu1 %v18160_v48  ;;  %v18179_v51 = vld [vmem:[%s20420_s4 + $0x148] sm:$0xff]  ;;  %v18193_v48 = vld [vmem:[%s20420_s4 + $0x130] sm:$0xff] }
 0xb77   :  { %6107 = vmatprep.subr.mxu0 %v18167_v6  ;;  %11528 = vmatprep.subr.mxu1 %v20764_v27  ;;  %21093 = vst [vmem:[#allocation13_spill] sm:$0xff] %v18179_v51  ;;  %v18186_v6 = vld [vmem:[%s20420_s4 + $0x128] sm:$0xff] }
 0xb78   :  { %6108 = vmatpush1.msra.mxu0 %v18174_v58  ;;  %11529 = vmatpush3.msra.mxu1 %v18179_v51  ;;  %v18202_v51 = vld [vmem:[%s20420_s4 + $0x118] sm:$0xff] }
 0xb79   :  { %6109 = vmatprep.subr.mxu0 %v18186_v6  ;;  %11530 = vmatprep.subr.mxu1 %v20764_v27  ;;  %21094 = vst [vmem:[#allocation90_spill] sm:$0xff] %v18202_v51 }
 0xb7a   :  { %6110 = vmatpush1.msra.mxu0 %v17758_v12  ;;  %11531 = vmatpush3.msra.mxu1 %v18193_v48  ;;  %v18211_v12 = vld [vmem:[%s20420_s4 + $0x100] sm:$0xff] }
 0xb7b   :  { %6111 = vmatprep.subr.mxu0 %v17764_v32  ;;  %11532 = vmatprep.subr.mxu1 %v20764_v27  ;;  %21095 = vst [vmem:[#allocation24_spill] sm:$0xff] %v18211_v12  ;;  %v18220_v32 = vld [vmem:[%s20420_s4 + $0xe8] sm:$0xff] }
 0xb7c   :  { %6112 = vmatpush1.msra.mxu0 %v17770_v21  ;;  %11533 = vmatpush3.msra.mxu1 %v18202_v51  ;;  %21096 = vst [vmem:[#allocation91_spill] sm:$0xff] %v18220_v32  ;;  %v18229_v21 = vld [vmem:[%s20420_s4 + $0xd0] sm:$0xff] }
 0xb7d   :  { %6113 = vmatprep.subr.mxu0 %v17776_v4  ;;  %11534 = vmatprep.subr.mxu1 %v20764_v27  ;;  %21097 = vst [vmem:[#allocation74_spill] sm:$0xff] %v18229_v21  ;;  %v18238_v4 = vld [vmem:[%s20420_s4 + $0xb8] sm:$0xff] }
 0xb7e   :  { %6114 = vmatpush1.msra.mxu0 %v17782_v36  ;;  %11535 = vmatpush3.msra.mxu1 %v18211_v12  ;;  %21098 = vst [vmem:[#allocation15_spill] sm:$0xff] %v18238_v4  ;;  %v18247_v36 = vld [vmem:[%s20420_s4 + $0xa0] sm:$0xff]  ;;  %v21117_v12 = vld [vmem:[#allocation36_spill] sm:$0xff] }
 0xb7f   :  { %6115 = vmatprep.subr.mxu0 %v17788_v55  ;;  %11536 = vmatprep.subr.mxu1 %v20764_v27  ;;  %21099 = vst [vmem:[#allocation16_spill] sm:$0xff] %v18247_v36  ;;  %v18256_v55 = vld [vmem:[%s20420_s4 + $0x88] sm:$0xff] }
 0xb80   :  { %6116 = vmatpush1.msra.mxu0 %v17794_v17  ;;  %11537 = vmatpush3.msra.mxu1 %v18220_v32  ;;  %21100 = vst [vmem:[#allocation88_spill] sm:$0xff] %v18256_v55  ;;  %v18265_v17 = vld [vmem:[%s20420_s4 + $0x60] sm:$0xff]  ;;  %v21116_v32 = vld [vmem:[#allocation68_spill] sm:$0xff] }
 0xb81   :  { %6117 = vmatprep.subr.mxu0 %v17800_v22  ;;  %11538 = vmatprep.subr.mxu1 %v20764_v27  ;;  %21101 = vst [vmem:[#allocation22_spill] sm:$0xff] %v18265_v17  ;;  %v18270_v22 = vld [vmem:[%s20420_s4 + $0x70] sm:$0xff] }
 0xb82   :  { %6118 = vmatpush1.msra.mxu0 %v17806_v3  ;;  %11539 = vmatpush3.msra.mxu1 %v18229_v21  ;;  %21102 = vst [vmem:[#allocation75_spill] sm:$0xff] %v18270_v22  ;;  %v18279_v3 = vld [vmem:[%s20420_s4 + $0x58] sm:$0xff]  ;;  %v21115_v21 = vld [vmem:[#allocation98_spill] sm:$0xff] }
 0xb83   :  { %6119 = vmatprep.subr.mxu0 %v17812_v11  ;;  %11540 = vmatprep.subr.mxu1 %v20764_v27  ;;  %21103 = vst [vmem:[#allocation19_spill] sm:$0xff] %v18279_v3  ;;  %v18288_v11 = vld [vmem:[%s20420_s4 + $0x30] sm:$0xff] }
 0xb84   :  { %6120 = vmatpush1.msra.mxu0 %v17818_v2  ;;  %11541 = vmatpush3.msra.mxu1 %v18238_v4  ;;  %21104 = vst [vmem:[#allocation9_spill] sm:$0xff] %v18288_v11  ;;  %v18293_v2 = vld [vmem:[%s20420_s4 + $0x40] sm:$0xff] }
 0xb85   :  { %6121 = vmatprep.subr.mxu0 %v17824_v49  ;;  %11542 = vmatprep.subr.mxu1 %v20764_v27  ;;  %21105 = vst [vmem:[#allocation120_spill] sm:$0xff] %v18293_v2  ;;  %v18300_v49 = vld [vmem:[%s20420_s4 + $0x20] sm:$0xff] }
 0xb86   :  { %6122 = vmatpush1.msra.mxu0 %v17830_v37  ;;  %11543 = vmatpush3.msra.mxu1 %v18247_v36  ;;  %21106 = vst [vmem:[#allocation89_spill] sm:$0xff] %v18300_v49  ;;  %v18307_v37 = vld [vmem:[%s20420_s4 + $0x18] sm:$0xff] }
 0xb87   :  { %6123 = vmatprep.subr.mxu0 %v17836_v56  ;;  %11544 = vmatprep.subr.mxu1 %v20764_v27  ;;  %21107 = vst [vmem:[#allocation99_spill] sm:$0xff] %v18307_v37  ;;  %v18312_v56 = vld [vmem:[%s20420_s4 + $0x28] sm:$0xff] }
 0xb88   :  { %6124 = vmatpush1.msra.mxu0 %v17842_v1  ;;  %11545 = vmatpush3.msra.mxu1 %v18256_v55  ;;  %21108 = vst [vmem:[#allocation94_spill] sm:$0xff] %v18312_v56  ;;  %v18319_v1 = vld [vmem:[%s20420_s4 + $0x8] sm:$0xff] }
 0xb89   :  { %6125 = vmatprep.subr.mxu0 %v17848_v57  ;;  %11546 = vmatprep.subr.mxu1 %v20764_v27  ;;  %21109 = vst [vmem:[#allocation95_spill] sm:$0xff] %v18319_v1  ;;  %v18326_v57 = vld [vmem:[%s20420_s4] sm:$0xff] }
 0xb8a   :  { %6126 = vmatpush1.msra.mxu0 %v18265_v17  ;;  %11547 = vmatpush3.msra.mxu1 %v18270_v22  ;;  %21110 = vst [vmem:[#allocation78_spill] sm:$0xff] %v18326_v57 }
 0xb8b   :  { %6127 = vmatprep.subr.mxu0 %v17855_v34  ;;  %11548 = vmatprep.subr.mxu1 %v20764_v27  ;;  %v18331_v34 = vld [vmem:[%s20420_s4 + $0x10] sm:$0xff] }
 0xb8c   :  { %6128 = vmatpush1.msra.mxu0 %v17861_v13  ;;  %11549 = vmatpush3.msra.mxu1 %v18279_v3  ;;  %21111 = vst [vmem:[#allocation25_spill] sm:$0xff] %v18331_v34 }
 0xb8d   :  { %6129 = vmatprep.subr.mxu0 %v17867_v16  ;;  %11550 = vmatprep.subr.mxu1 %v20764_v27 }
 0xb8e   :  { %6130 = vmatpush1.msra.mxu0 %v18288_v11  ;;  %11551 = vmatpush3.msra.mxu1 %v18293_v2 }
 0xb8f   :  { %6131 = vmatprep.subr.mxu0 %v18300_v49  ;;  %11552 = vmatprep.subr.mxu1 %v20764_v27 }
 0xb90   :  { %6132 = vmatpush1.msra.mxu0 %v18307_v37  ;;  %11553 = vmatpush3.msra.mxu1 %v18312_v56  ;;  %v21113_v56 = vld [vmem:[#allocation37_spill] sm:$0xff] }
 0xb91   :  { %6133 = vmatprep.subr.mxu0 %v18319_v1  ;;  %11554 = vmatprep.subr.mxu1 %v20764_v27  ;;  %v21112_v1 = vld [vmem:[#allocation35_spill] sm:$0xff]  ;;  %v257_v2 = vadd.f32 %v21113_v56, %v21079_v46 }
 0xb92   :  { %6134 = vmatpush1.msra.mxu0 %v18326_v57  ;;  %11555 = vmatpush3.msra.mxu1 %v18331_v34  ;;  %v21114_v34 = vld [vmem:[#allocation83_spill] sm:$0xff] }
 0xb93   :  { %6316 = vmatprep.subr.mxu0 %v17878_v0  ;;  %11559 = vmatprep.subr.mxu1 %v20764_v27 }
 0xc0f   :  { %v5741_v13 = vpop.f32.mrf.mxu0  ;;  %v5812_v16 = vpop.f32.mrf.mxu1 }
 0xc10   :  { %v5816_v37 = vadd.f32 %v5741_v13, %v21112_v1  ;;  %v5830_v36 = vadd.f32 %v21114_v34, %v5812_v16  ;;  %v634_v1 = vadd.f32 %v21116_v32, %v21115_v21 }
 0xc11   :  { %v11488_v49 = vpop.f32.mrf.mxu1  ;;  %v5743_v17 = vpop.f32.mrf.mxu0 }
 0xc12   :  { %v9505_v11 = vmul.f32 -1.442695, %v5816_v37  ;;  %v5817_v3 = vadd.f32 %v5743_v17, %v257_v2 }
 0xc14   :  { %12334 = vpow2.f32 %v9505_v11  ;;  %v9506_v22 = vmul.f32 -1.442695, %v5817_v3 }
 0xc16   :  { %12336 = vpow2.f32 %v9506_v22  ;;  %v21118_v22 = vld [vmem:[#allocation69_spill] sm:$0xff] }
 0xc17   :  { %v636_v2 = vadd.f32 %v21118_v22, %v13897_v42  ;;  %v18561_v22 = vld [vmem:[%s20420_s4 + $0x108] sm:$0xff] }
 0xc21   :  { %v12335_v57 = vpop.eup %12334 }
 0xc22   :  { %v5824_v55 = vadd.f32 1.0, %v12335_v57 }
 0xc23   :  { %v12337_v0 = vpop.eup %12336 }
 0xc24   :  { %12338 = vrcp.f32 %v5824_v55  ;;  %v5825_v56 = vadd.f32 1.0, %v12337_v0 }
 0xc31   :  { %v12339_v4 = vpop.eup %12338 }
 0xc32   :  { %v5831_v49 = vmul.f32 %v12339_v4, %v5830_v36  ;;  %v5954_v37 = vpop.f32.mrf.mxu0  ;;  %v6025_v11 = vpop.f32.mrf.mxu1 }
 0xc33   :  { %v6029_v13 = vadd.f32 %v5954_v37, %v634_v1  ;;  %v18368_v37 = vld [vmem:[%s20420_s4 + $0x2c8] sm:$0xff] }
 0xc34   :  { %v5832_v51 = vadd.f32 %v5831_v49, %v21117_v12  ;;  %v11523_v17 = vpop.f32.mrf.mxu1  ;;  %v5956_v55 = vpop.f32.mrf.mxu0  ;;  %v18359_v49 = vld [vmem:[%s20420_s4 + $0x2e0] sm:$0xff] }
 0xc35   :  { %v9555_v3 = vmul.f32 -1.442695, %v6029_v13  ;;  %v6030_v57 = vadd.f32 %v5956_v55, %v636_v2  ;;  %v21136_v13 = vld [vmem:[#allocation120_spill] sm:$0xff]  ;;  %v21138_v17 = vld [vmem:[#allocation25_spill] sm:$0xff] }
 0xc36   :  { %12340 = vtanh.f32 %v5832_v51  ;;  %v18352_v51 = vld [vmem:[%s20420_s4 + $0x2f8] sm:$0xff]  ;;  %v18555_v55 = vld [vmem:[%s20420_s4 + $0x110] sm:$0xff] }
 0xc37   :  { %12342 = vpow2.f32 %v9555_v3  ;;  %v9556_v34 = vmul.f32 -1.442695, %v6030_v57  ;;  %v18549_v3 = vld [vmem:[%s20420_s4 + $0x120] sm:$0xff]  ;;  %v18567_v2 = vld [vmem:[%s20420_s4 + $0xf8] sm:$0xff]  ;;  %v18573_v57 = vld [vmem:[%s20420_s4 + $0xf0] sm:$0xff] }
 0xc38   :  { %12344 = vrcp.f32 %v5825_v56  ;;  %v21137_v56 = vld [vmem:[#allocation94_spill] sm:$0xff] }
 0xc39   :  { %12346 = vpow2.f32 %v9556_v34  ;;  %v18579_v34 = vld [vmem:[%s20420_s4 + $0xe0] sm:$0xff] }
 0xc43   :  { %v12341_v16 = vpop.eup %12340 }
 0xc44   :  { %v12343_v32 = vpop.eup %12342  ;;  %v5834_v4 = vsub.f32 %v17892_v33, %v12341_v16 }
 0xc45   :  { %v12345_v36 = vpop.eup %12344  ;;  %v6037_v1 = vadd.f32 1.0, %v12343_v32  ;;  %v18591_v32 = vld [vmem:[%s20420_s4 + $0xc8] sm:$0xff] }
 0xc46   :  { %v5835_v12 = vmul.f32 %v12345_v36, %v5834_v4  ;;  %v18597_v4 = vld [vmem:[%s20420_s4 + $0xc0] sm:$0xff]  ;;  %v18603_v36 = vld [vmem:[%s20420_s4 + $0xb0] sm:$0xff] }
 0xc47   :  { %12348 = vrcp.f32 %v6037_v1  ;;  %v18609_v1 = vld [vmem:[%s20420_s4 + $0xa8] sm:$0xff] }
 0xc48   :  { %v18347_v0 = vadd.f32 %v12341_v16, %v5835_v12  ;;  %v18585_v16 = vld [vmem:[%s20420_s4 + $0xd8] sm:$0xff] }
 0xc49   :  { %v18615_v12 = vld [vmem:[%s20420_s4 + $0x98] sm:$0xff] }
 0xc4a   :  { %21119 = vst [vmem:[#allocation26_spill] sm:$0xff] %v18347_v0  ;;  %6168 = vmatmul.mubr.f32.vlgmr.msra.gmra.mxu0 %v18347_v0  ;;  %11557 = vmatmul.mubr.f32.vlgmr.msra.gmra.mxu1 %v18347_v0 }
 0xc4b   :  { %6317 = vmatpush1.msra.mxu0 %v17897_v31  ;;  %11560 = vmatpush3.msra.mxu1 %v18352_v51  ;;  %v18377_v31 = vld [vmem:[%s20420_s4 + $0x2b0] sm:$0xff] }
 0xc4c   :  { %6318 = vmatprep.subr.mxu0 %v17902_v47  ;;  %11561 = vmatprep.subr.mxu1 %v20764_v27  ;;  %v18386_v47 = vld [vmem:[%s20420_s4 + $0x298] sm:$0xff] }
 0xc4d   :  { %6319 = vmatpush1.msra.mxu0 %v17909_v24  ;;  %11562 = vmatpush3.msra.mxu1 %v18359_v49  ;;  %v18395_v24 = vld [vmem:[%s20420_s4 + $0x280] sm:$0xff] }
 0xc4e   :  { %6320 = vmatprep.subr.mxu0 %v17916_v8  ;;  %11563 = vmatprep.subr.mxu1 %v20764_v27  ;;  %v12347_v8 = vpop.eup %12346 }
 0xc4f   :  { %6321 = vmatpush1.msra.mxu0 %v17923_v50  ;;  %11564 = vmatpush3.msra.mxu1 %v18368_v37  ;;  %v6043_v50 = vadd.f32 %v17604_v19, %v6025_v11  ;;  %v18414_v19 = vld [vmem:[%s20420_s4 + $0x250] sm:$0xff]  ;;  %v6038_v11 = vadd.f32 1.0, %v12347_v8 }
 0xc50   :  { %6322 = vmatprep.subr.mxu0 %v17930_v5  ;;  %11565 = vmatprep.subr.mxu1 %v20764_v27  ;;  %v18621_v8 = vld [vmem:[%s20420_s4 + $0x90] sm:$0xff] }
 0xc51   :  { %6323 = vmatpush1.msra.mxu0 %v17937_v54  ;;  %11566 = vmatpush3.msra.mxu1 %v18377_v31  ;;  %v18405_v54 = vld [vmem:[%s20420_s4 + $0x268] sm:$0xff] }
 0xc52   :  { %6324 = vmatprep.subr.mxu0 %v17944_v45  ;;  %11567 = vmatprep.subr.mxu1 %v20764_v27 }
 0xc53   :  { %6325 = vmatpush1.msra.mxu0 %v17951_v60  ;;  %11568 = vmatpush3.msra.mxu1 %v18386_v47  ;;  %v21120_v60 = vld [vmem:[#allocation63_spill] sm:$0xff] }
 0xc54   :  { %v12349_v5 = vpop.eup %12348  ;;  %6326 = vmatprep.subr.mxu0 %v17958_v52  ;;  %11569 = vmatprep.subr.mxu1 %v20764_v27 }
 0xc55   :  { %v6044_v45 = vmul.f32 %v12349_v5, %v6043_v50  ;;  %6327 = vmatpush1.msra.mxu0 %v17965_v39  ;;  %11570 = vmatpush3.msra.mxu1 %v18395_v24  ;;  %v18424_v39 = vld [vmem:[%s20420_s4 + $0x238] sm:$0xff]  ;;  %v18627_v50 = vld [vmem:[%s20420_s4 + $0x80] sm:$0xff] }
 0xc56   :  { %6328 = vmatprep.subr.mxu0 %v17973_v25  ;;  %11571 = vmatprep.subr.mxu1 %v20764_v27  ;;  %v18433_v25 = vld [vmem:[%s20420_s4 + $0x220] sm:$0xff]  ;;  %v18633_v5 = vld [vmem:[%s20420_s4 + $0x78] sm:$0xff] }
 0xc57   :  { %v6045_v52 = vadd.f32 %v6044_v45, %v21120_v60  ;;  %6329 = vmatpush1.msra.mxu0 %v17980_v28  ;;  %11572 = vmatpush3.msra.mxu1 %v18405_v54  ;;  %v18442_v28 = vld [vmem:[%s20420_s4 + $0x208] sm:$0xff]  ;;  %v21139_v60 = vld [vmem:[#allocation22_spill] sm:$0xff] }
 0xc58   :  { %6330 = vmatprep.subr.mxu0 %v17987_v15  ;;  %11573 = vmatprep.subr.mxu1 %v20764_v27  ;;  %v18451_v15 = vld [vmem:[%s20420_s4 + $0x1f0] sm:$0xff]  ;;  %v18639_v45 = vld [vmem:[%s20420_s4 + $0x68] sm:$0xff] }
 0xc59   :  { %12350 = vtanh.f32 %v6045_v52  ;;  %6331 = vmatpush1.msra.mxu0 %v17994_v30  ;;  %11574 = vmatpush3.msra.mxu1 %v18414_v19  ;;  %v18460_v30 = vld [vmem:[%s20420_s4 + $0x1d8] sm:$0xff]  ;;  %v18646_v52 = vld [vmem:[%s20420_s4 + $0x50] sm:$0xff] }
 0xc5a   :  { %6332 = vmatprep.subr.mxu0 %v18002_v40  ;;  %11575 = vmatprep.subr.mxu1 %v20764_v27  ;;  %12352 = vrcp.f32 %v6038_v11  ;;  %v18469_v40 = vld [vmem:[%s20420_s4 + $0x1c0] sm:$0xff]  ;;  %v18652_v11 = vld [vmem:[%s20420_s4 + $0x48] sm:$0xff] }
 0xc5b   :  { %6333 = vmatpush1.msra.mxu0 %v18009_v44  ;;  %11576 = vmatpush3.msra.mxu1 %v18424_v39  ;;  %v18478_v44 = vld [vmem:[%s20420_s4 + $0x1a8] sm:$0xff] }
 0xc5c   :  { %6334 = vmatprep.subr.mxu0 %v18016_v59  ;;  %11577 = vmatprep.subr.mxu1 %v20764_v27 }
 0xc5d   :  { %6335 = vmatpush1.msra.mxu0 %v18023_v9  ;;  %11578 = vmatpush3.msra.mxu1 %v18433_v25  ;;  %v18489_v9 = vld [vmem:[%s20420_s4 + $0x190] sm:$0xff] }
 0xc5e   :  { %6336 = vmatprep.subr.mxu0 %v18030_v23  ;;  %11579 = vmatprep.subr.mxu1 %v20764_v27 }
 0xc5f   :  { %6337 = vmatpush1.msra.mxu0 %v18037_v14  ;;  %11580 = vmatpush3.msra.mxu1 %v18442_v28 }
 0xc60   :  { %6338 = vmatprep.subr.mxu0 %v18044_v43  ;;  %11581 = vmatprep.subr.mxu1 %v20764_v27 }
 0xc61   :  { %6339 = vmatpush1.msra.mxu0 %v18051_v53  ;;  %11582 = vmatpush3.msra.mxu1 %v18451_v15 }
 0xc62   :  { %6340 = vmatprep.subr.mxu0 %v18058_v29  ;;  %11583 = vmatprep.subr.mxu1 %v20764_v27  ;;  %v21122_v29 = vld [vmem:[#allocation121_spill] sm:$0xff] }
 0xc63   :  { %6341 = vmatpush1.msra.mxu0 %v18065_v20  ;;  %11584 = vmatpush3.msra.mxu1 %v18460_v30  ;;  %v21123_v20 = vld [vmem:[#allocation114_spill] sm:$0xff] }
 0xc64   :  { %6342 = vmatprep.subr.mxu0 %v18072_v10  ;;  %11585 = vmatprep.subr.mxu1 %v20764_v27  ;;  %v21124_v10 = vld [vmem:[#allocation117_spill] sm:$0xff] }
 0xc65   :  { %6343 = vmatpush1.msra.mxu0 %v18079_v18  ;;  %11586 = vmatpush3.msra.mxu1 %v18469_v40  ;;  %v21125_v18 = vld [vmem:[#allocation12_spill] sm:$0xff] }
 0xc66   :  { %v12351_v59 = vpop.eup %12350  ;;  %6344 = vmatprep.subr.mxu0 %v18086_v41  ;;  %11587 = vmatprep.subr.mxu1 %v20764_v27  ;;  %v21126_v41 = vld [vmem:[#allocation13_spill] sm:$0xff] }
 0xc67   :  { %6345 = vmatpush1.msra.mxu0 %v18093_v35  ;;  %11588 = vmatpush3.msra.mxu1 %v18478_v44  ;;  %v6047_v23 = vsub.f32 %v18119_v63, %v12351_v59  ;;  %v12353_v14 = vpop.eup %12352  ;;  %v21127_v35 = vld [vmem:[#allocation90_spill] sm:$0xff] }
 0xc68   :  { %6346 = vmatprep.subr.mxu0 %v18100_v7  ;;  %11589 = vmatprep.subr.mxu1 %v20764_v27  ;;  %v21128_v7 = vld [vmem:[#allocation24_spill] sm:$0xff] }
 0xc69   :  { %6347 = vmatpush1.msra.mxu0 %v18107_v26  ;;  %6380 = vmatprep.mubr.f32.mxu0 %v20764_v27  ;;  %v6048_v43 = vmul.f32 %v12353_v14, %v6047_v23  ;;  %v21130_v26 = vld [vmem:[#allocation74_spill] sm:$0xff]  ;;  %v21140_v23 = vld [vmem:[#allocation9_spill] sm:$0xff] }
 0xc6a   :  { %11590 = vmatpush3.msra.mxu1 %v18489_v9  ;;  %11591 = vmatprep.mubr.msk.f32.mxu1 %vm12447_vm0, %v20764_v27  ;;  %v21141_v14 = vld [vmem:[#allocation89_spill] sm:$0xff] }
 0xc6b   :  { %v18499_v53 = vadd.f32 %v12351_v59, %v6048_v43  ;;  %6531 = vmatprep.subr.mxu0 %v18130_v62  ;;  %11594 = vmatprep.subr.mxu1 %v20764_v27  ;;  %v21131_v62 = vld [vmem:[#allocation15_spill] sm:$0xff]  ;;  %v18658_v59 = vld [vmem:[%s20420_s4 + $0x38] sm:$0xff] }
 0xc6c   :  { %v21142_v43 = vld [vmem:[#allocation99_spill] sm:$0xff] }
 0xc6d   :  { %21121 = vst [vmem:[#allocation119_spill] sm:$0xff] %v18499_v53  ;;  %6381 = vmatmul.mubr.f32.vlgmr.msra.gmra.mxu0 %v18499_v53  ;;  %11592 = vmatmul.mubr.f32.vlgmr.msra.gmra.mxu1 %v18499_v53 }
 0xc6e   :  { %6532 = vmatpush1.msra.mxu0 %v18136_v38  ;;  %11595 = vmatpush3.msra.mxu1 %v18141_v61  ;;  %v21132_v38 = vld [vmem:[#allocation16_spill] sm:$0xff] }
 0xc6f   :  { %6533 = vmatprep.subr.mxu0 %v21122_v29  ;;  %11596 = vmatprep.subr.mxu1 %v20764_v27  ;;  %v21133_v61 = vld [vmem:[#allocation88_spill] sm:$0xff]  ;;  %v21143_v29 = vld [vmem:[#allocation95_spill] sm:$0xff] }
 0xc70   :  { %6534 = vmatpush1.msra.mxu0 %v21123_v20  ;;  %11597 = vmatpush3.msra.mxu1 %v21124_v10  ;;  %v21144_v20 = vld [vmem:[#allocation78_spill] sm:$0xff]  ;;  %v18669_v10 = vld [vmem:[%s20420_s4 + $0x2f0] sm:$0xff] }
 0xc71   :  { %6535 = vmatprep.subr.mxu0 %v21125_v18  ;;  %11598 = vmatprep.subr.mxu1 %v20764_v27 }
 0xc72   :  { %6536 = vmatpush1.msra.mxu0 %v18174_v58  ;;  %11599 = vmatpush3.msra.mxu1 %v21126_v41  ;;  %v21134_v58 = vld [vmem:[#allocation75_spill] sm:$0xff] }
 0xc73   :  { %6537 = vmatprep.subr.mxu0 %v18186_v6  ;;  %11600 = vmatprep.subr.mxu1 %v20764_v27  ;;  %v21129_v6 = vld [vmem:[#allocation91_spill] sm:$0xff] }
 0xc74   :  { %11601 = vmatpush3.msra.mxu1 %v18193_v48  ;;  %6595 = vmatprep.mubr.f32.mxu0 %v20764_v27  ;;  %v21135_v48 = vld [vmem:[#allocation19_spill] sm:$0xff] }
 0xc75   :  { %11602 = vmatprep.subr.mxu1 %v20764_v27  ;;  %11626 = vmatprep.mubr.msk.f32.mxu1 %vm12447_vm0, %v20764_v27 }
 0xc76   :  { %11603 = vmatpush3.msra.mxu1 %v21127_v35  ;;  %6538 = vmatpush1.msra.mxu0 %v18549_v3  ;;  %v21145_v35 = vld [vmem:[#allocation39_spill] sm:$0xff] }
 0xc77   :  { %11604 = vmatprep.subr.mxu1 %v20764_v27  ;;  %6539 = vmatprep.subr.mxu0 %v18555_v55 }
 0xc78   :  { %11605 = vmatpush3.msra.mxu1 %v21128_v7  ;;  %6540 = vmatpush1.msra.mxu0 %v18561_v22 }
 0xc79   :  { %11606 = vmatprep.subr.mxu1 %v20764_v27  ;;  %6541 = vmatprep.subr.mxu0 %v18567_v2 }
 0xc7a   :  { %11607 = vmatpush3.msra.mxu1 %v21129_v6  ;;  %6542 = vmatpush1.msra.mxu0 %v18573_v57 }
 0xc7b   :  { %11608 = vmatprep.subr.mxu1 %v20764_v27  ;;  %6543 = vmatprep.subr.mxu0 %v18579_v34 }
 0xc7c   :  { %11609 = vmatpush3.msra.mxu1 %v21130_v26  ;;  %6544 = vmatpush1.msra.mxu0 %v18585_v16 }
 0xc7d   :  { %11610 = vmatprep.subr.mxu1 %v20764_v27  ;;  %6545 = vmatprep.subr.mxu0 %v18591_v32 }
 0xc7e   :  { %11611 = vmatpush3.msra.mxu1 %v21131_v62  ;;  %6546 = vmatpush1.msra.mxu0 %v18597_v4 }
 0xc7f   :  { %11612 = vmatprep.subr.mxu1 %v20764_v27  ;;  %6547 = vmatprep.subr.mxu0 %v18603_v36 }
 0xc80   :  { %11613 = vmatpush3.msra.mxu1 %v21132_v38  ;;  %6548 = vmatpush1.msra.mxu0 %v18609_v1  ;;  %v21146_v38 = vld [vmem:[#allocation40_spill] sm:$0xff] }
 0xc81   :  { %11614 = vmatprep.subr.mxu1 %v20764_v27  ;;  %6549 = vmatprep.subr.mxu0 %v18615_v12 }
 0xc82   :  { %11615 = vmatpush3.msra.mxu1 %v21133_v61  ;;  %6550 = vmatpush1.msra.mxu0 %v18621_v8  ;;  %v263_v61 = vadd.f32 %v21146_v38, %v21079_v46 }
 0xc83   :  { %11616 = vmatprep.subr.mxu1 %v20764_v27  ;;  %6551 = vmatprep.subr.mxu0 %v18627_v50 }
 0xc84   :  { %11617 = vmatpush3.msra.mxu1 %v21134_v58  ;;  %6552 = vmatpush1.msra.mxu0 %v18633_v5 }
 0xc85   :  { %11618 = vmatprep.subr.mxu1 %v20764_v27  ;;  %6553 = vmatprep.subr.mxu0 %v18639_v45 }
 0xc86   :  { %11619 = vmatpush3.msra.mxu1 %v21135_v48  ;;  %6554 = vmatpush1.msra.mxu0 %v21139_v60  ;;  %v18678_v60 = vld [vmem:[%s20423_s5] ss:$0 sm:$0xff] }
 0xc87   :  { %11620 = vmatprep.subr.mxu1 %v20764_v27  ;;  %6555 = vmatprep.subr.mxu0 %v18646_v52  ;;  %21147 = vst [vmem:[#allocation80_spill] sm:$0xff] %v18678_v60 }
 0xc88   :  { %11621 = vmatpush3.msra.mxu1 %v21136_v13  ;;  %6556 = vmatpush1.msra.mxu0 %v18652_v11 }
 0xc89   :  { %11622 = vmatprep.subr.mxu1 %v20764_v27  ;;  %6557 = vmatprep.subr.mxu0 %v18658_v59 }
 0xc8a   :  { %11623 = vmatpush3.msra.mxu1 %v21137_v56  ;;  %6558 = vmatpush1.msra.mxu0 %v21140_v23 }
 0xc8b   :  { %11624 = vmatprep.subr.mxu1 %v20764_v27  ;;  %6559 = vmatprep.subr.mxu0 %v21141_v14 }
 0xc8c   :  { %11625 = vmatpush3.msra.mxu1 %v21138_v17  ;;  %6560 = vmatpush1.msra.mxu0 %v21142_v43  ;;  %v21148_v43 = vld [vmem:[#allocation64_spill] sm:$0xff] }
 0xc8d   :  { %11629 = vmatprep.subr.mxu1 %v20764_v27  ;;  %6561 = vmatprep.subr.mxu0 %v21143_v29  ;;  %v628_v29 = vadd.f32 %v21148_v43, %v21115_v21 }
 0xc8e   :  { %6562 = vmatpush1.msra.mxu0 %v21144_v20  ;;  %v21149_v20 = vld [vmem:[#allocation11_spill] sm:$0xff] }
 0xc8f   :  { %6744 = vmatprep.subr.mxu0 %v18669_v10 }
 0xd0a   :  { %v6169_v18 = vpop.f32.mrf.mxu0  ;;  %v6240_v41 = vpop.f32.mrf.mxu1 }
 0xd0b   :  { %v6244_v7 = vadd.f32 %v6169_v18, %v21145_v35  ;;  %v6258_v23 = vadd.f32 %v18678_v60, %v6240_v41  ;;  %v21150_v18 = vld [vmem:[#allocation42_spill] sm:$0xff]  ;;  %v21151_v41 = vld [vmem:[#allocation65_spill] sm:$0xff] }
 0xd0c   :  { %v11558_v6 = vpop.f32.mrf.mxu1  ;;  %v6171_v62 = vpop.f32.mrf.mxu0  ;;  %v410_v35 = vadd.f32 %v21150_v18, %v21149_v20 }
 0xd0d   :  { %v9557_v26 = vmul.f32 -1.442695, %v6244_v7  ;;  %v6245_v58 = vadd.f32 %v6171_v62, %v263_v61 }
 0xd0f   :  { %12354 = vpow2.f32 %v9557_v26  ;;  %v9558_v48 = vmul.f32 -1.442695, %v6245_v58 }
 0xd11   :  { %12356 = vpow2.f32 %v9558_v48 }
 0xd1c   :  { %v12355_v13 = vpop.eup %12354 }
 0xd1d   :  { %v6252_v56 = vadd.f32 1.0, %v12355_v13 }
 0xd1e   :  { %v12357_v17 = vpop.eup %12356 }
 0xd1f   :  { %12358 = vrcp.f32 %v6252_v56  ;;  %v6253_v61 = vadd.f32 1.0, %v12357_v17  ;;  %v630_v56 = vadd.f32 %v21151_v41, %v13897_v42  ;;  %v18781_v41 = vld [vmem:[%s20420_s4 + $0x258] sm:$0xff] }
 0xd2c   :  { %v12359_v14 = vpop.eup %12358 }
 0xd2d   :  { %v6259_v7 = vmul.f32 %v12359_v14, %v6258_v23  ;;  %v6382_v6 = vpop.f32.mrf.mxu0  ;;  %v6453_v26 = vpop.f32.mrf.mxu1 }
 0xd2e   :  { %v6457_v62 = vadd.f32 %v6382_v6, %v628_v29  ;;  %v18733_v6 = vld [vmem:[%s20420_s4 + $0x2a0] sm:$0xff] }
 0xd2f   :  { %v6260_v38 = vadd.f32 %v6259_v7, %v410_v35  ;;  %v11593_v58 = vpop.f32.mrf.mxu1  ;;  %v6384_v13 = vpop.f32.mrf.mxu0  ;;  %v18693_v35 = vld [vmem:[%s20420_s4 + $0x2e8] sm:$0xff]  ;;  %v18719_v7 = vld [vmem:[%s20420_s4 + $0x2b8] sm:$0xff] }
 0xd30   :  { %v9607_v48 = vmul.f32 -1.442695, %v6457_v62  ;;  %v6458_v33 = vadd.f32 %v6384_v13, %v630_v56  ;;  %v18747_v62 = vld [vmem:[%s20420_s4 + $0x288] sm:$0xff]  ;;  %v18766_v58 = vld [vmem:[%s20423_s5 + $0x1] ss:$0 sm:$0xff] }
 0xd31   :  { %12360 = vtanh.f32 %v6260_v38  ;;  %v18761_v38 = vld [vmem:[%s20420_s4 + $0x270] sm:$0xff]  ;;  %v18795_v56 = vld [vmem:[%s20420_s4 + $0x240] sm:$0xff] }
 0xd32   :  { %12362 = vpow2.f32 %v9607_v48  ;;  %v9608_v43 = vmul.f32 -1.442695, %v6458_v33  ;;  %v18698_v33 = vld [vmem:[%s20420_s4 + $0x2d8] sm:$0xff]  ;;  %v18774_v48 = vld [vmem:[%s20420_s4 + $0x260] sm:$0xff] }
 0xd33   :  { %12364 = vrcp.f32 %v6253_v61 }
 0xd34   :  { %12366 = vpow2.f32 %v9608_v43  ;;  %v21152_v43 = vld [vmem:[#allocation58_spill] sm:$0xff] }
 0xd3e   :  { %v12361_v63 = vpop.eup %12360 }
 0xd3f   :  { %v12363_v21 = vpop.eup %12362  ;;  %v6262_v23 = vsub.f32 %v18347_v0, %v12361_v63 }
 0xd40   :  { %v12365_v14 = vpop.eup %12364  ;;  %v6465_v18 = vadd.f32 1.0, %v12363_v21  ;;  %v18705_v21 = vld [vmem:[%s20420_s4 + $0x2d0] sm:$0xff] }
 0xd41   :  { %v6263_v29 = vmul.f32 %v12365_v14, %v6262_v23  ;;  %v12367_v61 = vpop.eup %12366 }
 0xd42   :  { %12368 = vrcp.f32 %v6465_v18  ;;  %v6466_v14 = vadd.f32 1.0, %v12367_v61  ;;  %v18810_v18 = vld [vmem:[%s20420_s4 + $0x228] sm:$0xff]  ;;  %v18838_v61 = vld [vmem:[%s20420_s4 + $0x1f8] sm:$0xff] }
 0xd43   :  { %v18688_v17 = vadd.f32 %v12361_v63, %v6263_v29  ;;  %v18712_v63 = vld [vmem:[%s20420_s4 + $0x2c0] sm:$0xff]  ;;  %v18824_v29 = vld [vmem:[%s20420_s4 + $0x210] sm:$0xff] }
 0xd45   :  { %6596 = vmatmul.mubr.f32.vlgmr.msra.gmra.mxu0 %v18688_v17  ;;  %11627 = vmatmul.mubr.f32.vlgmr.msra.gmra.mxu1 %v18688_v17 }
 0xd46   :  { %6745 = vmatpush1.msra.mxu0 %v18693_v35  ;;  %11630 = vmatpush3.msra.mxu1 %v18352_v51  ;;  %v18726_v51 = vld [vmem:[%s20420_s4 + $0x2a8] sm:$0xff] }
 0xd47   :  { %6746 = vmatprep.subr.mxu0 %v18698_v33  ;;  %11631 = vmatprep.subr.mxu1 %v20764_v27 }
 0xd48   :  { %6747 = vmatpush1.msra.mxu0 %v18705_v21  ;;  %11632 = vmatpush3.msra.mxu1 %v18359_v49  ;;  %v18740_v49 = vld [vmem:[%s20420_s4 + $0x290] sm:$0xff] }
 0xd49   :  { %6748 = vmatprep.subr.mxu0 %v18712_v63  ;;  %11633 = vmatprep.subr.mxu1 %v20764_v27 }
 0xd4a   :  { %6749 = vmatpush1.msra.mxu0 %v18719_v7  ;;  %11634 = vmatpush3.msra.mxu1 %v18368_v37  ;;  %v18754_v37 = vld [vmem:[%s20420_s4 + $0x278] sm:$0xff] }
 0xd4b   :  { %6750 = vmatprep.subr.mxu0 %v18726_v51  ;;  %11635 = vmatprep.subr.mxu1 %v20764_v27 }
 0xd4c   :  { %6751 = vmatpush1.msra.mxu0 %v18733_v6  ;;  %11636 = vmatpush3.msra.mxu1 %v18377_v31  ;;  %v6471_v31 = vadd.f32 %v18766_v58, %v6453_v26 }
 0xd4d   :  { %6752 = vmatprep.subr.mxu0 %v18740_v49  ;;  %11637 = vmatprep.subr.mxu1 %v20764_v27 }
 0xd4e   :  { %6753 = vmatpush1.msra.mxu0 %v18747_v62  ;;  %11638 = vmatpush3.msra.mxu1 %v18386_v47  ;;  %v18788_v47 = vld [vmem:[%s20420_s4 + $0x248] sm:$0xff] }
 0xd4f   :  { %v12369_v13 = vpop.eup %12368  ;;  %6754 = vmatprep.subr.mxu0 %v18754_v37  ;;  %11639 = vmatprep.subr.mxu1 %v20764_v27 }
 0xd50   :  { %v6472_v26 = vmul.f32 %v12369_v13, %v6471_v31  ;;  %6755 = vmatpush1.msra.mxu0 %v18761_v38  ;;  %11640 = vmatpush3.msra.mxu1 %v18395_v24  ;;  %v18803_v24 = vld [vmem:[%s20420_s4 + $0x230] sm:$0xff]  ;;  %v18852_v31 = vld [vmem:[%s20420_s4 + $0x1e0] sm:$0xff]  ;;  %v18866_v13 = vld [vmem:[%s20420_s4 + $0x1c8] sm:$0xff] }
 0xd51   :  { %6756 = vmatprep.subr.mxu0 %v18774_v48  ;;  %11641 = vmatprep.subr.mxu1 %v20764_v27 }
 0xd52   :  { %v6473_v23 = vadd.f32 %v6472_v26, %v21152_v43  ;;  %6757 = vmatpush1.msra.mxu0 %v18781_v41  ;;  %11642 = vmatpush3.msra.mxu1 %v18405_v54  ;;  %v18817_v54 = vld [vmem:[%s20420_s4 + $0x218] sm:$0xff]  ;;  %v18880_v26 = vld [vmem:[%s20420_s4 + $0x1b0] sm:$0xff] }
 0xd53   :  { %6758 = vmatprep.subr.mxu0 %v18788_v47  ;;  %11643 = vmatprep.subr.mxu1 %v20764_v27  ;;  %v18894_v43 = vld [vmem:[%s20420_s4 + $0x198] sm:$0xff] }
 0xd54   :  { %12370 = vtanh.f32 %v6473_v23  ;;  %6759 = vmatpush1.msra.mxu0 %v18795_v56  ;;  %11644 = vmatpush3.msra.mxu1 %v18414_v19  ;;  %v18831_v19 = vld [vmem:[%s20420_s4 + $0x200] sm:$0xff]  ;;  %21153 = vst [vmem:[#allocation33_spill] sm:$0xff] %v18894_v43 }
 0xd55   :  { %6760 = vmatprep.subr.mxu0 %v18803_v24  ;;  %11645 = vmatprep.subr.mxu1 %v20764_v27  ;;  %12372 = vrcp.f32 %v6466_v14  ;;  %v18908_v14 = vld [vmem:[%s20420_s4 + $0x180] sm:$0xff] }
 0xd56   :  { %6761 = vmatpush1.msra.mxu0 %v18810_v18  ;;  %11646 = vmatpush3.msra.mxu1 %v18424_v39  ;;  %v18845_v39 = vld [vmem:[%s20420_s4 + $0x1e8] sm:$0xff] }
 0xd57   :  { %6762 = vmatprep.subr.mxu0 %v18817_v54  ;;  %11647 = vmatprep.subr.mxu1 %v20764_v27 }
 0xd58   :  { %6763 = vmatpush1.msra.mxu0 %v18824_v29  ;;  %11648 = vmatpush3.msra.mxu1 %v18433_v25  ;;  %v18859_v25 = vld [vmem:[%s20420_s4 + $0x1d0] sm:$0xff] }
 0xd59   :  { %6764 = vmatprep.subr.mxu0 %v18831_v19  ;;  %11649 = vmatprep.subr.mxu1 %v20764_v27 }
 0xd5a   :  { %6765 = vmatpush1.msra.mxu0 %v18838_v61  ;;  %11650 = vmatpush3.msra.mxu1 %v18442_v28  ;;  %v18873_v28 = vld [vmem:[%s20420_s4 + $0x1b8] sm:$0xff] }
 0xd5b   :  { %6766 = vmatprep.subr.mxu0 %v18845_v39  ;;  %11651 = vmatprep.subr.mxu1 %v20764_v27 }
 0xd5c   :  { %6767 = vmatpush1.msra.mxu0 %v18852_v31  ;;  %11652 = vmatpush3.msra.mxu1 %v18451_v15  ;;  %v18887_v15 = vld [vmem:[%s20420_s4 + $0x1a0] sm:$0xff] }
 0xd5d   :  { %6768 = vmatprep.subr.mxu0 %v18859_v25  ;;  %11653 = vmatprep.subr.mxu1 %v20764_v27 }
 0xd5e   :  { %6769 = vmatpush1.msra.mxu0 %v18866_v13  ;;  %11654 = vmatpush3.msra.mxu1 %v18460_v30  ;;  %v18901_v30 = vld [vmem:[%s20420_s4 + $0x188] sm:$0xff] }
 0xd5f   :  { %6770 = vmatprep.subr.mxu0 %v18873_v28  ;;  %11655 = vmatprep.subr.mxu1 %v20764_v27 }
 0xd60   :  { %6771 = vmatpush1.msra.mxu0 %v18880_v26  ;;  %11656 = vmatpush3.msra.mxu1 %v18469_v40 }
 0xd61   :  { %v12371_v23 = vpop.eup %12370  ;;  %6772 = vmatprep.subr.mxu0 %v18887_v15  ;;  %11657 = vmatprep.subr.mxu1 %v20764_v27 }
 0xd62   :  { %6773 = vmatpush1.msra.mxu0 %v18894_v43  ;;  %11658 = vmatpush3.msra.mxu1 %v18478_v44  ;;  %v6475_v40 = vsub.f32 %v18499_v53, %v12371_v23  ;;  %v12373_v0 = vpop.eup %12372  ;;  %v18937_v44 = vld [vmem:[%s20420_s4 + $0x168] sm:$0xff]  ;;  %v18968_v53 = vld [vmem:[%s20420_s4 + $0x140] sm:$0xff] }
 0xd63   :  { %6774 = vmatprep.subr.mxu0 %v18901_v30  ;;  %11659 = vmatprep.subr.mxu1 %v20764_v27  ;;  %21157 = vst [vmem:[#allocation30_spill] sm:$0xff] %v18968_v53 }
 0xd64   :  { %6775 = vmatpush1.msra.mxu0 %v18908_v14  ;;  %6808 = vmatprep.mubr.f32.mxu0 %v20764_v27  ;;  %v6476_v20 = vmul.f32 %v12373_v0, %v6475_v40  ;;  %v18931_v0 = vld [vmem:[%s20420_s4 + $0x170] sm:$0xff]  ;;  %v18961_v40 = vld [vmem:[%s20420_s4 + $0x160] sm:$0xff] }
 0xd65   :  { %11660 = vmatpush3.msra.mxu1 %v18489_v9  ;;  %11661 = vmatprep.mubr.msk.f32.mxu1 %vm12447_vm0, %v20764_v27  ;;  %v18942_v9 = vld [vmem:[%s20420_s4 + $0x178] sm:$0xff]  ;;  %21156 = vst [vmem:[#allocation29_spill] sm:$0xff] %v18961_v40 }
 0xd66   :  { %v18920_v43 = vadd.f32 %v12371_v23, %v6476_v20  ;;  %11664 = vmatprep.subr.mxu1 %v20764_v27  ;;  %6959 = vmatprep.subr.mxu0 %v18931_v0  ;;  %v18949_v20 = vld [vmem:[%s20420_s4 + $0x158] sm:$0xff]  ;;  %v18956_v23 = vld [vmem:[%s20420_s4 + $0x150] sm:$0xff] }
 0xd67   :  { %21154 = vst [vmem:[#allocation81_spill] sm:$0xff] %v18949_v20  ;;  %21155 = vst [vmem:[#allocation66_spill] sm:$0xff] %v18956_v23 }
 0xd68   :  { %6809 = vmatmul.mubr.f32.vlgmr.msra.gmra.mxu0 %v18920_v43  ;;  %11662 = vmatmul.mubr.f32.vlgmr.msra.gmra.mxu1 %v18920_v43 }
 0xd69   :  { %7023 = vmatprep.mubr.f32.mxu0 %v20764_v27  ;;  %11696 = vmatprep.mubr.msk.f32.mxu1 %vm12447_vm0, %v20764_v27 }
 0xd6a   :  { %6960 = vmatpush1.msra.mxu0 %v18937_v44  ;;  %11665 = vmatpush3.msra.mxu1 %v18942_v9 }
 0xd6b   :  { %6961 = vmatprep.subr.mxu0 %v18949_v20  ;;  %11666 = vmatprep.subr.mxu1 %v20764_v27  ;;  %v18975_v20 = vld [vmem:[%s20420_s4 + $0x138] sm:$0xff] }
 0xd6c   :  { %6962 = vmatpush1.msra.mxu0 %v18956_v23  ;;  %11667 = vmatpush3.msra.mxu1 %v18961_v40  ;;  %v18980_v23 = vld [vmem:[%s20420_s4 + $0x148] sm:$0xff]  ;;  %v18994_v40 = vld [vmem:[%s20420_s4 + $0x130] sm:$0xff] }
 0xd6d   :  { %6963 = vmatprep.subr.mxu0 %v18968_v53  ;;  %11668 = vmatprep.subr.mxu1 %v20764_v27  ;;  %21158 = vst [vmem:[#allocation76_spill] sm:$0xff] %v18980_v23  ;;  %v18987_v53 = vld [vmem:[%s20420_s4 + $0x128] sm:$0xff] }
 0xd6e   :  { %6964 = vmatpush1.msra.mxu0 %v18975_v20  ;;  %11669 = vmatpush3.msra.mxu1 %v18980_v23  ;;  %v19003_v23 = vld [vmem:[%s20420_s4 + $0x118] sm:$0xff] }
 0xd6f   :  { %6965 = vmatprep.subr.mxu0 %v18987_v53  ;;  %11670 = vmatprep.subr.mxu1 %v20764_v27 }
 0xd70   :  { %6966 = vmatpush1.msra.mxu0 %v18549_v3  ;;  %11671 = vmatpush3.msra.mxu1 %v18994_v40  ;;  %v19012_v3 = vld [vmem:[%s20420_s4 + $0x100] sm:$0xff] }
 0xd71   :  { %6967 = vmatprep.subr.mxu0 %v18555_v55  ;;  %11672 = vmatprep.subr.mxu1 %v20764_v27  ;;  %21159 = vst [vmem:[#allocation31_spill] sm:$0xff] %v19012_v3  ;;  %v19021_v55 = vld [vmem:[%s20420_s4 + $0xe8] sm:$0xff] }
 0xd72   :  { %6968 = vmatpush1.msra.mxu0 %v18561_v22  ;;  %11673 = vmatpush3.msra.mxu1 %v19003_v23  ;;  %21160 = vst [vmem:[#allocation77_spill] sm:$0xff] %v19021_v55  ;;  %v19030_v22 = vld [vmem:[%s20420_s4 + $0xd0] sm:$0xff] }
 0xd73   :  { %6969 = vmatprep.subr.mxu0 %v18567_v2  ;;  %11674 = vmatprep.subr.mxu1 %v20764_v27  ;;  %21161 = vst [vmem:[#allocation67_spill] sm:$0xff] %v19030_v22  ;;  %v19039_v2 = vld [vmem:[%s20420_s4 + $0xb8] sm:$0xff] }
 0xd74   :  { %6970 = vmatpush1.msra.mxu0 %v18573_v57  ;;  %11675 = vmatpush3.msra.mxu1 %v19012_v3  ;;  %21162 = vst [vmem:[#allocation79_spill] sm:$0xff] %v19039_v2  ;;  %v19048_v57 = vld [vmem:[%s20420_s4 + $0xa0] sm:$0xff] }
 0xd75   :  { %6971 = vmatprep.subr.mxu0 %v18579_v34  ;;  %11676 = vmatprep.subr.mxu1 %v20764_v27  ;;  %21163 = vst [vmem:[#allocation82_spill] sm:$0xff] %v19048_v57  ;;  %v19057_v34 = vld [vmem:[%s20420_s4 + $0x88] sm:$0xff] }
 0xd76   :  { %6972 = vmatpush1.msra.mxu0 %v18585_v16  ;;  %11677 = vmatpush3.msra.mxu1 %v19021_v55  ;;  %21164 = vst [vmem:[#allocation103_spill] sm:$0xff] %v19057_v34  ;;  %v19066_v16 = vld [vmem:[%s20420_s4 + $0x60] sm:$0xff]  ;;  %v21180_v55 = vld [vmem:[#allocation41_spill] sm:$0xff] }
 0xd77   :  { %6973 = vmatprep.subr.mxu0 %v18591_v32  ;;  %11678 = vmatprep.subr.mxu1 %v20764_v27  ;;  %21165 = vst [vmem:[#allocation104_spill] sm:$0xff] %v19066_v16  ;;  %v19071_v32 = vld [vmem:[%s20420_s4 + $0x70] sm:$0xff] }
 0xd78   :  { %6974 = vmatpush1.msra.mxu0 %v18597_v4  ;;  %11679 = vmatpush3.msra.mxu1 %v19030_v22  ;;  %21166 = vst [vmem:[#allocation106_spill] sm:$0xff] %v19071_v32  ;;  %v19080_v4 = vld [vmem:[%s20420_s4 + $0x58] sm:$0xff]  ;;  %v21179_v22 = vld [vmem:[#allocation59_spill] sm:$0xff] }
 0xd79   :  { %6975 = vmatprep.subr.mxu0 %v18603_v36  ;;  %11680 = vmatprep.subr.mxu1 %v20764_v27  ;;  %21167 = vst [vmem:[#allocation109_spill] sm:$0xff] %v19080_v4  ;;  %v19089_v36 = vld [vmem:[%s20420_s4 + $0x30] sm:$0xff] }
 0xd7a   :  { %6976 = vmatpush1.msra.mxu0 %v18609_v1  ;;  %11681 = vmatpush3.msra.mxu1 %v19039_v2  ;;  %21168 = vst [vmem:[#allocation113_spill] sm:$0xff] %v19089_v36  ;;  %v19094_v1 = vld [vmem:[%s20420_s4 + $0x40] sm:$0xff] }
 0xd7b   :  { %6977 = vmatprep.subr.mxu0 %v18615_v12  ;;  %11682 = vmatprep.subr.mxu1 %v20764_v27  ;;  %21169 = vst [vmem:[#allocation102_spill] sm:$0xff] %v19094_v1  ;;  %v19101_v12 = vld [vmem:[%s20420_s4 + $0x20] sm:$0xff] }
 0xd7c   :  { %6978 = vmatpush1.msra.mxu0 %v18621_v8  ;;  %11683 = vmatpush3.msra.mxu1 %v19048_v57  ;;  %21170 = vst [vmem:[#allocation105_spill] sm:$0xff] %v19101_v12  ;;  %v19108_v8 = vld [vmem:[%s20420_s4 + $0x18] sm:$0xff]  ;;  %v21178_v2 = vld [vmem:[#allocation98_spill] sm:$0xff] }
 0xd7d   :  { %6979 = vmatprep.subr.mxu0 %v18627_v50  ;;  %11684 = vmatprep.subr.mxu1 %v20764_v27  ;;  %21171 = vst [vmem:[#allocation107_spill] sm:$0xff] %v19108_v8  ;;  %v19113_v50 = vld [vmem:[%s20420_s4 + $0x28] sm:$0xff] }
 0xd7e   :  { %6980 = vmatpush1.msra.mxu0 %v18633_v5  ;;  %11685 = vmatpush3.msra.mxu1 %v19057_v34  ;;  %21172 = vst [vmem:[#allocation110_spill] sm:$0xff] %v19113_v50  ;;  %v19120_v5 = vld [vmem:[%s20420_s4 + $0x8] sm:$0xff] }
 0xd7f   :  { %6981 = vmatprep.subr.mxu0 %v18639_v45  ;;  %11686 = vmatprep.subr.mxu1 %v20764_v27  ;;  %21173 = vst [vmem:[#allocation112_spill] sm:$0xff] %v19120_v5  ;;  %v19127_v45 = vld [vmem:[%s20420_s4] sm:$0xff] }
 0xd80   :  { %6982 = vmatpush1.msra.mxu0 %v19066_v16  ;;  %11687 = vmatpush3.msra.mxu1 %v19071_v32  ;;  %21174 = vst [vmem:[#allocation20_spill] sm:$0xff] %v19127_v45 }
 0xd81   :  { %6983 = vmatprep.subr.mxu0 %v18646_v52  ;;  %11688 = vmatprep.subr.mxu1 %v20764_v27  ;;  %v19132_v52 = vld [vmem:[%s20420_s4 + $0x10] sm:$0xff] }
 0xd82   :  { %6984 = vmatpush1.msra.mxu0 %v18652_v11  ;;  %11689 = vmatpush3.msra.mxu1 %v19080_v4  ;;  %21175 = vst [vmem:[#allocation86_spill] sm:$0xff] %v19132_v52 }
 0xd83   :  { %6985 = vmatprep.subr.mxu0 %v18658_v59  ;;  %11690 = vmatprep.subr.mxu1 %v20764_v27 }
 0xd84   :  { %6986 = vmatpush1.msra.mxu0 %v19089_v36  ;;  %11691 = vmatpush3.msra.mxu1 %v19094_v1 }
 0xd85   :  { %6987 = vmatprep.subr.mxu0 %v19101_v12  ;;  %11692 = vmatprep.subr.mxu1 %v20764_v27 }
 0xd86   :  { %6988 = vmatpush1.msra.mxu0 %v19108_v8  ;;  %11693 = vmatpush3.msra.mxu1 %v19113_v50  ;;  %v21177_v50 = vld [vmem:[#allocation44_spill] sm:$0xff] }
 0xd87   :  { %6989 = vmatprep.subr.mxu0 %v19120_v5  ;;  %11694 = vmatprep.subr.mxu1 %v20764_v27  ;;  %v21176_v5 = vld [vmem:[#allocation43_spill] sm:$0xff]  ;;  %v269_v1 = vadd.f32 %v21177_v50, %v21079_v46 }
 0xd88   :  { %6990 = vmatpush1.msra.mxu0 %v19127_v45  ;;  %11695 = vmatpush3.msra.mxu1 %v19132_v52 }
 0xd89   :  { %7172 = vmatprep.subr.mxu0 %v18669_v10  ;;  %11699 = vmatprep.subr.mxu1 %v20764_v27 }
 0xe05   :  { %v6597_v11 = vpop.f32.mrf.mxu0  ;;  %v6668_v59 = vpop.f32.mrf.mxu1 }
 0xe06   :  { %v6672_v8 = vadd.f32 %v6597_v11, %v21176_v5  ;;  %v6686_v52 = vadd.f32 %v18678_v60, %v6668_v59  ;;  %v622_v5 = vadd.f32 %v21179_v22, %v21178_v2 }
 0xe07   :  { %v11628_v12 = vpop.f32.mrf.mxu1  ;;  %v6599_v16 = vpop.f32.mrf.mxu0 }
 0xe08   :  { %v9609_v36 = vmul.f32 -1.442695, %v6672_v8  ;;  %v6673_v4 = vadd.f32 %v6599_v16, %v269_v1 }
 0xe0a   :  { %12374 = vpow2.f32 %v9609_v36  ;;  %v9610_v32 = vmul.f32 -1.442695, %v6673_v4 }
 0xe0c   :  { %12376 = vpow2.f32 %v9610_v32  ;;  %v21181_v32 = vld [vmem:[#allocation61_spill] sm:$0xff] }
 0xe0d   :  { %v624_v1 = vadd.f32 %v21181_v32, %v13897_v42  ;;  %v7375_v32 = vld [vmem:[%s20420_s4 + $0x120] sm:$0xff] }
 0xe17   :  { %v12375_v45 = vpop.eup %12374 }
 0xe18   :  { %v6680_v34 = vadd.f32 1.0, %v12375_v45 }
 0xe19   :  { %v12377_v10 = vpop.eup %12376 }
 0xe1a   :  { %12378 = vrcp.f32 %v6680_v34  ;;  %v6681_v50 = vadd.f32 1.0, %v12377_v10 }
 0xe27   :  { %v12379_v57 = vpop.eup %12378 }
 0xe28   :  { %v6687_v12 = vmul.f32 %v12379_v57, %v6686_v52  ;;  %v6810_v8 = vpop.f32.mrf.mxu0  ;;  %v6881_v36 = vpop.f32.mrf.mxu1 }
 0xe29   :  { %v6885_v11 = vadd.f32 %v6810_v8, %v622_v5  ;;  %v21183_v8 = vld [vmem:[#allocation60_spill] sm:$0xff] }
 0xe2a   :  { %v6688_v3 = vadd.f32 %v6687_v12, %v21180_v55  ;;  %v11663_v16 = vpop.f32.mrf.mxu1  ;;  %v6812_v34 = vpop.f32.mrf.mxu0  ;;  %v19160_v12 = vld [vmem:[%s20420_s4 + $0x2e0] sm:$0xff] }
 0xe2b   :  { %v9659_v4 = vmul.f32 -1.442695, %v6885_v11  ;;  %v6886_v45 = vadd.f32 %v6812_v34, %v624_v1  ;;  %v21198_v16 = vld [vmem:[#allocation102_spill] sm:$0xff]  ;;  %v7373_v1 = vld [vmem:[%s20420_s4 + $0x110] sm:$0xff] }
 0xe2c   :  { %12380 = vtanh.f32 %v6688_v3  ;;  %v19153_v3 = vld [vmem:[%s20420_s4 + $0x2f8] sm:$0xff]  ;;  %v21200_v34 = vld [vmem:[#allocation86_spill] sm:$0xff] }
 0xe2d   :  { %12382 = vpow2.f32 %v9659_v4  ;;  %v9660_v59 = vmul.f32 -1.442695, %v6886_v45  ;;  %v21199_v4 = vld [vmem:[#allocation110_spill] sm:$0xff]  ;;  %v7372_v45 = vld [vmem:[%s20420_s4 + $0x108] sm:$0xff] }
 0xe2e   :  { %12384 = vrcp.f32 %v6681_v50 }
 0xe2f   :  { %12386 = vpow2.f32 %v9660_v59  ;;  %v7370_v59 = vld [vmem:[%s20420_s4 + $0xf8] sm:$0xff] }
 0xe39   :  { %v12381_v60 = vpop.eup %12380 }
 0xe3a   :  { %v12383_v22 = vpop.eup %12382  ;;  %v6690_v57 = vsub.f32 %v18688_v17, %v12381_v60 }
 0xe3b   :  { %v12385_v52 = vpop.eup %12384  ;;  %v6893_v5 = vadd.f32 1.0, %v12383_v22  ;;  %v7369_v22 = vld [vmem:[%s20420_s4 + $0xf0] sm:$0xff] }
 0xe3c   :  { %v6691_v55 = vmul.f32 %v12385_v52, %v6690_v57  ;;  %v7367_v57 = vld [vmem:[%s20420_s4 + $0xe0] sm:$0xff]  ;;  %v7366_v52 = vld [vmem:[%s20420_s4 + $0xd8] sm:$0xff] }
 0xe3d   :  { %12388 = vrcp.f32 %v6893_v5  ;;  %v7364_v5 = vld [vmem:[%s20420_s4 + $0xc8] sm:$0xff] }
 0xe3e   :  { %v19148_v10 = vadd.f32 %v12381_v60, %v6691_v55  ;;  %v19169_v60 = vld [vmem:[%s20420_s4 + $0x2c8] sm:$0xff]  ;;  %v7363_v55 = vld [vmem:[%s20420_s4 + $0xc0] sm:$0xff] }
 0xe40   :  { %7024 = vmatmul.mubr.f32.vlgmr.msra.gmra.mxu0 %v19148_v10  ;;  %11697 = vmatmul.mubr.f32.vlgmr.msra.gmra.mxu1 %v19148_v10 }
 0xe41   :  { %7173 = vmatpush1.msra.mxu0 %v18693_v35  ;;  %11700 = vmatpush3.msra.mxu1 %v19153_v3  ;;  %v19178_v35 = vld [vmem:[%s20420_s4 + $0x2b0] sm:$0xff] }
 0xe42   :  { %7174 = vmatprep.subr.mxu0 %v18698_v33  ;;  %11701 = vmatprep.subr.mxu1 %v20764_v27  ;;  %v19187_v33 = vld [vmem:[%s20420_s4 + $0x298] sm:$0xff] }
 0xe43   :  { %7175 = vmatpush1.msra.mxu0 %v18705_v21  ;;  %11702 = vmatpush3.msra.mxu1 %v19160_v12  ;;  %v19196_v21 = vld [vmem:[%s20420_s4 + $0x280] sm:$0xff] }
 0xe44   :  { %7176 = vmatprep.subr.mxu0 %v18712_v63  ;;  %11703 = vmatprep.subr.mxu1 %v20764_v27  ;;  %v12387_v63 = vpop.eup %12386 }
 0xe45   :  { %7177 = vmatpush1.msra.mxu0 %v18719_v7  ;;  %11704 = vmatpush3.msra.mxu1 %v19169_v60  ;;  %v6899_v7 = vadd.f32 %v18766_v58, %v6881_v36  ;;  %v6894_v36 = vadd.f32 1.0, %v12387_v63  ;;  %v7361_v63 = vld [vmem:[%s20420_s4 + $0xb0] sm:$0xff] }
 0xe46   :  { %7178 = vmatprep.subr.mxu0 %v18726_v51  ;;  %11705 = vmatprep.subr.mxu1 %v20764_v27 }
 0xe47   :  { %7179 = vmatpush1.msra.mxu0 %v18733_v6  ;;  %11706 = vmatpush3.msra.mxu1 %v19178_v35  ;;  %v19206_v6 = vld [vmem:[%s20420_s4 + $0x268] sm:$0xff] }
 0xe48   :  { %7180 = vmatprep.subr.mxu0 %v18740_v49  ;;  %11707 = vmatprep.subr.mxu1 %v20764_v27  ;;  %v21182_v49 = vld [vmem:[#allocation51_spill] sm:$0xff] }
 0xe49   :  { %7181 = vmatpush1.msra.mxu0 %v18747_v62  ;;  %11708 = vmatpush3.msra.mxu1 %v19187_v33  ;;  %v781_v11 = vadd.f32 %v21183_v8, %v21182_v49  ;;  %v19217_v62 = vld [vmem:[%s20420_s4 + $0x250] sm:$0xff] }
 0xe4a   :  { %v12389_v51 = vpop.eup %12388  ;;  %7182 = vmatprep.subr.mxu0 %v18754_v37  ;;  %11709 = vmatprep.subr.mxu1 %v20764_v27  ;;  %v7357_v8 = vld [vmem:[%s20420_s4 + $0x90] sm:$0xff] }
 0xe4b   :  { %v6900_v50 = vmul.f32 %v12389_v51, %v6899_v7  ;;  %7183 = vmatpush1.msra.mxu0 %v18761_v38  ;;  %11710 = vmatpush3.msra.mxu1 %v19196_v21  ;;  %v19226_v38 = vld [vmem:[%s20420_s4 + $0x238] sm:$0xff]  ;;  %v7360_v7 = vld [vmem:[%s20420_s4 + $0xa8] sm:$0xff] }
 0xe4c   :  { %7184 = vmatprep.subr.mxu0 %v18774_v48  ;;  %11711 = vmatprep.subr.mxu1 %v20764_v27  ;;  %v19235_v48 = vld [vmem:[%s20420_s4 + $0x220] sm:$0xff]  ;;  %v7358_v51 = vld [vmem:[%s20420_s4 + $0x98] sm:$0xff] }
 0xe4d   :  { %v6901_v37 = vadd.f32 %v6900_v50, %v781_v11  ;;  %7185 = vmatpush1.msra.mxu0 %v18781_v41  ;;  %11712 = vmatpush3.msra.mxu1 %v19206_v6  ;;  %v19244_v41 = vld [vmem:[%s20420_s4 + $0x208] sm:$0xff]  ;;  %v7355_v11 = vld [vmem:[%s20420_s4 + $0x80] sm:$0xff]  ;;  %v7354_v50 = vld [vmem:[%s20420_s4 + $0x78] sm:$0xff] }
 0xe4e   :  { %7186 = vmatprep.subr.mxu0 %v18788_v47  ;;  %11713 = vmatprep.subr.mxu1 %v20764_v27  ;;  %v19253_v47 = vld [vmem:[%s20420_s4 + $0x1f0] sm:$0xff] }
 0xe4f   :  { %12390 = vtanh.f32 %v6901_v37  ;;  %7187 = vmatpush1.msra.mxu0 %v18795_v56  ;;  %11714 = vmatpush3.msra.mxu1 %v19217_v62  ;;  %v19262_v56 = vld [vmem:[%s20420_s4 + $0x1d8] sm:$0xff]  ;;  %v7352_v37 = vld [vmem:[%s20420_s4 + $0x68] sm:$0xff] }
 0xe50   :  { %7188 = vmatprep.subr.mxu0 %v18803_v24  ;;  %11715 = vmatprep.subr.mxu1 %v20764_v27  ;;  %12392 = vrcp.f32 %v6894_v36  ;;  %v19271_v24 = vld [vmem:[%s20420_s4 + $0x1c0] sm:$0xff]  ;;  %v21201_v36 = vld [vmem:[#allocation104_spill] sm:$0xff] }
 0xe51   :  { %7189 = vmatpush1.msra.mxu0 %v18810_v18  ;;  %11716 = vmatpush3.msra.mxu1 %v19226_v38  ;;  %v19280_v18 = vld [vmem:[%s20420_s4 + $0x1a8] sm:$0xff] }
 0xe52   :  { %7190 = vmatprep.subr.mxu0 %v18817_v54  ;;  %11717 = vmatprep.subr.mxu1 %v20764_v27 }
 0xe53   :  { %7191 = vmatpush1.msra.mxu0 %v18824_v29  ;;  %11718 = vmatpush3.msra.mxu1 %v19235_v48  ;;  %v21184_v29 = vld [vmem:[#allocation33_spill] sm:$0xff] }
 0xe54   :  { %7192 = vmatprep.subr.mxu0 %v18831_v19  ;;  %11719 = vmatprep.subr.mxu1 %v20764_v27  ;;  %v19291_v19 = vld [vmem:[%s20420_s4 + $0x190] sm:$0xff] }
 0xe55   :  { %7193 = vmatpush1.msra.mxu0 %v18838_v61  ;;  %11720 = vmatpush3.msra.mxu1 %v19244_v41 }
 0xe56   :  { %7194 = vmatprep.subr.mxu0 %v18845_v39  ;;  %11721 = vmatprep.subr.mxu1 %v20764_v27 }
 0xe57   :  { %7195 = vmatpush1.msra.mxu0 %v18852_v31  ;;  %11722 = vmatpush3.msra.mxu1 %v19253_v47 }
 0xe58   :  { %7196 = vmatprep.subr.mxu0 %v18859_v25  ;;  %11723 = vmatprep.subr.mxu1 %v20764_v27 }
 0xe59   :  { %7197 = vmatpush1.msra.mxu0 %v18866_v13  ;;  %11724 = vmatpush3.msra.mxu1 %v19262_v56  ;;  %v21185_v13 = vld [vmem:[#allocation81_spill] sm:$0xff] }
 0xe5a   :  { %7198 = vmatprep.subr.mxu0 %v18873_v28  ;;  %11725 = vmatprep.subr.mxu1 %v20764_v27  ;;  %v21186_v28 = vld [vmem:[#allocation66_spill] sm:$0xff] }
 0xe5b   :  { %7199 = vmatpush1.msra.mxu0 %v18880_v26  ;;  %11726 = vmatpush3.msra.mxu1 %v19271_v24  ;;  %v21187_v26 = vld [vmem:[#allocation29_spill] sm:$0xff] }
 0xe5c   :  { %v12391_v54 = vpop.eup %12390  ;;  %7200 = vmatprep.subr.mxu0 %v18887_v15  ;;  %11727 = vmatprep.subr.mxu1 %v20764_v27  ;;  %v21188_v15 = vld [vmem:[#allocation30_spill] sm:$0xff] }
 0xe5d   :  { %7201 = vmatpush1.msra.mxu0 %v21184_v29  ;;  %11728 = vmatpush3.msra.mxu1 %v19280_v18  ;;  %v6903_v61 = vsub.f32 %v18920_v43, %v12391_v54  ;;  %v12393_v39 = vpop.eup %12392  ;;  %v7348_v29 = vld [vmem:[%s20420_s4 + $0x48] sm:$0xff] }
 0xe5e   :  { %7202 = vmatprep.subr.mxu0 %v18901_v30  ;;  %11729 = vmatprep.subr.mxu1 %v20764_v27  ;;  %v21189_v30 = vld [vmem:[#allocation76_spill] sm:$0xff] }
 0xe5f   :  { %7203 = vmatpush1.msra.mxu0 %v18908_v14  ;;  %7236 = vmatprep.mubr.f32.mxu0 %v20764_v27  ;;  %v6904_v31 = vmul.f32 %v12393_v39, %v6903_v61  ;;  %v21190_v14 = vld [vmem:[#allocation31_spill] sm:$0xff]  ;;  %v7346_v61 = vld [vmem:[%s20420_s4 + $0x38] sm:$0xff] }
 0xe60   :  { %11730 = vmatpush3.msra.mxu1 %v19291_v19  ;;  %11731 = vmatprep.mubr.msk.f32.mxu1 %vm12447_vm0, %v20764_v27  ;;  %v21202_v39 = vld [vmem:[#allocation113_spill] sm:$0xff] }
 0xe61   :  { %v19301_v25 = vadd.f32 %v12391_v54, %v6904_v31  ;;  %7387 = vmatprep.subr.mxu0 %v18931_v0  ;;  %11734 = vmatprep.subr.mxu1 %v20764_v27  ;;  %v21192_v0 = vld [vmem:[#allocation67_spill] sm:$0xff]  ;;  %v7349_v54 = vld [vmem:[%s20420_s4 + $0x50] sm:$0xff]  ;;  %v21203_v31 = vld [vmem:[#allocation105_spill] sm:$0xff] }
 0xe63   :  { %7237 = vmatmul.mubr.f32.vlgmr.msra.gmra.mxu0 %v19301_v25  ;;  %11732 = vmatmul.mubr.f32.vlgmr.msra.gmra.mxu1 %v19301_v25 }
 0xe64   :  { %7388 = vmatpush1.msra.mxu0 %v18937_v44  ;;  %11735 = vmatpush3.msra.mxu1 %v18942_v9  ;;  %v21193_v44 = vld [vmem:[#allocation79_spill] sm:$0xff]  ;;  %v21194_v9 = vld [vmem:[#allocation82_spill] sm:$0xff] }
 0xe65   :  { %7389 = vmatprep.subr.mxu0 %v21185_v13  ;;  %11736 = vmatprep.subr.mxu1 %v20764_v27  ;;  %v21204_v13 = vld [vmem:[#allocation107_spill] sm:$0xff] }
 0xe66   :  { %7390 = vmatpush1.msra.mxu0 %v21186_v28  ;;  %11737 = vmatpush3.msra.mxu1 %v21187_v26  ;;  %v21205_v28 = vld [vmem:[#allocation112_spill] sm:$0xff] }
 0xe67   :  { %7391 = vmatprep.subr.mxu0 %v21188_v15  ;;  %11738 = vmatprep.subr.mxu1 %v20764_v27  ;;  %v21206_v26 = vld [vmem:[#allocation20_spill] sm:$0xff] }
 0xe68   :  { %7392 = vmatpush1.msra.mxu0 %v18975_v20  ;;  %11739 = vmatpush3.msra.mxu1 %v21189_v30  ;;  %v21195_v20 = vld [vmem:[#allocation103_spill] sm:$0xff]  ;;  %v9761_v15 = vld [vmem:[%s20420_s4 + $0x2f0] sm:$0xff] }
 0xe69   :  { %7393 = vmatprep.subr.mxu0 %v18987_v53  ;;  %11740 = vmatprep.subr.mxu1 %v20764_v27  ;;  %v21191_v53 = vld [vmem:[#allocation77_spill] sm:$0xff] }
 0xe6a   :  { %11741 = vmatpush3.msra.mxu1 %v18994_v40  ;;  %7451 = vmatprep.mubr.f32.mxu0 %v20764_v27  ;;  %v21197_v40 = vld [vmem:[#allocation109_spill] sm:$0xff] }
 0xe6b   :  { %11742 = vmatprep.subr.mxu1 %v20764_v27  ;;  %11766 = vmatprep.mubr.msk.f32.mxu1 %vm12447_vm0, %v20764_v27 }
 0xe6c   :  { %11743 = vmatpush3.msra.mxu1 %v19003_v23  ;;  %v21196_v23 = vld [vmem:[#allocation106_spill] sm:$0xff]  ;;  %7394 = vmatpush1.msra.mxu0 %v7375_v32 }
 0xe6d   :  { %11744 = vmatprep.subr.mxu1 %v20764_v27  ;;  %7395 = vmatprep.subr.mxu0 %v7373_v1 }
 0xe6e   :  { %11745 = vmatpush3.msra.mxu1 %v21190_v14  ;;  %7396 = vmatpush1.msra.mxu0 %v7372_v45  ;;  %v21209_v45 = vld [vmem:[#allocation80_spill] sm:$0xff] }
 0xe6f   :  { %11746 = vmatprep.subr.mxu1 %v20764_v27  ;;  %7397 = vmatprep.subr.mxu0 %v7370_v59 }
 0xe70   :  { %11747 = vmatpush3.msra.mxu1 %v21191_v53  ;;  %7398 = vmatpush1.msra.mxu0 %v7369_v22  ;;  %v21207_v53 = vld [vmem:[#allocation46_spill] sm:$0xff] }
 0xe71   :  { %11748 = vmatprep.subr.mxu1 %v20764_v27  ;;  %7399 = vmatprep.subr.mxu0 %v7367_v57  ;;  %v21210_v57 = vld [vmem:[#allocation54_spill] sm:$0xff] }
 0xe72   :  { %11749 = vmatpush3.msra.mxu1 %v21192_v0  ;;  %7400 = vmatpush1.msra.mxu0 %v7366_v52  ;;  %v616_v52 = vadd.f32 %v21210_v57, %v21178_v2  ;;  %v21214_v57 = vld [vmem:[#allocation55_spill] sm:$0xff] }
 0xe73   :  { %11750 = vmatprep.subr.mxu1 %v20764_v27  ;;  %7401 = vmatprep.subr.mxu0 %v7364_v5  ;;  %v21211_v5 = vld [vmem:[#allocation11_spill] sm:$0xff] }
 0xe74   :  { %11751 = vmatpush3.msra.mxu1 %v21193_v44  ;;  %7402 = vmatpush1.msra.mxu0 %v7363_v55  ;;  %v21212_v55 = vld [vmem:[#allocation47_spill] sm:$0xff] }
 0xe75   :  { %11752 = vmatprep.subr.mxu1 %v20764_v27  ;;  %7403 = vmatprep.subr.mxu0 %v7361_v63  ;;  %v420_v63 = vadd.f32 %v21212_v55, %v21211_v5  ;;  %v9736_v55 = vld [vmem:[%s20420_s4 + $0x228] sm:$0xff] }
 0xe76   :  { %11753 = vmatpush3.msra.mxu1 %v21194_v9  ;;  %7404 = vmatpush1.msra.mxu0 %v7360_v7 }
 0xe77   :  { %11754 = vmatprep.subr.mxu1 %v20764_v27  ;;  %7405 = vmatprep.subr.mxu0 %v7358_v51 }
 0xe78   :  { %11755 = vmatpush3.msra.mxu1 %v21195_v20  ;;  %7406 = vmatpush1.msra.mxu0 %v7357_v8 }
 0xe79   :  { %11756 = vmatprep.subr.mxu1 %v20764_v27  ;;  %7407 = vmatprep.subr.mxu0 %v7355_v11 }
 0xe7a   :  { %11757 = vmatpush3.msra.mxu1 %v21196_v23  ;;  %7408 = vmatpush1.msra.mxu0 %v7354_v50  ;;  %v21208_v23 = vld [vmem:[#allocation48_spill] sm:$0xff] }
 0xe7b   :  { %11758 = vmatprep.subr.mxu1 %v20764_v27  ;;  %7409 = vmatprep.subr.mxu0 %v7352_v37 }
 0xe7c   :  { %11759 = vmatpush3.msra.mxu1 %v21197_v40  ;;  %7410 = vmatpush1.msra.mxu0 %v21201_v36  ;;  %v275_v40 = vadd.f32 %v21208_v23, %v21079_v46  ;;  %v9755_v23 = vld [vmem:[%s20420_s4 + $0x2c0] sm:$0xff] }
 0xe7d   :  { %11760 = vmatprep.subr.mxu1 %v20764_v27  ;;  %7411 = vmatprep.subr.mxu0 %v7349_v54 }
 0xe7e   :  { %11761 = vmatpush3.msra.mxu1 %v21198_v16  ;;  %7412 = vmatpush1.msra.mxu0 %v7348_v29 }
 0xe7f   :  { %11762 = vmatprep.subr.mxu1 %v20764_v27  ;;  %7413 = vmatprep.subr.mxu0 %v7346_v61  ;;  %v21213_v61 = vld [vmem:[#allocation57_spill] sm:$0xff] }
 0xe80   :  { %11763 = vmatpush3.msra.mxu1 %v21199_v4  ;;  %7414 = vmatpush1.msra.mxu0 %v21202_v39  ;;  %v618_v39 = vadd.f32 %v21213_v61, %v13897_v42 }
 0xe81   :  { %11764 = vmatprep.subr.mxu1 %v20764_v27  ;;  %7415 = vmatprep.subr.mxu0 %v21203_v31 }
 0xe82   :  { %11765 = vmatpush3.msra.mxu1 %v21200_v34  ;;  %7416 = vmatpush1.msra.mxu0 %v21204_v13 }
 0xe83   :  { %11769 = vmatprep.subr.mxu1 %v20764_v27  ;;  %7417 = vmatprep.subr.mxu0 %v21205_v28 }
 0xe84   :  { %7418 = vmatpush1.msra.mxu0 %v21206_v26 }
 0xe85   :  { %7600 = vmatprep.subr.mxu0 %v9761_v15 }
 0xf00   :  { %v7025_v30 = vpop.f32.mrf.mxu0  ;;  %v7096_v14 = vpop.f32.mrf.mxu1 }
 0xf01   :  { %v7100_v0 = vadd.f32 %v7025_v30, %v21207_v53  ;;  %v7114_v59 = vadd.f32 %v21209_v45, %v7096_v14 }
 0xf02   :  { %v11698_v44 = vpop.f32.mrf.mxu1  ;;  %v7027_v20 = vpop.f32.mrf.mxu0 }
 0xf03   :  { %v9661_v9 = vmul.f32 -1.442695, %v7100_v0  ;;  %v7101_v16 = vadd.f32 %v7027_v20, %v275_v40  ;;  %v9760_v44 = vld [vmem:[%s20420_s4 + $0x2e8] sm:$0xff]  ;;  %v9757_v20 = vld [vmem:[%s20420_s4 + $0x2d0] sm:$0xff]  ;;  %v9754_v40 = vld [vmem:[%s20420_s4 + $0x2b8] sm:$0xff] }
 0xf05   :  { %12394 = vpow2.f32 %v9661_v9  ;;  %v9662_v4 = vmul.f32 -1.442695, %v7101_v16  ;;  %v9758_v9 = vld [vmem:[%s20420_s4 + $0x2d8] sm:$0xff]  ;;  %v9752_v16 = vld [vmem:[%s20420_s4 + $0x2a8] sm:$0xff] }
 0xf07   :  { %12396 = vpow2.f32 %v9662_v4  ;;  %v9749_v4 = vld [vmem:[%s20420_s4 + $0x290] sm:$0xff] }
 0xf12   :  { %v12395_v34 = vpop.eup %12394 }
 0xf13   :  { %v7108_v32 = vadd.f32 1.0, %v12395_v34  ;;  %v9746_v34 = vld [vmem:[%s20420_s4 + $0x278] sm:$0xff] }
 0xf14   :  { %v12397_v1 = vpop.eup %12396 }
 0xf15   :  { %12398 = vrcp.f32 %v7108_v32  ;;  %v7109_v37 = vadd.f32 1.0, %v12397_v1 }
 0xf22   :  { %v12399_v22 = vpop.eup %12398 }
 0xf23   :  { %v7115_v7 = vmul.f32 %v12399_v22, %v7114_v59  ;;  %v7238_v51 = vpop.f32.mrf.mxu0  ;;  %v7309_v8 = vpop.f32.mrf.mxu1  ;;  %v9742_v59 = vld [vmem:[%s20420_s4 + $0x258] sm:$0xff] }
 0xf24   :  { %v7313_v11 = vadd.f32 %v7238_v51, %v616_v52  ;;  %v7327_v1 = vadd.f32 %v18766_v58, %v7309_v8  ;;  %v9740_v58 = vld [vmem:[%s20420_s4 + $0x248] sm:$0xff]  ;;  %v9725_v8 = vld [vmem:[%s20420_s4 + $0x1d0] sm:$0xff] }
 0xf25   :  { %v7116_v50 = vadd.f32 %v7115_v7, %v420_v63  ;;  %v11733_v36 = vpop.f32.mrf.mxu1  ;;  %v7240_v29 = vpop.f32.mrf.mxu0  ;;  %v9734_v63 = vld [vmem:[%s20420_s4 + $0x218] sm:$0xff]  ;;  %v9731_v7 = vld [vmem:[%s20420_s4 + $0x200] sm:$0xff]  ;;  %v9728_v51 = vld [vmem:[%s20420_s4 + $0x1e8] sm:$0xff] }
 0xf26   :  { %v9711_v54 = vmul.f32 -1.442695, %v7313_v11  ;;  %v7314_v31 = vadd.f32 %v7240_v29, %v618_v39  ;;  %v9722_v11 = vld [vmem:[%s20420_s4 + $0x1b8] sm:$0xff]  ;;  %v7860_v39 = vld [vmem:[%s20424_s6 + $0x70] sm:$0xff] }
 0xf27   :  { %12400 = vtanh.f32 %v7116_v50  ;;  %v9719_v50 = vld [vmem:[%s20420_s4 + $0x1a0] sm:$0xff] }
 0xf28   :  { %12402 = vpow2.f32 %v9711_v54  ;;  %v9712_v13 = vmul.f32 -1.442695, %v7314_v31  ;;  %v9779_v31 = vld [vmem:[%s20424_s6 + $0xf0] sm:$0xff] }
 0xf29   :  { %12404 = vrcp.f32 %v7109_v37  ;;  %v9716_v37 = vld [vmem:[%s20420_s4 + $0x188] sm:$0xff] }
 0xf2a   :  { %12406 = vpow2.f32 %v9712_v13  ;;  %v7859_v13 = vld [vmem:[%s20424_s6 + $0x68] sm:$0xff] }
 0xf34   :  { %v12401_v28 = vpop.eup %12400 }
 0xf35   :  { %v12403_v26 = vpop.eup %12402  ;;  %v7118_v15 = vsub.f32 %v19148_v10, %v12401_v28 }
 0xf36   :  { %v12405_v30 = vpop.eup %12404  ;;  %v7321_v14 = vadd.f32 1.0, %v12403_v26  ;;  %v7858_v26 = vld [vmem:[%s20424_s6 + $0x60] sm:$0xff] }
 0xf37   :  { %v7119_v53 = vmul.f32 %v12405_v30, %v7118_v15  ;;  %v12407_v32 = vpop.eup %12406  ;;  %v9777_v15 = vld [vmem:[%s20424_s6 + $0xe0] sm:$0xff]  ;;  %v7857_v30 = vld [vmem:[%s20424_s6 + $0x58] sm:$0xff] }
 0xf38   :  { %12408 = vrcp.f32 %v7321_v14  ;;  %v7322_v5 = vadd.f32 1.0, %v12407_v32  ;;  %v9776_v14 = vld [vmem:[%s20424_s6 + $0xd8] sm:$0xff]  ;;  %v7850_v32 = vld [vmem:[%s20424_s6 + $0x20] sm:$0xff] }
 0xf39   :  { %v19425_v0 = vadd.f32 %v12401_v28, %v7119_v53  ;;  %v9778_v28 = vld [vmem:[%s20424_s6 + $0xe8] sm:$0xff]  ;;  %v7856_v53 = vld [vmem:[%s20424_s6 + $0x50] sm:$0xff] }
 0xf3b   :  { %7452 = vmatmul.mubr.f32.vlgmr.msra.gmra.mxu0 %v19425_v0  ;;  %11767 = vmatmul.mubr.f32.vlgmr.msra.gmra.mxu1 %v19425_v0 }
 0xf3c   :  { %7601 = vmatpush1.msra.mxu0 %v9760_v44  ;;  %11770 = vmatpush3.msra.mxu1 %v19153_v3  ;;  %v9751_v3 = vld [vmem:[%s20420_s4 + $0x2a0] sm:$0xff]  ;;  %v9775_v44 = vld [vmem:[%s20424_s6 + $0xd0] sm:$0xff] }
 0xf3d   :  { %7602 = vmatprep.subr.mxu0 %v9758_v9  ;;  %11771 = vmatprep.subr.mxu1 %v20764_v27  ;;  %v7855_v9 = vld [vmem:[%s20424_s6 + $0x48] sm:$0xff] }
 0xf3e   :  { %7603 = vmatpush1.msra.mxu0 %v9757_v20  ;;  %11772 = vmatpush3.msra.mxu1 %v19160_v12  ;;  %v9748_v12 = vld [vmem:[%s20420_s4 + $0x288] sm:$0xff] }
 0xf3f   :  { %7604 = vmatprep.subr.mxu0 %v9755_v23  ;;  %11773 = vmatprep.subr.mxu1 %v20764_v27  ;;  %v9774_v20 = vld [vmem:[%s20424_s6 + $0xc8] sm:$0xff]  ;;  %v7854_v23 = vld [vmem:[%s20424_s6 + $0x40] sm:$0xff] }
 0xf40   :  { %7605 = vmatpush1.msra.mxu0 %v9754_v40  ;;  %11774 = vmatpush3.msra.mxu1 %v19169_v60  ;;  %v9745_v60 = vld [vmem:[%s20420_s4 + $0x270] sm:$0xff]  ;;  %v9773_v40 = vld [vmem:[%s20424_s6 + $0xc0] sm:$0xff] }
 0xf41   :  { %7606 = vmatprep.subr.mxu0 %v9752_v16  ;;  %11775 = vmatprep.subr.mxu1 %v20764_v27  ;;  %v7853_v16 = vld [vmem:[%s20424_s6 + $0x38] sm:$0xff] }
 0xf42   :  { %7607 = vmatpush1.msra.mxu0 %v9751_v3  ;;  %11776 = vmatpush3.msra.mxu1 %v19178_v35  ;;  %v9743_v35 = vld [vmem:[%s20420_s4 + $0x260] sm:$0xff]  ;;  %v9772_v3 = vld [vmem:[%s20424_s6 + $0xb8] sm:$0xff] }
 0xf43   :  { %7608 = vmatprep.subr.mxu0 %v9749_v4  ;;  %11777 = vmatprep.subr.mxu1 %v20764_v27  ;;  %v7852_v4 = vld [vmem:[%s20424_s6 + $0x30] sm:$0xff] }
 0xf44   :  { %7609 = vmatpush1.msra.mxu0 %v9748_v12  ;;  %11778 = vmatpush3.msra.mxu1 %v19187_v33  ;;  %v9739_v33 = vld [vmem:[%s20420_s4 + $0x240] sm:$0xff]  ;;  %v9771_v12 = vld [vmem:[%s20424_s6 + $0xb0] sm:$0xff] }
 0xf45   :  { %v12409_v45 = vpop.eup %12408  ;;  %7610 = vmatprep.subr.mxu0 %v9746_v34  ;;  %11779 = vmatprep.subr.mxu1 %v20764_v27  ;;  %v7851_v34 = vld [vmem:[%s20424_s6 + $0x28] sm:$0xff] }
 0xf46   :  { %v7328_v22 = vmul.f32 %v12409_v45, %v7327_v1  ;;  %7611 = vmatpush1.msra.mxu0 %v9745_v60  ;;  %11780 = vmatpush3.msra.mxu1 %v19196_v21  ;;  %v9737_v21 = vld [vmem:[%s20420_s4 + $0x230] sm:$0xff]  ;;  %v9770_v60 = vld [vmem:[%s20424_s6 + $0xa8] sm:$0xff]  ;;  %v9769_v1 = vld [vmem:[%s20424_s6 + $0xa0] sm:$0xff] }
 0xf47   :  { %7612 = vmatprep.subr.mxu0 %v9743_v35  ;;  %11781 = vmatprep.subr.mxu1 %v20764_v27  ;;  %v7849_v35 = vld [vmem:[%s20424_s6 + $0x18] sm:$0xff] }
 0xf48   :  { %v7329_v52 = vadd.f32 %v7328_v22, %v21214_v57  ;;  %7613 = vmatpush1.msra.mxu0 %v9742_v59  ;;  %11782 = vmatpush3.msra.mxu1 %v19206_v6  ;;  %v9733_v6 = vld [vmem:[%s20420_s4 + $0x210] sm:$0xff]  ;;  %v9768_v45 = vld [vmem:[%s20424_s6 + $0x98] sm:$0xff]  ;;  %v7846_v57 = vld [vmem:[%s20424_s6] sm:$0xff] }
 0xf49   :  { %7614 = vmatprep.subr.mxu0 %v9740_v58  ;;  %11783 = vmatprep.subr.mxu1 %v20764_v27  ;;  %v7848_v59 = vld [vmem:[%s20424_s6 + $0x10] sm:$0xff]  ;;  %v7847_v58 = vld [vmem:[%s20424_s6 + $0x8] sm:$0xff] }
 0xf4a   :  { %12410 = vtanh.f32 %v7329_v52  ;;  %7615 = vmatpush1.msra.mxu0 %v9739_v33  ;;  %11784 = vmatpush3.msra.mxu1 %v19217_v62  ;;  %v9730_v62 = vld [vmem:[%s20420_s4 + $0x1f8] sm:$0xff]  ;;  %v9767_v22 = vld [vmem:[%s20424_s6 + $0x90] sm:$0xff]  ;;  %v9766_v33 = vld [vmem:[%s20424_s6 + $0x88] sm:$0xff] }
 0xf4b   :  { %7616 = vmatprep.subr.mxu0 %v9737_v21  ;;  %11785 = vmatprep.subr.mxu1 %v20764_v27  ;;  %12412 = vrcp.f32 %v7322_v5  ;;  %v9765_v52 = vld [vmem:[%s20424_s6 + $0x80] sm:$0xff]  ;;  %v19663_v5 = vld [vmem:[%s20424_s6 + $0x178] sm:$0xff] }
 0xf4c   :  { %7617 = vmatpush1.msra.mxu0 %v9736_v55  ;;  %11786 = vmatpush3.msra.mxu1 %v19226_v38  ;;  %v9727_v38 = vld [vmem:[%s20420_s4 + $0x1e0] sm:$0xff] }
 0xf4d   :  { %7618 = vmatprep.subr.mxu0 %v9734_v63  ;;  %11787 = vmatprep.subr.mxu1 %v20764_v27  ;;  %v21215_v63 = vld [vmem:[#allocation50_spill] sm:$0xff] }
 0xf4e   :  { %7619 = vmatpush1.msra.mxu0 %v9733_v6  ;;  %11788 = vmatpush3.msra.mxu1 %v19235_v48  ;;  %v9724_v48 = vld [vmem:[%s20420_s4 + $0x1c8] sm:$0xff] }
 0xf4f   :  { %7620 = vmatprep.subr.mxu0 %v9731_v7  ;;  %11789 = vmatprep.subr.mxu1 %v20764_v27 }
 0xf50   :  { %7621 = vmatpush1.msra.mxu0 %v9730_v62  ;;  %11790 = vmatpush3.msra.mxu1 %v19244_v41  ;;  %v9721_v41 = vld [vmem:[%s20420_s4 + $0x1b0] sm:$0xff] }
 0xf51   :  { %7622 = vmatprep.subr.mxu0 %v9728_v51  ;;  %11791 = vmatprep.subr.mxu1 %v20764_v27 }
 0xf52   :  { %7623 = vmatpush1.msra.mxu0 %v9727_v38  ;;  %11792 = vmatpush3.msra.mxu1 %v19253_v47  ;;  %v9718_v47 = vld [vmem:[%s20420_s4 + $0x198] sm:$0xff]  ;;  %v21216_v38 = vld [vmem:[#allocation52_spill] sm:$0xff] }
 0xf53   :  { %7624 = vmatprep.subr.mxu0 %v9725_v8  ;;  %11793 = vmatprep.subr.mxu1 %v20764_v27  ;;  %v281_v8 = vadd.f32 %v21216_v38, %v21079_v46  ;;  %v21230_v38 = vld [vmem:[#allocation119_spill] sm:$0xff] }
 0xf54   :  { %7625 = vmatpush1.msra.mxu0 %v9724_v48  ;;  %11794 = vmatpush3.msra.mxu1 %v19262_v56  ;;  %v9715_v56 = vld [vmem:[%s20420_s4 + $0x180] sm:$0xff] }
 0xf55   :  { %7626 = vmatprep.subr.mxu0 %v9722_v11  ;;  %11795 = vmatprep.subr.mxu1 %v20764_v27 }
 0xf56   :  { %7627 = vmatpush1.msra.mxu0 %v9721_v41  ;;  %11796 = vmatpush3.msra.mxu1 %v19271_v24 }
 0xf57   :  { %v12411_v36 = vpop.eup %12410  ;;  %7628 = vmatprep.subr.mxu0 %v9719_v50  ;;  %11797 = vmatprep.subr.mxu1 %v20764_v27 }
 0xf58   :  { %7629 = vmatpush1.msra.mxu0 %v9718_v47  ;;  %11798 = vmatpush3.msra.mxu1 %v19280_v18  ;;  %v7331_v54 = vsub.f32 %v19301_v25, %v12411_v36  ;;  %v12413_v29 = vpop.eup %12412  ;;  %v7861_v18 = vld [vmem:[%s20424_s6 + $0x78] sm:$0xff] }
 0xf59   :  { %7630 = vmatprep.subr.mxu0 %v9716_v37  ;;  %11799 = vmatprep.subr.mxu1 %v20764_v27  ;;  %v12444_v37 = vld [vmem:[%s20423_s5] ss:$0 sm:$0xff] }
 0xf5a   :  { %7631 = vmatpush1.msra.mxu0 %v9715_v56  ;;  %7664 = vmatprep.mubr.f32.mxu0 %v20764_v27  ;;  %v7332_v24 = vmul.f32 %v12413_v29, %v7331_v54  ;;  %v21217_v54 = vld [vmem:[#allocation49_spill] sm:$0xff] }
 0xf5b   :  { %11800 = vmatpush3.msra.mxu1 %v19291_v19  ;;  %11801 = vmatprep.mubr.msk.f32.mxu1 %vm12447_vm0, %v20764_v27  ;;  %v9780_v19 = vld [vmem:[%s20424_s6 + $0xf8] sm:$0xff]  ;;  %v610_v29 = vadd.f32 %v21217_v54, %v21178_v2 }
 0xf5c   :  { %v19559_v61 = vadd.f32 %v12411_v36, %v7332_v24  ;;  %11860 = vmatprep.subr.mxu1 %v7861_v18  ;;  %11804 = vmatprep.subr.mxu0 %v9780_v19  ;;  %v21239_v54 = vld [vmem:[#allocation93_spill] sm:$0xff] }
 0xf5e   :  { %7665 = vmatmul.mubr.f32.vlgmr.msra.gmra.mxu0 %v19559_v61  ;;  %11802 = vmatmul.mubr.f32.vlgmr.msra.gmra.mxu1 %v19559_v61 }
 0xf5f   :  { %11892 = vmatprep.mubr.f32.mxu1 %v20764_v27  ;;  %11861 = vmatpush3.msra.mxu1 %v7861_v18 }
 0xf60   :  { %11805 = vmatpush3.msra.mxu0 %v9780_v19  ;;  %11862 = vmatprep.subr.mxu1 %v7860_v39 }
 0xf61   :  { %11806 = vmatprep.subr.mxu0 %v9779_v31  ;;  %11863 = vmatpush3.msra.mxu1 %v7860_v39  ;;  %v21218_v39 = vld [vmem:[#allocation45_spill] sm:$0xff] }
 0xf62   :  { %11807 = vmatpush3.msra.mxu0 %v9779_v31  ;;  %11864 = vmatprep.subr.mxu1 %v7859_v13 }
 0xf63   :  { %11808 = vmatprep.subr.mxu0 %v9778_v28  ;;  %11865 = vmatpush3.msra.mxu1 %v7859_v13 }
 0xf64   :  { %11809 = vmatpush3.msra.mxu0 %v9778_v28  ;;  %11866 = vmatprep.subr.mxu1 %v7858_v26 }
 0xf65   :  { %11810 = vmatprep.subr.mxu0 %v9777_v15  ;;  %11867 = vmatpush3.msra.mxu1 %v7858_v26 }
 0xf66   :  { %11811 = vmatpush3.msra.mxu0 %v9777_v15  ;;  %11868 = vmatprep.subr.mxu1 %v7857_v30 }
 0xf67   :  { %11812 = vmatprep.subr.mxu0 %v9776_v14  ;;  %11869 = vmatpush3.msra.mxu1 %v7857_v30  ;;  %v21219_v30 = vld [vmem:[#allocation53_spill] sm:$0xff] }
 0xf68   :  { %11813 = vmatpush3.msra.mxu0 %v9776_v14  ;;  %11870 = vmatprep.subr.mxu1 %v7856_v53  ;;  %v612_v14 = vadd.f32 %v21219_v30, %v13897_v42  ;;  %v21248_v30 = vld [vmem:[#allocation71_spill] sm:$0xff] }
 0xf69   :  { %11814 = vmatprep.subr.mxu0 %v9775_v44  ;;  %11871 = vmatpush3.msra.mxu1 %v7856_v53 }
 0xf6a   :  { %11815 = vmatpush3.msra.mxu0 %v9775_v44  ;;  %11872 = vmatprep.subr.mxu1 %v7855_v9 }
 0xf6b   :  { %11816 = vmatprep.subr.mxu0 %v9774_v20  ;;  %11873 = vmatpush3.msra.mxu1 %v7855_v9 }
 0xf6c   :  { %11817 = vmatpush3.msra.mxu0 %v9774_v20  ;;  %11874 = vmatprep.subr.mxu1 %v7854_v23 }
 0xf6d   :  { %11818 = vmatprep.subr.mxu0 %v9773_v40  ;;  %11875 = vmatpush3.msra.mxu1 %v7854_v23 }
 0xf6e   :  { %11819 = vmatpush3.msra.mxu0 %v9773_v40  ;;  %11876 = vmatprep.subr.mxu1 %v7853_v16 }
 0xf6f   :  { %11820 = vmatprep.subr.mxu0 %v9772_v3  ;;  %11877 = vmatpush3.msra.mxu1 %v7853_v16 }
 0xf70   :  { %11821 = vmatpush3.msra.mxu0 %v9772_v3  ;;  %11878 = vmatprep.subr.mxu1 %v7852_v4 }
 0xf71   :  { %11822 = vmatprep.subr.mxu0 %v9771_v12  ;;  %11879 = vmatpush3.msra.mxu1 %v7852_v4 }
 0xf72   :  { %11823 = vmatpush3.msra.mxu0 %v9771_v12  ;;  %11880 = vmatprep.subr.mxu1 %v7851_v34  ;;  %v12445_v12 = vld [vmem:[%s20423_s5 + $0x1] ss:$0 sm:$0xff] }
 0xf73   :  { %11824 = vmatprep.subr.mxu0 %v9770_v60  ;;  %11881 = vmatpush3.msra.mxu1 %v7851_v34 }
 0xf74   :  { %11825 = vmatpush3.msra.mxu0 %v9770_v60  ;;  %11882 = vmatprep.subr.mxu1 %v7850_v32  ;;  %v21220_v60 = vld [vmem:[#allocation56_spill] sm:$0xff] }
 0xf75   :  { %11826 = vmatprep.subr.mxu0 %v9769_v1  ;;  %11883 = vmatpush3.msra.mxu1 %v7850_v32  ;;  %v771_v32 = vadd.f32 %v21220_v60, %v21182_v49  ;;  %v21225_v49 = vld [vmem:[#allocation14_spill] sm:$0xff]  ;;  %v9783_v60 = vld [vmem:[%s20424_s6 + $0x110] sm:$0xff] }
 0xf76   :  { %11827 = vmatpush3.msra.mxu0 %v9769_v1  ;;  %11884 = vmatprep.subr.mxu1 %v7849_v35 }
 0xf77   :  { %11828 = vmatprep.subr.mxu0 %v9768_v45  ;;  %11885 = vmatpush3.msra.mxu1 %v7849_v35 }
 0xf78   :  { %11829 = vmatpush3.msra.mxu0 %v9768_v45  ;;  %11886 = vmatprep.subr.mxu1 %v7848_v59 }
 0xf79   :  { %11830 = vmatprep.subr.mxu0 %v9767_v22  ;;  %11887 = vmatpush3.msra.mxu1 %v7848_v59 }
 0xf7a   :  { %11831 = vmatpush3.msra.mxu0 %v9767_v22  ;;  %11888 = vmatprep.subr.mxu1 %v7847_v58 }
 0xf7b   :  { %11832 = vmatprep.subr.mxu0 %v9766_v33  ;;  %11889 = vmatpush3.msra.mxu1 %v7847_v58 }
 0xf7c   :  { %11833 = vmatpush3.msra.mxu0 %v9766_v33  ;;  %11890 = vmatprep.subr.mxu1 %v7846_v57 }
 0xf7d   :  { %11834 = vmatprep.subr.mxu0 %v9765_v52  ;;  %11891 = vmatpush3.msra.mxu1 %v7846_v57 }
 0xf7e   :  { %11835 = vmatpush3.msra.mxu0 %v9765_v52  ;;  %11972 = vmatprep.subr.mxu1 %v20764_v27  ;;  %v21221_v52 = vld [vmem:[#allocation100_spill] sm:$0xff] }
 0xf7f   :  { %11916 = vmatprep.subr.mxu0 %v19663_v5 }
 0xffb   :  { %v7453_v21 = vpop.f32.mrf.mxu0  ;;  %v7524_v55 = vpop.f32.mrf.mxu1 }
 0xffc   :  { %v7528_v6 = vadd.f32 %v7453_v21, %v21215_v63  ;;  %v7542_v36 = vadd.f32 %v12444_v37, %v7524_v55  ;;  %v21223_v55 = vld [vmem:[#allocation6_spill] sm:$0xff] }
 0xffd   :  { %v11768_v7 = vpop.f32.mrf.mxu1  ;;  %v7455_v51 = vpop.f32.mrf.mxu0  ;;  %v19692_v63 = vadd.f32 %v19559_v61, %v21223_v55  ;;  %v19912_v55 = vld [vmem:[%s20425_s10 + $0x30] sm:$0xff] }
 0xffe   :  { %v9713_v62 = vmul.f32 -1.442695, %v7528_v6  ;;  %v7529_v48 = vadd.f32 %v7455_v51, %v281_v8  ;;  %v19698_v6 = vadd.f32 %v19301_v25, %v21225_v49  ;;  %v9795_v7 = vld [vmem:[%s20424_s6 + $0x170] sm:$0xff]  ;;  %v9794_v25 = vld [vmem:[%s20424_s6 + $0x168] sm:$0xff]  ;;  %21266 = vst [vmem:[#allocation121_spill] sm:$0xff] %v19912_v55 }
 0xfff   :  { %21224 = vst [vmem:[#allocation108_spill] sm:$0xff] %v19692_v63  ;;  %v21229_v51 = vld [vmem:[#allocation7_spill] sm:$0xff] }
0x1000   :  { %12414 = vpow2.f32 %v9713_v62  ;;  %v9714_v11 = vmul.f32 -1.442695, %v7529_v48  ;;  %21226 = vst [vmem:[#allocation18_spill] sm:$0xff] %v19698_v6  ;;  %v19717_v8 = vadd.f32 %v21230_v38, %v21229_v51  ;;  %v21233_v48 = vld [vmem:[#allocation115_spill] sm:$0xff] }
0x1001   :  { %v19919_v49 = vld [vmem:[%s20425_s10 + $0x28] sm:$0xff] }
0x1002   :  { %12416 = vpow2.f32 %v9714_v11  ;;  %21231 = vst [vmem:[#allocation28_spill] sm:$0xff] %v19717_v8  ;;  %21267 = vst [vmem:[#allocation114_spill] sm:$0xff] %v19919_v49  ;;  %v19947_v51 = vld [vmem:[%s20425_s10 + $0x8] sm:$0xff] }
0x1003   :  { %21271 = vst [vmem:[#allocation90_spill] sm:$0xff] %v19947_v51 }
0x100d   :  { %v12415_v41 = vpop.eup %12414 }
0x100e   :  { %v7536_v50 = vadd.f32 1.0, %v12415_v41  ;;  %v9792_v41 = vld [vmem:[%s20424_s6 + $0x158] sm:$0xff] }
0x100f   :  { %v12417_v47 = vpop.eup %12416 }
0x1010   :  { %12418 = vrcp.f32 %v7536_v50  ;;  %v7537_v13 = vadd.f32 1.0, %v12417_v47  ;;  %v21235_v50 = vld [vmem:[#allocation111_spill] sm:$0xff]  ;;  %v21236_v47 = vld [vmem:[#allocation84_spill] sm:$0xff] }
0x1011   :  { %v19736_v37 = vadd.f32 %v21236_v47, %v21235_v50 }
0x1013   :  { %21237 = vst [vmem:[#allocation21_spill] sm:$0xff] %v19736_v37 }
0x101d   :  { %v12419_v56 = vpop.eup %12418 }
0x101e   :  { %v7543_v24 = vmul.f32 %v12419_v56, %v7542_v36  ;;  %v7666_v18 = vpop.f32.mrf.mxu0  ;;  %v7737_v19 = vpop.f32.mrf.mxu1  ;;  %v9791_v36 = vld [vmem:[%s20424_s6 + $0x150] sm:$0xff]  ;;  %v21238_v56 = vld [vmem:[#allocation10_spill] sm:$0xff] }
0x101f   :  { %v7741_v46 = vadd.f32 %v7666_v18, %v610_v29  ;;  %v7755_v34 = vadd.f32 %v12445_v12, %v7737_v19  ;;  %v19745_v29 = vadd.f32 %v21239_v54, %v21238_v56  ;;  %v21241_v18 = vld [vmem:[#allocation92_spill] sm:$0xff]  ;;  %v21242_v19 = vld [vmem:[#allocation17_spill] sm:$0xff] }
0x1020   :  { %v7544_v31 = vadd.f32 %v7543_v24, %v21218_v39  ;;  %v11803_v28 = vpop.f32.mrf.mxu1  ;;  %v7668_v15 = vpop.f32.mrf.mxu0  ;;  %v9790_v24 = vld [vmem:[%s20424_s6 + $0x148] sm:$0xff]  ;;  %v9789_v39 = vld [vmem:[%s20424_s6 + $0x140] sm:$0xff] }
0x1021   :  { %v9763_v26 = vmul.f32 -1.442695, %v7741_v46  ;;  %v7742_v53 = vadd.f32 %v7668_v15, %v612_v14  ;;  %21240 = vst [vmem:[#allocation32_spill] sm:$0xff] %v19745_v29  ;;  %v19754_v46 = vadd.f32 %v21242_v19, %v21241_v18  ;;  %v21247_v15 = vld [vmem:[#allocation124_spill] sm:$0xff] }
0x1022   :  { %12420 = vtanh.f32 %v7544_v31  ;;  %v21244_v31 = vld [vmem:[#allocation118_spill] sm:$0xff]  ;;  %v19772_v14 = vadd.f32 %v21248_v30, %v21247_v15 }
0x1023   :  { %12422 = vpow2.f32 %v9763_v26  ;;  %v9764_v44 = vmul.f32 -1.442695, %v7742_v53  ;;  %21243 = vst [vmem:[#allocation87_spill] sm:$0xff] %v19754_v46  ;;  %v9788_v26 = vld [vmem:[%s20424_s6 + $0x138] sm:$0xff]  ;;  %v9787_v53 = vld [vmem:[%s20424_s6 + $0x130] sm:$0xff] }
0x1024   :  { %12424 = vrcp.f32 %v7537_v13  ;;  %v21245_v13 = vld [vmem:[#allocation27_spill] sm:$0xff]  ;;  %21249 = vst [vmem:[#allocation72_spill] sm:$0xff] %v19772_v14 }
0x1025   :  { %12426 = vpow2.f32 %v9764_v44  ;;  %v19763_v28 = vadd.f32 %v21245_v13, %v21244_v31  ;;  %v21250_v44 = vld [vmem:[#allocation8_spill] sm:$0xff] }
0x1027   :  { %21246 = vst [vmem:[#allocation34_spill] sm:$0xff] %v19763_v28 }
0x102f   :  { %v12421_v9 = vpop.eup %12420 }
0x1030   :  { %v12423_v2 = vpop.eup %12422  ;;  %v7546_v20 = vsub.f32 %v19425_v0, %v12421_v9 }
0x1031   :  { %v12425_v23 = vpop.eup %12424  ;;  %v7749_v40 = vadd.f32 1.0, %v12423_v2 }
0x1032   :  { %v7547_v16 = vmul.f32 %v12425_v23, %v7546_v20  ;;  %v12427_v4 = vpop.eup %12426  ;;  %v9786_v20 = vld [vmem:[%s20424_s6 + $0x128] sm:$0xff] }
0x1033   :  { %12428 = vrcp.f32 %v7749_v40  ;;  %v7750_v45 = vadd.f32 1.0, %v12427_v4  ;;  %v21253_v23 = vld [vmem:[#allocation123_spill] sm:$0xff]  ;;  %v21255_v4 = vld [vmem:[#allocation97_spill] sm:$0xff] }
0x1034   :  { %v19679_v3 = vadd.f32 %v12421_v9, %v7547_v16  ;;  %v21251_v9 = vld [vmem:[#allocation26_spill] sm:$0xff]  ;;  %v19790_v40 = vadd.f32 %v18688_v17, %v21253_v23  ;;  %v19799_v12 = vadd.f32 %v19148_v10, %v21255_v4  ;;  %v21257_v17 = vld [vmem:[#allocation96_spill] sm:$0xff]  ;;  %v9782_v10 = vld [vmem:[%s20424_s6 + $0x108] sm:$0xff] }
0x1035   :  { %v19781_v2 = vadd.f32 %v21251_v9, %v21250_v44  ;;  %v9785_v16 = vld [vmem:[%s20424_s6 + $0x120] sm:$0xff] }
0x1036   :  { %21254 = vst [vmem:[#allocation73_spill] sm:$0xff] %v19790_v40  ;;  %21256 = vst [vmem:[#allocation62_spill] sm:$0xff] %v19799_v12 }
0x1037   :  { %21252 = vst [vmem:[#allocation38_spill] sm:$0xff] %v19781_v2 }
0x1040   :  { %v12429_v42 = vpop.eup %12428 }
0x1041   :  { %v7756_v1 = vmul.f32 %v12429_v42, %v7755_v34  ;;  %v9784_v34 = vld [vmem:[%s20424_s6 + $0x118] sm:$0xff]  ;;  %v19808_v42 = vadd.f32 %v19425_v0, %v21257_v17 }
0x1043   :  { %v7757_v35 = vadd.f32 %v7756_v1, %v771_v32  ;;  %21258 = vst [vmem:[#allocation35_spill] sm:$0xff] %v19808_v42  ;;  %v21259_v32 = vld [vmem:[#allocation101_spill] sm:$0xff]  ;;  %v9781_v1 = vld [vmem:[%s20424_s6 + $0x100] sm:$0xff] }
0x1044   :  { %v19821_v0 = vadd.f32 %v19679_v3, %v21259_v32  ;;  %v19851_v3 = vld [vmem:[%s20425_s10 + $0x78] sm:$0xff] }
0x1045   :  { %12430 = vtanh.f32 %v7757_v35  ;;  %v19856_v35 = vld [vmem:[%s20425_s10 + $0x70] sm:$0xff] }
0x1046   :  { %12432 = vrcp.f32 %v7750_v45  ;;  %21260 = vst [vmem:[#allocation37_spill] sm:$0xff] %v19821_v0  ;;  %v19863_v45 = vld [vmem:[%s20425_s10 + $0x68] sm:$0xff] }
0x1052   :  { %v12431_v59 = vpop.eup %12430 }
0x1053   :  { %v7759_v22 = vsub.f32 %v19559_v61, %v12431_v59  ;;  %v12433_v58 = vpop.eup %12432  ;;  %v21227_v61 = vld [vmem:[#allocation122_spill] sm:$0xff] }
0x1054   :  { %v19709_v62 = vadd.f32 %v18920_v43, %v21227_v61  ;;  %v9793_v43 = vld [vmem:[%s20424_s6 + $0x160] sm:$0xff]  ;;  %v19933_v61 = vld [vmem:[%s20425_s10 + $0x18] sm:$0xff] }
0x1055   :  { %v7760_v33 = vmul.f32 %v12433_v58, %v7759_v22  ;;  %v19877_v22 = vld [vmem:[%s20425_s10 + $0x58] sm:$0xff]  ;;  %v19884_v58 = vld [vmem:[%s20425_s10 + $0x50] sm:$0xff]  ;;  %21269 = vst [vmem:[#allocation12_spill] sm:$0xff] %v19933_v61 }
0x1056   :  { %21228 = vst [vmem:[#allocation85_spill] sm:$0xff] %v19709_v62  ;;  %21261 = vst [vmem:[#allocation83_spill] sm:$0xff] %v19877_v22 }
0x1057   :  { %v7761_v57 = vadd.f32 %v12431_v59, %v7760_v33  ;;  %v19870_v59 = vld [vmem:[%s20425_s10 + $0x60] sm:$0xff]  ;;  %21262 = vst [vmem:[#allocation68_spill] sm:$0xff] %v19884_v58  ;;  %v19891_v33 = vld [vmem:[%s20425_s10 + $0x48] sm:$0xff] }
0x1058   :  { %21263 = vst [vmem:[#allocation36_spill] sm:$0xff] %v19891_v33 }
0x1059   :  { %v19688_v21 = vadd.f32 %v7761_v57, %v21221_v52  ;;  %v19898_v57 = vld [vmem:[%s20425_s10 + $0x40] sm:$0xff]  ;;  %v19905_v52 = vld [vmem:[%s20425_s10 + $0x38] sm:$0xff] }
0x105a   :  { %21264 = vst [vmem:[#allocation69_spill] sm:$0xff] %v19898_v57  ;;  %21265 = vst [vmem:[#allocation63_spill] sm:$0xff] %v19905_v52 }
0x105b   :  { %21222 = vst [vmem:[#allocation23_spill] sm:$0xff] %v19688_v21  ;;  %11836 = vmatprep.mubr.f32.mxu0 %v19688_v21  ;;  %11893 = vmatmul.mubr.f32.vlgmr.msra.gmra.mxu1 %v19688_v21 }
0x105c   :  { %11837 = vmatmul.mubr.f32.vlgmr.msra.gmra.mxu0 %v19692_v63  ;;  %11895 = vmatprep.mubr.f32.mxu1 %v19692_v63 }
0x105d   :  { %11839 = vmatprep.mubr.f32.mxu0 %v19698_v6  ;;  %11917 = vmatpush3.msra.mxu0 %v19663_v5  ;;  %v21232_v5 = vld [vmem:[#allocation116_spill] sm:$0xff] }
0x105e   :  { %11918 = vmatprep.subr.mxu0 %v9795_v7  ;;  %v19727_v11 = vadd.f32 %v21233_v48, %v21232_v5 }
0x105f   :  { %11896 = vmatmul.mubr.f32.gmra.mxu1 %v19698_v6  ;;  %11919 = vmatpush3.msra.mxu0 %v9795_v7  ;;  %v19926_v7 = vld [vmem:[%s20425_s10 + $0x20] sm:$0xff] }
0x1060   :  { %11840 = vmatmul.mubr.f32.gmra.mxu0 %v19709_v62  ;;  %11898 = vmatprep.mubr.f32.mxu1 %v19709_v62  ;;  %21234 = vst [vmem:[#allocation70_spill] sm:$0xff] %v19727_v11  ;;  %21268 = vst [vmem:[#allocation117_spill] sm:$0xff] %v19926_v7 }
0x1061   :  { %11920 = vmatprep.subr.mxu0 %v9794_v25  ;;  %11842 = vmatprep.mubr.f32.mxu0 %v19717_v8 }
0x1062   :  { %11921 = vmatpush3.msra.mxu0 %v9794_v25  ;;  %v19940_v25 = vld [vmem:[%s20425_s10 + $0x10] sm:$0xff] }
0x1063   :  { %11922 = vmatprep.subr.mxu0 %v9793_v43  ;;  %11899 = vmatmul.mubr.f32.gmra.mxu1 %v19717_v8  ;;  %21270 = vst [vmem:[#allocation13_spill] sm:$0xff] %v19940_v25 }
0x1064   :  { %11923 = vmatpush3.msra.mxu0 %v9793_v43  ;;  %11901 = vmatprep.mubr.f32.mxu1 %v19727_v11 }
0x1065   :  { %11843 = vmatmul.mubr.f32.gmra.mxu0 %v19727_v11  ;;  %11924 = vmatprep.subr.mxu0 %v9792_v41 }
0x1066   :  { %11845 = vmatprep.mubr.f32.mxu0 %v19736_v37  ;;  %11925 = vmatpush3.msra.mxu0 %v9792_v41 }
0x1067   :  { %11926 = vmatprep.subr.mxu0 %v9791_v36  ;;  %11902 = vmatmul.mubr.f32.gmra.mxu1 %v19736_v37 }
0x1068   :  { %11927 = vmatpush3.msra.mxu0 %v9791_v36  ;;  %11904 = vmatprep.mubr.f32.mxu1 %v19745_v29 }
0x1069   :  { %11846 = vmatmul.mubr.f32.gmra.mxu0 %v19745_v29  ;;  %11928 = vmatprep.subr.mxu0 %v9790_v24 }
0x106a   :  { %11848 = vmatprep.mubr.f32.mxu0 %v19754_v46  ;;  %11929 = vmatpush3.msra.mxu0 %v9790_v24 }
0x106b   :  { %11930 = vmatprep.subr.mxu0 %v9789_v39  ;;  %11905 = vmatmul.mubr.f32.gmra.mxu1 %v19754_v46 }
0x106c   :  { %11931 = vmatpush3.msra.mxu0 %v9789_v39  ;;  %11907 = vmatprep.mubr.f32.mxu1 %v19763_v28 }
0x106d   :  { %11849 = vmatmul.mubr.f32.gmra.mxu0 %v19763_v28  ;;  %11932 = vmatprep.subr.mxu0 %v9788_v26 }
0x106e   :  { %11851 = vmatprep.mubr.f32.mxu0 %v19772_v14  ;;  %11933 = vmatpush3.msra.mxu0 %v9788_v26 }
0x106f   :  { %11934 = vmatprep.subr.mxu0 %v9787_v53  ;;  %11908 = vmatmul.mubr.f32.gmra.mxu1 %v19772_v14 }
0x1070   :  { %11935 = vmatpush3.msra.mxu0 %v9787_v53  ;;  %11910 = vmatprep.mubr.f32.mxu1 %v19781_v2 }
0x1071   :  { %11852 = vmatmul.mubr.f32.gmra.mxu0 %v19781_v2  ;;  %11936 = vmatprep.subr.mxu0 %v9786_v20 }
0x1072   :  { %11854 = vmatprep.mubr.f32.mxu0 %v19790_v40  ;;  %11937 = vmatpush3.msra.mxu0 %v9786_v20 }
0x1073   :  { %11938 = vmatprep.subr.mxu0 %v9785_v16  ;;  %11911 = vmatmul.mubr.f32.gmra.mxu1 %v19790_v40 }
0x1074   :  { %11939 = vmatpush3.msra.mxu0 %v9785_v16  ;;  %11913 = vmatprep.mubr.f32.mxu1 %v19799_v12 }
0x1075   :  { %11855 = vmatmul.mubr.f32.gmra.mxu0 %v19799_v12  ;;  %11940 = vmatprep.subr.mxu0 %v9784_v34 }
0x1076   :  { %11857 = vmatprep.mubr.f32.mxu0 %v19808_v42  ;;  %11941 = vmatpush3.msra.mxu0 %v9784_v34 }
0x1077   :  { %11942 = vmatprep.subr.mxu0 %v9783_v60  ;;  %11914 = vmatmul.mubr.f32.gmra.mxu1 %v19808_v42 }
0x1078   :  { %11943 = vmatpush3.msra.mxu0 %v9783_v60  ;;  %12004 = vmatprep.mubr.msk.f32.mxu1 %vm12447_vm0, %v20764_v27 }
0x1079   :  { %11858 = vmatmul.mubr.f32.gmra.mxu0 %v19821_v0  ;;  %11944 = vmatprep.subr.mxu0 %v9782_v10 }
0x107a   :  { %11945 = vmatpush3.msra.mxu0 %v9782_v10  ;;  %11948 = vmatprep.mubr.f32.mxu0 %v19692_v63 }
0x107b   :  { %11946 = vmatprep.subr.mxu0 %v9781_v1 }
0x107c   :  { %11947 = vmatpush3.msra.mxu0 %v9781_v1 }
0x107d   :  { %11949 = vmatmul.mubr.f32.vlgmr.msra.gmra.mxu0 %v19698_v6  ;;  %12007 = vmatprep.subr.mxu0 %v20764_v27 }
0x107e   :  { %11951 = vmatprep.mubr.f32.mxu0 %v19709_v62  ;;  %12008 = vmatpush3.msra.mxu0 %v19851_v3 }
0x107f   :  { %12009 = vmatprep.subr.mxu0 %v20764_v27 }
0x1080   :  { %12010 = vmatpush3.msra.mxu0 %v19856_v35 }
0x1081   :  { %11952 = vmatmul.mubr.f32.gmra.mxu0 %v19717_v8  ;;  %12011 = vmatprep.subr.mxu0 %v20764_v27 }
0x1082   :  { %11954 = vmatprep.mubr.f32.mxu0 %v19727_v11  ;;  %12012 = vmatpush3.msra.mxu0 %v19863_v45 }
0x1083   :  { %12013 = vmatprep.subr.mxu0 %v20764_v27 }
0x1084   :  { %12014 = vmatpush3.msra.mxu0 %v19870_v59 }
0x1085   :  { %11955 = vmatmul.mubr.f32.gmra.mxu0 %v19736_v37  ;;  %12015 = vmatprep.subr.mxu0 %v20764_v27 }
0x1086   :  { %11957 = vmatprep.mubr.f32.mxu0 %v19745_v29  ;;  %12016 = vmatpush3.msra.mxu0 %v19877_v22 }
0x1087   :  { %12017 = vmatprep.subr.mxu0 %v20764_v27 }
0x1088   :  { %12018 = vmatpush3.msra.mxu0 %v19884_v58 }
0x1089   :  { %11958 = vmatmul.mubr.f32.gmra.mxu0 %v19754_v46  ;;  %12019 = vmatprep.subr.mxu0 %v20764_v27 }
0x108a   :  { %11960 = vmatprep.mubr.f32.mxu0 %v19763_v28  ;;  %12020 = vmatpush3.msra.mxu0 %v19891_v33 }
0x108b   :  { %12021 = vmatprep.subr.mxu0 %v20764_v27 }
0x108c   :  { %12022 = vmatpush3.msra.mxu0 %v19898_v57 }
0x108d   :  { %11961 = vmatmul.mubr.f32.gmra.mxu0 %v19772_v14  ;;  %12023 = vmatprep.subr.mxu0 %v20764_v27 }
0x108e   :  { %11963 = vmatprep.mubr.f32.mxu0 %v19781_v2  ;;  %12024 = vmatpush3.msra.mxu0 %v19905_v52 }
0x108f   :  { %12025 = vmatprep.subr.mxu0 %v20764_v27 }
0x1090   :  { %12026 = vmatpush3.msra.mxu0 %v19912_v55 }
0x1091   :  { %11964 = vmatmul.mubr.f32.gmra.mxu0 %v19790_v40  ;;  %12027 = vmatprep.subr.mxu0 %v20764_v27 }
0x1092   :  { %11966 = vmatprep.mubr.f32.mxu0 %v19799_v12  ;;  %12028 = vmatpush3.msra.mxu0 %v19919_v49 }
0x1093   :  { %12029 = vmatprep.subr.mxu0 %v20764_v27 }
0x1094   :  { %12030 = vmatpush3.msra.mxu0 %v19926_v7  ;;  %v19998_v7 = vld [vmem:[%s20426_s7] ss:$0 sm:$0xff] }
0x1095   :  { %11967 = vmatmul.mubr.f32.gmra.mxu0 %v19808_v42  ;;  %12031 = vmatprep.subr.mxu0 %v20764_v27 }
0x1096   :  { %11969 = vmatprep.mubr.f32.mxu0 %v19821_v0  ;;  %12032 = vmatpush3.msra.mxu0 %v19933_v61 }
0x1097   :  { %12033 = vmatprep.subr.mxu0 %v20764_v27 }
0x1098   :  { %12034 = vmatpush3.msra.mxu0 %v19940_v25 }
0x1099   :  { %11970 = vmatmul.mubr.f32.gmra.mxu0 %v20764_v27  ;;  %12035 = vmatprep.subr.mxu0 %v20764_v27 }
0x109a   :  { %12039 = vmatprep.mubr.msk.f32.mxu0 %vm12447_vm0, %v20764_v27  ;;  %12036 = vmatpush3.msra.mxu0 %v19947_v51 }
0x109b   :  { %12037 = vmatprep.subr.mxu0 %v20764_v27 }
0x111b   :  { %v19951_v38 = vpop.f32.mrf.mxu1 }
0x111c   :  { %v19954_v43 = vpop.f32.mrf.mxu0 }
0x111d   :  { %v19959_v48 = vpop.f32.mrf.mxu1 }
0x111e   :  { %v19957_v5 = vpop.f32.mrf.mxu0 }
0x111f   :  { %v19965_v47 = vpop.f32.mrf.mxu1 }
0x1120   :  { %v19961_v41 = vpop.f32.mrf.mxu0 }
0x1121   :  { %v19969_v56 = vpop.f32.mrf.mxu1 }
0x1122   :  { %v19963_v50 = vpop.f32.mrf.mxu0 }
0x1123   :  { %v19975_v18 = vpop.f32.mrf.mxu1 }
0x1125   :  { %v19967_v36 = vpop.f32.mrf.mxu0  ;;  %v19979_v31 = vpop.f32.mrf.mxu1 }
0x1127   :  { %v19971_v54 = vpop.f32.mrf.mxu0  ;;  %v11903_v15 = vpop.f32.mrf.mxu1 }
0x1129   :  { %v19973_v24 = vpop.f32.mrf.mxu0  ;;  %v19981_v44 = vpop.f32.mrf.mxu1 }
0x112b   :  { %v19977_v19 = vpop.f32.mrf.mxu0  ;;  %v11906_v23 = vpop.f32.mrf.mxu1 }
0x112d   :  { %v11850_v39 = vpop.f32.mrf.mxu0  ;;  %v8131_v34 = vpop.f32.mrf.mxu1 }
0x112f   :  { %v7986_v13 = vpop.f32.mrf.mxu0  ;;  %v11909_v10 = vpop.f32.mrf.mxu1 }
0x1131   :  { %v11853_v26 = vpop.f32.mrf.mxu0  ;;  %v8141_v21 = vpop.f32.mrf.mxu1 }
0x1132   :  { %v8147_v58 = vadd.f32 %v11909_v10, %v11853_v26  ;;  %v21272_v26 = vld [vmem:[#allocation83_spill] sm:$0xff] }
0x1133   :  { %v7996_v30 = vpop.f32.mrf.mxu0  ;;  %v11912_v12 = vpop.f32.mrf.mxu1 }
0x1135   :  { %v11856_v53 = vpop.f32.mrf.mxu0  ;;  %v8151_v40 = vpop.f32.mrf.mxu1 }
0x1136   :  { %v8157_v51 = vadd.f32 %v11912_v12, %v11856_v53  ;;  %v8132_v12 = vadd.f32 %v8131_v34, %v7986_v13  ;;  %v21279_v53 = vld [vmem:[#allocation117_spill] sm:$0xff] }
0x1137   :  { %v8006_v9 = vpop.f32.mrf.mxu0  ;;  %v11915_v2 = vpop.f32.mrf.mxu1 }
0x1138   :  { %v8152_v55 = vadd.f32 %v8151_v40, %v8006_v9  ;;  %v21281_v9 = vld [vmem:[#allocation13_spill] sm:$0xff] }
0x1139   :  { %v11859_v20 = vpop.f32.mrf.mxu0  ;;  %v8161_v11 = vpop.f32.mrf.mxu1 }
0x113a   :  { %v8167_v46 = vadd.f32 %v11915_v2, %v11859_v20  ;;  %v21282_v20 = vld [vmem:[#allocation90_spill] sm:$0xff] }
0x113b   :  { %v8016_v16 = vpop.f32.mrf.mxu0 }
0x113c   :  { %v8162_v25 = vadd.f32 %v8161_v11, %v8016_v16  ;;  %v8142_v11 = vadd.f32 %v8141_v21, %v7996_v30  ;;  %v21278_v30 = vld [vmem:[#allocation114_spill] sm:$0xff] }
0x113d   :  { %v19983_v4 = vpop.f32.mrf.mxu0 }
0x113f   :  { %v19985_v17 = vpop.f32.mrf.mxu0 }
0x1141   :  { %v19987_v60 = vpop.f32.mrf.mxu0 }
0x1143   :  { %v19989_v32 = vpop.f32.mrf.mxu0 }
0x1145   :  { %v19991_v1 = vpop.f32.mrf.mxu0 }
0x1147   :  { %v19993_v0 = vpop.f32.mrf.mxu0 }
0x1149   :  { %v11959_v42 = vpop.f32.mrf.mxu0 }
0x114b   :  { %v8299_v6 = vpop.f32.mrf.mxu0 }
0x114d   :  { %v11962_v63 = vpop.f32.mrf.mxu0 }
0x114f   :  { %v8309_v8 = vpop.f32.mrf.mxu0 }
0x1151   :  { %v11965_v62 = vpop.f32.mrf.mxu0 }
0x1153   :  { %v8319_v14 = vpop.f32.mrf.mxu0 }
0x1154   :  { %v8358_v40 = vadd.f32 %v8319_v14, %v8142_v11 }
0x1155   :  { %v11968_v37 = vpop.f32.mrf.mxu0 }
0x1156   :  { %v8361_v52 = vadd.f32 %v11968_v37, %v8157_v51  ;;  %v8137_v37 = vadd.f32 %v11906_v23, %v11850_v39  ;;  %v20025_v14 = vadd.f32 %v19998_v7, %v8358_v40  ;;  %v20101_v39 = vld [vmem:[%s20427_s11] sm:$0xff] }
0x1157   :  { %v8329_v28 = vpop.f32.mrf.mxu0 }
0x1158   :  { %v8360_v22 = vadd.f32 %v8329_v28, %v8152_v55 }
0x1159   :  { %v11971_v29 = vpop.f32.mrf.mxu0 }
0x115a   :  { %v8363_v61 = vadd.f32 %v11971_v29, %v8167_v46  ;;  %v8359_v29 = vadd.f32 %v11965_v62, %v8147_v58  ;;  %v20009_v46 = vadd.f32 %v19998_v7, %v8361_v52  ;;  %v20014_v28 = vadd.f32 %v19998_v7, %v8360_v22 }
0x115b   :  { %v8339_v49 = vpop.f32.mrf.mxu0  ;;  %v8127_v62 = vadd.f32 %v11903_v15, %v19973_v24  ;;  %v8356_v58 = vadd.f32 %v8309_v8, %v8132_v12  ;;  %v8117_v8 = vadd.f32 %v19975_v18, %v19967_v36  ;;  %v21274_v15 = vld [vmem:[#allocation36_spill] sm:$0xff] }
0x115c   :  { %v20001_v57 = vadd.f32 %v19998_v7, %v8363_v61  ;;  %v8362_v33 = vadd.f32 %v8339_v49, %v8162_v25  ;;  %v20019_v21 = vadd.f32 %v19998_v7, %v8359_v29 }
0x115d   :  { %v8355_v22 = vadd.f32 %v11959_v42, %v8127_v62  ;;  %v20039_v49 = vadd.f32 %v19998_v7, %v8356_v58  ;;  %v8112_v42 = vadd.f32 %v19979_v31, %v19971_v54  ;;  %v8353_v61 = vadd.f32 %v19991_v1, %v8117_v8 }
0x115e   :  { %v20004_v2 = vadd.f32 %v19998_v7, %v8362_v33  ;;  %11973 = vmatpush3.msra.mxu1 %v20001_v57  ;;  %v8357_v33 = vadd.f32 %v11962_v63, %v8137_v37  ;;  %v8122_v63 = vadd.f32 %v19981_v44, %v19977_v19  ;;  %v8102_v54 = vadd.f32 %v19969_v56, %v19963_v50  ;;  %v21280_v44 = vld [vmem:[#allocation12_spill] sm:$0xff] }
0x115f   :  { %11974 = vmatprep.subr.mxu1 %v20764_v27  ;;  %v20047_v25 = vadd.f32 %v19998_v7, %v8355_v22  ;;  %v8352_v51 = vadd.f32 %v19993_v0, %v8112_v42  ;;  %v20063_v18 = vadd.f32 %v19998_v7, %v8353_v61  ;;  %v8097_v0 = vadd.f32 %v19951_v38, %v19954_v43 }
0x1160   :  { %11975 = vmatpush3.msra.mxu1 %v20004_v2  ;;  %v20032_v52 = vadd.f32 %v19998_v7, %v8357_v33  ;;  %v8354_v55 = vadd.f32 %v8299_v6, %v8122_v63  ;;  %v8107_v6 = vadd.f32 %v19965_v47, %v19961_v41  ;;  %v8350_v41 = vadd.f32 %v19989_v32, %v8102_v54 }
0x1161   :  { %11976 = vmatprep.subr.mxu1 %v20764_v27  ;;  %v20071_v47 = vadd.f32 %v19998_v7, %v8352_v51  ;;  %v8092_v50 = vadd.f32 %v19959_v48, %v19957_v5  ;;  %v8349_v56 = vadd.f32 %v19983_v4, %v8097_v0 }
0x1162   :  { %11977 = vmatpush3.msra.mxu1 %v20009_v46  ;;  %v20055_v36 = vadd.f32 %v19998_v7, %v8354_v55  ;;  %v8351_v24 = vadd.f32 %v19987_v60, %v8107_v6  ;;  %v20085_v43 = vadd.f32 %v19998_v7, %v8350_v41  ;;  %v8819_v41 = vld [vmem:[%s20419_s0 + $0x38] sm:$0xff] }
0x1163   :  { %11978 = vmatprep.subr.mxu1 %v20764_v27  ;;  %v8348_v38 = vadd.f32 %v19985_v17, %v8092_v50  ;;  %v20090_v5 = vadd.f32 %v19998_v7, %v8349_v56  ;;  %v8817_v50 = vld [vmem:[%s20419_s0 + $0x28] sm:$0xff]  ;;  %v8818_v56 = vld [vmem:[%s20419_s0 + $0x30] sm:$0xff] }
0x1164   :  { %11979 = vmatpush3.msra.mxu1 %v20014_v28  ;;  %v20079_v19 = vadd.f32 %v19998_v7, %v8351_v24 }
0x1165   :  { %11980 = vmatprep.subr.mxu1 %v20764_v27  ;;  %v20095_v48 = vadd.f32 %v19998_v7, %v8348_v38  ;;  %v8458_v7 = vld [vmem:[%s20425_s10] sm:$0xff] }
0x1166   :  { %11981 = vmatpush3.msra.mxu1 %v20019_v21  ;;  %12038 = vmatpush3.msra.mxu0 %v8458_v7  ;;  %v8816_v38 = vld [vmem:[%s20419_s0 + $0x20] sm:$0xff] }
0x1167   :  { %11982 = vmatprep.subr.mxu1 %v20764_v27  ;;  %12077 = vmatprep.subr.mxu0 %v20764_v27 }
0x1168   :  { %11983 = vmatpush3.msra.mxu1 %v20025_v14 }
0x1169   :  { %11984 = vmatprep.subr.mxu1 %v20764_v27 }
0x116a   :  { %11985 = vmatpush3.msra.mxu1 %v20032_v52 }
0x116b   :  { %11986 = vmatprep.subr.mxu1 %v20764_v27 }
0x116c   :  { %11987 = vmatpush3.msra.mxu1 %v20039_v49 }
0x116d   :  { %11988 = vmatprep.subr.mxu1 %v20764_v27 }
0x116e   :  { %11989 = vmatpush3.msra.mxu1 %v20047_v25 }
0x116f   :  { %11990 = vmatprep.subr.mxu1 %v20764_v27 }
0x1170   :  { %11991 = vmatpush3.msra.mxu1 %v20055_v36 }
0x1171   :  { %11992 = vmatprep.subr.mxu1 %v20764_v27 }
0x1172   :  { %11993 = vmatpush3.msra.mxu1 %v20063_v18 }
0x1173   :  { %11994 = vmatprep.subr.mxu1 %v20764_v27 }
0x1174   :  { %11995 = vmatpush3.msra.mxu1 %v20071_v47 }
0x1175   :  { %11996 = vmatprep.subr.mxu1 %v20764_v27 }
0x1176   :  { %11997 = vmatpush3.msra.mxu1 %v20079_v19 }
0x1177   :  { %11998 = vmatprep.subr.mxu1 %v20764_v27 }
0x1178   :  { %11999 = vmatpush3.msra.mxu1 %v20085_v43 }
0x1179   :  { %12000 = vmatprep.subr.mxu1 %v20764_v27 }
0x117a   :  { %12001 = vmatpush3.msra.mxu1 %v20090_v5 }
0x117b   :  { %12002 = vmatprep.subr.mxu1 %v20764_v27 }
0x117c   :  { %12003 = vmatpush3.msra.mxu1 %v20095_v48 }
0x117d   :  { %12005 = vmatmul.mubr.f32.vlgmr.msra.gmra.mxu1 %v20101_v39  ;;  %12042 = vmatprep.subr.mxu1 %v20764_v27 }
0x117e   :  { %12074 = vmatprep.mubr.msk.f32.mxu1 %vm12447_vm0, %v20764_v27 }
0x123d   :  { %v8454_v31 = vpop.f32.mrf.mxu1 }
0x123e   :  { %12040 = vmatmul.mubr.f32.vlgmr.msra.gmra.mxu0 %v8454_v31  ;;  %v8813_v31 = vld [vmem:[%s20419_s0 + $0x8] sm:$0xff] }
0x123f   :  { %v12006_v13 = vpop.f32.mrf.mxu1  ;;  %12078 = vmatpush3.msra.mxu0 %v19851_v3  ;;  %12109 = vmatprep.mubr.msk.f32.mxu0 %vm12447_vm0, %v20764_v27  ;;  %v21273_v3 = vld [vmem:[#allocation68_spill] sm:$0xff] }
0x1240   :  { %12079 = vmatprep.subr.mxu0 %v20764_v27  ;;  %v8814_v13 = vld [vmem:[%s20419_s0 + $0x10] sm:$0xff] }
0x1241   :  { %12080 = vmatpush3.msra.mxu0 %v19856_v35  ;;  %v21275_v35 = vld [vmem:[#allocation69_spill] sm:$0xff] }
0x1242   :  { %12081 = vmatprep.subr.mxu0 %v20764_v27 }
0x1243   :  { %12082 = vmatpush3.msra.mxu0 %v19863_v45  ;;  %v21276_v45 = vld [vmem:[#allocation63_spill] sm:$0xff] }
0x1244   :  { %12083 = vmatprep.subr.mxu0 %v20764_v27 }
0x1245   :  { %12084 = vmatpush3.msra.mxu0 %v19870_v59  ;;  %v21277_v59 = vld [vmem:[#allocation121_spill] sm:$0xff] }
0x1246   :  { %12085 = vmatprep.subr.mxu0 %v20764_v27 }
0x1247   :  { %12086 = vmatpush3.msra.mxu0 %v21272_v26  ;;  %v21283_v26 = vld [vmem:[#allocation32_spill] sm:$0xff] }
0x1248   :  { %12087 = vmatprep.subr.mxu0 %v20764_v27 }
0x1249   :  { %12088 = vmatpush3.msra.mxu0 %v21273_v3  ;;  %v20272_v3 = vadd.f32 %v8819_v41, %v21283_v26 }
0x124a   :  { %12089 = vmatprep.subr.mxu0 %v20764_v27 }
0x124b   :  { %12090 = vmatpush3.msra.mxu0 %v21274_v15  ;;  %v21284_v15 = vld [vmem:[#allocation87_spill] sm:$0xff] }
0x124c   :  { %12091 = vmatprep.subr.mxu0 %v20764_v27 }
0x124d   :  { %12092 = vmatpush3.msra.mxu0 %v21275_v35 }
0x124e   :  { %12093 = vmatprep.subr.mxu0 %v20764_v27 }
0x124f   :  { %12094 = vmatpush3.msra.mxu0 %v21276_v45  ;;  %v21285_v45 = vld [vmem:[#allocation34_spill] sm:$0xff] }
0x1250   :  { %12095 = vmatprep.subr.mxu0 %v20764_v27 }
0x1251   :  { %12096 = vmatpush3.msra.mxu0 %v21277_v59 }
0x1252   :  { %12097 = vmatprep.subr.mxu0 %v20764_v27 }
0x1253   :  { %12098 = vmatpush3.msra.mxu0 %v21278_v30  ;;  %v8826_v30 = vld [vmem:[%s20419_s0 + $0x70] sm:$0xff] }
0x1254   :  { %12099 = vmatprep.subr.mxu0 %v20764_v27 }
0x1255   :  { %12100 = vmatpush3.msra.mxu0 %v21279_v53 }
0x1256   :  { %12101 = vmatprep.subr.mxu0 %v20764_v27 }
0x1257   :  { %12102 = vmatpush3.msra.mxu0 %v21280_v44  ;;  %v21286_v44 = vld [vmem:[#allocation70_spill] sm:$0xff] }
0x1258   :  { %12103 = vmatprep.subr.mxu0 %v20764_v27 }
0x1259   :  { %12104 = vmatpush3.msra.mxu0 %v21281_v9  ;;  %v20284_v9 = vadd.f32 %v8817_v50, %v21286_v44 }
0x125a   :  { %12105 = vmatprep.subr.mxu0 %v20764_v27 }
0x125b   :  { %12106 = vmatpush3.msra.mxu0 %v21282_v20  ;;  %v21287_v20 = vld [vmem:[#allocation21_spill] sm:$0xff] }
0x125c   :  { %12107 = vmatprep.subr.mxu0 %v20764_v27 }
0x125d   :  { %12108 = vmatpush3.msra.mxu0 %v8458_v7  ;;  %v9798_v7 = vld [vmem:[%s20428_s8] ss:$0 sm:$0xff] }
0x12fe   :  { %v8540_v23 = vpop.f32.mrf.mxu0 }
0x12ff   :  { %v20146_v16 = vsub.f32 %v20001_v57, %v8540_v23  ;;  %v20149_v4 = vsub.f32 %v20004_v2, %v8540_v23  ;;  %v20154_v60 = vsub.f32 %v20009_v46, %v8540_v23  ;;  %v20159_v32 = vsub.f32 %v20014_v28, %v8540_v23 }
0x1300   :  { %v12041_v34 = vpop.f32.mrf.mxu0  ;;  %v20165_v1 = vsub.f32 %v20019_v21, %v8540_v23  ;;  %v20171_v11 = vsub.f32 %v20025_v14, %v8540_v23  ;;  %v20177_v46 = vsub.f32 %v20032_v52, %v8540_v23  ;;  %v20183_v40 = vsub.f32 %v20039_v49, %v8540_v23 }
0x1301   :  { %v8575_v17 = vmul.f32 %v20146_v16, %v20146_v16  ;;  %v8574_v10 = vmul.f32 %v20149_v4, %v20149_v4  ;;  %v8573_v57 = vmul.f32 %v20154_v60, %v20154_v60  ;;  %v8572_v2 = vmul.f32 %v20159_v32, %v20159_v32  ;;  %v21288_v34 = vld [vmem:[#allocation72_spill] sm:$0xff] }
0x1302   :  { %v8571_v29 = vmul.f32 %v20165_v1, %v20165_v1  ;;  %v8570_v37 = vmul.f32 %v20171_v11, %v20171_v11  ;;  %v8569_v28 = vmul.f32 %v20177_v46, %v20177_v46  ;;  %v20189_v12 = vsub.f32 %v20047_v25, %v8540_v23 }
0x1303   :  { %12043 = vmatpush3.msra.mxu1 %v8575_v17  ;;  %v8568_v33 = vmul.f32 %v20183_v40, %v20183_v40  ;;  %v20195_v21 = vsub.f32 %v20055_v36, %v8540_v23  ;;  %v20201_v58 = vsub.f32 %v20063_v18, %v8540_v23  ;;  %v20207_v63 = vsub.f32 %v20071_v47, %v8540_v23  ;;  %v8820_v47 = vld [vmem:[%s20419_s0 + $0x40] sm:$0xff] }
0x1304   :  { %12044 = vmatprep.subr.mxu1 %v20764_v27  ;;  %v8567_v62 = vmul.f32 %v20189_v12, %v20189_v12  ;;  %v20213_v52 = vsub.f32 %v20079_v19, %v8540_v23  ;;  %v8546_v55 = vsub.f32 %v20085_v43, %v8540_v23  ;;  %v8545_v42 = vsub.f32 %v20090_v5, %v8540_v23  ;;  %v8822_v19 = vld [vmem:[%s20419_s0 + $0x50] sm:$0xff]  ;;  %v8823_v43 = vld [vmem:[%s20419_s0 + $0x58] sm:$0xff]  ;;  %v8824_v5 = vld [vmem:[%s20419_s0 + $0x60] sm:$0xff] }
0x1305   :  { %12045 = vmatpush3.msra.mxu1 %v8574_v10  ;;  %v8566_v14 = vmul.f32 %v20195_v21, %v20195_v21  ;;  %v8565_v22 = vmul.f32 %v20201_v58, %v20201_v58  ;;  %v8564_v8 = vmul.f32 %v20207_v63, %v20207_v63  ;;  %v8544_v25 = vsub.f32 %v20095_v48, %v8540_v23  ;;  %v8815_v48 = vld [vmem:[%s20419_s0 + $0x18] sm:$0xff]  ;;  %v21289_v10 = vld [vmem:[#allocation38_spill] sm:$0xff] }
0x1306   :  { %12046 = vmatprep.subr.mxu1 %v20764_v27  ;;  %v8563_v49 = vmul.f32 %v20213_v52, %v20213_v52  ;;  %v8562_v61 = vmul.f32 %v8546_v55, %v8546_v55  ;;  %v8561_v6 = vmul.f32 %v8545_v42, %v8545_v42  ;;  %v20275_v35 = vadd.f32 %v8820_v47, %v21284_v15 }
0x1307   :  { %12047 = vmatpush3.msra.mxu1 %v8573_v57  ;;  %v8560_v51 = vmul.f32 %v8544_v25, %v8544_v25  ;;  %v20287_v23 = vadd.f32 %v8818_v56, %v21287_v20  ;;  %v20290_v17 = vadd.f32 %v8822_v19, %v21288_v34  ;;  %v20293_v57 = vadd.f32 %v8823_v43, %v21289_v10  ;;  %v9799_v19 = vld [vmem:[%s20429_s9] ss:$0 sm:$0xff]  ;;  %v21298_v34 = vld [vmem:[#allocation23_spill] sm:$0xff] }
0x1308   :  { %12048 = vmatprep.subr.mxu1 %v20764_v27 }
0x1309   :  { %12049 = vmatpush3.msra.mxu1 %v8572_v2  ;;  %v21290_v2 = vld [vmem:[#allocation85_spill] sm:$0xff] }
0x130a   :  { %12050 = vmatprep.subr.mxu1 %v20764_v27 }
0x130b   :  { %12051 = vmatpush3.msra.mxu1 %v8571_v29  ;;  %v20296_v29 = vadd.f32 %v8815_v48, %v21290_v2 }
0x130c   :  { %12052 = vmatprep.subr.mxu1 %v20764_v27 }
0x130d   :  { %12053 = vmatpush3.msra.mxu1 %v8570_v37  ;;  %v21291_v37 = vld [vmem:[#allocation28_spill] sm:$0xff] }
0x130e   :  { %12054 = vmatprep.subr.mxu1 %v20764_v27 }
0x130f   :  { %12055 = vmatpush3.msra.mxu1 %v8569_v28  ;;  %v20299_v28 = vadd.f32 %v8816_v38, %v21291_v37 }
0x1310   :  { %12056 = vmatprep.subr.mxu1 %v20764_v27 }
0x1311   :  { %12057 = vmatpush3.msra.mxu1 %v8568_v33  ;;  %v21292_v33 = vld [vmem:[#allocation73_spill] sm:$0xff] }
0x1312   :  { %12058 = vmatprep.subr.mxu1 %v20764_v27 }
0x1313   :  { %12059 = vmatpush3.msra.mxu1 %v8567_v62  ;;  %v20302_v62 = vadd.f32 %v8824_v5, %v21292_v33 }
0x1314   :  { %12060 = vmatprep.subr.mxu1 %v20764_v27 }
0x1315   :  { %12061 = vmatpush3.msra.mxu1 %v8566_v14 }
0x1316   :  { %12062 = vmatprep.subr.mxu1 %v20764_v27 }
0x1317   :  { %12063 = vmatpush3.msra.mxu1 %v8565_v22  ;;  %v21293_v22 = vld [vmem:[#allocation108_spill] sm:$0xff] }
0x1318   :  { %12064 = vmatprep.subr.mxu1 %v20764_v27 }
0x1319   :  { %12065 = vmatpush3.msra.mxu1 %v8564_v8  ;;  %v20305_v8 = vadd.f32 %v8813_v31, %v21293_v22 }
0x131a   :  { %12066 = vmatprep.subr.mxu1 %v20764_v27 }
0x131b   :  { %12067 = vmatpush3.msra.mxu1 %v8563_v49  ;;  %v21294_v49 = vld [vmem:[#allocation18_spill] sm:$0xff] }
0x131c   :  { %12068 = vmatprep.subr.mxu1 %v20764_v27 }
0x131d   :  { %12069 = vmatpush3.msra.mxu1 %v8562_v61  ;;  %v20308_v61 = vadd.f32 %v8814_v13, %v21294_v49 }
0x131e   :  { %12070 = vmatprep.subr.mxu1 %v20764_v27 }
0x131f   :  { %12071 = vmatpush3.msra.mxu1 %v8561_v6  ;;  %v21295_v6 = vld [vmem:[#allocation62_spill] sm:$0xff] }
0x1320   :  { %12072 = vmatprep.subr.mxu1 %v20764_v27  ;;  %v8821_v27 = vld [vmem:[%s20419_s0 + $0x48] sm:$0xff] }
0x1321   :  { %12073 = vmatpush3.msra.mxu1 %v8560_v51  ;;  %v20278_v59 = vadd.f32 %v8821_v27, %v21285_v45  ;;  %v21297_v45 = vld [vmem:[#allocation37_spill] sm:$0xff] }
0x1322   :  { %12075 = vmatmul.mubr.f32.vlgmr.msra.gmra.mxu1 %v20101_v39  ;;  %v8825_v39 = vld [vmem:[%s20419_s0 + $0x68] sm:$0xff] }
0x1323   :  { %v20311_v51 = vadd.f32 %v8825_v39, %v21295_v6 }
0x13e2   :  { %v8642_v36 = vpop.f32.mrf.mxu1 }
0x13e3   :  { %12110 = vmatmul.mubr.f32.vlgmr.msra.gmra.mxu0 %v8642_v36  ;;  %v21296_v36 = vld [vmem:[#allocation35_spill] sm:$0xff] }
0x13e4   :  { %v12076_v54 = vpop.f32.mrf.mxu1 }
0x13e5   :  { %v20314_v54 = vadd.f32 %v8826_v30, %v21296_v36 }
0x14a3   :  { %v8712_v24 = vpop.f32.mrf.mxu0 }
0x14a4   :  { %v8713_v18 = vadd.f32 1e-05, %v8712_v24 }
0x14a5   :  { %v12111_v0 = vpop.f32.mrf.mxu0 }
0x14a6   :  { %12434 = vrsqrt.f32 %v8713_v18 }
0x14b3   :  { %v12435_v53 = vpop.eup %12434 }
0x14b4   :  { %v8724_v14 = vmul.f32 %v12435_v53, %v9798_v7 }
0x14b6   :  { %v8725_v24 = vmul.f32 %v8724_v14, %v8544_v25  ;;  %v8726_v18 = vmul.f32 %v8724_v14, %v8545_v42  ;;  %v8727_v0 = vmul.f32 %v8724_v14, %v8546_v55  ;;  %v8728_v41 = vmul.f32 %v8724_v14, %v20213_v52 }
0x14b7   :  { %v8729_v47 = vmul.f32 %v8724_v14, %v20207_v63  ;;  %v8730_v27 = vmul.f32 %v8724_v14, %v20201_v58  ;;  %v8731_v50 = vmul.f32 %v8724_v14, %v20195_v21  ;;  %v8732_v56 = vmul.f32 %v8724_v14, %v20189_v12 }
0x14b8   :  { %v8733_v38 = vmul.f32 %v8724_v14, %v20183_v40  ;;  %v8734_v25 = vmul.f32 %v8724_v14, %v20177_v46  ;;  %v8735_v55 = vmul.f32 %v8724_v14, %v20171_v11  ;;  %v8736_v52 = vmul.f32 %v8724_v14, %v20165_v1 }
0x14b9   :  { %v8737_v63 = vmul.f32 %v8724_v14, %v20159_v32  ;;  %v8738_v58 = vmul.f32 %v8724_v14, %v20154_v60  ;;  %v8739_v21 = vmul.f32 %v8724_v14, %v20149_v4  ;;  %v8740_v12 = vmul.f32 %v8724_v14, %v20146_v16  ;;  %v8827_v16 = vld [vmem:[%s20419_s0 + $0x78] sm:$0xff]  ;;  %v8812_v4 = vld [vmem:[%s20419_s0] sm:$0xff] }
0x14ba   :  { %v8748_v42 = vadd.f32 %v9799_v19, %v8725_v24  ;;  %v8749_v43 = vadd.f32 %v9799_v19, %v8726_v18  ;;  %v8750_v5 = vadd.f32 %v9799_v19, %v8727_v0  ;;  %v8751_v48 = vadd.f32 %v9799_v19, %v8728_v41 }
0x14bb   :  { %v8752_v39 = vadd.f32 %v9799_v19, %v8729_v47  ;;  %v8753_v40 = vadd.f32 %v9799_v19, %v8730_v27  ;;  %v8754_v7 = vadd.f32 %v9799_v19, %v8731_v50  ;;  %v8755_v46 = vadd.f32 %v9799_v19, %v8732_v56 }
0x14bc   :  { %v8756_v31 = vadd.f32 %v9799_v19, %v8733_v38  ;;  %v8757_v11 = vadd.f32 %v9799_v19, %v8734_v25  ;;  %v8758_v13 = vadd.f32 %v9799_v19, %v8735_v55  ;;  %v8759_v1 = vadd.f32 %v9799_v19, %v8736_v52 }
0x14bd   :  { %v8760_v26 = vadd.f32 %v9799_v19, %v8737_v63  ;;  %v8761_v32 = vadd.f32 %v9799_v19, %v8738_v58  ;;  %v8762_v15 = vadd.f32 %v9799_v19, %v8739_v21  ;;  %v8763_v60 = vadd.f32 %v9799_v19, %v8740_v12 }
0x14be   :  { %vm8764_vm1 = vcmp.ge.f32.partialorder %v8748_v42, 0.0  ;;  %vm8765_vm2 = vcmp.ge.f32.partialorder %v8749_v43, 0.0  ;;  %vm8766_vm3 = vcmp.ge.f32.partialorder %v8750_v5, 0.0  ;;  %vm8767_vm4 = vcmp.ge.f32.partialorder %v8751_v48, 0.0 }
0x14bf   :  { %vm8768_vm5 = vcmp.ge.f32.partialorder %v8752_v39, 0.0  ;;  %vm8769_vm6 = vcmp.ge.f32.partialorder %v8753_v40, 0.0  ;;  %vm8770_vm7 = vcmp.ge.f32.partialorder %v8754_v7, 0.0  ;;  %vm8771_vm8 = vcmp.ge.f32.partialorder %v8755_v46, 0.0 }
0x14c0   :  { %vm8772_vm9 = vcmp.ge.f32.partialorder %v8756_v31, 0.0  ;;  %vm8773_vm10 = vcmp.ge.f32.partialorder %v8757_v11, 0.0  ;;  %vm8774_vm11 = vcmp.ge.f32.partialorder %v8758_v13, 0.0  ;;  %vm8775_vm12 = vcmp.ge.f32.partialorder %v8759_v1, 0.0 }
0x14c1   :  { %vm8776_vm13 = vcmp.ge.f32.partialorder %v8760_v26, 0.0  ;;  %vm8777_vm14 = vcmp.ge.f32.partialorder %v8761_v32, 0.0  ;;  %vm8778_vm15 = vcmp.ge.f32.partialorder %v8762_v15, 0.0  ;;  %vm8779_vm0 = vcmp.ge.f32.partialorder %v8763_v60, 0.0 }
0x14c2   :  { %v8843_v30 = vadd.f32 %v8827_v16, %v21297_v45  ;;  %v8780_v53 = vmul.f32 0.01, %v8748_v42  ;;  %v8781_v44 = vmul.f32 0.01, %v8749_v43  ;;  %v8782_v20 = vmul.f32 0.01, %v8750_v5 }
0x14c3   :  { %v8828_v10 = vadd.f32 %v8812_v4, %v21298_v34  ;;  %v8783_v2 = vmul.f32 0.01, %v8751_v48  ;;  %v8784_v37 = vmul.f32 0.01, %v8752_v39  ;;  %v8785_v33 = vmul.f32 0.01, %v8753_v40 }
0x14c4   :  { %v8786_v14 = vmul.f32 0.01, %v8754_v7  ;;  %v8787_v22 = vmul.f32 0.01, %v8755_v46  ;;  %v8788_v49 = vmul.f32 0.01, %v8756_v31  ;;  %v8796_v6 = vsel %vm8764_vm1, %v8748_v42, %v8780_v53 }
0x14c5   :  { %v8789_v36 = vmul.f32 0.01, %v8757_v11  ;;  %v8790_v24 = vmul.f32 0.01, %v8758_v13  ;;  %v8791_v18 = vmul.f32 0.01, %v8759_v1  ;;  %v8797_v0 = vsel %vm8765_vm2, %v8749_v43, %v8781_v44 }
0x14c6   :  { %v8792_v41 = vmul.f32 0.01, %v8760_v26  ;;  %v8793_v47 = vmul.f32 0.01, %v8761_v32  ;;  %v8794_v27 = vmul.f32 0.01, %v8762_v15  ;;  %v8798_v50 = vsel %vm8766_vm3, %v8750_v5, %v8782_v20 }
0x14c7   :  { %v8795_v56 = vmul.f32 0.01, %v8763_v60  ;;  %v8799_v19 = vsel %vm8767_vm4, %v8751_v48, %v8783_v2  ;;  %v8800_v38 = vsel %vm8768_vm5, %v8752_v39, %v8784_v37  ;;  %v8801_v25 = vsel %vm8769_vm6, %v8753_v40, %v8785_v33 }
0x14c8   :  { %v8802_v55 = vsel %vm8770_vm7, %v8754_v7, %v8786_v14  ;;  %v8803_v52 = vsel %vm8771_vm8, %v8755_v46, %v8787_v22  ;;  %v8804_v63 = vsel %vm8772_vm9, %v8756_v31, %v8788_v49  ;;  %v8805_v58 = vsel %vm8773_vm10, %v8757_v11, %v8789_v36 }
0x14c9   :  { %v8806_v21 = vsel %vm8774_vm11, %v8758_v13, %v8790_v24  ;;  %v8807_v12 = vsel %vm8775_vm12, %v8759_v1, %v8791_v18  ;;  %v8808_v42 = vsel %vm8776_vm13, %v8760_v26, %v8792_v41  ;;  %v8809_v43 = vsel %vm8777_vm14, %v8761_v32, %v8793_v47 }
0x14ca   :  { %v8810_v5 = vsel %vm8778_vm15, %v8762_v15, %v8794_v27  ;;  %v8811_v48 = vsel %vm8779_vm0, %v8763_v60, %v8795_v56  ;;  %v8844_v39 = vadd.f32 %v8828_v10, %v8796_v6  ;;  %v8845_v40 = vadd.f32 %v20305_v8, %v8797_v0 }
0x14cb   :  { %v8846_v7 = vadd.f32 %v20308_v61, %v8798_v50  ;;  %v8847_v46 = vadd.f32 %v20296_v29, %v8799_v19  ;;  %v8848_v31 = vadd.f32 %v20299_v28, %v8800_v38  ;;  %v8849_v11 = vadd.f32 %v20284_v9, %v8801_v25 }
0x14cc   :  { %v8850_v13 = vadd.f32 %v20287_v23, %v8802_v55  ;;  %v8851_v1 = vadd.f32 %v20272_v3, %v8803_v52  ;;  %v8852_v26 = vadd.f32 %v20275_v35, %v8804_v63  ;;  %v8853_v32 = vadd.f32 %v20278_v59, %v8805_v58  ;;  %8860 = vst [vmem:[%s20430_s12] sm:$0xff] %v8844_v39 }
0x14cd   :  { %8861 = vst [vmem:[%s20430_s12 + $0x8] sm:$0xff] %v8845_v40  ;;  %v8854_v29 = vadd.f32 %v20290_v17, %v8806_v21  ;;  %v8855_v9 = vadd.f32 %v20293_v57, %v8807_v12  ;;  %v8856_v23 = vadd.f32 %v20302_v62, %v8808_v42  ;;  %v8857_v3 = vadd.f32 %v20311_v51, %v8809_v43 }
0x14ce   :  { %8862 = vst [vmem:[%s20430_s12 + $0x10] sm:$0xff] %v8846_v7  ;;  %8863 = vst [vmem:[%s20430_s12 + $0x18] sm:$0xff] %v8847_v46  ;;  %v8858_v35 = vadd.f32 %v20314_v54, %v8810_v5  ;;  %v8859_v59 = vadd.f32 %v8843_v30, %v8811_v48 }
0x14cf   :  { %8864 = vst [vmem:[%s20430_s12 + $0x20] sm:$0xff] %v8848_v31  ;;  %8865 = vst [vmem:[%s20430_s12 + $0x28] sm:$0xff] %v8849_v11 }
0x14d0   :  { %8866 = vst [vmem:[%s20430_s12 + $0x30] sm:$0xff] %v8850_v13  ;;  %8867 = vst [vmem:[%s20430_s12 + $0x38] sm:$0xff] %v8851_v1 }
0x14d1   :  { %8868 = vst [vmem:[%s20430_s12 + $0x40] sm:$0xff] %v8852_v26  ;;  %8869 = vst [vmem:[%s20430_s12 + $0x48] sm:$0xff] %v8853_v32 }
0x14d2   :  { %8870 = vst [vmem:[%s20430_s12 + $0x50] sm:$0xff] %v8854_v29  ;;  %8871 = vst [vmem:[%s20430_s12 + $0x58] sm:$0xff] %v8855_v9 }
0x14d3   :  { %8872 = vst [vmem:[%s20430_s12 + $0x60] sm:$0xff] %v8856_v23  ;;  %8873 = vst [vmem:[%s20430_s12 + $0x68] sm:$0xff] %v8857_v3 }
0x14d4   :  { %8874 = vst [vmem:[%s20430_s12 + $0x70] sm:$0xff] %v8858_v35  ;;  %8875 = vst [vmem:[%s20430_s12 + $0x78] sm:$0xff] %v8859_v59 }

</bundles_post_ra>
